<compile_context>
chip_gen: v6e
topology: v6e:2x2x1
jax: 0.10.0
libtpu: 0.0.40
codegen_flags: <defaults>
</compile_context>

<pallas_src>
import jax
import jax.numpy as jnp
from jax import lax
from jax.experimental import pallas as pl
from jax.experimental.pallas import tpu as pltpu

H = 100        # true hidden size (nn.LSTM(hidden_size=100))
HP = 128       # lane-padded hidden size used inside the kernel
OUTP = 128     # lane-dense padded output width (>= 3*dof); sliced in wrapper
_GATE_PERM = (0, 1, 3, 2)   # PyTorch gate order i,f,g,o  ->  kernel order i,f,o,g


# ----------------------------- Pallas kernel --------------------------------
def _phylstm_kernel(x_ref, wih1_ref, whh1_ref, b1_ref,
                    wcat2_ref, b2_ref, wcat3_ref, b3_ref,
                    wdf_ref, bdf_ref,
                    out_ref, g1_scr):
    # Shapes (all f32):
    #   x_ref (T,B,1)   wih1_ref (1,4*HP)   whh1_ref (HP,4*HP)   b*_ref (1,4*HP)
    #   wcat*_ref (2*HP,4*HP)   wdf_ref (HP,OUTP)   bdf_ref (1,OUTP)
    #   out_ref (T,B,OUTP)      g1_scr (T,B,4*HP) VMEM scratch
    #
    # NOTE: the HP-padding is exact ONLY because the padded columns of every
    # weight/bias are exactly zero (then padded gate pre-activations are 0, so
    # c_pad stays 0 and h_pad = sigmoid(0)*tanh(0) = 0).  _prep_params
    # guarantees this; keep it that way when editing dtypes / fusions.
    T = x_ref.shape[0]
    B = x_ref.shape[1]

    # Layer-1 gate inputs depend only on x: compute them for every timestep
    # up-front (bias folded in) -- pure VPU work off the recurrence chain.
    g1_scr[...] = x_ref[...] * wih1_ref[...] + b1_ref[...]

    # Hoist only the small biases; the big weight matrices are re-read from
    # their VMEM refs next to each matmul so they never stay live in vregs.
    b2 = b2_ref[...]
    b3 = b3_ref[...]
    bdf = bdf_ref[...]

    def cell(gates, c):
        # gate layout: [i | f | o | g], each HP lanes wide
        sig = jax.nn.sigmoid(gates[:, :3 * HP])
        i = sig[:, 0 * HP:1 * HP]
        f = sig[:, 1 * HP:2 * HP]
        o = sig[:, 2 * HP:3 * HP]
        g = jnp.tanh(gates[:, 3 * HP:4 * HP])
        c_new = f * c + i * g
        h_new = o * jnp.tanh(c_new)
        return h_new, c_new

    zst = jnp.zeros((B, HP), jnp.float32)   # h0 = c0 = 0 (nn.LSTM default)
    h1 = c1 = h2 = c2 = h3 = c3 = zst

    # T is small and static: fully unroll so MXU/EUP latencies of consecutive
    # timesteps can overlap.
    for t in range(T):
        # layer 1: recurrent matmul only (input part precomputed above)
        gates1 = g1_scr[t] + jnp.dot(h1, whh1_ref[...],
                                     preferred_element_type=jnp.float32)
        h1, c1 = cell(gates1, c1)
        a1 = jnp.maximum(h1, 0.0)

        # layer 2: fused input+recurrent matmul, K = 2*HP = 256
        gates2 = jnp.dot(jnp.concatenate([a1, h2], axis=-1), wcat2_ref[...],
                         preferred_element_type=jnp.float32) + b2
        h2, c2 = cell(gates2, c2)
        a2 = jnp.maximum(h2, 0.0)

        # layer 3: fused input+recurrent matmul, K = 2*HP = 256
        gates3 = jnp.dot(jnp.concatenate([a2, h3], axis=-1), wcat3_ref[...],
                         preferred_element_type=jnp.float32) + b3
        h3, c3 = cell(gates3, c3)
        a3 = jnp.maximum(h3, 0.0)

        # dense1+dense2 pre-composed offline; OUTP=128 keeps the store
        # lane-dense (no masked partial stores).
        out_ref[t] = jnp.dot(a3, wdf_ref[...],
                             preferred_element_type=jnp.float32) + bdf


# ------------------------- parameter preparation ----------------------------
def _pad_gate_cols(w_t):
    """(in_dim, 4*H) in PyTorch gate order (i,f,g,o) ->
       (in_dim, 4*HP) in kernel order (i,f,o,g), each gate zero-padded H->HP."""
    in_dim = w_t.shape[0]
    w4 = w_t.reshape(in_dim, 4, H)[:, _GATE_PERM, :]
    out = jnp.zeros((in_dim, 4, HP), w_t.dtype).at[:, :, :H].set(w4)
    return out.reshape(in_dim, 4 * HP)


def _pad_rows(w, rows):
    return jnp.zeros((rows, w.shape[1]), w.dtype).at[:w.shape[0], :].set(w)


def _prep_lstm(w_ih, w_hh, b_ih, b_hh, fuse_input):
    wi = _pad_gate_cols(jnp.transpose(w_ih))                  # (in, 4*HP)
    wh = _pad_rows(_pad_gate_cols(jnp.transpose(w_hh)), HP)   # (HP, 4*HP)
    b = _pad_gate_cols((b_ih + b_hh).reshape(1, 4 * H))       # (1, 4*HP)
    if fuse_input:
        # gates = concat([a_prev, h], -1) @ wcat + b   with K = 2*HP
        wcat = jnp.concatenate([_pad_rows(wi, HP), wh], axis=0)  # (2*HP, 4*HP)
        return wcat, b
    return wi, wh, b


def _prep_params(p, dof):
    hi = lax.Precision.HIGHEST
    wi1, wh1, b1 = _prep_lstm(p["w_ih1"], p["w_hh1"], p["b_ih1"], p["b_hh1"], False)
    wc2, b2 = _prep_lstm(p["w_ih2"], p["w_hh2"], p["b_ih2"], p["b_hh2"], True)
    wc3, b3 = _prep_lstm(p["w_ih3"], p["w_hh3"], p["b_ih3"], p["b_hh3"], True)
    # dense1 -> dense2 has no nonlinearity in between: compose offline (f32,
    # highest precision so the composition itself adds no error).
    wdf_t = jnp.dot(jnp.transpose(p["wd1"]), jnp.transpose(p["wd2"]), precision=hi)
    bdf_t = jnp.dot(p["bd1"], jnp.transpose(p["wd2"]), precision=hi) + p["bd2"]
    wdf = jnp.zeros((HP, OUTP), jnp.float32).at[:H, :3 * dof].set(wdf_t)
    bdf = jnp.zeros((1, OUTP), jnp.float32).at[0, :3 * dof].set(bdf_t)
    return (wi1, wh1, b1, wc2, b2, wc3, b3, wdf, bdf)


# ------------------------------ wrapper --------------------------------------
def phylstm_forward(x, params, dof):
    """x: (B, T, 1) float32 -> (B, T, 3*dof) float32."""
    B, T, _ = x.shape
    x_tm = jnp.transpose(x, (1, 0, 2)).astype(jnp.float32)    # (T, B, 1)
    ops = _prep_params(params, dof)
    out = pl.pallas_call(
        _phylstm_kernel,
        out_shape=jax.ShapeDtypeStruct((T, B, OUTP), jnp.float32),
        scratch_shapes=[pltpu.VMEM((T, B, 4 * HP), jnp.float32)],
    )(x_tm, *ops)
    # TODO(synk): on v7x the independent batch sequences could be split across
    # the 2 TensorCores (grid=(B,), dimension_semantics=("parallel",)); for
    # large T, chunk the time axis with BlockSpecs and carry h/c in scratch.
    return jnp.transpose(out[:, :, :3 * dof], (1, 0, 2))      # (B, T, 3*dof)


# --------------------------- pure-JAX reference ------------------------------
def _lstm_layer_ref(x, w_ih, w_hh, b_ih, b_hh):
    B = x.shape[0]
    hid = w_hh.shape[1]

    def cell(carry, x_t):
        h, c = carry
        gates = (x_t @ w_ih.T + h @ w_hh.T + b_ih + b_hh)
        i, f, g, o = jnp.split(gates, 4, axis=-1)
        i = jax.nn.sigmoid(i); f = jax.nn.sigmoid(f)
        g = jnp.tanh(g); o = jax.nn.sigmoid(o)
        c = f * c + i * g
        h = o * jnp.tanh(c)
        return (h, c), h

    h0 = jnp.zeros((B, hid), jnp.float32)
    c0 = jnp.zeros((B, hid), jnp.float32)
    _, hs = lax.scan(cell, (h0, c0), jnp.swapaxes(x, 0, 1))
    return jnp.swapaxes(hs, 0, 1)


def _forward_ref(x, p):
    with jax.default_matmul_precision("highest"):
        y = _lstm_layer_ref(x, p["w_ih1"], p["w_hh1"], p["b_ih1"], p["b_hh1"])
        y = jnp.maximum(y, 0.0)
        y = _lstm_layer_ref(y, p["w_ih2"], p["w_hh2"], p["b_ih2"], p["b_hh2"])
        y = jnp.maximum(y, 0.0)
        y = _lstm_layer_ref(y, p["w_ih3"], p["w_hh3"], p["b_ih3"], p["b_hh3"])
        y = jnp.maximum(y, 0.0)
        y = y @ p["wd1"].T + p["bd1"]
        y = y @ p["wd2"].T + p["bd2"]
    return y


# ------------------------------- main ----------------------------------------
if __name__ == "__main__":
    dof = 2
    B, T = 2, 8

    key = jax.random.PRNGKey(0)
    ks = jax.random.split(key, 16)
    k_init = 1.0 / jnp.sqrt(jnp.float32(H))   # PyTorch default init bound

    def u(k, shape):
        return jax.random.uniform(k, shape, jnp.float32, -k_init, k_init)

    params = {
        # LSTM 1 (input_size=1)
        "w_ih1": u(ks[0], (4 * H, 1)),   "w_hh1": u(ks[1], (4 * H, H)),
        "b_ih1": u(ks[2], (4 * H,)),     "b_hh1": u(ks[3], (4 * H,)),
        # LSTM 2
        "w_ih2": u(ks[4], (4 * H, H)),   "w_hh2": u(ks[5], (4 * H, H)),
        "b_ih2": u(ks[6], (4 * H,)),     "b_hh2": u(ks[7], (4 * H,)),
        # LSTM 3
        "w_ih3": u(ks[8], (4 * H, H)),   "w_hh3": u(ks[9], (4 * H, H)),
        "b_ih3": u(ks[10], (4 * H,)),    "b_hh3": u(ks[11], (4 * H,)),
        # dense1: 100 -> 100, dense2: 100 -> 3*dof
        "wd1": u(ks[12], (H, H)),        "bd1": u(ks[13], (H,)),
        "wd2": u(ks[14], (3 * dof, H)),  "bd2": u(ks[15], (3 * dof,)),
    }

    x = jax.random.normal(jax.random.PRNGKey(42), (B, T, 1), jnp.float32)

    out = phylstm_forward(x, params, dof)
    out = jax.block_until_ready(out)

    ref = jax.block_until_ready(_forward_ref(x, params))

    assert out.shape == (B, T, 3 * dof), out.shape
    assert jnp.allclose(out, ref, rtol=1e-3, atol=2e-3), (
        float(jnp.max(jnp.abs(out - ref))))

    print("KERNEL_OK")
</pallas_src>

<mosaic_0001>
module attributes {stable_mosaic.version = 11 : i64} {
  func.func @_phylstm_kernel(%arg0: memref<8x2x1xf32, #tpu.memory_space<vmem>>, %arg1: memref<1x512xf32, #tpu.memory_space<vmem>>, %arg2: memref<128x512xf32, #tpu.memory_space<vmem>>, %arg3: memref<1x512xf32, #tpu.memory_space<vmem>>, %arg4: memref<256x512xf32, #tpu.memory_space<vmem>>, %arg5: memref<1x512xf32, #tpu.memory_space<vmem>>, %arg6: memref<256x512xf32, #tpu.memory_space<vmem>>, %arg7: memref<1x512xf32, #tpu.memory_space<vmem>>, %arg8: memref<128x128xf32, #tpu.memory_space<vmem>>, %arg9: memref<1x128xf32, #tpu.memory_space<vmem>>, %arg10: memref<8x2x128xf32, #tpu.memory_space<vmem>>, %arg11: memref<8x2x512xf32, #tpu.memory_space<vmem>>) attributes {dimension_semantics = [], scalar_prefetch = 0 : i64, scratch_operands = 1 : i64, tpu.core_type = #tpu.core_type<tc>} {
    %c0 = arith.constant 0 : index
    %c0_0 = arith.constant 0 : index
    %c0_1 = arith.constant 0 : index
    %0 = vector.load %arg0[%c0, %c0_0, %c0_1] : memref<8x2x1xf32, #tpu.memory_space<vmem>>, vector<8x2x1xf32>
    %c0_2 = arith.constant 0 : index
    %c0_3 = arith.constant 0 : index
    %1 = vector.load %arg1[%c0_2, %c0_3] : memref<1x512xf32, #tpu.memory_space<vmem>>, vector<1x512xf32>
    %2 = vector.shape_cast %1 : vector<1x512xf32> to vector<1x1x512xf32>
    %3 = vector.broadcast %0 : vector<8x2x1xf32> to vector<8x2x512xf32>
    %4 = vector.broadcast %2 : vector<1x1x512xf32> to vector<8x2x512xf32>
    %5 = arith.mulf %3, %4 : vector<8x2x512xf32>
    %c0_4 = arith.constant 0 : index
    %c0_5 = arith.constant 0 : index
    %6 = vector.load %arg3[%c0_4, %c0_5] : memref<1x512xf32, #tpu.memory_space<vmem>>, vector<1x512xf32>
    %7 = vector.shape_cast %6 : vector<1x512xf32> to vector<1x1x512xf32>
    %8 = vector.broadcast %7 : vector<1x1x512xf32> to vector<8x2x512xf32>
    %9 = arith.addf %5, %8 : vector<8x2x512xf32>
    %c0_6 = arith.constant 0 : index
    %c0_7 = arith.constant 0 : index
    %c0_8 = arith.constant 0 : index
    %10 = vector.load %arg11[%c0_6, %c0_7, %c0_8] : memref<8x2x512xf32, #tpu.memory_space<vmem>>, vector<8x2x512xf32>
    tpu.vector_store %arg11[%c0_6, %c0_7, %c0_8], %9 {strides = array<i32>} : memref<8x2x512xf32, #tpu.memory_space<vmem>>, vector<8x2x512xf32>,
    %c0_9 = arith.constant 0 : index
    %c0_10 = arith.constant 0 : index
    %11 = vector.load %arg5[%c0_9, %c0_10] : memref<1x512xf32, #tpu.memory_space<vmem>>, vector<1x512xf32>
    %c0_11 = arith.constant 0 : index
    %c0_12 = arith.constant 0 : index
    %12 = vector.load %arg7[%c0_11, %c0_12] : memref<1x512xf32, #tpu.memory_space<vmem>>, vector<1x512xf32>
    %c0_13 = arith.constant 0 : index
    %c0_14 = arith.constant 0 : index
    %13 = vector.load %arg9[%c0_13, %c0_14] : memref<1x128xf32, #tpu.memory_space<vmem>>, vector<1x128xf32>
    %cst = arith.constant 0.000000e+00 : f32
    %14 = vector.broadcast %cst : f32 to vector<2x128xf32>
    %c0_15 = arith.constant 0 : index
    %c0_16 = arith.constant 0 : index
    %c0_17 = arith.constant 0 : index
    %15 = vector.load %arg11[%c0_15, %c0_16, %c0_17] : memref<8x2x512xf32, #tpu.memory_space<vmem>>, vector<1x2x512xf32>
    %16 = vector.shape_cast %15 : vector<1x2x512xf32> to vector<2x512xf32>
    %c0_18 = arith.constant 0 : index
    %c0_19 = arith.constant 0 : index
    %17 = vector.load %arg2[%c0_18, %c0_19] : memref<128x512xf32, #tpu.memory_space<vmem>>, vector<128x512xf32>
    %cst_20 = arith.constant dense<0.000000e+00> : vector<2x512xf32>
    %18 = tpu.matmul %14, %17, %cst_20 {dimension_numbers = #tpu.dot_dimension_numbers<[1], [0], [0], [1], [0, 0, 1, 1], [], []>} : vector<2x128xf32>, vector<128x512xf32>, vector<2x512xf32> -> vector<2x512xf32>
    %19 = arith.addf %16, %18 : vector<2x512xf32>
    %20 = vector.extract_strided_slice %19 {offsets = [0, 0], sizes = [2, 384], strides = [1, 1]} : vector<2x512xf32> to vector<2x384xf32>
    %21 = arith.negf %20 : vector<2x384xf32>
    %22 = math.exp %21 : vector<2x384xf32>
    %cst_21 = arith.constant 1.000000e+00 : f32
    %23 = vector.broadcast %cst_21 : f32 to vector<2x384xf32>
    %24 = arith.addf %23, %22 : vector<2x384xf32>
    %25 = arith.divf %23, %24 : vector<2x384xf32>
    %26 = vector.extract_strided_slice %25 {offsets = [0, 0], sizes = [2, 128], strides = [1, 1]} : vector<2x384xf32> to vector<2x128xf32>
    %27 = vector.extract_strided_slice %25 {offsets = [0, 128], sizes = [2, 128], strides = [1, 1]} : vector<2x384xf32> to vector<2x128xf32>
    %28 = vector.extract_strided_slice %25 {offsets = [0, 256], sizes = [2, 128], strides = [1, 1]} : vector<2x384xf32> to vector<2x128xf32>
    %29 = vector.extract_strided_slice %19 {offsets = [0, 384], sizes = [2, 128], strides = [1, 1]} : vector<2x512xf32> to vector<2x128xf32>
    %30 = math.tanh %29 : vector<2x128xf32>
    %31 = arith.mulf %27, %14 : vector<2x128xf32>
    %32 = arith.mulf %26, %30 : vector<2x128xf32>
    %33 = arith.addf %31, %32 : vector<2x128xf32>
    %34 = math.tanh %33 : vector<2x128xf32>
    %35 = arith.mulf %28, %34 : vector<2x128xf32>
    %cst_22 = arith.constant 0.000000e+00 : f32
    %36 = vector.broadcast %cst_22 : f32 to vector<2x128xf32>
    %37 = arith.maximumf %35, %36 : vector<2x128xf32>
    %38 = tpu.concatenate %37, %14 in 1 : vector<2x128xf32>, vector<2x128xf32> -> vector<2x256xf32>
    %c0_23 = arith.constant 0 : index
    %c0_24 = arith.constant 0 : index
    %39 = vector.load %arg4[%c0_23, %c0_24] : memref<256x512xf32, #tpu.memory_space<vmem>>, vector<256x512xf32>
    %cst_25 = arith.constant dense<0.000000e+00> : vector<2x512xf32>
    %40 = tpu.matmul %38, %39, %cst_25 {dimension_numbers = #tpu.dot_dimension_numbers<[1], [0], [0], [1], [0, 0, 1, 1], [], []>} : vector<2x256xf32>, vector<256x512xf32>, vector<2x512xf32> -> vector<2x512xf32>
    %41 = vector.broadcast %11 : vector<1x512xf32> to vector<2x512xf32>
    %42 = arith.addf %40, %41 : vector<2x512xf32>
    %43 = vector.extract_strided_slice %42 {offsets = [0, 0], sizes = [2, 384], strides = [1, 1]} : vector<2x512xf32> to vector<2x384xf32>
    %44 = arith.negf %43 : vector<2x384xf32>
    %45 = math.exp %44 : vector<2x384xf32>
    %cst_26 = arith.constant 1.000000e+00 : f32
    %46 = vector.broadcast %cst_26 : f32 to vector<2x384xf32>
    %47 = arith.addf %46, %45 : vector<2x384xf32>
    %48 = arith.divf %46, %47 : vector<2x384xf32>
    %49 = vector.extract_strided_slice %48 {offsets = [0, 0], sizes = [2, 128], strides = [1, 1]} : vector<2x384xf32> to vector<2x128xf32>
    %50 = vector.extract_strided_slice %48 {offsets = [0, 128], sizes = [2, 128], strides = [1, 1]} : vector<2x384xf32> to vector<2x128xf32>
    %51 = vector.extract_strided_slice %48 {offsets = [0, 256], sizes = [2, 128], strides = [1, 1]} : vector<2x384xf32> to vector<2x128xf32>
    %52 = vector.extract_strided_slice %42 {offsets = [0, 384], sizes = [2, 128], strides = [1, 1]} : vector<2x512xf32> to vector<2x128xf32>
    %53 = math.tanh %52 : vector<2x128xf32>
    %54 = arith.mulf %50, %14 : vector<2x128xf32>
    %55 = arith.mulf %49, %53 : vector<2x128xf32>
    %56 = arith.addf %54, %55 : vector<2x128xf32>
    %57 = math.tanh %56 : vector<2x128xf32>
    %58 = arith.mulf %51, %57 : vector<2x128xf32>
    %cst_27 = arith.constant 0.000000e+00 : f32
    %59 = vector.broadcast %cst_27 : f32 to vector<2x128xf32>
    %60 = arith.maximumf %58, %59 : vector<2x128xf32>
    %61 = tpu.concatenate %60, %14 in 1 : vector<2x128xf32>, vector<2x128xf32> -> vector<2x256xf32>
    %c0_28 = arith.constant 0 : index
    %c0_29 = arith.constant 0 : index
    %62 = vector.load %arg6[%c0_28, %c0_29] : memref<256x512xf32, #tpu.memory_space<vmem>>, vector<256x512xf32>
    %cst_30 = arith.constant dense<0.000000e+00> : vector<2x512xf32>
    %63 = tpu.matmul %61, %62, %cst_30 {dimension_numbers = #tpu.dot_dimension_numbers<[1], [0], [0], [1], [0, 0, 1, 1], [], []>} : vector<2x256xf32>, vector<256x512xf32>, vector<2x512xf32> -> vector<2x512xf32>
    %64 = vector.broadcast %12 : vector<1x512xf32> to vector<2x512xf32>
    %65 = arith.addf %63, %64 : vector<2x512xf32>
    %66 = vector.extract_strided_slice %65 {offsets = [0, 0], sizes = [2, 384], strides = [1, 1]} : vector<2x512xf32> to vector<2x384xf32>
    %67 = arith.negf %66 : vector<2x384xf32>
    %68 = math.exp %67 : vector<2x384xf32>
    %cst_31 = arith.constant 1.000000e+00 : f32
    %69 = vector.broadcast %cst_31 : f32 to vector<2x384xf32>
    %70 = arith.addf %69, %68 : vector<2x384xf32>
    %71 = arith.divf %69, %70 : vector<2x384xf32>
    %72 = vector.extract_strided_slice %71 {offsets = [0, 0], sizes = [2, 128], strides = [1, 1]} : vector<2x384xf32> to vector<2x128xf32>
    %73 = vector.extract_strided_slice %71 {offsets = [0, 128], sizes = [2, 128], strides = [1, 1]} : vector<2x384xf32> to vector<2x128xf32>
    %74 = vector.extract_strided_slice %71 {offsets = [0, 256], sizes = [2, 128], strides = [1, 1]} : vector<2x384xf32> to vector<2x128xf32>
    %75 = vector.extract_strided_slice %65 {offsets = [0, 384], sizes = [2, 128], strides = [1, 1]} : vector<2x512xf32> to vector<2x128xf32>
    %76 = math.tanh %75 : vector<2x128xf32>
    %77 = arith.mulf %73, %14 : vector<2x128xf32>
    %78 = arith.mulf %72, %76 : vector<2x128xf32>
    %79 = arith.addf %77, %78 : vector<2x128xf32>
    %80 = math.tanh %79 : vector<2x128xf32>
    %81 = arith.mulf %74, %80 : vector<2x128xf32>
    %cst_32 = arith.constant 0.000000e+00 : f32
    %82 = vector.broadcast %cst_32 : f32 to vector<2x128xf32>
    %83 = arith.maximumf %81, %82 : vector<2x128xf32>
    %c0_33 = arith.constant 0 : index
    %c0_34 = arith.constant 0 : index
    %84 = vector.load %arg8[%c0_33, %c0_34] : memref<128x128xf32, #tpu.memory_space<vmem>>, vector<128x128xf32>
    %cst_35 = arith.constant dense<0.000000e+00> : vector<2x128xf32>
    %85 = tpu.matmul %83, %84, %cst_35 {dimension_numbers = #tpu.dot_dimension_numbers<[1], [0], [0], [1], [0, 0, 1, 1], [], []>} : vector<2x128xf32>, vector<128x128xf32>, vector<2x128xf32> -> vector<2x128xf32>
    %86 = vector.broadcast %13 : vector<1x128xf32> to vector<2x128xf32>
    %87 = arith.addf %85, %86 : vector<2x128xf32>
    %c0_36 = arith.constant 0 : index
    %c0_37 = arith.constant 0 : index
    %c0_38 = arith.constant 0 : index
    %88 = vector.load %arg10[%c0_36, %c0_37, %c0_38] : memref<8x2x128xf32, #tpu.memory_space<vmem>>, vector<1x2x128xf32>
    %89 = vector.shape_cast %88 : vector<1x2x128xf32> to vector<2x128xf32>
    %90 = vector.shape_cast %87 : vector<2x128xf32> to vector<1x2x128xf32>
    tpu.vector_store %arg10[%c0_36, %c0_37, %c0_38], %90 {strides = array<i32>} : memref<8x2x128xf32, #tpu.memory_space<vmem>>, vector<1x2x128xf32>,
    %c1 = arith.constant 1 : index
    %c0_39 = arith.constant 0 : index
    %c0_40 = arith.constant 0 : index
    %91 = vector.load %arg11[%c1, %c0_39, %c0_40] : memref<8x2x512xf32, #tpu.memory_space<vmem>>, vector<1x2x512xf32>
    %92 = vector.shape_cast %91 : vector<1x2x512xf32> to vector<2x512xf32>
    %c0_41 = arith.constant 0 : index
    %c0_42 = arith.constant 0 : index
    %93 = vector.load %arg2[%c0_41, %c0_42] : memref<128x512xf32, #tpu.memory_space<vmem>>, vector<128x512xf32>
    %cst_43 = arith.constant dense<0.000000e+00> : vector<2x512xf32>
    %94 = tpu.matmul %35, %93, %cst_43 {dimension_numbers = #tpu.dot_dimension_numbers<[1], [0], [0], [1], [0, 0, 1, 1], [], []>} : vector<2x128xf32>, vector<128x512xf32>, vector<2x512xf32> -> vector<2x512xf32>
    %95 = arith.addf %92, %94 : vector<2x512xf32>
    %96 = vector.extract_strided_slice %95 {offsets = [0, 0], sizes = [2, 384], strides = [1, 1]} : vector<2x512xf32> to vector<2x384xf32>
    %97 = arith.negf %96 : vector<2x384xf32>
    %98 = math.exp %97 : vector<2x384xf32>
    %cst_44 = arith.constant 1.000000e+00 : f32
    %99 = vector.broadcast %cst_44 : f32 to vector<2x384xf32>
    %100 = arith.addf %99, %98 : vector<2x384xf32>
    %101 = arith.divf %99, %100 : vector<2x384xf32>
    %102 = vector.extract_strided_slice %101 {offsets = [0, 0], sizes = [2, 128], strides = [1, 1]} : vector<2x384xf32> to vector<2x128xf32>
    %103 = vector.extract_strided_slice %101 {offsets = [0, 128], sizes = [2, 128], strides = [1, 1]} : vector<2x384xf32> to vector<2x128xf32>
    %104 = vector.extract_strided_slice %101 {offsets = [0, 256], sizes = [2, 128], strides = [1, 1]} : vector<2x384xf32> to vector<2x128xf32>
    %105 = vector.extract_strided_slice %95 {offsets = [0, 384], sizes = [2, 128], strides = [1, 1]} : vector<2x512xf32> to vector<2x128xf32>
    %106 = math.tanh %105 : vector<2x128xf32>
    %107 = arith.mulf %103, %33 : vector<2x128xf32>
    %108 = arith.mulf %102, %106 : vector<2x128xf32>
    %109 = arith.addf %107, %108 : vector<2x128xf32>
    %110 = math.tanh %109 : vector<2x128xf32>
    %111 = arith.mulf %104, %110 : vector<2x128xf32>
    %cst_45 = arith.constant 0.000000e+00 : f32
    %112 = vector.broadcast %cst_45 : f32 to vector<2x128xf32>
    %113 = arith.maximumf %111, %112 : vector<2x128xf32>
    %114 = tpu.concatenate %113, %58 in 1 : vector<2x128xf32>, vector<2x128xf32> -> vector<2x256xf32>
    %c0_46 = arith.constant 0 : index
    %c0_47 = arith.constant 0 : index
    %115 = vector.load %arg4[%c0_46, %c0_47] : memref<256x512xf32, #tpu.memory_space<vmem>>, vector<256x512xf32>
    %cst_48 = arith.constant dense<0.000000e+00> : vector<2x512xf32>
    %116 = tpu.matmul %114, %115, %cst_48 {dimension_numbers = #tpu.dot_dimension_numbers<[1], [0], [0], [1], [0, 0, 1, 1], [], []>} : vector<2x256xf32>, vector<256x512xf32>, vector<2x512xf32> -> vector<2x512xf32>
    %117 = vector.broadcast %11 : vector<1x512xf32> to vector<2x512xf32>
    %118 = arith.addf %116, %117 : vector<2x512xf32>
    %119 = vector.extract_strided_slice %118 {offsets = [0, 0], sizes = [2, 384], strides = [1, 1]} : vector<2x512xf32> to vector<2x384xf32>
    %120 = arith.negf %119 : vector<2x384xf32>
    %121 = math.exp %120 : vector<2x384xf32>
    %cst_49 = arith.constant 1.000000e+00 : f32
    %122 = vector.broadcast %cst_49 : f32 to vector<2x384xf32>
    %123 = arith.addf %122, %121 : vector<2x384xf32>
    %124 = arith.divf %122, %123 : vector<2x384xf32>
    %125 = vector.extract_strided_slice %124 {offsets = [0, 0], sizes = [2, 128], strides = [1, 1]} : vector<2x384xf32> to vector<2x128xf32>
    %126 = vector.extract_strided_slice %124 {offsets = [0, 128], sizes = [2, 128], strides = [1, 1]} : vector<2x384xf32> to vector<2x128xf32>
    %127 = vector.extract_strided_slice %124 {offsets = [0, 256], sizes = [2, 128], strides = [1, 1]} : vector<2x384xf32> to vector<2x128xf32>
    %128 = vector.extract_strided_slice %118 {offsets = [0, 384], sizes = [2, 128], strides = [1, 1]} : vector<2x512xf32> to vector<2x128xf32>
    %129 = math.tanh %128 : vector<2x128xf32>
    %130 = arith.mulf %126, %56 : vector<2x128xf32>
    %131 = arith.mulf %125, %129 : vector<2x128xf32>
    %132 = arith.addf %130, %131 : vector<2x128xf32>
    %133 = math.tanh %132 : vector<2x128xf32>
    %134 = arith.mulf %127, %133 : vector<2x128xf32>
    %cst_50 = arith.constant 0.000000e+00 : f32
    %135 = vector.broadcast %cst_50 : f32 to vector<2x128xf32>
    %136 = arith.maximumf %134, %135 : vector<2x128xf32>
    %137 = tpu.concatenate %136, %81 in 1 : vector<2x128xf32>, vector<2x128xf32> -> vector<2x256xf32>
    %c0_51 = arith.constant 0 : index
    %c0_52 = arith.constant 0 : index
    %138 = vector.load %arg6[%c0_51, %c0_52] : memref<256x512xf32, #tpu.memory_space<vmem>>, vector<256x512xf32>
    %cst_53 = arith.constant dense<0.000000e+00> : vector<2x512xf32>
    %139 = tpu.matmul %137, %138, %cst_53 {dimension_numbers = #tpu.dot_dimension_numbers<[1], [0], [0], [1], [0, 0, 1, 1], [], []>} : vector<2x256xf32>, vector<256x512xf32>, vector<2x512xf32> -> vector<2x512xf32>
    %140 = vector.broadcast %12 : vector<1x512xf32> to vector<2x512xf32>
    %141 = arith.addf %139, %140 : vector<2x512xf32>
    %142 = vector.extract_strided_slice %141 {offsets = [0, 0], sizes = [2, 384], strides = [1, 1]} : vector<2x512xf32> to vector<2x384xf32>
    %143 = arith.negf %142 : vector<2x384xf32>
    %144 = math.exp %143 : vector<2x384xf32>
    %cst_54 = arith.constant 1.000000e+00 : f32
    %145 = vector.broadcast %cst_54 : f32 to vector<2x384xf32>
    %146 = arith.addf %145, %144 : vector<2x384xf32>
    %147 = arith.divf %145, %146 : vector<2x384xf32>
    %148 = vector.extract_strided_slice %147 {offsets = [0, 0], sizes = [2, 128], strides = [1, 1]} : vector<2x384xf32> to vector<2x128xf32>
    %149 = vector.extract_strided_slice %147 {offsets = [0, 128], sizes = [2, 128], strides = [1, 1]} : vector<2x384xf32> to vector<2x128xf32>
    %150 = vector.extract_strided_slice %147 {offsets = [0, 256], sizes = [2, 128], strides = [1, 1]} : vector<2x384xf32> to vector<2x128xf32>
    %151 = vector.extract_strided_slice %141 {offsets = [0, 384], sizes = [2, 128], strides = [1, 1]} : vector<2x512xf32> to vector<2x128xf32>
    %152 = math.tanh %151 : vector<2x128xf32>
    %153 = arith.mulf %149, %79 : vector<2x128xf32>
    %154 = arith.mulf %148, %152 : vector<2x128xf32>
    %155 = arith.addf %153, %154 : vector<2x128xf32>
    %156 = math.tanh %155 : vector<2x128xf32>
    %157 = arith.mulf %150, %156 : vector<2x128xf32>
    %cst_55 = arith.constant 0.000000e+00 : f32
    %158 = vector.broadcast %cst_55 : f32 to vector<2x128xf32>
    %159 = arith.maximumf %157, %158 : vector<2x128xf32>
    %c0_56 = arith.constant 0 : index
    %c0_57 = arith.constant 0 : index
    %160 = vector.load %arg8[%c0_56, %c0_57] : memref<128x128xf32, #tpu.memory_space<vmem>>, vector<128x128xf32>
    %cst_58 = arith.constant dense<0.000000e+00> : vector<2x128xf32>
    %161 = tpu.matmul %159, %160, %cst_58 {dimension_numbers = #tpu.dot_dimension_numbers<[1], [0], [0], [1], [0, 0, 1, 1], [], []>} : vector<2x128xf32>, vector<128x128xf32>, vector<2x128xf32> -> vector<2x128xf32>
    %162 = vector.broadcast %13 : vector<1x128xf32> to vector<2x128xf32>
    %163 = arith.addf %161, %162 : vector<2x128xf32>
    %c1_59 = arith.constant 1 : index
    %c0_60 = arith.constant 0 : index
    %c0_61 = arith.constant 0 : index
    %164 = vector.load %arg10[%c1_59, %c0_60, %c0_61] : memref<8x2x128xf32, #tpu.memory_space<vmem>>, vector<1x2x128xf32>
    %165 = vector.shape_cast %164 : vector<1x2x128xf32> to vector<2x128xf32>
    %166 = vector.shape_cast %163 : vector<2x128xf32> to vector<1x2x128xf32>
    tpu.vector_store %arg10[%c1_59, %c0_60, %c0_61], %166 {strides = array<i32>} : memref<8x2x128xf32, #tpu.memory_space<vmem>>, vector<1x2x128xf32>,
    %c2 = arith.constant 2 : index
    %c0_62 = arith.constant 0 : index
    %c0_63 = arith.constant 0 : index
    %167 = vector.load %arg11[%c2, %c0_62, %c0_63] : memref<8x2x512xf32, #tpu.memory_space<vmem>>, vector<1x2x512xf32>
    %168 = vector.shape_cast %167 : vector<1x2x512xf32> to vector<2x512xf32>
    %c0_64 = arith.constant 0 : index
    %c0_65 = arith.constant 0 : index
    %169 = vector.load %arg2[%c0_64, %c0_65] : memref<128x512xf32, #tpu.memory_space<vmem>>, vector<128x512xf32>
    %cst_66 = arith.constant dense<0.000000e+00> : vector<2x512xf32>
    %170 = tpu.matmul %111, %169, %cst_66 {dimension_numbers = #tpu.dot_dimension_numbers<[1], [0], [0], [1], [0, 0, 1, 1], [], []>} : vector<2x128xf32>, vector<128x512xf32>, vector<2x512xf32> -> vector<2x512xf32>
    %171 = arith.addf %168, %170 : vector<2x512xf32>
    %172 = vector.extract_strided_slice %171 {offsets = [0, 0], sizes = [2, 384], strides = [1, 1]} : vector<2x512xf32> to vector<2x384xf32>
    %173 = arith.negf %172 : vector<2x384xf32>
    %174 = math.exp %173 : vector<2x384xf32>
    %cst_67 = arith.constant 1.000000e+00 : f32
    %175 = vector.broadcast %cst_67 : f32 to vector<2x384xf32>
    %176 = arith.addf %175, %174 : vector<2x384xf32>
    %177 = arith.divf %175, %176 : vector<2x384xf32>
    %178 = vector.extract_strided_slice %177 {offsets = [0, 0], sizes = [2, 128], strides = [1, 1]} : vector<2x384xf32> to vector<2x128xf32>
    %179 = vector.extract_strided_slice %177 {offsets = [0, 128], sizes = [2, 128], strides = [1, 1]} : vector<2x384xf32> to vector<2x128xf32>
    %180 = vector.extract_strided_slice %177 {offsets = [0, 256], sizes = [2, 128], strides = [1, 1]} : vector<2x384xf32> to vector<2x128xf32>
    %181 = vector.extract_strided_slice %171 {offsets = [0, 384], sizes = [2, 128], strides = [1, 1]} : vector<2x512xf32> to vector<2x128xf32>
    %182 = math.tanh %181 : vector<2x128xf32>
    %183 = arith.mulf %179, %109 : vector<2x128xf32>
    %184 = arith.mulf %178, %182 : vector<2x128xf32>
    %185 = arith.addf %183, %184 : vector<2x128xf32>
    %186 = math.tanh %185 : vector<2x128xf32>
    %187 = arith.mulf %180, %186 : vector<2x128xf32>
    %cst_68 = arith.constant 0.000000e+00 : f32
    %188 = vector.broadcast %cst_68 : f32 to vector<2x128xf32>
    %189 = arith.maximumf %187, %188 : vector<2x128xf32>
    %190 = tpu.concatenate %189, %134 in 1 : vector<2x128xf32>, vector<2x128xf32> -> vector<2x256xf32>
    %c0_69 = arith.constant 0 : index
    %c0_70 = arith.constant 0 : index
    %191 = vector.load %arg4[%c0_69, %c0_70] : memref<256x512xf32, #tpu.memory_space<vmem>>, vector<256x512xf32>
    %cst_71 = arith.constant dense<0.000000e+00> : vector<2x512xf32>
    %192 = tpu.matmul %190, %191, %cst_71 {dimension_numbers = #tpu.dot_dimension_numbers<[1], [0], [0], [1], [0, 0, 1, 1], [], []>} : vector<2x256xf32>, vector<256x512xf32>, vector<2x512xf32> -> vector<2x512xf32>
    %193 = vector.broadcast %11 : vector<1x512xf32> to vector<2x512xf32>
    %194 = arith.addf %192, %193 : vector<2x512xf32>
    %195 = vector.extract_strided_slice %194 {offsets = [0, 0], sizes = [2, 384], strides = [1, 1]} : vector<2x512xf32> to vector<2x384xf32>
    %196 = arith.negf %195 : vector<2x384xf32>
    %197 = math.exp %196 : vector<2x384xf32>
    %cst_72 = arith.constant 1.000000e+00 : f32
    %198 = vector.broadcast %cst_72 : f32 to vector<2x384xf32>
    %199 = arith.addf %198, %197 : vector<2x384xf32>
    %200 = arith.divf %198, %199 : vector<2x384xf32>
    %201 = vector.extract_strided_slice %200 {offsets = [0, 0], sizes = [2, 128], strides = [1, 1]} : vector<2x384xf32> to vector<2x128xf32>
    %202 = vector.extract_strided_slice %200 {offsets = [0, 128], sizes = [2, 128], strides = [1, 1]} : vector<2x384xf32> to vector<2x128xf32>
    %203 = vector.extract_strided_slice %200 {offsets = [0, 256], sizes = [2, 128], strides = [1, 1]} : vector<2x384xf32> to vector<2x128xf32>
    %204 = vector.extract_strided_slice %194 {offsets = [0, 384], sizes = [2, 128], strides = [1, 1]} : vector<2x512xf32> to vector<2x128xf32>
    %205 = math.tanh %204 : vector<2x128xf32>
    %206 = arith.mulf %202, %132 : vector<2x128xf32>
    %207 = arith.mulf %201, %205 : vector<2x128xf32>
    %208 = arith.addf %206, %207 : vector<2x128xf32>
    %209 = math.tanh %208 : vector<2x128xf32>
    %210 = arith.mulf %203, %209 : vector<2x128xf32>
    %cst_73 = arith.constant 0.000000e+00 : f32
    %211 = vector.broadcast %cst_73 : f32 to vector<2x128xf32>
    %212 = arith.maximumf %210, %211 : vector<2x128xf32>
    %213 = tpu.concatenate %212, %157 in 1 : vector<2x128xf32>, vector<2x128xf32> -> vector<2x256xf32>
    %c0_74 = arith.constant 0 : index
    %c0_75 = arith.constant 0 : index
    %214 = vector.load %arg6[%c0_74, %c0_75] : memref<256x512xf32, #tpu.memory_space<vmem>>, vector<256x512xf32>
    %cst_76 = arith.constant dense<0.000000e+00> : vector<2x512xf32>
    %215 = tpu.matmul %213, %214, %cst_76 {dimension_numbers = #tpu.dot_dimension_numbers<[1], [0], [0], [1], [0, 0, 1, 1], [], []>} : vector<2x256xf32>, vector<256x512xf32>, vector<2x512xf32> -> vector<2x512xf32>
    %216 = vector.broadcast %12 : vector<1x512xf32> to vector<2x512xf32>
    %217 = arith.addf %215, %216 : vector<2x512xf32>
    %218 = vector.extract_strided_slice %217 {offsets = [0, 0], sizes = [2, 384], strides = [1, 1]} : vector<2x512xf32> to vector<2x384xf32>
    %219 = arith.negf %218 : vector<2x384xf32>
    %220 = math.exp %219 : vector<2x384xf32>
    %cst_77 = arith.constant 1.000000e+00 : f32
    %221 = vector.broadcast %cst_77 : f32 to vector<2x384xf32>
    %222 = arith.addf %221, %220 : vector<2x384xf32>
    %223 = arith.divf %221, %222 : vector<2x384xf32>
    %224 = vector.extract_strided_slice %223 {offsets = [0, 0], sizes = [2, 128], strides = [1, 1]} : vector<2x384xf32> to vector<2x128xf32>
    %225 = vector.extract_strided_slice %223 {offsets = [0, 128], sizes = [2, 128], strides = [1, 1]} : vector<2x384xf32> to vector<2x128xf32>
    %226 = vector.extract_strided_slice %223 {offsets = [0, 256], sizes = [2, 128], strides = [1, 1]} : vector<2x384xf32> to vector<2x128xf32>
    %227 = vector.extract_strided_slice %217 {offsets = [0, 384], sizes = [2, 128], strides = [1, 1]} : vector<2x512xf32> to vector<2x128xf32>
    %228 = math.tanh %227 : vector<2x128xf32>
    %229 = arith.mulf %225, %155 : vector<2x128xf32>
    %230 = arith.mulf %224, %228 : vector<2x128xf32>
    %231 = arith.addf %229, %230 : vector<2x128xf32>
    %232 = math.tanh %231 : vector<2x128xf32>
    %233 = arith.mulf %226, %232 : vector<2x128xf32>
    %cst_78 = arith.constant 0.000000e+00 : f32
    %234 = vector.broadcast %cst_78 : f32 to vector<2x128xf32>
    %235 = arith.maximumf %233, %234 : vector<2x128xf32>
    %c0_79 = arith.constant 0 : index
    %c0_80 = arith.constant 0 : index
    %236 = vector.load %arg8[%c0_79, %c0_80] : memref<128x128xf32, #tpu.memory_space<vmem>>, vector<128x128xf32>
    %cst_81 = arith.constant dense<0.000000e+00> : vector<2x128xf32>
    %237 = tpu.matmul %235, %236, %cst_81 {dimension_numbers = #tpu.dot_dimension_numbers<[1], [0], [0], [1], [0, 0, 1, 1], [], []>} : vector<2x128xf32>, vector<128x128xf32>, vector<2x128xf32> -> vector<2x128xf32>
    %238 = vector.broadcast %13 : vector<1x128xf32> to vector<2x128xf32>
    %239 = arith.addf %237, %238 : vector<2x128xf32>
    %c2_82 = arith.constant 2 : index
    %c0_83 = arith.constant 0 : index
    %c0_84 = arith.constant 0 : index
    %240 = vector.load %arg10[%c2_82, %c0_83, %c0_84] : memref<8x2x128xf32, #tpu.memory_space<vmem>>, vector<1x2x128xf32>
    %241 = vector.shape_cast %240 : vector<1x2x128xf32> to vector<2x128xf32>
    %242 = vector.shape_cast %239 : vector<2x128xf32> to vector<1x2x128xf32>
    tpu.vector_store %arg10[%c2_82, %c0_83, %c0_84], %242 {strides = array<i32>} : memref<8x2x128xf32, #tpu.memory_space<vmem>>, vector<1x2x128xf32>,
    %c3 = arith.constant 3 : index
    %c0_85 = arith.constant 0 : index
    %c0_86 = arith.constant 0 : index
    %243 = vector.load %arg11[%c3, %c0_85, %c0_86] : memref<8x2x512xf32, #tpu.memory_space<vmem>>, vector<1x2x512xf32>
    %244 = vector.shape_cast %243 : vector<1x2x512xf32> to vector<2x512xf32>
    %c0_87 = arith.constant 0 : index
    %c0_88 = arith.constant 0 : index
    %245 = vector.load %arg2[%c0_87, %c0_88] : memref<128x512xf32, #tpu.memory_space<vmem>>, vector<128x512xf32>
    %cst_89 = arith.constant dense<0.000000e+00> : vector<2x512xf32>
    %246 = tpu.matmul %187, %245, %cst_89 {dimension_numbers = #tpu.dot_dimension_numbers<[1], [0], [0], [1], [0, 0, 1, 1], [], []>} : vector<2x128xf32>, vector<128x512xf32>, vector<2x512xf32> -> vector<2x512xf32>
    %247 = arith.addf %244, %246 : vector<2x512xf32>
    %248 = vector.extract_strided_slice %247 {offsets = [0, 0], sizes = [2, 384], strides = [1, 1]} : vector<2x512xf32> to vector<2x384xf32>
    %249 = arith.negf %248 : vector<2x384xf32>
    %250 = math.exp %249 : vector<2x384xf32>
    %cst_90 = arith.constant 1.000000e+00 : f32
    %251 = vector.broadcast %cst_90 : f32 to vector<2x384xf32>
    %252 = arith.addf %251, %250 : vector<2x384xf32>
    %253 = arith.divf %251, %252 : vector<2x384xf32>
    %254 = vector.extract_strided_slice %253 {offsets = [0, 0], sizes = [2, 128], strides = [1, 1]} : vector<2x384xf32> to vector<2x128xf32>
    %255 = vector.extract_strided_slice %253 {offsets = [0, 128], sizes = [2, 128], strides = [1, 1]} : vector<2x384xf32> to vector<2x128xf32>
    %256 = vector.extract_strided_slice %253 {offsets = [0, 256], sizes = [2, 128], strides = [1, 1]} : vector<2x384xf32> to vector<2x128xf32>
    %257 = vector.extract_strided_slice %247 {offsets = [0, 384], sizes = [2, 128], strides = [1, 1]} : vector<2x512xf32> to vector<2x128xf32>
    %258 = math.tanh %257 : vector<2x128xf32>
    %259 = arith.mulf %255, %185 : vector<2x128xf32>
    %260 = arith.mulf %254, %258 : vector<2x128xf32>
    %261 = arith.addf %259, %260 : vector<2x128xf32>
    %262 = math.tanh %261 : vector<2x128xf32>
    %263 = arith.mulf %256, %262 : vector<2x128xf32>
    %cst_91 = arith.constant 0.000000e+00 : f32
    %264 = vector.broadcast %cst_91 : f32 to vector<2x128xf32>
    %265 = arith.maximumf %263, %264 : vector<2x128xf32>
    %266 = tpu.concatenate %265, %210 in 1 : vector<2x128xf32>, vector<2x128xf32> -> vector<2x256xf32>
    %c0_92 = arith.constant 0 : index
    %c0_93 = arith.constant 0 : index
    %267 = vector.load %arg4[%c0_92, %c0_93] : memref<256x512xf32, #tpu.memory_space<vmem>>, vector<256x512xf32>
    %cst_94 = arith.constant dense<0.000000e+00> : vector<2x512xf32>
    %268 = tpu.matmul %266, %267, %cst_94 {dimension_numbers = #tpu.dot_dimension_numbers<[1], [0], [0], [1], [0, 0, 1, 1], [], []>} : vector<2x256xf32>, vector<256x512xf32>, vector<2x512xf32> -> vector<2x512xf32>
    %269 = vector.broadcast %11 : vector<1x512xf32> to vector<2x512xf32>
    %270 = arith.addf %268, %269 : vector<2x512xf32>
    %271 = vector.extract_strided_slice %270 {offsets = [0, 0], sizes = [2, 384], strides = [1, 1]} : vector<2x512xf32> to vector<2x384xf32>
    %272 = arith.negf %271 : vector<2x384xf32>
    %273 = math.exp %272 : vector<2x384xf32>
    %cst_95 = arith.constant 1.000000e+00 : f32
    %274 = vector.broadcast %cst_95 : f32 to vector<2x384xf32>
    %275 = arith.addf %274, %273 : vector<2x384xf32>
    %276 = arith.divf %274, %275 : vector<2x384xf32>
    %277 = vector.extract_strided_slice %276 {offsets = [0, 0], sizes = [2, 128], strides = [1, 1]} : vector<2x384xf32> to vector<2x128xf32>
    %278 = vector.extract_strided_slice %276 {offsets = [0, 128], sizes = [2, 128], strides = [1, 1]} : vector<2x384xf32> to vector<2x128xf32>
    %279 = vector.extract_strided_slice %276 {offsets = [0, 256], sizes = [2, 128], strides = [1, 1]} : vector<2x384xf32> to vector<2x128xf32>
    %280 = vector.extract_strided_slice %270 {offsets = [0, 384], sizes = [2, 128], strides = [1, 1]} : vector<2x512xf32> to vector<2x128xf32>
    %281 = math.tanh %280 : vector<2x128xf32>
    %282 = arith.mulf %278, %208 : vector<2x128xf32>
    %283 = arith.mulf %277, %281 : vector<2x128xf32>
    %284 = arith.addf %282, %283 : vector<2x128xf32>
    %285 = math.tanh %284 : vector<2x128xf32>
    %286 = arith.mulf %279, %285 : vector<2x128xf32>
    %cst_96 = arith.constant 0.000000e+00 : f32
    %287 = vector.broadcast %cst_96 : f32 to vector<2x128xf32>
    %288 = arith.maximumf %286, %287 : vector<2x128xf32>
    %289 = tpu.concatenate %288, %233 in 1 : vector<2x128xf32>, vector<2x128xf32> -> vector<2x256xf32>
    %c0_97 = arith.constant 0 : index
    %c0_98 = arith.constant 0 : index
    %290 = vector.load %arg6[%c0_97, %c0_98] : memref<256x512xf32, #tpu.memory_space<vmem>>, vector<256x512xf32>
    %cst_99 = arith.constant dense<0.000000e+00> : vector<2x512xf32>
    %291 = tpu.matmul %289, %290, %cst_99 {dimension_numbers = #tpu.dot_dimension_numbers<[1], [0], [0], [1], [0, 0, 1, 1], [], []>} : vector<2x256xf32>, vector<256x512xf32>, vector<2x512xf32> -> vector<2x512xf32>
    %292 = vector.broadcast %12 : vector<1x512xf32> to vector<2x512xf32>
    %293 = arith.addf %291, %292 : vector<2x512xf32>
    %294 = vector.extract_strided_slice %293 {offsets = [0, 0], sizes = [2, 384], strides = [1, 1]} : vector<2x512xf32> to vector<2x384xf32>
    %295 = arith.negf %294 : vector<2x384xf32>
    %296 = math.exp %295 : vector<2x384xf32>
    %cst_100 = arith.constant 1.000000e+00 : f32
    %297 = vector.broadcast %cst_100 : f32 to vector<2x384xf32>
    %298 = arith.addf %297, %296 : vector<2x384xf32>
    %299 = arith.divf %297, %298 : vector<2x384xf32>
    %300 = vector.extract_strided_slice %299 {offsets = [0, 0], sizes = [2, 128], strides = [1, 1]} : vector<2x384xf32> to vector<2x128xf32>
    %301 = vector.extract_strided_slice %299 {offsets = [0, 128], sizes = [2, 128], strides = [1, 1]} : vector<2x384xf32> to vector<2x128xf32>
    %302 = vector.extract_strided_slice %299 {offsets = [0, 256], sizes = [2, 128], strides = [1, 1]} : vector<2x384xf32> to vector<2x128xf32>
    %303 = vector.extract_strided_slice %293 {offsets = [0, 384], sizes = [2, 128], strides = [1, 1]} : vector<2x512xf32> to vector<2x128xf32>
    %304 = math.tanh %303 : vector<2x128xf32>
    %305 = arith.mulf %301, %231 : vector<2x128xf32>
    %306 = arith.mulf %300, %304 : vector<2x128xf32>
    %307 = arith.addf %305, %306 : vector<2x128xf32>
    %308 = math.tanh %307 : vector<2x128xf32>
    %309 = arith.mulf %302, %308 : vector<2x128xf32>
    %cst_101 = arith.constant 0.000000e+00 : f32
    %310 = vector.broadcast %cst_101 : f32 to vector<2x128xf32>
    %311 = arith.maximumf %309, %310 : vector<2x128xf32>
    %c0_102 = arith.constant 0 : index
    %c0_103 = arith.constant 0 : index
    %312 = vector.load %arg8[%c0_102, %c0_103] : memref<128x128xf32, #tpu.memory_space<vmem>>, vector<128x128xf32>
    %cst_104 = arith.constant dense<0.000000e+00> : vector<2x128xf32>
    %313 = tpu.matmul %311, %312, %cst_104 {dimension_numbers = #tpu.dot_dimension_numbers<[1], [0], [0], [1], [0, 0, 1, 1], [], []>} : vector<2x128xf32>, vector<128x128xf32>, vector<2x128xf32> -> vector<2x128xf32>
    %314 = vector.broadcast %13 : vector<1x128xf32> to vector<2x128xf32>
    %315 = arith.addf %313, %314 : vector<2x128xf32>
    %c3_105 = arith.constant 3 : index
    %c0_106 = arith.constant 0 : index
    %c0_107 = arith.constant 0 : index
    %316 = vector.load %arg10[%c3_105, %c0_106, %c0_107] : memref<8x2x128xf32, #tpu.memory_space<vmem>>, vector<1x2x128xf32>
    %317 = vector.shape_cast %316 : vector<1x2x128xf32> to vector<2x128xf32>
    %318 = vector.shape_cast %315 : vector<2x128xf32> to vector<1x2x128xf32>
    tpu.vector_store %arg10[%c3_105, %c0_106, %c0_107], %318 {strides = array<i32>} : memref<8x2x128xf32, #tpu.memory_space<vmem>>, vector<1x2x128xf32>,
    %c4 = arith.constant 4 : index
    %c0_108 = arith.constant 0 : index
    %c0_109 = arith.constant 0 : index
    %319 = vector.load %arg11[%c4, %c0_108, %c0_109] : memref<8x2x512xf32, #tpu.memory_space<vmem>>, vector<1x2x512xf32>
    %320 = vector.shape_cast %319 : vector<1x2x512xf32> to vector<2x512xf32>
    %c0_110 = arith.constant 0 : index
    %c0_111 = arith.constant 0 : index
    %321 = vector.load %arg2[%c0_110, %c0_111] : memref<128x512xf32, #tpu.memory_space<vmem>>, vector<128x512xf32>
    %cst_112 = arith.constant dense<0.000000e+00> : vector<2x512xf32>
    %322 = tpu.matmul %263, %321, %cst_112 {dimension_numbers = #tpu.dot_dimension_numbers<[1], [0], [0], [1], [0, 0, 1, 1], [], []>} : vector<2x128xf32>, vector<128x512xf32>, vector<2x512xf32> -> vector<2x512xf32>
    %323 = arith.addf %320, %322 : vector<2x512xf32>
    %324 = vector.extract_strided_slice %323 {offsets = [0, 0], sizes = [2, 384], strides = [1, 1]} : vector<2x512xf32> to vector<2x384xf32>
    %325 = arith.negf %324 : vector<2x384xf32>
    %326 = math.exp %325 : vector<2x384xf32>
    %cst_113 = arith.constant 1.000000e+00 : f32
    %327 = vector.broadcast %cst_113 : f32 to vector<2x384xf32>
    %328 = arith.addf %327, %326 : vector<2x384xf32>
    %329 = arith.divf %327, %328 : vector<2x384xf32>
    %330 = vector.extract_strided_slice %329 {offsets = [0, 0], sizes = [2, 128], strides = [1, 1]} : vector<2x384xf32> to vector<2x128xf32>
    %331 = vector.extract_strided_slice %329 {offsets = [0, 128], sizes = [2, 128], strides = [1, 1]} : vector<2x384xf32> to vector<2x128xf32>
    %332 = vector.extract_strided_slice %329 {offsets = [0, 256], sizes = [2, 128], strides = [1, 1]} : vector<2x384xf32> to vector<2x128xf32>
    %333 = vector.extract_strided_slice %323 {offsets = [0, 384], sizes = [2, 128], strides = [1, 1]} : vector<2x512xf32> to vector<2x128xf32>
    %334 = math.tanh %333 : vector<2x128xf32>
    %335 = arith.mulf %331, %261 : vector<2x128xf32>
    %336 = arith.mulf %330, %334 : vector<2x128xf32>
    %337 = arith.addf %335, %336 : vector<2x128xf32>
    %338 = math.tanh %337 : vector<2x128xf32>
    %339 = arith.mulf %332, %338 : vector<2x128xf32>
    %cst_114 = arith.constant 0.000000e+00 : f32
    %340 = vector.broadcast %cst_114 : f32 to vector<2x128xf32>
    %341 = arith.maximumf %339, %340 : vector<2x128xf32>
    %342 = tpu.concatenate %341, %286 in 1 : vector<2x128xf32>, vector<2x128xf32> -> vector<2x256xf32>
    %c0_115 = arith.constant 0 : index
    %c0_116 = arith.constant 0 : index
    %343 = vector.load %arg4[%c0_115, %c0_116] : memref<256x512xf32, #tpu.memory_space<vmem>>, vector<256x512xf32>
    %cst_117 = arith.constant dense<0.000000e+00> : vector<2x512xf32>
    %344 = tpu.matmul %342, %343, %cst_117 {dimension_numbers = #tpu.dot_dimension_numbers<[1], [0], [0], [1], [0, 0, 1, 1], [], []>} : vector<2x256xf32>, vector<256x512xf32>, vector<2x512xf32> -> vector<2x512xf32>
    %345 = vector.broadcast %11 : vector<1x512xf32> to vector<2x512xf32>
    %346 = arith.addf %344, %345 : vector<2x512xf32>
    %347 = vector.extract_strided_slice %346 {offsets = [0, 0], sizes = [2, 384], strides = [1, 1]} : vector<2x512xf32> to vector<2x384xf32>
    %348 = arith.negf %347 : vector<2x384xf32>
    %349 = math.exp %348 : vector<2x384xf32>
    %cst_118 = arith.constant 1.000000e+00 : f32
    %350 = vector.broadcast %cst_118 : f32 to vector<2x384xf32>
    %351 = arith.addf %350, %349 : vector<2x384xf32>
    %352 = arith.divf %350, %351 : vector<2x384xf32>
    %353 = vector.extract_strided_slice %352 {offsets = [0, 0], sizes = [2, 128], strides = [1, 1]} : vector<2x384xf32> to vector<2x128xf32>
    %354 = vector.extract_strided_slice %352 {offsets = [0, 128], sizes = [2, 128], strides = [1, 1]} : vector<2x384xf32> to vector<2x128xf32>
    %355 = vector.extract_strided_slice %352 {offsets = [0, 256], sizes = [2, 128], strides = [1, 1]} : vector<2x384xf32> to vector<2x128xf32>
    %356 = vector.extract_strided_slice %346 {offsets = [0, 384], sizes = [2, 128], strides = [1, 1]} : vector<2x512xf32> to vector<2x128xf32>
    %357 = math.tanh %356 : vector<2x128xf32>
    %358 = arith.mulf %354, %284 : vector<2x128xf32>
    %359 = arith.mulf %353, %357 : vector<2x128xf32>
    %360 = arith.addf %358, %359 : vector<2x128xf32>
    %361 = math.tanh %360 : vector<2x128xf32>
    %362 = arith.mulf %355, %361 : vector<2x128xf32>
    %cst_119 = arith.constant 0.000000e+00 : f32
    %363 = vector.broadcast %cst_119 : f32 to vector<2x128xf32>
    %364 = arith.maximumf %362, %363 : vector<2x128xf32>
    %365 = tpu.concatenate %364, %309 in 1 : vector<2x128xf32>, vector<2x128xf32> -> vector<2x256xf32>
    %c0_120 = arith.constant 0 : index
    %c0_121 = arith.constant 0 : index
    %366 = vector.load %arg6[%c0_120, %c0_121] : memref<256x512xf32, #tpu.memory_space<vmem>>, vector<256x512xf32>
    %cst_122 = arith.constant dense<0.000000e+00> : vector<2x512xf32>
    %367 = tpu.matmul %365, %366, %cst_122 {dimension_numbers = #tpu.dot_dimension_numbers<[1], [0], [0], [1], [0, 0, 1, 1], [], []>} : vector<2x256xf32>, vector<256x512xf32>, vector<2x512xf32> -> vector<2x512xf32>
    %368 = vector.broadcast %12 : vector<1x512xf32> to vector<2x512xf32>
    %369 = arith.addf %367, %368 : vector<2x512xf32>
    %370 = vector.extract_strided_slice %369 {offsets = [0, 0], sizes = [2, 384], strides = [1, 1]} : vector<2x512xf32> to vector<2x384xf32>
    %371 = arith.negf %370 : vector<2x384xf32>
    %372 = math.exp %371 : vector<2x384xf32>
    %cst_123 = arith.constant 1.000000e+00 : f32
    %373 = vector.broadcast %cst_123 : f32 to vector<2x384xf32>
    %374 = arith.addf %373, %372 : vector<2x384xf32>
    %375 = arith.divf %373, %374 : vector<2x384xf32>
    %376 = vector.extract_strided_slice %375 {offsets = [0, 0], sizes = [2, 128], strides = [1, 1]} : vector<2x384xf32> to vector<2x128xf32>
    %377 = vector.extract_strided_slice %375 {offsets = [0, 128], sizes = [2, 128], strides = [1, 1]} : vector<2x384xf32> to vector<2x128xf32>
    %378 = vector.extract_strided_slice %375 {offsets = [0, 256], sizes = [2, 128], strides = [1, 1]} : vector<2x384xf32> to vector<2x128xf32>
    %379 = vector.extract_strided_slice %369 {offsets = [0, 384], sizes = [2, 128], strides = [1, 1]} : vector<2x512xf32> to vector<2x128xf32>
    %380 = math.tanh %379 : vector<2x128xf32>
    %381 = arith.mulf %377, %307 : vector<2x128xf32>
    %382 = arith.mulf %376, %380 : vector<2x128xf32>
    %383 = arith.addf %381, %382 : vector<2x128xf32>
    %384 = math.tanh %383 : vector<2x128xf32>
    %385 = arith.mulf %378, %384 : vector<2x128xf32>
    %cst_124 = arith.constant 0.000000e+00 : f32
    %386 = vector.broadcast %cst_124 : f32 to vector<2x128xf32>
    %387 = arith.maximumf %385, %386 : vector<2x128xf32>
    %c0_125 = arith.constant 0 : index
    %c0_126 = arith.constant 0 : index
    %388 = vector.load %arg8[%c0_125, %c0_126] : memref<128x128xf32, #tpu.memory_space<vmem>>, vector<128x128xf32>
    %cst_127 = arith.constant dense<0.000000e+00> : vector<2x128xf32>
    %389 = tpu.matmul %387, %388, %cst_127 {dimension_numbers = #tpu.dot_dimension_numbers<[1], [0], [0], [1], [0, 0, 1, 1], [], []>} : vector<2x128xf32>, vector<128x128xf32>, vector<2x128xf32> -> vector<2x128xf32>
    %390 = vector.broadcast %13 : vector<1x128xf32> to vector<2x128xf32>
    %391 = arith.addf %389, %390 : vector<2x128xf32>
    %c4_128 = arith.constant 4 : index
    %c0_129 = arith.constant 0 : index
    %c0_130 = arith.constant 0 : index
    %392 = vector.load %arg10[%c4_128, %c0_129, %c0_130] : memref<8x2x128xf32, #tpu.memory_space<vmem>>, vector<1x2x128xf32>
    %393 = vector.shape_cast %392 : vector<1x2x128xf32> to vector<2x128xf32>
    %394 = vector.shape_cast %391 : vector<2x128xf32> to vector<1x2x128xf32>
    tpu.vector_store %arg10[%c4_128, %c0_129, %c0_130], %394 {strides = array<i32>} : memref<8x2x128xf32, #tpu.memory_space<vmem>>, vector<1x2x128xf32>,
    %c5 = arith.constant 5 : index
    %c0_131 = arith.constant 0 : index
    %c0_132 = arith.constant 0 : index
    %395 = vector.load %arg11[%c5, %c0_131, %c0_132] : memref<8x2x512xf32, #tpu.memory_space<vmem>>, vector<1x2x512xf32>
    %396 = vector.shape_cast %395 : vector<1x2x512xf32> to vector<2x512xf32>
    %c0_133 = arith.constant 0 : index
    %c0_134 = arith.constant 0 : index
    %397 = vector.load %arg2[%c0_133, %c0_134] : memref<128x512xf32, #tpu.memory_space<vmem>>, vector<128x512xf32>
    %cst_135 = arith.constant dense<0.000000e+00> : vector<2x512xf32>
    %398 = tpu.matmul %339, %397, %cst_135 {dimension_numbers = #tpu.dot_dimension_numbers<[1], [0], [0], [1], [0, 0, 1, 1], [], []>} : vector<2x128xf32>, vector<128x512xf32>, vector<2x512xf32> -> vector<2x512xf32>
    %399 = arith.addf %396, %398 : vector<2x512xf32>
    %400 = vector.extract_strided_slice %399 {offsets = [0, 0], sizes = [2, 384], strides = [1, 1]} : vector<2x512xf32> to vector<2x384xf32>
    %401 = arith.negf %400 : vector<2x384xf32>
    %402 = math.exp %401 : vector<2x384xf32>
    %cst_136 = arith.constant 1.000000e+00 : f32
    %403 = vector.broadcast %cst_136 : f32 to vector<2x384xf32>
    %404 = arith.addf %403, %402 : vector<2x384xf32>
    %405 = arith.divf %403, %404 : vector<2x384xf32>
    %406 = vector.extract_strided_slice %405 {offsets = [0, 0], sizes = [2, 128], strides = [1, 1]} : vector<2x384xf32> to vector<2x128xf32>
    %407 = vector.extract_strided_slice %405 {offsets = [0, 128], sizes = [2, 128], strides = [1, 1]} : vector<2x384xf32> to vector<2x128xf32>
    %408 = vector.extract_strided_slice %405 {offsets = [0, 256], sizes = [2, 128], strides = [1, 1]} : vector<2x384xf32> to vector<2x128xf32>
    %409 = vector.extract_strided_slice %399 {offsets = [0, 384], sizes = [2, 128], strides = [1, 1]} : vector<2x512xf32> to vector<2x128xf32>
    %410 = math.tanh %409 : vector<2x128xf32>
    %411 = arith.mulf %407, %337 : vector<2x128xf32>
    %412 = arith.mulf %406, %410 : vector<2x128xf32>
    %413 = arith.addf %411, %412 : vector<2x128xf32>
    %414 = math.tanh %413 : vector<2x128xf32>
    %415 = arith.mulf %408, %414 : vector<2x128xf32>
    %cst_137 = arith.constant 0.000000e+00 : f32
    %416 = vector.broadcast %cst_137 : f32 to vector<2x128xf32>
    %417 = arith.maximumf %415, %416 : vector<2x128xf32>
    %418 = tpu.concatenate %417, %362 in 1 : vector<2x128xf32>, vector<2x128xf32> -> vector<2x256xf32>
    %c0_138 = arith.constant 0 : index
    %c0_139 = arith.constant 0 : index
    %419 = vector.load %arg4[%c0_138, %c0_139] : memref<256x512xf32, #tpu.memory_space<vmem>>, vector<256x512xf32>
    %cst_140 = arith.constant dense<0.000000e+00> : vector<2x512xf32>
    %420 = tpu.matmul %418, %419, %cst_140 {dimension_numbers = #tpu.dot_dimension_numbers<[1], [0], [0], [1], [0, 0, 1, 1], [], []>} : vector<2x256xf32>, vector<256x512xf32>, vector<2x512xf32> -> vector<2x512xf32>
    %421 = vector.broadcast %11 : vector<1x512xf32> to vector<2x512xf32>
    %422 = arith.addf %420, %421 : vector<2x512xf32>
    %423 = vector.extract_strided_slice %422 {offsets = [0, 0], sizes = [2, 384], strides = [1, 1]} : vector<2x512xf32> to vector<2x384xf32>
    %424 = arith.negf %423 : vector<2x384xf32>
    %425 = math.exp %424 : vector<2x384xf32>
    %cst_141 = arith.constant 1.000000e+00 : f32
    %426 = vector.broadcast %cst_141 : f32 to vector<2x384xf32>
    %427 = arith.addf %426, %425 : vector<2x384xf32>
    %428 = arith.divf %426, %427 : vector<2x384xf32>
    %429 = vector.extract_strided_slice %428 {offsets = [0, 0], sizes = [2, 128], strides = [1, 1]} : vector<2x384xf32> to vector<2x128xf32>
    %430 = vector.extract_strided_slice %428 {offsets = [0, 128], sizes = [2, 128], strides = [1, 1]} : vector<2x384xf32> to vector<2x128xf32>
    %431 = vector.extract_strided_slice %428 {offsets = [0, 256], sizes = [2, 128], strides = [1, 1]} : vector<2x384xf32> to vector<2x128xf32>
    %432 = vector.extract_strided_slice %422 {offsets = [0, 384], sizes = [2, 128], strides = [1, 1]} : vector<2x512xf32> to vector<2x128xf32>
    %433 = math.tanh %432 : vector<2x128xf32>
    %434 = arith.mulf %430, %360 : vector<2x128xf32>
    %435 = arith.mulf %429, %433 : vector<2x128xf32>
    %436 = arith.addf %434, %435 : vector<2x128xf32>
    %437 = math.tanh %436 : vector<2x128xf32>
    %438 = arith.mulf %431, %437 : vector<2x128xf32>
    %cst_142 = arith.constant 0.000000e+00 : f32
    %439 = vector.broadcast %cst_142 : f32 to vector<2x128xf32>
    %440 = arith.maximumf %438, %439 : vector<2x128xf32>
    %441 = tpu.concatenate %440, %385 in 1 : vector<2x128xf32>, vector<2x128xf32> -> vector<2x256xf32>
    %c0_143 = arith.constant 0 : index
    %c0_144 = arith.constant 0 : index
    %442 = vector.load %arg6[%c0_143, %c0_144] : memref<256x512xf32, #tpu.memory_space<vmem>>, vector<256x512xf32>
    %cst_145 = arith.constant dense<0.000000e+00> : vector<2x512xf32>
    %443 = tpu.matmul %441, %442, %cst_145 {dimension_numbers = #tpu.dot_dimension_numbers<[1], [0], [0], [1], [0, 0, 1, 1], [], []>} : vector<2x256xf32>, vector<256x512xf32>, vector<2x512xf32> -> vector<2x512xf32>
    %444 = vector.broadcast %12 : vector<1x512xf32> to vector<2x512xf32>
    %445 = arith.addf %443, %444 : vector<2x512xf32>
    %446 = vector.extract_strided_slice %445 {offsets = [0, 0], sizes = [2, 384], strides = [1, 1]} : vector<2x512xf32> to vector<2x384xf32>
    %447 = arith.negf %446 : vector<2x384xf32>
    %448 = math.exp %447 : vector<2x384xf32>
    %cst_146 = arith.constant 1.000000e+00 : f32
    %449 = vector.broadcast %cst_146 : f32 to vector<2x384xf32>
    %450 = arith.addf %449, %448 : vector<2x384xf32>
    %451 = arith.divf %449, %450 : vector<2x384xf32>
    %452 = vector.extract_strided_slice %451 {offsets = [0, 0], sizes = [2, 128], strides = [1, 1]} : vector<2x384xf32> to vector<2x128xf32>
    %453 = vector.extract_strided_slice %451 {offsets = [0, 128], sizes = [2, 128], strides = [1, 1]} : vector<2x384xf32> to vector<2x128xf32>
    %454 = vector.extract_strided_slice %451 {offsets = [0, 256], sizes = [2, 128], strides = [1, 1]} : vector<2x384xf32> to vector<2x128xf32>
    %455 = vector.extract_strided_slice %445 {offsets = [0, 384], sizes = [2, 128], strides = [1, 1]} : vector<2x512xf32> to vector<2x128xf32>
    %456 = math.tanh %455 : vector<2x128xf32>
    %457 = arith.mulf %453, %383 : vector<2x128xf32>
    %458 = arith.mulf %452, %456 : vector<2x128xf32>
    %459 = arith.addf %457, %458 : vector<2x128xf32>
    %460 = math.tanh %459 : vector<2x128xf32>
    %461 = arith.mulf %454, %460 : vector<2x128xf32>
    %cst_147 = arith.constant 0.000000e+00 : f32
    %462 = vector.broadcast %cst_147 : f32 to vector<2x128xf32>
    %463 = arith.maximumf %461, %462 : vector<2x128xf32>
    %c0_148 = arith.constant 0 : index
    %c0_149 = arith.constant 0 : index
    %464 = vector.load %arg8[%c0_148, %c0_149] : memref<128x128xf32, #tpu.memory_space<vmem>>, vector<128x128xf32>
    %cst_150 = arith.constant dense<0.000000e+00> : vector<2x128xf32>
    %465 = tpu.matmul %463, %464, %cst_150 {dimension_numbers = #tpu.dot_dimension_numbers<[1], [0], [0], [1], [0, 0, 1, 1], [], []>} : vector<2x128xf32>, vector<128x128xf32>, vector<2x128xf32> -> vector<2x128xf32>
    %466 = vector.broadcast %13 : vector<1x128xf32> to vector<2x128xf32>
    %467 = arith.addf %465, %466 : vector<2x128xf32>
    %c5_151 = arith.constant 5 : index
    %c0_152 = arith.constant 0 : index
    %c0_153 = arith.constant 0 : index
    %468 = vector.load %arg10[%c5_151, %c0_152, %c0_153] : memref<8x2x128xf32, #tpu.memory_space<vmem>>, vector<1x2x128xf32>
    %469 = vector.shape_cast %468 : vector<1x2x128xf32> to vector<2x128xf32>
    %470 = vector.shape_cast %467 : vector<2x128xf32> to vector<1x2x128xf32>
    tpu.vector_store %arg10[%c5_151, %c0_152, %c0_153], %470 {strides = array<i32>} : memref<8x2x128xf32, #tpu.memory_space<vmem>>, vector<1x2x128xf32>,
    %c6 = arith.constant 6 : index
    %c0_154 = arith.constant 0 : index
    %c0_155 = arith.constant 0 : index
    %471 = vector.load %arg11[%c6, %c0_154, %c0_155] : memref<8x2x512xf32, #tpu.memory_space<vmem>>, vector<1x2x512xf32>
    %472 = vector.shape_cast %471 : vector<1x2x512xf32> to vector<2x512xf32>
    %c0_156 = arith.constant 0 : index
    %c0_157 = arith.constant 0 : index
    %473 = vector.load %arg2[%c0_156, %c0_157] : memref<128x512xf32, #tpu.memory_space<vmem>>, vector<128x512xf32>
    %cst_158 = arith.constant dense<0.000000e+00> : vector<2x512xf32>
    %474 = tpu.matmul %415, %473, %cst_158 {dimension_numbers = #tpu.dot_dimension_numbers<[1], [0], [0], [1], [0, 0, 1, 1], [], []>} : vector<2x128xf32>, vector<128x512xf32>, vector<2x512xf32> -> vector<2x512xf32>
    %475 = arith.addf %472, %474 : vector<2x512xf32>
    %476 = vector.extract_strided_slice %475 {offsets = [0, 0], sizes = [2, 384], strides = [1, 1]} : vector<2x512xf32> to vector<2x384xf32>
    %477 = arith.negf %476 : vector<2x384xf32>
    %478 = math.exp %477 : vector<2x384xf32>
    %cst_159 = arith.constant 1.000000e+00 : f32
    %479 = vector.broadcast %cst_159 : f32 to vector<2x384xf32>
    %480 = arith.addf %479, %478 : vector<2x384xf32>
    %481 = arith.divf %479, %480 : vector<2x384xf32>
    %482 = vector.extract_strided_slice %481 {offsets = [0, 0], sizes = [2, 128], strides = [1, 1]} : vector<2x384xf32> to vector<2x128xf32>
    %483 = vector.extract_strided_slice %481 {offsets = [0, 128], sizes = [2, 128], strides = [1, 1]} : vector<2x384xf32> to vector<2x128xf32>
    %484 = vector.extract_strided_slice %481 {offsets = [0, 256], sizes = [2, 128], strides = [1, 1]} : vector<2x384xf32> to vector<2x128xf32>
    %485 = vector.extract_strided_slice %475 {offsets = [0, 384], sizes = [2, 128], strides = [1, 1]} : vector<2x512xf32> to vector<2x128xf32>
    %486 = math.tanh %485 : vector<2x128xf32>
    %487 = arith.mulf %483, %413 : vector<2x128xf32>
    %488 = arith.mulf %482, %486 : vector<2x128xf32>
    %489 = arith.addf %487, %488 : vector<2x128xf32>
    %490 = math.tanh %489 : vector<2x128xf32>
    %491 = arith.mulf %484, %490 : vector<2x128xf32>
    %cst_160 = arith.constant 0.000000e+00 : f32
    %492 = vector.broadcast %cst_160 : f32 to vector<2x128xf32>
    %493 = arith.maximumf %491, %492 : vector<2x128xf32>
    %494 = tpu.concatenate %493, %438 in 1 : vector<2x128xf32>, vector<2x128xf32> -> vector<2x256xf32>
    %c0_161 = arith.constant 0 : index
    %c0_162 = arith.constant 0 : index
    %495 = vector.load %arg4[%c0_161, %c0_162] : memref<256x512xf32, #tpu.memory_space<vmem>>, vector<256x512xf32>
    %cst_163 = arith.constant dense<0.000000e+00> : vector<2x512xf32>
    %496 = tpu.matmul %494, %495, %cst_163 {dimension_numbers = #tpu.dot_dimension_numbers<[1], [0], [0], [1], [0, 0, 1, 1], [], []>} : vector<2x256xf32>, vector<256x512xf32>, vector<2x512xf32> -> vector<2x512xf32>
    %497 = vector.broadcast %11 : vector<1x512xf32> to vector<2x512xf32>
    %498 = arith.addf %496, %497 : vector<2x512xf32>
    %499 = vector.extract_strided_slice %498 {offsets = [0, 0], sizes = [2, 384], strides = [1, 1]} : vector<2x512xf32> to vector<2x384xf32>
    %500 = arith.negf %499 : vector<2x384xf32>
    %501 = math.exp %500 : vector<2x384xf32>
    %cst_164 = arith.constant 1.000000e+00 : f32
    %502 = vector.broadcast %cst_164 : f32 to vector<2x384xf32>
    %503 = arith.addf %502, %501 : vector<2x384xf32>
    %504 = arith.divf %502, %503 : vector<2x384xf32>
    %505 = vector.extract_strided_slice %504 {offsets = [0, 0], sizes = [2, 128], strides = [1, 1]} : vector<2x384xf32> to vector<2x128xf32>
    %506 = vector.extract_strided_slice %504 {offsets = [0, 128], sizes = [2, 128], strides = [1, 1]} : vector<2x384xf32> to vector<2x128xf32>
    %507 = vector.extract_strided_slice %504 {offsets = [0, 256], sizes = [2, 128], strides = [1, 1]} : vector<2x384xf32> to vector<2x128xf32>
    %508 = vector.extract_strided_slice %498 {offsets = [0, 384], sizes = [2, 128], strides = [1, 1]} : vector<2x512xf32> to vector<2x128xf32>
    %509 = math.tanh %508 : vector<2x128xf32>
    %510 = arith.mulf %506, %436 : vector<2x128xf32>
    %511 = arith.mulf %505, %509 : vector<2x128xf32>
    %512 = arith.addf %510, %511 : vector<2x128xf32>
    %513 = math.tanh %512 : vector<2x128xf32>
    %514 = arith.mulf %507, %513 : vector<2x128xf32>
    %cst_165 = arith.constant 0.000000e+00 : f32
    %515 = vector.broadcast %cst_165 : f32 to vector<2x128xf32>
    %516 = arith.maximumf %514, %515 : vector<2x128xf32>
    %517 = tpu.concatenate %516, %461 in 1 : vector<2x128xf32>, vector<2x128xf32> -> vector<2x256xf32>
    %c0_166 = arith.constant 0 : index
    %c0_167 = arith.constant 0 : index
    %518 = vector.load %arg6[%c0_166, %c0_167] : memref<256x512xf32, #tpu.memory_space<vmem>>, vector<256x512xf32>
    %cst_168 = arith.constant dense<0.000000e+00> : vector<2x512xf32>
    %519 = tpu.matmul %517, %518, %cst_168 {dimension_numbers = #tpu.dot_dimension_numbers<[1], [0], [0], [1], [0, 0, 1, 1], [], []>} : vector<2x256xf32>, vector<256x512xf32>, vector<2x512xf32> -> vector<2x512xf32>
    %520 = vector.broadcast %12 : vector<1x512xf32> to vector<2x512xf32>
    %521 = arith.addf %519, %520 : vector<2x512xf32>
    %522 = vector.extract_strided_slice %521 {offsets = [0, 0], sizes = [2, 384], strides = [1, 1]} : vector<2x512xf32> to vector<2x384xf32>
    %523 = arith.negf %522 : vector<2x384xf32>
    %524 = math.exp %523 : vector<2x384xf32>
    %cst_169 = arith.constant 1.000000e+00 : f32
    %525 = vector.broadcast %cst_169 : f32 to vector<2x384xf32>
    %526 = arith.addf %525, %524 : vector<2x384xf32>
    %527 = arith.divf %525, %526 : vector<2x384xf32>
    %528 = vector.extract_strided_slice %527 {offsets = [0, 0], sizes = [2, 128], strides = [1, 1]} : vector<2x384xf32> to vector<2x128xf32>
    %529 = vector.extract_strided_slice %527 {offsets = [0, 128], sizes = [2, 128], strides = [1, 1]} : vector<2x384xf32> to vector<2x128xf32>
    %530 = vector.extract_strided_slice %527 {offsets = [0, 256], sizes = [2, 128], strides = [1, 1]} : vector<2x384xf32> to vector<2x128xf32>
    %531 = vector.extract_strided_slice %521 {offsets = [0, 384], sizes = [2, 128], strides = [1, 1]} : vector<2x512xf32> to vector<2x128xf32>
    %532 = math.tanh %531 : vector<2x128xf32>
    %533 = arith.mulf %529, %459 : vector<2x128xf32>
    %534 = arith.mulf %528, %532 : vector<2x128xf32>
    %535 = arith.addf %533, %534 : vector<2x128xf32>
    %536 = math.tanh %535 : vector<2x128xf32>
    %537 = arith.mulf %530, %536 : vector<2x128xf32>
    %cst_170 = arith.constant 0.000000e+00 : f32
    %538 = vector.broadcast %cst_170 : f32 to vector<2x128xf32>
    %539 = arith.maximumf %537, %538 : vector<2x128xf32>
    %c0_171 = arith.constant 0 : index
    %c0_172 = arith.constant 0 : index
    %540 = vector.load %arg8[%c0_171, %c0_172] : memref<128x128xf32, #tpu.memory_space<vmem>>, vector<128x128xf32>
    %cst_173 = arith.constant dense<0.000000e+00> : vector<2x128xf32>
    %541 = tpu.matmul %539, %540, %cst_173 {dimension_numbers = #tpu.dot_dimension_numbers<[1], [0], [0], [1], [0, 0, 1, 1], [], []>} : vector<2x128xf32>, vector<128x128xf32>, vector<2x128xf32> -> vector<2x128xf32>
    %542 = vector.broadcast %13 : vector<1x128xf32> to vector<2x128xf32>
    %543 = arith.addf %541, %542 : vector<2x128xf32>
    %c6_174 = arith.constant 6 : index
    %c0_175 = arith.constant 0 : index
    %c0_176 = arith.constant 0 : index
    %544 = vector.load %arg10[%c6_174, %c0_175, %c0_176] : memref<8x2x128xf32, #tpu.memory_space<vmem>>, vector<1x2x128xf32>
    %545 = vector.shape_cast %544 : vector<1x2x128xf32> to vector<2x128xf32>
    %546 = vector.shape_cast %543 : vector<2x128xf32> to vector<1x2x128xf32>
    tpu.vector_store %arg10[%c6_174, %c0_175, %c0_176], %546 {strides = array<i32>} : memref<8x2x128xf32, #tpu.memory_space<vmem>>, vector<1x2x128xf32>,
    %c7 = arith.constant 7 : index
    %c0_177 = arith.constant 0 : index
    %c0_178 = arith.constant 0 : index
    %547 = vector.load %arg11[%c7, %c0_177, %c0_178] : memref<8x2x512xf32, #tpu.memory_space<vmem>>, vector<1x2x512xf32>
    %548 = vector.shape_cast %547 : vector<1x2x512xf32> to vector<2x512xf32>
    %c0_179 = arith.constant 0 : index
    %c0_180 = arith.constant 0 : index
    %549 = vector.load %arg2[%c0_179, %c0_180] : memref<128x512xf32, #tpu.memory_space<vmem>>, vector<128x512xf32>
    %cst_181 = arith.constant dense<0.000000e+00> : vector<2x512xf32>
    %550 = tpu.matmul %491, %549, %cst_181 {dimension_numbers = #tpu.dot_dimension_numbers<[1], [0], [0], [1], [0, 0, 1, 1], [], []>} : vector<2x128xf32>, vector<128x512xf32>, vector<2x512xf32> -> vector<2x512xf32>
    %551 = arith.addf %548, %550 : vector<2x512xf32>
    %552 = vector.extract_strided_slice %551 {offsets = [0, 0], sizes = [2, 384], strides = [1, 1]} : vector<2x512xf32> to vector<2x384xf32>
    %553 = arith.negf %552 : vector<2x384xf32>
    %554 = math.exp %553 : vector<2x384xf32>
    %cst_182 = arith.constant 1.000000e+00 : f32
    %555 = vector.broadcast %cst_182 : f32 to vector<2x384xf32>
    %556 = arith.addf %555, %554 : vector<2x384xf32>
    %557 = arith.divf %555, %556 : vector<2x384xf32>
    %558 = vector.extract_strided_slice %557 {offsets = [0, 0], sizes = [2, 128], strides = [1, 1]} : vector<2x384xf32> to vector<2x128xf32>
    %559 = vector.extract_strided_slice %557 {offsets = [0, 128], sizes = [2, 128], strides = [1, 1]} : vector<2x384xf32> to vector<2x128xf32>
    %560 = vector.extract_strided_slice %557 {offsets = [0, 256], sizes = [2, 128], strides = [1, 1]} : vector<2x384xf32> to vector<2x128xf32>
    %561 = vector.extract_strided_slice %551 {offsets = [0, 384], sizes = [2, 128], strides = [1, 1]} : vector<2x512xf32> to vector<2x128xf32>
    %562 = math.tanh %561 : vector<2x128xf32>
    %563 = arith.mulf %559, %489 : vector<2x128xf32>
    %564 = arith.mulf %558, %562 : vector<2x128xf32>
    %565 = arith.addf %563, %564 : vector<2x128xf32>
    %566 = math.tanh %565 : vector<2x128xf32>
    %567 = arith.mulf %560, %566 : vector<2x128xf32>
    %cst_183 = arith.constant 0.000000e+00 : f32
    %568 = vector.broadcast %cst_183 : f32 to vector<2x128xf32>
    %569 = arith.maximumf %567, %568 : vector<2x128xf32>
    %570 = tpu.concatenate %569, %514 in 1 : vector<2x128xf32>, vector<2x128xf32> -> vector<2x256xf32>
    %c0_184 = arith.constant 0 : index
    %c0_185 = arith.constant 0 : index
    %571 = vector.load %arg4[%c0_184, %c0_185] : memref<256x512xf32, #tpu.memory_space<vmem>>, vector<256x512xf32>
    %cst_186 = arith.constant dense<0.000000e+00> : vector<2x512xf32>
    %572 = tpu.matmul %570, %571, %cst_186 {dimension_numbers = #tpu.dot_dimension_numbers<[1], [0], [0], [1], [0, 0, 1, 1], [], []>} : vector<2x256xf32>, vector<256x512xf32>, vector<2x512xf32> -> vector<2x512xf32>
    %573 = vector.broadcast %11 : vector<1x512xf32> to vector<2x512xf32>
    %574 = arith.addf %572, %573 : vector<2x512xf32>
    %575 = vector.extract_strided_slice %574 {offsets = [0, 0], sizes = [2, 384], strides = [1, 1]} : vector<2x512xf32> to vector<2x384xf32>
    %576 = arith.negf %575 : vector<2x384xf32>
    %577 = math.exp %576 : vector<2x384xf32>
    %cst_187 = arith.constant 1.000000e+00 : f32
    %578 = vector.broadcast %cst_187 : f32 to vector<2x384xf32>
    %579 = arith.addf %578, %577 : vector<2x384xf32>
    %580 = arith.divf %578, %579 : vector<2x384xf32>
    %581 = vector.extract_strided_slice %580 {offsets = [0, 0], sizes = [2, 128], strides = [1, 1]} : vector<2x384xf32> to vector<2x128xf32>
    %582 = vector.extract_strided_slice %580 {offsets = [0, 128], sizes = [2, 128], strides = [1, 1]} : vector<2x384xf32> to vector<2x128xf32>
    %583 = vector.extract_strided_slice %580 {offsets = [0, 256], sizes = [2, 128], strides = [1, 1]} : vector<2x384xf32> to vector<2x128xf32>
    %584 = vector.extract_strided_slice %574 {offsets = [0, 384], sizes = [2, 128], strides = [1, 1]} : vector<2x512xf32> to vector<2x128xf32>
    %585 = math.tanh %584 : vector<2x128xf32>
    %586 = arith.mulf %582, %512 : vector<2x128xf32>
    %587 = arith.mulf %581, %585 : vector<2x128xf32>
    %588 = arith.addf %586, %587 : vector<2x128xf32>
    %589 = math.tanh %588 : vector<2x128xf32>
    %590 = arith.mulf %583, %589 : vector<2x128xf32>
    %cst_188 = arith.constant 0.000000e+00 : f32
    %591 = vector.broadcast %cst_188 : f32 to vector<2x128xf32>
    %592 = arith.maximumf %590, %591 : vector<2x128xf32>
    %593 = tpu.concatenate %592, %537 in 1 : vector<2x128xf32>, vector<2x128xf32> -> vector<2x256xf32>
    %c0_189 = arith.constant 0 : index
    %c0_190 = arith.constant 0 : index
    %594 = vector.load %arg6[%c0_189, %c0_190] : memref<256x512xf32, #tpu.memory_space<vmem>>, vector<256x512xf32>
    %cst_191 = arith.constant dense<0.000000e+00> : vector<2x512xf32>
    %595 = tpu.matmul %593, %594, %cst_191 {dimension_numbers = #tpu.dot_dimension_numbers<[1], [0], [0], [1], [0, 0, 1, 1], [], []>} : vector<2x256xf32>, vector<256x512xf32>, vector<2x512xf32> -> vector<2x512xf32>
    %596 = vector.broadcast %12 : vector<1x512xf32> to vector<2x512xf32>
    %597 = arith.addf %595, %596 : vector<2x512xf32>
    %598 = vector.extract_strided_slice %597 {offsets = [0, 0], sizes = [2, 384], strides = [1, 1]} : vector<2x512xf32> to vector<2x384xf32>
    %599 = arith.negf %598 : vector<2x384xf32>
    %600 = math.exp %599 : vector<2x384xf32>
    %cst_192 = arith.constant 1.000000e+00 : f32
    %601 = vector.broadcast %cst_192 : f32 to vector<2x384xf32>
    %602 = arith.addf %601, %600 : vector<2x384xf32>
    %603 = arith.divf %601, %602 : vector<2x384xf32>
    %604 = vector.extract_strided_slice %603 {offsets = [0, 0], sizes = [2, 128], strides = [1, 1]} : vector<2x384xf32> to vector<2x128xf32>
    %605 = vector.extract_strided_slice %603 {offsets = [0, 128], sizes = [2, 128], strides = [1, 1]} : vector<2x384xf32> to vector<2x128xf32>
    %606 = vector.extract_strided_slice %603 {offsets = [0, 256], sizes = [2, 128], strides = [1, 1]} : vector<2x384xf32> to vector<2x128xf32>
    %607 = vector.extract_strided_slice %597 {offsets = [0, 384], sizes = [2, 128], strides = [1, 1]} : vector<2x512xf32> to vector<2x128xf32>
    %608 = math.tanh %607 : vector<2x128xf32>
    %609 = arith.mulf %605, %535 : vector<2x128xf32>
    %610 = arith.mulf %604, %608 : vector<2x128xf32>
    %611 = arith.addf %609, %610 : vector<2x128xf32>
    %612 = math.tanh %611 : vector<2x128xf32>
    %613 = arith.mulf %606, %612 : vector<2x128xf32>
    %cst_193 = arith.constant 0.000000e+00 : f32
    %614 = vector.broadcast %cst_193 : f32 to vector<2x128xf32>
    %615 = arith.maximumf %613, %614 : vector<2x128xf32>
    %c0_194 = arith.constant 0 : index
    %c0_195 = arith.constant 0 : index
    %616 = vector.load %arg8[%c0_194, %c0_195] : memref<128x128xf32, #tpu.memory_space<vmem>>, vector<128x128xf32>
    %cst_196 = arith.constant dense<0.000000e+00> : vector<2x128xf32>
    %617 = tpu.matmul %615, %616, %cst_196 {dimension_numbers = #tpu.dot_dimension_numbers<[1], [0], [0], [1], [0, 0, 1, 1], [], []>} : vector<2x128xf32>, vector<128x128xf32>, vector<2x128xf32> -> vector<2x128xf32>
    %618 = vector.broadcast %13 : vector<1x128xf32> to vector<2x128xf32>
    %619 = arith.addf %617, %618 : vector<2x128xf32>
    %c7_197 = arith.constant 7 : index
    %c0_198 = arith.constant 0 : index
    %c0_199 = arith.constant 0 : index
    %620 = vector.load %arg10[%c7_197, %c0_198, %c0_199] : memref<8x2x128xf32, #tpu.memory_space<vmem>>, vector<1x2x128xf32>
    %621 = vector.shape_cast %620 : vector<1x2x128xf32> to vector<2x128xf32>
    %622 = vector.shape_cast %619 : vector<2x128xf32> to vector<1x2x128xf32>
    tpu.vector_store %arg10[%c7_197, %c0_198, %c0_199], %622 {strides = array<i32>} : memref<8x2x128xf32, #tpu.memory_space<vmem>>, vector<1x2x128xf32>,
    return
  }
}

</mosaic_0001>

<bundles_post_ra>
// kernel: tpu_custom_call.1
= control target key start
LH: loop header
LB: loop body
LE: loop exit
PB: predicated region body
PF: predicated region fallthrough
CT: control target
= control target key end

     0   :  { %15 = vsyncpa [#allocation4], 0  ;;  %s9585_s0 = inlined_call_operand.vmem [shape: f32[8,2,1], index: 0, kind: input, shape index: {}]   ;;  %s9586_s1 = inlined_call_operand.vmem [shape: f32[1,512], index: 1, kind: input, shape index: {}]   ;;  %s9587_s2 = inlined_call_operand.hbm [shape: f32[128,512], index: 2, kind: input, shape index: {}]   ;;  %s9588_s3 = inlined_call_operand.vmem [shape: f32[1,512], index: 3, kind: input, shape index: {}]   ;;  %s9589_s4 = inlined_call_operand.hbm [shape: f32[256,512], index: 4, kind: input, shape index: {}]   ;;  %s9590_s5 = inlined_call_operand.vmem [shape: f32[1,512], index: 5, kind: input, shape index: {}]   ;;  %s9591_s6 = inlined_call_operand.hbm [shape: f32[256,512], index: 6, kind: input, shape index: {}]   ;;  %s9592_s7 = inlined_call_operand.vmem [shape: f32[1,512], index: 7, kind: input, shape index: {}]   ;;  %s9593_s8 = inlined_call_operand.hbm [shape: f32[128,128], index: 8, kind: input, shape index: {}]   ;;  %s9594_s9 = inlined_call_operand.vmem [shape: f32[1,128], index: 9, kind: input, shape index: {}]   ;;  %s9595_s10 = inlined_call_operand.hbm [shape: f32[8,2,128], index: 10, kind: output, shape index: {}]  }
   0x1   :  { %16 = vsyncpa [#allocation7], 0 }
   0x2   :  { %17 = vsyncpa [#allocation10], 0 }
   0x3   :  { %18 = vsyncpa [#allocation5], 0  ;;  %s8862_s13 = smov [#allocation6]   ;;  %s8863_s15 = smov [#allocation3]  }
   0x4   :  { %s42_s14 = sshll.u32 %s8862_s13, 4  ;;  %s28_s16 = sshll.u32 %s8863_s15, 4  ;;  %s43_s14 = int_to_ptr.vmem [resolvable:$true] %s42_s14  ;;  %s29_s16 = int_to_ptr.vmem [resolvable:$true] %s28_s16 }
   0x5   :  { %s8762_s17 = scalar_lea.vmem %s43_s14, 16384  ;;  %p8767_p1 = scmp.lt.s32.totalorder %s43_s14, %s43_s14 }
   0x6   :  { %p8763_p0 = scmp.ne.s32.totalorder %s43_s14, %s8762_s17  ;;  %p8768_p2 = scmp.lt.s32.totalorder %s8762_s17, %s8762_s17 }
   0x8   :  { %p8769_p3 = por %p8768_p2, %p8767_p1 }
   0xa   :  { %p8770_p4 = pnand %p8769_p3, %p8763_p0 }
   0xc   :  { %8773 = shalt.err (!%p8770_p4)
}
   0xd   :  { %s8864_s18 = smov 512   ;;  %s8865_s19 = smov 32  }
   0xe   :  { %48 = dma.hbm_to_vmem [thread:$0]  %s9589_s4, 16384, %s43_s14, [#allocation7], %s8864_s18, %s8864_s18, %s8865_s19  }
   0xf   :  { %s8782_s22 = scalar_lea.vmem %s29_s16, 8192  ;;  %p8787_p6 = scmp.lt.s32.totalorder %s29_s16, %s29_s16 }
  0x10   :  { %p8783_p5 = scmp.ne.s32.totalorder %s29_s16, %s8782_s22  ;;  %p8788_p7 = scmp.lt.s32.totalorder %s8782_s22, %s8782_s22 }
  0x12   :  { %p8789_p8 = por %p8788_p7, %p8787_p6 }
  0x14   :  { %p8790_p9 = pnand %p8789_p8, %p8783_p5 }
  0x16   :  { %8793 = shalt.err (!%p8790_p9)
}
  0x17   :  { %34 = dma.hbm_to_vmem [thread:$0]  %s9587_s2, 8192, %s29_s16, [#allocation4], %s8864_s18, %s8864_s18, %s8865_s19  }
  0x18   :  { %s8866_s25 = smov [#allocation8]   ;;  %s8867_s27 = smov [#allocation9]  }
  0x19   :  { %s56_s26 = sshll.u32 %s8866_s25, 4  ;;  %s70_s28 = sshll.u32 %s8867_s27, 4  ;;  %s57_s26 = int_to_ptr.vmem [resolvable:$true] %s56_s26  ;;  %s71_s28 = int_to_ptr.vmem [resolvable:$true] %s70_s28 }
  0x1a   :  { %s8802_s29 = scalar_lea.vmem %s57_s26, 16384  ;;  %p8807_p11 = scmp.lt.s32.totalorder %s57_s26, %s57_s26 }
  0x1b   :  { %p8803_p10 = scmp.ne.s32.totalorder %s57_s26, %s8802_s29  ;;  %p8808_p12 = scmp.lt.s32.totalorder %s8802_s29, %s8802_s29 }
  0x1d   :  { %p8809_p13 = por %p8808_p12, %p8807_p11 }
  0x1f   :  { %p8810_p0 = pnand %p8809_p13, %p8803_p10 }
  0x21   :  { %8813 = shalt.err (!%p8810_p0)
}
  0x22   :  { %62 = dma.hbm_to_vmem [thread:$0]  %s9591_s6, 16384, %s57_s26, [#allocation7], %s8864_s18, %s8864_s18, %s8865_s19  }
  0x23   :  { %s8822_s11 = scalar_lea.vmem %s71_s28, 2048  ;;  %p8827_p2 = scmp.lt.s32.totalorder %s71_s28, %s71_s28 }
  0x24   :  { %p8823_p1 = scmp.ne.s32.totalorder %s71_s28, %s8822_s11  ;;  %p8828_p3 = scmp.lt.s32.totalorder %s8822_s11, %s8822_s11 }
  0x26   :  { %p8829_p4 = por %p8828_p3, %p8827_p2 }
  0x28   :  { %p8830_p5 = pnand %p8829_p4, %p8823_p1 }
  0x2a   :  { %8833 = shalt.err (!%p8830_p5)
}
  0x2b   :  { %s8868_s2 = smov 128   ;;  %s8869_s12 = smov 8  }
  0x2c   :  { %76 = dma.hbm_to_vmem [thread:$0]  %s9593_s8, 2048, %s71_s28, [#allocation10], %s8868_s2, %s8868_s2, %s8869_s12  }
  0x2d   :  { %8854 = dma.done.wait [#allocation4], 8192  }
  0x2e   :  { %8855 = vsyncadd [#allocation4], 4294959104 }
  0x2f   :  { %8856 = dma.done.wait [#allocation7], 32768  }
  0x30   :  { %8857 = vsyncadd [#allocation7], 4294934528 }
  0x31   :  { %8858 = dma.done.wait [#allocation10], 2048  }
  0x32   :  { %8859 = vsyncadd [#allocation10], 4294965248  ;;  %v8870_v0 = vmov 0.0   ;;  %v8871_v1 = vmov 0   ;;  %v496_v2 = vld [vmem:[#allocation3 + $0x1e8] sm:$0xff]  ;;  %v498_v3 = vld [vmem:[#allocation3 + $0x1f8] sm:$0xff] }
  0x33   :  { %563 = vmatprep.mubr.f32.mxu0 %v8870_v0  ;;  %634 = vmatprep.mubr.f32.mxu1 %v8870_v0  ;;  %v495_v4 = vld [vmem:[#allocation3 + $0x1e0] sm:$0xff]  ;;  %v497_v5 = vld [vmem:[#allocation3 + $0x1f0] sm:$0xff]  ;;  %v492_v6 = vld [vmem:[#allocation3 + $0x1c8] sm:$0xff]  ;;  %vm8873_vm0 = vmmov 0  }
  0x34   :  { %8426 = vset.pattern.permute.xlu0 %v8871_v1  ;;  %8427 = vset.pattern.permute.xlu1 %v8871_v1  ;;  %v494_v7 = vld [vmem:[#allocation3 + $0x1d8] sm:$0xff]  ;;  %v491_v8 = vld [vmem:[#allocation3 + $0x1c0] sm:$0xff]  ;;  %v493_v9 = vld [vmem:[#allocation3 + $0x1d0] sm:$0xff] }
  0x35   :  { %499 = vmatprep.subr.mxu0 %v496_v2  ;;  %570 = vmatprep.subr.mxu1 %v498_v3  ;;  %v488_v10 = vld [vmem:[#allocation3 + $0x1a8] sm:$0xff]  ;;  %v490_v11 = vld [vmem:[#allocation3 + $0x1b8] sm:$0xff]  ;;  %v487_v12 = vld [vmem:[#allocation3 + $0x1a0] sm:$0xff] }
  0x36   :  { %500 = vmatpush1.msra.mxu0 %v495_v4  ;;  %571 = vmatpush1.msra.mxu1 %v497_v5  ;;  %v489_v13 = vld [vmem:[#allocation3 + $0x1b0] sm:$0xff]  ;;  %v484_v14 = vld [vmem:[#allocation3 + $0x188] sm:$0xff]  ;;  %v486_v15 = vld [vmem:[#allocation3 + $0x198] sm:$0xff] }
  0x37   :  { %501 = vmatprep.subr.mxu0 %v492_v6  ;;  %572 = vmatprep.subr.mxu1 %v494_v7  ;;  %v483_v16 = vld [vmem:[#allocation3 + $0x180] sm:$0xff]  ;;  %v485_v17 = vld [vmem:[#allocation3 + $0x190] sm:$0xff]  ;;  %v480_v18 = vld [vmem:[#allocation3 + $0x168] sm:$0xff] }
  0x38   :  { %502 = vmatpush1.msra.mxu0 %v491_v8  ;;  %573 = vmatpush1.msra.mxu1 %v493_v9  ;;  %v482_v19 = vld [vmem:[#allocation3 + $0x178] sm:$0xff]  ;;  %v479_v20 = vld [vmem:[#allocation3 + $0x160] sm:$0xff]  ;;  %v481_v21 = vld [vmem:[#allocation3 + $0x170] sm:$0xff] }
  0x39   :  { %503 = vmatprep.subr.mxu0 %v488_v10  ;;  %574 = vmatprep.subr.mxu1 %v490_v11  ;;  %v476_v22 = vld [vmem:[#allocation3 + $0x148] sm:$0xff]  ;;  %v478_v23 = vld [vmem:[#allocation3 + $0x158] sm:$0xff]  ;;  %v475_v24 = vld [vmem:[#allocation3 + $0x140] sm:$0xff] }
  0x3a   :  { %504 = vmatpush1.msra.mxu0 %v487_v12  ;;  %575 = vmatpush1.msra.mxu1 %v489_v13  ;;  %v477_v25 = vld [vmem:[#allocation3 + $0x150] sm:$0xff]  ;;  %v472_v26 = vld [vmem:[#allocation3 + $0x128] sm:$0xff]  ;;  %v474_v27 = vld [vmem:[#allocation3 + $0x138] sm:$0xff] }
  0x3b   :  { %505 = vmatprep.subr.mxu0 %v484_v14  ;;  %576 = vmatprep.subr.mxu1 %v486_v15  ;;  %v471_v28 = vld [vmem:[#allocation3 + $0x120] sm:$0xff]  ;;  %v473_v29 = vld [vmem:[#allocation3 + $0x130] sm:$0xff]  ;;  %v468_v30 = vld [vmem:[#allocation3 + $0x108] sm:$0xff] }
  0x3c   :  { %506 = vmatpush1.msra.mxu0 %v483_v16  ;;  %577 = vmatpush1.msra.mxu1 %v485_v17  ;;  %v470_v31 = vld [vmem:[#allocation3 + $0x118] sm:$0xff]  ;;  %v467_v32 = vld [vmem:[#allocation3 + $0x100] sm:$0xff]  ;;  %v469_v33 = vld [vmem:[#allocation3 + $0x110] sm:$0xff] }
  0x3d   :  { %507 = vmatprep.subr.mxu0 %v480_v18  ;;  %578 = vmatprep.subr.mxu1 %v482_v19  ;;  %v464_v34 = vld [vmem:[#allocation3 + $0xe8] sm:$0xff]  ;;  %v466_v35 = vld [vmem:[#allocation3 + $0xf8] sm:$0xff]  ;;  %v463_v36 = vld [vmem:[#allocation3 + $0xe0] sm:$0xff] }
  0x3e   :  { %508 = vmatpush1.msra.mxu0 %v479_v20  ;;  %579 = vmatpush1.msra.mxu1 %v481_v21  ;;  %v465_v37 = vld [vmem:[#allocation3 + $0xf0] sm:$0xff]  ;;  %v460_v38 = vld [vmem:[#allocation3 + $0xc8] sm:$0xff]  ;;  %v462_v39 = vld [vmem:[#allocation3 + $0xd8] sm:$0xff] }
  0x3f   :  { %509 = vmatprep.subr.mxu0 %v476_v22  ;;  %580 = vmatprep.subr.mxu1 %v478_v23  ;;  %v459_v40 = vld [vmem:[#allocation3 + $0xc0] sm:$0xff]  ;;  %v461_v41 = vld [vmem:[#allocation3 + $0xd0] sm:$0xff]  ;;  %v456_v42 = vld [vmem:[#allocation3 + $0xa8] sm:$0xff] }
  0x40   :  { %510 = vmatpush1.msra.mxu0 %v475_v24  ;;  %581 = vmatpush1.msra.mxu1 %v477_v25  ;;  %v458_v43 = vld [vmem:[#allocation3 + $0xb8] sm:$0xff]  ;;  %v455_v44 = vld [vmem:[#allocation3 + $0xa0] sm:$0xff]  ;;  %v457_v45 = vld [vmem:[#allocation3 + $0xb0] sm:$0xff] }
  0x41   :  { %511 = vmatprep.subr.mxu0 %v472_v26  ;;  %582 = vmatprep.subr.mxu1 %v474_v27  ;;  %v452_v46 = vld [vmem:[#allocation3 + $0x88] sm:$0xff]  ;;  %v454_v47 = vld [vmem:[#allocation3 + $0x98] sm:$0xff]  ;;  %v451_v48 = vld [vmem:[#allocation3 + $0x80] sm:$0xff] }
  0x42   :  { %512 = vmatpush1.msra.mxu0 %v471_v28  ;;  %583 = vmatpush1.msra.mxu1 %v473_v29  ;;  %v453_v49 = vld [vmem:[#allocation3 + $0x90] sm:$0xff]  ;;  %v448_v50 = vld [vmem:[#allocation3 + $0x68] sm:$0xff]  ;;  %v450_v51 = vld [vmem:[#allocation3 + $0x78] sm:$0xff] }
  0x43   :  { %513 = vmatprep.subr.mxu0 %v468_v30  ;;  %584 = vmatprep.subr.mxu1 %v470_v31  ;;  %v447_v52 = vld [vmem:[#allocation3 + $0x60] sm:$0xff]  ;;  %v449_v53 = vld [vmem:[#allocation3 + $0x70] sm:$0xff]  ;;  %v444_v54 = vld [vmem:[#allocation3 + $0x48] sm:$0xff] }
  0x44   :  { %514 = vmatpush1.msra.mxu0 %v467_v32  ;;  %585 = vmatpush1.msra.mxu1 %v469_v33  ;;  %v446_v55 = vld [vmem:[#allocation3 + $0x58] sm:$0xff]  ;;  %v443_v56 = vld [vmem:[#allocation3 + $0x40] sm:$0xff]  ;;  %v445_v57 = vld [vmem:[#allocation3 + $0x50] sm:$0xff] }
  0x45   :  { %515 = vmatprep.subr.mxu0 %v464_v34  ;;  %586 = vmatprep.subr.mxu1 %v466_v35  ;;  %v440_v58 = vld [vmem:[#allocation3 + $0x28] sm:$0xff]  ;;  %v442_v59 = vld [vmem:[#allocation3 + $0x38] sm:$0xff]  ;;  %v439_v60 = vld [vmem:[#allocation3 + $0x20] sm:$0xff] }
  0x46   :  { %516 = vmatpush1.msra.mxu0 %v463_v36  ;;  %587 = vmatpush1.msra.mxu1 %v465_v37  ;;  %v441_v61 = vld [vmem:[#allocation3 + $0x30] sm:$0xff]  ;;  %v436_v62 = vld [vmem:[#allocation3 + $0x8] sm:$0xff]  ;;  %v438_v63 = vld [vmem:[#allocation3 + $0x18] sm:$0xff] }
  0x47   :  { %517 = vmatprep.subr.mxu0 %v460_v38  ;;  %588 = vmatprep.subr.mxu1 %v462_v39  ;;  %v435_v1 = vld [vmem:[#allocation3] sm:$0xff]  ;;  %v437_v2 = vld [vmem:[#allocation3 + $0x10] sm:$0xff]  ;;  %v95_v5 = vld [vmem:[%s9585_s0 + $0x8] sm:$0x3] }
  0x48   :  { %518 = vmatpush1.msra.mxu0 %v459_v40  ;;  %589 = vmatpush1.msra.mxu1 %v461_v41  ;;  %v91_v3 = vld [vmem:[%s9585_s0] sm:$0x3]  ;;  %v92_v4 = vld [vmem:[%s9585_s0 + $0x2] sm:$0x3]  ;;  %v97_v6 = vld [vmem:[%s9585_s0 + $0xc] sm:$0x3] }
  0x49   :  { %519 = vmatprep.subr.mxu0 %v456_v42  ;;  %590 = vmatprep.subr.mxu1 %v458_v43  ;;  %v746_v7 = vld [vmem:[#allocation6 + $0x1e8] sm:$0xff]  ;;  %v748_v8 = vld [vmem:[#allocation6 + $0x1f8] sm:$0xff]  ;;  %v745_v9 = vld [vmem:[#allocation6 + $0x1e0] sm:$0xff] }
  0x4a   :  { %520 = vmatpush1.msra.mxu0 %v455_v44  ;;  %591 = vmatpush1.msra.mxu1 %v457_v45  ;;  %v747_v10 = vld [vmem:[#allocation6 + $0x1f0] sm:$0xff]  ;;  %v742_v11 = vld [vmem:[#allocation6 + $0x1c8] sm:$0xff]  ;;  %v744_v12 = vld [vmem:[#allocation6 + $0x1d8] sm:$0xff] }
  0x4b   :  { %521 = vmatprep.subr.mxu0 %v452_v46  ;;  %592 = vmatprep.subr.mxu1 %v454_v47  ;;  %v741_v13 = vld [vmem:[#allocation6 + $0x1c0] sm:$0xff]  ;;  %v743_v14 = vld [vmem:[#allocation6 + $0x1d0] sm:$0xff]  ;;  %v738_v15 = vld [vmem:[#allocation6 + $0x1a8] sm:$0xff] }
  0x4c   :  { %522 = vmatpush1.msra.mxu0 %v451_v48  ;;  %593 = vmatpush1.msra.mxu1 %v453_v49  ;;  %v740_v16 = vld [vmem:[#allocation6 + $0x1b8] sm:$0xff]  ;;  %v737_v17 = vld [vmem:[#allocation6 + $0x1a0] sm:$0xff]  ;;  %v739_v18 = vld [vmem:[#allocation6 + $0x1b0] sm:$0xff] }
  0x4d   :  { %523 = vmatprep.subr.mxu0 %v448_v50  ;;  %594 = vmatprep.subr.mxu1 %v450_v51  ;;  %v734_v19 = vld [vmem:[#allocation6 + $0x188] sm:$0xff]  ;;  %v736_v20 = vld [vmem:[#allocation6 + $0x198] sm:$0xff]  ;;  %v733_v21 = vld [vmem:[#allocation6 + $0x180] sm:$0xff] }
  0x4e   :  { %524 = vmatpush1.msra.mxu0 %v447_v52  ;;  %595 = vmatpush1.msra.mxu1 %v449_v53  ;;  %v735_v22 = vld [vmem:[#allocation6 + $0x190] sm:$0xff]  ;;  %v730_v23 = vld [vmem:[#allocation6 + $0x168] sm:$0xff]  ;;  %v732_v24 = vld [vmem:[#allocation6 + $0x178] sm:$0xff] }
  0x4f   :  { %525 = vmatprep.subr.mxu0 %v444_v54  ;;  %596 = vmatprep.subr.mxu1 %v446_v55  ;;  %v729_v25 = vld [vmem:[#allocation6 + $0x160] sm:$0xff]  ;;  %v731_v26 = vld [vmem:[#allocation6 + $0x170] sm:$0xff]  ;;  %v726_v27 = vld [vmem:[#allocation6 + $0x148] sm:$0xff] }
  0x50   :  { %526 = vmatpush1.msra.mxu0 %v443_v56  ;;  %597 = vmatpush1.msra.mxu1 %v445_v57  ;;  %v728_v28 = vld [vmem:[#allocation6 + $0x158] sm:$0xff]  ;;  %v725_v29 = vld [vmem:[#allocation6 + $0x140] sm:$0xff]  ;;  %v727_v30 = vld [vmem:[#allocation6 + $0x150] sm:$0xff] }
  0x51   :  { %527 = vmatprep.subr.mxu0 %v440_v58  ;;  %598 = vmatprep.subr.mxu1 %v442_v59  ;;  %v722_v31 = vld [vmem:[#allocation6 + $0x128] sm:$0xff]  ;;  %v724_v32 = vld [vmem:[#allocation6 + $0x138] sm:$0xff]  ;;  %v721_v33 = vld [vmem:[#allocation6 + $0x120] sm:$0xff] }
  0x52   :  { %528 = vmatpush1.msra.mxu0 %v439_v60  ;;  %599 = vmatpush1.msra.mxu1 %v441_v61  ;;  %v723_v34 = vld [vmem:[#allocation6 + $0x130] sm:$0xff]  ;;  %v718_v35 = vld [vmem:[#allocation6 + $0x108] sm:$0xff]  ;;  %v720_v36 = vld [vmem:[#allocation6 + $0x118] sm:$0xff] }
  0x53   :  { %529 = vmatprep.subr.mxu0 %v436_v62  ;;  %600 = vmatprep.subr.mxu1 %v438_v63  ;;  %v717_v37 = vld [vmem:[#allocation6 + $0x100] sm:$0xff]  ;;  %v719_v38 = vld [vmem:[#allocation6 + $0x110] sm:$0xff]  ;;  %v714_v39 = vld [vmem:[#allocation6 + $0xe8] sm:$0xff] }
  0x54   :  { %530 = vmatpush1.msra.mxu0 %v435_v1  ;;  %601 = vmatpush1.msra.mxu1 %v437_v2  ;;  %v716_v40 = vld [vmem:[#allocation6 + $0xf8] sm:$0xff]  ;;  %v713_v41 = vld [vmem:[#allocation6 + $0xe0] sm:$0xff]  ;;  %v715_v42 = vld [vmem:[#allocation6 + $0xf0] sm:$0xff] }
  0x55   :  { %564 = vmatmul.mubr.f32.vlgmr.msra.gmra.mxu0 %v8870_v0  ;;  %635 = vmatmul.mubr.f32.vlgmr.msra.gmra.mxu1 %v8870_v0  ;;  %v710_v43 = vld [vmem:[#allocation6 + $0xc8] sm:$0xff]  ;;  %v712_v44 = vld [vmem:[#allocation6 + $0xd8] sm:$0xff]  ;;  %v709_v45 = vld [vmem:[#allocation6 + $0xc0] sm:$0xff] }
  0x56   :  { %102 = vperm.xlu0 %8426, %v91_v3   ;;  %898 = vmatprep.mubr.f32.mxu0 %v8870_v0  ;;  %v711_v46 = vld [vmem:[#allocation6 + $0xd0] sm:$0xff]  ;;  %v706_v47 = vld [vmem:[#allocation6 + $0xa8] sm:$0xff]  ;;  %v708_v48 = vld [vmem:[#allocation6 + $0xb8] sm:$0xff] }
  0x57   :  { %969 = vmatprep.mubr.f32.mxu1 %v8870_v0  ;;  %834 = vmatprep.subr.mxu0 %v746_v7  ;;  %v705_v49 = vld [vmem:[#allocation6 + $0xa0] sm:$0xff]  ;;  %v707_v50 = vld [vmem:[#allocation6 + $0xb0] sm:$0xff]  ;;  %v702_v51 = vld [vmem:[#allocation6 + $0x88] sm:$0xff] }
  0x58   :  { %905 = vmatprep.subr.mxu1 %v748_v8  ;;  %835 = vmatpush1.msra.mxu0 %v745_v9  ;;  %v704_v52 = vld [vmem:[#allocation6 + $0x98] sm:$0xff]  ;;  %v701_v53 = vld [vmem:[#allocation6 + $0x80] sm:$0xff]  ;;  %v703_v54 = vld [vmem:[#allocation6 + $0x90] sm:$0xff] }
  0x59   :  { %906 = vmatpush1.msra.mxu1 %v747_v10  ;;  %836 = vmatprep.subr.mxu0 %v742_v11  ;;  %v698_v55 = vld [vmem:[#allocation6 + $0x68] sm:$0xff]  ;;  %v700_v56 = vld [vmem:[#allocation6 + $0x78] sm:$0xff]  ;;  %v697_v57 = vld [vmem:[#allocation6 + $0x60] sm:$0xff] }
  0x5a   :  { %107 = vperm.xlu0 %8426, %v92_v4   ;;  %907 = vmatprep.subr.mxu1 %v744_v12  ;;  %v699_v58 = vld [vmem:[#allocation6 + $0x70] sm:$0xff]  ;;  %v694_v59 = vld [vmem:[#allocation6 + $0x48] sm:$0xff]  ;;  %v696_v60 = vld [vmem:[#allocation6 + $0x58] sm:$0xff] }
  0x5b   :  { %837 = vmatpush1.msra.mxu0 %v741_v13  ;;  %908 = vmatpush1.msra.mxu1 %v743_v14  ;;  %v693_v61 = vld [vmem:[#allocation6 + $0x40] sm:$0xff]  ;;  %v695_v62 = vld [vmem:[#allocation6 + $0x50] sm:$0xff]  ;;  %v690_v63 = vld [vmem:[#allocation6 + $0x28] sm:$0xff] }
  0x5c   :  { %838 = vmatprep.subr.mxu0 %v738_v15  ;;  %909 = vmatprep.subr.mxu1 %v740_v16  ;;  %v692_v1 = vld [vmem:[#allocation6 + $0x38] sm:$0xff]  ;;  %v689_v2 = vld [vmem:[#allocation6 + $0x20] sm:$0xff]  ;;  %v691_v3 = vld [vmem:[#allocation6 + $0x30] sm:$0xff] }
  0x5d   :  { %839 = vmatpush1.msra.mxu0 %v737_v17  ;;  %910 = vmatpush1.msra.mxu1 %v739_v18  ;;  %v686_v4 = vld [vmem:[#allocation6 + $0x8] sm:$0xff]  ;;  %v687_v7 = vld [vmem:[#allocation6 + $0x10] sm:$0xff]  ;;  %v812_v9 = vld [vmem:[#allocation6 + $0x3f8] sm:$0xff] }
  0x5e   :  { %122 = vperm.xlu0 %8426, %v95_v5   ;;  %840 = vmatprep.subr.mxu0 %v734_v19  ;;  %v688_v5 = vld [vmem:[#allocation6 + $0x18] sm:$0xff]  ;;  %v810_v8 = vld [vmem:[#allocation6 + $0x3e8] sm:$0xff]  ;;  %v809_v10 = vld [vmem:[#allocation6 + $0x3e0] sm:$0xff] }
  0x5f   :  { %911 = vmatprep.subr.mxu1 %v736_v20  ;;  %841 = vmatpush1.msra.mxu0 %v733_v21  ;;  %v811_v11 = vld [vmem:[#allocation6 + $0x3f0] sm:$0xff]  ;;  %v806_v12 = vld [vmem:[#allocation6 + $0x3c8] sm:$0xff]  ;;  %v808_v13 = vld [vmem:[#allocation6 + $0x3d8] sm:$0xff] }
  0x60   :  { %912 = vmatpush1.msra.mxu1 %v735_v22  ;;  %842 = vmatprep.subr.mxu0 %v730_v23  ;;  %v805_v14 = vld [vmem:[#allocation6 + $0x3c0] sm:$0xff]  ;;  %v807_v15 = vld [vmem:[#allocation6 + $0x3d0] sm:$0xff]  ;;  %v802_v16 = vld [vmem:[#allocation6 + $0x3a8] sm:$0xff] }
  0x61   :  { %913 = vmatprep.subr.mxu1 %v732_v24  ;;  %843 = vmatpush1.msra.mxu0 %v729_v25  ;;  %v804_v17 = vld [vmem:[#allocation6 + $0x3b8] sm:$0xff]  ;;  %v801_v18 = vld [vmem:[#allocation6 + $0x3a0] sm:$0xff]  ;;  %v803_v19 = vld [vmem:[#allocation6 + $0x3b0] sm:$0xff] }
  0x62   :  { %132 = vperm.xlu0 %8426, %v97_v6   ;;  %914 = vmatpush1.msra.mxu1 %v731_v26  ;;  %v685_v6 = vld [vmem:[#allocation6] sm:$0xff]  ;;  %v798_v20 = vld [vmem:[#allocation6 + $0x388] sm:$0xff]  ;;  %v800_v21 = vld [vmem:[#allocation6 + $0x398] sm:$0xff] }
  0x63   :  { %844 = vmatprep.subr.mxu0 %v726_v27  ;;  %915 = vmatprep.subr.mxu1 %v728_v28  ;;  %v797_v22 = vld [vmem:[#allocation6 + $0x380] sm:$0xff]  ;;  %v799_v23 = vld [vmem:[#allocation6 + $0x390] sm:$0xff]  ;;  %v794_v24 = vld [vmem:[#allocation6 + $0x368] sm:$0xff] }
  0x64   :  { %845 = vmatpush1.msra.mxu0 %v725_v29  ;;  %916 = vmatpush1.msra.mxu1 %v727_v30  ;;  %v796_v25 = vld [vmem:[#allocation6 + $0x378] sm:$0xff]  ;;  %v793_v26 = vld [vmem:[#allocation6 + $0x360] sm:$0xff]  ;;  %v795_v27 = vld [vmem:[#allocation6 + $0x370] sm:$0xff] }
  0x65   :  { %846 = vmatprep.subr.mxu0 %v722_v31  ;;  %917 = vmatprep.subr.mxu1 %v724_v32  ;;  %v790_v28 = vld [vmem:[#allocation6 + $0x348] sm:$0xff]  ;;  %v792_v29 = vld [vmem:[#allocation6 + $0x358] sm:$0xff]  ;;  %v789_v30 = vld [vmem:[#allocation6 + $0x340] sm:$0xff] }
  0x66   :  { %847 = vmatpush1.msra.mxu0 %v721_v33  ;;  %918 = vmatpush1.msra.mxu1 %v723_v34  ;;  %v791_v31 = vld [vmem:[#allocation6 + $0x350] sm:$0xff]  ;;  %v786_v32 = vld [vmem:[#allocation6 + $0x328] sm:$0xff]  ;;  %v788_v33 = vld [vmem:[#allocation6 + $0x338] sm:$0xff] }
  0x67   :  { %848 = vmatprep.subr.mxu0 %v718_v35  ;;  %919 = vmatprep.subr.mxu1 %v720_v36  ;;  %v785_v34 = vld [vmem:[#allocation6 + $0x320] sm:$0xff]  ;;  %v787_v35 = vld [vmem:[#allocation6 + $0x330] sm:$0xff]  ;;  %v782_v36 = vld [vmem:[#allocation6 + $0x308] sm:$0xff] }
  0x68   :  { %849 = vmatpush1.msra.mxu0 %v717_v37  ;;  %920 = vmatpush1.msra.mxu1 %v719_v38  ;;  %v784_v37 = vld [vmem:[#allocation6 + $0x318] sm:$0xff]  ;;  %v781_v38 = vld [vmem:[#allocation6 + $0x300] sm:$0xff] }
  0x69   :  { %850 = vmatprep.subr.mxu0 %v714_v39  ;;  %921 = vmatprep.subr.mxu1 %v716_v40  ;;  %v783_v39 = vld [vmem:[#allocation6 + $0x310] sm:$0xff]  ;;  %v778_v40 = vld [vmem:[#allocation6 + $0x2e8] sm:$0xff] }
  0x6a   :  { %851 = vmatpush1.msra.mxu0 %v713_v41  ;;  %922 = vmatpush1.msra.mxu1 %v715_v42  ;;  %v780_v41 = vld [vmem:[#allocation6 + $0x2f8] sm:$0xff]  ;;  %v777_v42 = vld [vmem:[#allocation6 + $0x2e0] sm:$0xff] }
  0x6b   :  { %852 = vmatprep.subr.mxu0 %v710_v43  ;;  %923 = vmatprep.subr.mxu1 %v712_v44  ;;  %v779_v43 = vld [vmem:[#allocation6 + $0x2f0] sm:$0xff]  ;;  %v774_v44 = vld [vmem:[#allocation6 + $0x2c8] sm:$0xff] }
  0x6c   :  { %853 = vmatpush1.msra.mxu0 %v709_v45  ;;  %924 = vmatpush1.msra.mxu1 %v711_v46  ;;  %v776_v45 = vld [vmem:[#allocation6 + $0x2d8] sm:$0xff]  ;;  %v773_v46 = vld [vmem:[#allocation6 + $0x2c0] sm:$0xff] }
  0x6d   :  { %854 = vmatprep.subr.mxu0 %v706_v47  ;;  %925 = vmatprep.subr.mxu1 %v708_v48  ;;  %v775_v47 = vld [vmem:[#allocation6 + $0x2d0] sm:$0xff]  ;;  %v770_v48 = vld [vmem:[#allocation6 + $0x2a8] sm:$0xff] }
  0x6e   :  { %855 = vmatpush1.msra.mxu0 %v705_v49  ;;  %926 = vmatpush1.msra.mxu1 %v707_v50  ;;  %v772_v49 = vld [vmem:[#allocation6 + $0x2b8] sm:$0xff]  ;;  %v769_v50 = vld [vmem:[#allocation6 + $0x2a0] sm:$0xff] }
  0x6f   :  { %856 = vmatprep.subr.mxu0 %v702_v51  ;;  %927 = vmatprep.subr.mxu1 %v704_v52  ;;  %v771_v51 = vld [vmem:[#allocation6 + $0x2b0] sm:$0xff]  ;;  %v766_v52 = vld [vmem:[#allocation6 + $0x288] sm:$0xff] }
  0x70   :  { %857 = vmatpush1.msra.mxu0 %v701_v53  ;;  %928 = vmatpush1.msra.mxu1 %v703_v54  ;;  %v768_v53 = vld [vmem:[#allocation6 + $0x298] sm:$0xff]  ;;  %v765_v54 = vld [vmem:[#allocation6 + $0x280] sm:$0xff] }
  0x71   :  { %858 = vmatprep.subr.mxu0 %v698_v55  ;;  %929 = vmatprep.subr.mxu1 %v700_v56  ;;  %v767_v55 = vld [vmem:[#allocation6 + $0x290] sm:$0xff]  ;;  %v762_v56 = vld [vmem:[#allocation6 + $0x268] sm:$0xff] }
  0x72   :  { %859 = vmatpush1.msra.mxu0 %v697_v57  ;;  %930 = vmatpush1.msra.mxu1 %v699_v58  ;;  %v764_v57 = vld [vmem:[#allocation6 + $0x278] sm:$0xff]  ;;  %v761_v58 = vld [vmem:[#allocation6 + $0x260] sm:$0xff] }
  0x73   :  { %860 = vmatprep.subr.mxu0 %v694_v59  ;;  %931 = vmatprep.subr.mxu1 %v696_v60  ;;  %v763_v59 = vld [vmem:[#allocation6 + $0x270] sm:$0xff]  ;;  %v758_v60 = vld [vmem:[#allocation6 + $0x248] sm:$0xff] }
  0x74   :  { %861 = vmatpush1.msra.mxu0 %v693_v61  ;;  %932 = vmatpush1.msra.mxu1 %v695_v62  ;;  %v760_v61 = vld [vmem:[#allocation6 + $0x258] sm:$0xff]  ;;  %v757_v62 = vld [vmem:[#allocation6 + $0x240] sm:$0xff] }
  0x75   :  { %862 = vmatprep.subr.mxu0 %v690_v63  ;;  %933 = vmatprep.subr.mxu1 %v692_v1  ;;  %v759_v63 = vld [vmem:[#allocation6 + $0x250] sm:$0xff]  ;;  %v754_v1 = vld [vmem:[#allocation6 + $0x228] sm:$0xff] }
  0x76   :  { %863 = vmatpush1.msra.mxu0 %v689_v2  ;;  %934 = vmatpush1.msra.mxu1 %v691_v3  ;;  %v756_v2 = vld [vmem:[#allocation6 + $0x238] sm:$0xff]  ;;  %v753_v3 = vld [vmem:[#allocation6 + $0x220] sm:$0xff] }
  0x77   :  { %864 = vmatprep.subr.mxu0 %v686_v4  ;;  %935 = vmatprep.subr.mxu1 %v688_v5  ;;  %v755_v4 = vld [vmem:[#allocation6 + $0x230] sm:$0xff]  ;;  %v750_v5 = vld [vmem:[#allocation6 + $0x208] sm:$0xff] }
  0x78   :  { %865 = vmatpush1.msra.mxu0 %v685_v6  ;;  %936 = vmatpush1.msra.mxu1 %v687_v7  ;;  %v752_v6 = vld [vmem:[#allocation6 + $0x218] sm:$0xff]  ;;  %v749_v7 = vld [vmem:[#allocation6 + $0x200] sm:$0xff] }
  0x79   :  { %866 = vmatprep.subr.mxu0 %v810_v8  ;;  %937 = vmatprep.subr.mxu1 %v812_v9  ;;  %v751_v8 = vld [vmem:[#allocation6 + $0x210] sm:$0xff]  ;;  %v1062_v9 = vld [vmem:[#allocation8 + $0x1e8] sm:$0xff] }
  0x7a   :  { %867 = vmatpush2.msra.mxu0 %v809_v10  ;;  %938 = vmatpush2.msra.mxu1 %v811_v11  ;;  %v1064_v10 = vld [vmem:[#allocation8 + $0x1f8] sm:$0xff]  ;;  %v141_v11 = vlaneseq }
  0x7b   :  { %868 = vmatprep.subr.mxu0 %v806_v12  ;;  %939 = vmatprep.subr.mxu1 %v808_v13 }
  0x7c   :  { %869 = vmatpush2.msra.mxu0 %v805_v14  ;;  %940 = vmatpush2.msra.mxu1 %v807_v15  ;;  %v142_v12 = vshrl.u32 %v141_v11, 7  ;;  %v1057_v11 = vld [vmem:[#allocation8 + $0x1c0] sm:$0xff] }
  0x7d   :  { %870 = vmatprep.subr.mxu0 %v802_v16  ;;  %941 = vmatprep.subr.mxu1 %v804_v17  ;;  %v99_v17 = vld [vmem:[%s9586_s1] sm:$0xf] }
  0x7e   :  { %871 = vmatpush2.msra.mxu0 %v801_v18  ;;  %942 = vmatpush2.msra.mxu1 %v803_v19  ;;  %v8964_v13 = vsub.s32 0, %v142_v12  ;;  %v8966_v14 = vsub.s32 1, %v142_v12  ;;  %v8968_v15 = vsub.s32 2, %v142_v12  ;;  %v8970_v16 = vsub.s32 3, %v142_v12 }
  0x7f   :  { %872 = vmatprep.subr.mxu0 %v798_v20  ;;  %943 = vmatprep.subr.mxu1 %v800_v21 }
  0x80   :  { %873 = vmatpush2.msra.mxu0 %v797_v22  ;;  %944 = vmatpush2.msra.mxu1 %v799_v23  ;;  %v8976_v18 = vrot.slane %v99_v17, %v8964_v13  ;;  %v8979_v19 = vrot.slane %v99_v17, %v8966_v14  ;;  %v8982_v20 = vrot.slane %v99_v17, %v8968_v15  ;;  %v193_v22 = vld [vmem:[%s9588_s3] sm:$0xf]  ;;  %v8872_v23 = vmov 1983009808  }
  0x81   :  { %874 = vmatprep.subr.mxu0 %v794_v24  ;;  %945 = vmatprep.subr.mxu1 %v796_v25  ;;  %v8985_v21 = vrot.slane %v99_v17, %v8970_v16  ;;  %v282_v24 = vunpack.c.l.s4 %v8872_v23  ;;  %v8991_v25 = vrot.slane %v193_v22, %v8964_v13  ;;  %v1054_v17 = vld [vmem:[#allocation8 + $0x1a8] sm:$0xff]  ;;  %v1053_v23 = vld [vmem:[#allocation8 + $0x1a0] sm:$0xff] }
  0x82   :  { %875 = vmatpush2.msra.mxu0 %v793_v26  ;;  %946 = vmatpush2.msra.mxu1 %v795_v27  ;;  %v8994_v26 = vrot.slane %v193_v22, %v8966_v14  ;;  %v8997_v27 = vrot.slane %v193_v22, %v8968_v15 }
  0x83   :  { %876 = vmatprep.subr.mxu0 %v790_v28  ;;  %947 = vmatprep.subr.mxu1 %v792_v29  ;;  %v9000_v28 = vrot.slane %v193_v22, %v8970_v16  ;;  %v1055_v22 = vld [vmem:[#allocation8 + $0x1b0] sm:$0xff] }
  0x84   :  { %877 = vmatpush2.msra.mxu0 %v789_v30  ;;  %948 = vmatpush2.msra.mxu1 %v791_v31 }
  0x85   :  { %878 = vmatprep.subr.mxu0 %v786_v32  ;;  %949 = vmatprep.subr.mxu1 %v788_v33 }
  0x86   :  { %879 = vmatpush2.msra.mxu0 %v785_v34  ;;  %950 = vmatpush2.msra.mxu1 %v787_v35  ;;  %v283_v34 = vunpack.c.0.s8 %v282_v24  ;;  %v1052_v24 = vld [vmem:[#allocation8 + $0x198] sm:$0xff] }
  0x87   :  { %880 = vmatprep.subr.mxu0 %v782_v36  ;;  %951 = vmatprep.subr.mxu1 %v784_v37 }
  0x88   :  { %881 = vmatpush2.msra.mxu0 %v781_v38  ;;  %952 = vmatpush2.msra.mxu1 %v783_v39  ;;  %v9010_v39 = vsub.s32 %v283_v34, %v142_v12  ;;  %v1056_v12 = vld [vmem:[#allocation8 + $0x1b8] sm:$0xff]  ;;  %v1047_v34 = vld [vmem:[#allocation8 + $0x170] sm:$0xff] }
  0x89   :  { %882 = vmatprep.subr.mxu0 %v778_v40  ;;  %953 = vmatprep.subr.mxu1 %v780_v41 }
  0x8a   :  { %883 = vmatpush2.msra.mxu0 %v777_v42  ;;  %954 = vmatpush2.msra.mxu1 %v779_v43 }
  0x8b   :  { %884 = vmatprep.subr.mxu0 %v774_v44  ;;  %955 = vmatprep.subr.mxu1 %v776_v45 }
  0x8c   :  { %885 = vmatpush2.msra.mxu0 %v773_v46  ;;  %956 = vmatpush2.msra.mxu1 %v775_v47 }
  0x8d   :  { %886 = vmatprep.subr.mxu0 %v770_v48  ;;  %957 = vmatprep.subr.mxu1 %v772_v49 }
  0x8e   :  { %887 = vmatpush2.msra.mxu0 %v769_v50  ;;  %958 = vmatpush2.msra.mxu1 %v771_v51 }
  0x8f   :  { %888 = vmatprep.subr.mxu0 %v766_v52  ;;  %959 = vmatprep.subr.mxu1 %v768_v53 }
  0x90   :  { %889 = vmatpush2.msra.mxu0 %v765_v54  ;;  %960 = vmatpush2.msra.mxu1 %v767_v55 }
  0x91   :  { %890 = vmatprep.subr.mxu0 %v762_v56  ;;  %961 = vmatprep.subr.mxu1 %v764_v57 }
  0x92   :  { %891 = vmatpush2.msra.mxu0 %v761_v58  ;;  %962 = vmatpush2.msra.mxu1 %v763_v59 }
  0x93   :  { %892 = vmatprep.subr.mxu0 %v758_v60  ;;  %963 = vmatprep.subr.mxu1 %v760_v61 }
  0x94   :  { %893 = vmatpush2.msra.mxu0 %v757_v62  ;;  %964 = vmatpush2.msra.mxu1 %v759_v63 }
  0x95   :  { %894 = vmatprep.subr.mxu0 %v754_v1  ;;  %965 = vmatprep.subr.mxu1 %v756_v2 }
  0x96   :  { %895 = vmatpush2.msra.mxu0 %v753_v3  ;;  %966 = vmatpush2.msra.mxu1 %v755_v4 }
  0x97   :  { %896 = vmatprep.subr.mxu0 %v750_v5  ;;  %967 = vmatprep.subr.mxu1 %v752_v6  ;;  %v1063_v6 = vld [vmem:[#allocation8 + $0x1f0] sm:$0xff] }
  0x98   :  { %897 = vmatpush2.msra.mxu0 %v749_v7  ;;  %968 = vmatpush2.msra.mxu1 %v751_v8  ;;  %v1061_v7 = vld [vmem:[#allocation8 + $0x1e0] sm:$0xff]  ;;  %v1060_v8 = vld [vmem:[#allocation8 + $0x1d8] sm:$0xff] }
  0x99   :  { %1150 = vmatprep.subr.mxu0 %v1062_v9  ;;  %1221 = vmatprep.subr.mxu1 %v1064_v10  ;;  %v1058_v9 = vld [vmem:[#allocation8 + $0x1c8] sm:$0xff]  ;;  %v1059_v10 = vld [vmem:[#allocation8 + $0x1d0] sm:$0xff] }
  0xd1   :  { %v103_v29 = vpop.permute.xlu0 %102 }
  0xd2   :  { %v161_v30 = vmul.f32 %v8976_v18, %v103_v29  ;;  %v162_v31 = vmul.f32 %v8979_v19, %v103_v29  ;;  %v163_v32 = vmul.f32 %v8982_v20, %v103_v29  ;;  %v164_v33 = vmul.f32 %v8985_v21, %v103_v29  ;;  %v1050_v29 = vld [vmem:[#allocation8 + $0x188] sm:$0xff] }
  0xd4   :  { %v215_v35 = vadd.f32 %v8991_v25, %v161_v30  ;;  %v216_v36 = vadd.f32 %v8994_v26, %v162_v31  ;;  %v217_v37 = vadd.f32 %v8997_v27, %v163_v32  ;;  %v218_v38 = vadd.f32 %v9000_v28, %v164_v33  ;;  %v1051_v30 = vld [vmem:[#allocation8 + $0x190] sm:$0xff]  ;;  %v1049_v31 = vld [vmem:[#allocation8 + $0x180] sm:$0xff]  ;;  %v1048_v32 = vld [vmem:[#allocation8 + $0x178] sm:$0xff] }
  0xd5   :  { %v1046_v33 = vld [vmem:[#allocation8 + $0x168] sm:$0xff] }
  0xd6   :  { %v279_v40 = vcombine.low %v215_v35, %v216_v36  ;;  %v280_v41 = vcombine.low %v217_v37, %v218_v38  ;;  %v1045_v35 = vld [vmem:[#allocation8 + $0x160] sm:$0xff]  ;;  %v1044_v36 = vld [vmem:[#allocation8 + $0x158] sm:$0xff]  ;;  %v1042_v37 = vld [vmem:[#allocation8 + $0x148] sm:$0xff] }
  0xd7   :  { %v1043_v38 = vld [vmem:[#allocation8 + $0x150] sm:$0xff] }
  0xd8   :  { %v287_v44 = vrot.slane %v279_v40, %v9010_v39  ;;  %v294_v45 = vrot.slane %v280_v41, %v9010_v39  ;;  %v1041_v40 = vld [vmem:[#allocation8 + $0x140] sm:$0xff]  ;;  %v1040_v41 = vld [vmem:[#allocation8 + $0x138] sm:$0xff] }
  0xda   :  { %v295_v51 = vcombine.low %v287_v44, %v294_v45  ;;  %v1037_v44 = vld [vmem:[#allocation8 + $0x120] sm:$0xff]  ;;  %v1036_v45 = vld [vmem:[#allocation8 + $0x118] sm:$0xff] }
 0x115   :  { %v565_v42 = vpop.f32.mrf.mxu0  ;;  %v636_v43 = vpop.f32.mrf.mxu1 }
 0x117   :  { %v567_v46 = vpop.f32.mrf.mxu0  ;;  %v638_v47 = vpop.f32.mrf.mxu1 }
 0x118   :  { %v645_v48 = vcombine.low %v565_v42, %v567_v46  ;;  %v646_v49 = vcombine.low %v636_v43, %v638_v47  ;;  %v1038_v42 = vld [vmem:[#allocation8 + $0x128] sm:$0xff]  ;;  %v1039_v43 = vld [vmem:[#allocation8 + $0x130] sm:$0xff] }
 0x119   :  { %v1034_v46 = vld [vmem:[#allocation8 + $0x108] sm:$0xff]  ;;  %v1035_v47 = vld [vmem:[#allocation8 + $0x110] sm:$0xff] }
 0x11a   :  { %v653_v50 = vrot.slane %v645_v48, %v9010_v39  ;;  %v660_v52 = vrot.slane %v646_v49, %v9010_v39  ;;  %v1033_v48 = vld [vmem:[#allocation8 + $0x100] sm:$0xff]  ;;  %v1032_v49 = vld [vmem:[#allocation8 + $0xf8] sm:$0xff] }
 0x11c   :  { %v661_v53 = vcombine.low %v653_v50, %v660_v52  ;;  %v1030_v50 = vld [vmem:[#allocation8 + $0xe8] sm:$0xff]  ;;  %v1029_v52 = vld [vmem:[#allocation8 + $0xe0] sm:$0xff] }
 0x11e   :  { %v663_v54 = vadd.f32 %v661_v53, %v295_v51  ;;  %v1031_v51 = vld [vmem:[#allocation8 + $0xf0] sm:$0xff]  ;;  %v1028_v53 = vld [vmem:[#allocation8 + $0xd8] sm:$0xff] }
 0x120   :  { %v7939_v55 = vmul.f32 -1.442695, %v663_v54  ;;  %v671_v58 = vrot.slane %v663_v54, 6  ;;  %v1026_v54 = vld [vmem:[#allocation8 + $0xc8] sm:$0xff] }
 0x122   :  { %8428 = vpow2.f32 %v7939_v55  ;;  %v1027_v55 = vld [vmem:[#allocation8 + $0xd0] sm:$0xff] }
 0x12f   :  { %v8429_v56 = vpop.eup %8428 }
 0x130   :  { %v667_v57 = vadd.f32 1.0, %v8429_v56  ;;  %v1025_v56 = vld [vmem:[#allocation8 + $0xc0] sm:$0xff] }
 0x132   :  { %8430 = vrcp.f32 %v667_v57  ;;  %v1024_v57 = vld [vmem:[#allocation8 + $0xb8] sm:$0xff] }
 0x133   :  { %8432 = vtanh.f32 %v671_v58  ;;  %v1022_v58 = vld [vmem:[#allocation8 + $0xa8] sm:$0xff] }
 0x13f   :  { %v8431_v59 = vpop.eup %8430 }
 0x140   :  { %v675_v60 = vrot.slane %v8431_v59, 2  ;;  %v8433_v61 = vpop.eup %8432  ;;  %v681_v2 = vrot.slane %v8431_v59, 4 }
 0x141   :  { %v678_v63 = vmul.f32 %v8433_v61, %v8431_v59  ;;  %v1023_v59 = vld [vmem:[#allocation8 + $0xb0] sm:$0xff]  ;;  %v1020_v61 = vld [vmem:[#allocation8 + $0x98] sm:$0xff] }
 0x142   :  { %v677_v62 = vmul.f32 0.0, %v675_v60  ;;  %v1021_v60 = vld [vmem:[#allocation8 + $0xa0] sm:$0xff] }
 0x144   :  { %v9016_v1 = vadd.f32 %v678_v63, %v677_v62  ;;  %v1018_v62 = vld [vmem:[#allocation8 + $0x88] sm:$0xff]  ;;  %v1019_v63 = vld [vmem:[#allocation8 + $0x90] sm:$0xff] }
 0x146   :  { %8434 = vtanh.f32 %v9016_v1 }
 0x153   :  { %v8435_v3 = vpop.eup %8434 }
 0x154   :  { %v9019_v4 = vmul.f32 %v8435_v3, %v681_v2  ;;  %v1017_v2 = vld [vmem:[#allocation8 + $0x80] sm:$0xff]  ;;  %v1016_v3 = vld [vmem:[#allocation8 + $0x78] sm:$0xff] }
 0x156   :  { %v684_v5 = vmax.f32 %v9019_v4, 0.0 }
 0x158   :  { %899 = vmatmul.mubr.f32.vlgmr.msra.gmra.mxu0 %v684_v5  ;;  %970 = vmatmul.mubr.f32.vlgmr.msra.gmra.mxu1 %v684_v5  ;;  %v1014_v5 = vld [vmem:[#allocation8 + $0x68] sm:$0xff] }
 0x159   :  { %1222 = vmatpush1.msra.mxu1 %v1063_v6  ;;  %1151 = vmatpush1.msra.mxu0 %v1061_v7  ;;  %v1015_v6 = vld [vmem:[#allocation8 + $0x70] sm:$0xff]  ;;  %v1013_v7 = vld [vmem:[#allocation8 + $0x60] sm:$0xff] }
 0x15a   :  { %1223 = vmatprep.subr.mxu1 %v1060_v8  ;;  %1152 = vmatprep.subr.mxu0 %v1058_v9  ;;  %v1012_v8 = vld [vmem:[#allocation8 + $0x58] sm:$0xff]  ;;  %v1010_v9 = vld [vmem:[#allocation8 + $0x48] sm:$0xff] }
 0x15b   :  { %1224 = vmatpush1.msra.mxu1 %v1059_v10  ;;  %1153 = vmatpush1.msra.mxu0 %v1057_v11  ;;  %v1011_v10 = vld [vmem:[#allocation8 + $0x50] sm:$0xff]  ;;  %v1009_v11 = vld [vmem:[#allocation8 + $0x40] sm:$0xff] }
 0x15c   :  { %1225 = vmatprep.subr.mxu1 %v1056_v12  ;;  %1154 = vmatprep.subr.mxu0 %v1054_v17  ;;  %v1008_v12 = vld [vmem:[#allocation8 + $0x38] sm:$0xff]  ;;  %v1006_v17 = vld [vmem:[#allocation8 + $0x28] sm:$0xff] }
 0x15d   :  { %1226 = vmatpush1.msra.mxu1 %v1055_v22  ;;  %1214 = vmatprep.mubr.f32.mxu0 %v8870_v0  ;;  %v1007_v22 = vld [vmem:[#allocation8 + $0x30] sm:$0xff] }
 0x15e   :  { %1285 = vmatprep.mubr.f32.mxu1 %v8870_v0  ;;  %1155 = vmatpush1.msra.mxu0 %v1053_v23  ;;  %v1005_v23 = vld [vmem:[#allocation8 + $0x20] sm:$0xff] }
 0x15f   :  { %1227 = vmatprep.subr.mxu1 %v1052_v24  ;;  %1156 = vmatprep.subr.mxu0 %v1050_v29  ;;  %v1004_v24 = vld [vmem:[#allocation8 + $0x18] sm:$0xff]  ;;  %v1002_v29 = vld [vmem:[#allocation8 + $0x8] sm:$0xff] }
 0x160   :  { %1228 = vmatpush1.msra.mxu1 %v1051_v30  ;;  %1157 = vmatpush1.msra.mxu0 %v1049_v31  ;;  %v1003_v30 = vld [vmem:[#allocation8 + $0x10] sm:$0xff]  ;;  %v1001_v31 = vld [vmem:[#allocation8] sm:$0xff] }
 0x161   :  { %1229 = vmatprep.subr.mxu1 %v1048_v32  ;;  %1158 = vmatprep.subr.mxu0 %v1046_v33  ;;  %v1128_v32 = vld [vmem:[#allocation8 + $0x3f8] sm:$0xff]  ;;  %v1126_v33 = vld [vmem:[#allocation8 + $0x3e8] sm:$0xff] }
 0x162   :  { %1230 = vmatpush1.msra.mxu1 %v1047_v34  ;;  %1159 = vmatpush1.msra.mxu0 %v1045_v35  ;;  %v1127_v34 = vld [vmem:[#allocation8 + $0x3f0] sm:$0xff]  ;;  %v1125_v35 = vld [vmem:[#allocation8 + $0x3e0] sm:$0xff] }
 0x163   :  { %1231 = vmatprep.subr.mxu1 %v1044_v36  ;;  %1160 = vmatprep.subr.mxu0 %v1042_v37  ;;  %v1124_v36 = vld [vmem:[#allocation8 + $0x3d8] sm:$0xff]  ;;  %v1122_v37 = vld [vmem:[#allocation8 + $0x3c8] sm:$0xff] }
 0x164   :  { %1232 = vmatpush1.msra.mxu1 %v1043_v38  ;;  %1161 = vmatpush1.msra.mxu0 %v1041_v40  ;;  %v1123_v38 = vld [vmem:[#allocation8 + $0x3d0] sm:$0xff]  ;;  %v1121_v40 = vld [vmem:[#allocation8 + $0x3c0] sm:$0xff] }
 0x165   :  { %1233 = vmatprep.subr.mxu1 %v1040_v41  ;;  %1162 = vmatprep.subr.mxu0 %v1038_v42  ;;  %v1120_v41 = vld [vmem:[#allocation8 + $0x3b8] sm:$0xff]  ;;  %v1118_v42 = vld [vmem:[#allocation8 + $0x3a8] sm:$0xff] }
 0x166   :  { %1234 = vmatpush1.msra.mxu1 %v1039_v43  ;;  %1163 = vmatpush1.msra.mxu0 %v1037_v44  ;;  %v1119_v43 = vld [vmem:[#allocation8 + $0x3b0] sm:$0xff]  ;;  %v1117_v44 = vld [vmem:[#allocation8 + $0x3a0] sm:$0xff] }
 0x167   :  { %1235 = vmatprep.subr.mxu1 %v1036_v45  ;;  %1164 = vmatprep.subr.mxu0 %v1034_v46  ;;  %v1116_v45 = vld [vmem:[#allocation8 + $0x398] sm:$0xff]  ;;  %v1114_v46 = vld [vmem:[#allocation8 + $0x388] sm:$0xff] }
 0x168   :  { %1236 = vmatpush1.msra.mxu1 %v1035_v47  ;;  %1165 = vmatpush1.msra.mxu0 %v1033_v48  ;;  %v1115_v47 = vld [vmem:[#allocation8 + $0x390] sm:$0xff]  ;;  %v1113_v48 = vld [vmem:[#allocation8 + $0x380] sm:$0xff] }
 0x169   :  { %1237 = vmatprep.subr.mxu1 %v1032_v49  ;;  %1166 = vmatprep.subr.mxu0 %v1030_v50  ;;  %v1112_v49 = vld [vmem:[#allocation8 + $0x378] sm:$0xff]  ;;  %v1110_v50 = vld [vmem:[#allocation8 + $0x368] sm:$0xff] }
 0x16a   :  { %1238 = vmatpush1.msra.mxu1 %v1031_v51  ;;  %1167 = vmatpush1.msra.mxu0 %v1029_v52  ;;  %v1111_v51 = vld [vmem:[#allocation8 + $0x370] sm:$0xff]  ;;  %v1109_v52 = vld [vmem:[#allocation8 + $0x360] sm:$0xff] }
 0x16b   :  { %1239 = vmatprep.subr.mxu1 %v1028_v53  ;;  %1168 = vmatprep.subr.mxu0 %v1026_v54  ;;  %v1108_v53 = vld [vmem:[#allocation8 + $0x358] sm:$0xff]  ;;  %v1106_v54 = vld [vmem:[#allocation8 + $0x348] sm:$0xff] }
 0x16c   :  { %1240 = vmatpush1.msra.mxu1 %v1027_v55  ;;  %1169 = vmatpush1.msra.mxu0 %v1025_v56  ;;  %v1107_v55 = vld [vmem:[#allocation8 + $0x350] sm:$0xff]  ;;  %v1105_v56 = vld [vmem:[#allocation8 + $0x340] sm:$0xff] }
 0x16d   :  { %1241 = vmatprep.subr.mxu1 %v1024_v57  ;;  %1170 = vmatprep.subr.mxu0 %v1022_v58  ;;  %v1104_v57 = vld [vmem:[#allocation8 + $0x338] sm:$0xff]  ;;  %v1102_v58 = vld [vmem:[#allocation8 + $0x328] sm:$0xff] }
 0x16e   :  { %1242 = vmatpush1.msra.mxu1 %v1023_v59  ;;  %1171 = vmatpush1.msra.mxu0 %v1021_v60  ;;  %v1103_v59 = vld [vmem:[#allocation8 + $0x330] sm:$0xff]  ;;  %v1101_v60 = vld [vmem:[#allocation8 + $0x320] sm:$0xff] }
 0x16f   :  { %1243 = vmatprep.subr.mxu1 %v1020_v61  ;;  %1172 = vmatprep.subr.mxu0 %v1018_v62  ;;  %v1100_v61 = vld [vmem:[#allocation8 + $0x318] sm:$0xff]  ;;  %v1098_v62 = vld [vmem:[#allocation8 + $0x308] sm:$0xff] }
 0x170   :  { %1244 = vmatpush1.msra.mxu1 %v1019_v63  ;;  %1173 = vmatpush1.msra.mxu0 %v1017_v2  ;;  %v1099_v63 = vld [vmem:[#allocation8 + $0x310] sm:$0xff]  ;;  %v1097_v2 = vld [vmem:[#allocation8 + $0x300] sm:$0xff] }
 0x171   :  { %1245 = vmatprep.subr.mxu1 %v1016_v3  ;;  %1174 = vmatprep.subr.mxu0 %v1014_v5  ;;  %v1096_v3 = vld [vmem:[#allocation8 + $0x2f8] sm:$0xff]  ;;  %v1094_v5 = vld [vmem:[#allocation8 + $0x2e8] sm:$0xff] }
 0x172   :  { %1246 = vmatpush1.msra.mxu1 %v1015_v6  ;;  %1175 = vmatpush1.msra.mxu0 %v1013_v7  ;;  %v1095_v6 = vld [vmem:[#allocation8 + $0x2f0] sm:$0xff]  ;;  %v1093_v7 = vld [vmem:[#allocation8 + $0x2e0] sm:$0xff] }
 0x173   :  { %1247 = vmatprep.subr.mxu1 %v1012_v8  ;;  %1176 = vmatprep.subr.mxu0 %v1010_v9  ;;  %v1092_v8 = vld [vmem:[#allocation8 + $0x2d8] sm:$0xff]  ;;  %v1090_v9 = vld [vmem:[#allocation8 + $0x2c8] sm:$0xff] }
 0x174   :  { %1248 = vmatpush1.msra.mxu1 %v1011_v10  ;;  %1177 = vmatpush1.msra.mxu0 %v1009_v11  ;;  %v1091_v10 = vld [vmem:[#allocation8 + $0x2d0] sm:$0xff]  ;;  %v1089_v11 = vld [vmem:[#allocation8 + $0x2c0] sm:$0xff] }
 0x175   :  { %1249 = vmatprep.subr.mxu1 %v1008_v12  ;;  %1178 = vmatprep.subr.mxu0 %v1006_v17  ;;  %v1088_v12 = vld [vmem:[#allocation8 + $0x2b8] sm:$0xff]  ;;  %v1086_v17 = vld [vmem:[#allocation8 + $0x2a8] sm:$0xff] }
 0x176   :  { %1250 = vmatpush1.msra.mxu1 %v1007_v22  ;;  %1179 = vmatpush1.msra.mxu0 %v1005_v23  ;;  %v1087_v22 = vld [vmem:[#allocation8 + $0x2b0] sm:$0xff]  ;;  %v1085_v23 = vld [vmem:[#allocation8 + $0x2a0] sm:$0xff] }
 0x177   :  { %1251 = vmatprep.subr.mxu1 %v1004_v24  ;;  %1180 = vmatprep.subr.mxu0 %v1002_v29  ;;  %v1084_v24 = vld [vmem:[#allocation8 + $0x298] sm:$0xff]  ;;  %v1082_v29 = vld [vmem:[#allocation8 + $0x288] sm:$0xff] }
 0x178   :  { %1252 = vmatpush1.msra.mxu1 %v1003_v30  ;;  %1181 = vmatpush1.msra.mxu0 %v1001_v31  ;;  %v1083_v30 = vld [vmem:[#allocation8 + $0x290] sm:$0xff]  ;;  %v1081_v31 = vld [vmem:[#allocation8 + $0x280] sm:$0xff] }
 0x179   :  { %1253 = vmatprep.subr.mxu1 %v1128_v32  ;;  %1182 = vmatprep.subr.mxu0 %v1126_v33  ;;  %v1080_v32 = vld [vmem:[#allocation8 + $0x278] sm:$0xff]  ;;  %v1078_v33 = vld [vmem:[#allocation8 + $0x268] sm:$0xff] }
 0x17a   :  { %1254 = vmatpush2.msra.mxu1 %v1127_v34  ;;  %1183 = vmatpush2.msra.mxu0 %v1125_v35  ;;  %v1079_v34 = vld [vmem:[#allocation8 + $0x270] sm:$0xff]  ;;  %v1077_v35 = vld [vmem:[#allocation8 + $0x260] sm:$0xff] }
 0x17b   :  { %1255 = vmatprep.subr.mxu1 %v1124_v36  ;;  %1184 = vmatprep.subr.mxu0 %v1122_v37  ;;  %v1076_v36 = vld [vmem:[#allocation8 + $0x258] sm:$0xff]  ;;  %v1074_v37 = vld [vmem:[#allocation8 + $0x248] sm:$0xff] }
 0x17c   :  { %1256 = vmatpush2.msra.mxu1 %v1123_v38  ;;  %1185 = vmatpush2.msra.mxu0 %v1121_v40  ;;  %v1075_v38 = vld [vmem:[#allocation8 + $0x250] sm:$0xff]  ;;  %v1073_v40 = vld [vmem:[#allocation8 + $0x240] sm:$0xff] }
 0x17d   :  { %1257 = vmatprep.subr.mxu1 %v1120_v41  ;;  %1186 = vmatprep.subr.mxu0 %v1118_v42  ;;  %v1072_v41 = vld [vmem:[#allocation8 + $0x238] sm:$0xff]  ;;  %v1070_v42 = vld [vmem:[#allocation8 + $0x228] sm:$0xff] }
 0x17e   :  { %1258 = vmatpush2.msra.mxu1 %v1119_v43  ;;  %1187 = vmatpush2.msra.mxu0 %v1117_v44  ;;  %v1071_v43 = vld [vmem:[#allocation8 + $0x230] sm:$0xff]  ;;  %v1069_v44 = vld [vmem:[#allocation8 + $0x220] sm:$0xff] }
 0x17f   :  { %1259 = vmatprep.subr.mxu1 %v1116_v45  ;;  %1188 = vmatprep.subr.mxu0 %v1114_v46  ;;  %v1068_v45 = vld [vmem:[#allocation8 + $0x218] sm:$0xff]  ;;  %v1066_v46 = vld [vmem:[#allocation8 + $0x208] sm:$0xff] }
 0x180   :  { %1260 = vmatpush2.msra.mxu1 %v1115_v47  ;;  %1189 = vmatpush2.msra.mxu0 %v1113_v48  ;;  %v1067_v47 = vld [vmem:[#allocation8 + $0x210] sm:$0xff]  ;;  %v1065_v48 = vld [vmem:[#allocation8 + $0x200] sm:$0xff] }
 0x181   :  { %1261 = vmatprep.subr.mxu1 %v1112_v49  ;;  %1190 = vmatprep.subr.mxu0 %v1110_v50  ;;  %v1473_v49 = vld [vmem:[#allocation3 + $0x1e8] sm:$0xff]  ;;  %v431_v50 = vld [vmem:[%s9590_s5] sm:$0xf] }
 0x182   :  { %1262 = vmatpush2.msra.mxu1 %v1111_v51  ;;  %1191 = vmatpush2.msra.mxu0 %v1109_v52  ;;  %v9029_v51 = vrot.slane %v431_v50, %v8964_v13  ;;  %v9032_v52 = vrot.slane %v431_v50, %v8966_v14 }
 0x183   :  { %1263 = vmatprep.subr.mxu1 %v1108_v53  ;;  %1192 = vmatprep.subr.mxu0 %v1106_v54 }
 0x184   :  { %1264 = vmatpush2.msra.mxu1 %v1107_v55  ;;  %1193 = vmatpush2.msra.mxu0 %v1105_v56 }
 0x185   :  { %1265 = vmatprep.subr.mxu1 %v1104_v57  ;;  %1194 = vmatprep.subr.mxu0 %v1102_v58 }
 0x186   :  { %1266 = vmatpush2.msra.mxu1 %v1103_v59  ;;  %1195 = vmatpush2.msra.mxu0 %v1101_v60  ;;  %v9037_v59 = vrot.slane %v431_v50, %v8968_v15 }
 0x187   :  { %1267 = vmatprep.subr.mxu1 %v1100_v61  ;;  %1196 = vmatprep.subr.mxu0 %v1098_v62  ;;  %v9041_v62 = vrot.slane %v431_v50, %v8970_v16  ;;  %v1440_v50 = vld [vmem:[#allocation3 + $0xe0] sm:$0xff] }
 0x188   :  { %1268 = vmatpush2.msra.mxu1 %v1099_v63  ;;  %1197 = vmatpush2.msra.mxu0 %v1097_v2 }
 0x189   :  { %1269 = vmatprep.subr.mxu1 %v1096_v3  ;;  %1198 = vmatprep.subr.mxu0 %v1094_v5 }
 0x18a   :  { %1270 = vmatpush2.msra.mxu1 %v1095_v6  ;;  %1199 = vmatpush2.msra.mxu0 %v1093_v7 }
 0x18b   :  { %1271 = vmatprep.subr.mxu1 %v1092_v8  ;;  %1200 = vmatprep.subr.mxu0 %v1090_v9 }
 0x18c   :  { %1272 = vmatpush2.msra.mxu1 %v1091_v10  ;;  %1201 = vmatpush2.msra.mxu0 %v1089_v11 }
 0x18d   :  { %1273 = vmatprep.subr.mxu1 %v1088_v12  ;;  %1202 = vmatprep.subr.mxu0 %v1086_v17 }
 0x18e   :  { %1274 = vmatpush2.msra.mxu1 %v1087_v22  ;;  %1203 = vmatpush2.msra.mxu0 %v1085_v23 }
 0x18f   :  { %1275 = vmatprep.subr.mxu1 %v1084_v24  ;;  %1204 = vmatprep.subr.mxu0 %v1082_v29 }
 0x190   :  { %1276 = vmatpush2.msra.mxu1 %v1083_v30  ;;  %1205 = vmatpush2.msra.mxu0 %v1081_v31 }
 0x191   :  { %1277 = vmatprep.subr.mxu1 %v1080_v32  ;;  %1206 = vmatprep.subr.mxu0 %v1078_v33  ;;  %v1472_v33 = vld [vmem:[#allocation3 + $0x1e0] sm:$0xff] }
 0x192   :  { %1278 = vmatpush2.msra.mxu1 %v1079_v34  ;;  %1207 = vmatpush2.msra.mxu0 %v1077_v35  ;;  %v1469_v34 = vld [vmem:[#allocation3 + $0x1c8] sm:$0xff]  ;;  %v1468_v35 = vld [vmem:[#allocation3 + $0x1c0] sm:$0xff] }
 0x193   :  { %1279 = vmatprep.subr.mxu1 %v1076_v36  ;;  %1208 = vmatprep.subr.mxu0 %v1074_v37  ;;  %v1465_v36 = vld [vmem:[#allocation3 + $0x1a8] sm:$0xff]  ;;  %v1464_v37 = vld [vmem:[#allocation3 + $0x1a0] sm:$0xff] }
 0x194   :  { %1280 = vmatpush2.msra.mxu1 %v1075_v38  ;;  %1209 = vmatpush2.msra.mxu0 %v1073_v40  ;;  %v1461_v38 = vld [vmem:[#allocation3 + $0x188] sm:$0xff]  ;;  %v1460_v40 = vld [vmem:[#allocation3 + $0x180] sm:$0xff] }
 0x195   :  { %1281 = vmatprep.subr.mxu1 %v1072_v41  ;;  %1210 = vmatprep.subr.mxu0 %v1070_v42  ;;  %v1457_v41 = vld [vmem:[#allocation3 + $0x168] sm:$0xff]  ;;  %v1456_v42 = vld [vmem:[#allocation3 + $0x160] sm:$0xff] }
 0x196   :  { %1282 = vmatpush2.msra.mxu1 %v1071_v43  ;;  %1211 = vmatpush2.msra.mxu0 %v1069_v44  ;;  %v1453_v43 = vld [vmem:[#allocation3 + $0x148] sm:$0xff]  ;;  %v1452_v44 = vld [vmem:[#allocation3 + $0x140] sm:$0xff] }
 0x197   :  { %1283 = vmatprep.subr.mxu1 %v1068_v45  ;;  %1212 = vmatprep.subr.mxu0 %v1066_v46  ;;  %v1449_v45 = vld [vmem:[#allocation3 + $0x128] sm:$0xff]  ;;  %v1448_v46 = vld [vmem:[#allocation3 + $0x120] sm:$0xff] }
 0x198   :  { %1284 = vmatpush2.msra.mxu1 %v1067_v47  ;;  %1213 = vmatpush2.msra.mxu0 %v1065_v48  ;;  %v1445_v47 = vld [vmem:[#allocation3 + $0x108] sm:$0xff]  ;;  %v1444_v48 = vld [vmem:[#allocation3 + $0x100] sm:$0xff] }
 0x199   :  { %1476 = vmatprep.subr.mxu1 %v1473_v49  ;;  %8132 = vmatprep.subr.mxu0 %v8870_v0  ;;  %v1441_v49 = vld [vmem:[#allocation3 + $0xe8] sm:$0xff] }
 0x218   :  { %v900_v53 = vpop.f32.mrf.mxu0  ;;  %v971_v60 = vpop.f32.mrf.mxu1 }
 0x219   :  { %v901_v54 = vadd.f32 %v900_v53, %v9029_v51  ;;  %v972_v61 = vadd.f32 %v971_v60, %v9037_v59  ;;  %v1437_v53 = vld [vmem:[#allocation3 + $0xc8] sm:$0xff] }
 0x21a   :  { %v902_v55 = vpop.f32.mrf.mxu0  ;;  %v973_v63 = vpop.f32.mrf.mxu1  ;;  %v1425_v60 = vld [vmem:[#allocation3 + $0x68] sm:$0xff] }
 0x21b   :  { %v7940_v56 = vmul.f32 -1.442695, %v901_v54  ;;  %v903_v57 = vadd.f32 %v902_v55, %v9032_v52  ;;  %v7942_v2 = vmul.f32 -1.442695, %v972_v61  ;;  %v974_v5 = vadd.f32 %v973_v63, %v9041_v62  ;;  %v1436_v54 = vld [vmem:[#allocation3 + $0xc0] sm:$0xff]  ;;  %v1433_v55 = vld [vmem:[#allocation3 + $0xa8] sm:$0xff] }
 0x21c   :  { %v1424_v61 = vld [vmem:[#allocation3 + $0x60] sm:$0xff]  ;;  %v1421_v63 = vld [vmem:[#allocation3 + $0x48] sm:$0xff] }
 0x21d   :  { %8436 = vpow2.f32 %v7940_v56  ;;  %v7941_v58 = vmul.f32 -1.442695, %v903_v57  ;;  %v1432_v56 = vld [vmem:[#allocation3 + $0xa0] sm:$0xff]  ;;  %v1429_v57 = vld [vmem:[#allocation3 + $0x88] sm:$0xff] }
 0x21f   :  { %8438 = vpow2.f32 %v7941_v58  ;;  %v1428_v58 = vld [vmem:[#allocation3 + $0x80] sm:$0xff] }
 0x220   :  { %8440 = vpow2.f32 %v7942_v2  ;;  %v1420_v2 = vld [vmem:[#allocation3 + $0x40] sm:$0xff] }
 0x22a   :  { %v8437_v3 = vpop.eup %8436 }
 0x22b   :  { %v985_v6 = vadd.f32 1.0, %v8437_v3  ;;  %v1417_v3 = vld [vmem:[#allocation3 + $0x28] sm:$0xff] }
 0x22c   :  { %v8439_v7 = vpop.eup %8438 }
 0x22d   :  { %8442 = vrcp.f32 %v985_v6  ;;  %v986_v8 = vadd.f32 1.0, %v8439_v7  ;;  %v8441_v9 = vpop.eup %8440  ;;  %v1413_v6 = vld [vmem:[#allocation3 + $0x8] sm:$0xff]  ;;  %v1412_v7 = vld [vmem:[#allocation3] sm:$0xff] }
 0x22e   :  { %8444 = vtanh.f32 %v974_v5  ;;  %v987_v17 = vadd.f32 1.0, %v8441_v9  ;;  %v1416_v5 = vld [vmem:[#allocation3 + $0x20] sm:$0xff]  ;;  %v1331_v9 = vld [vmem:[#allocation9 + $0x70] sm:$0xff] }
 0x22f   :  { %8446 = vrcp.f32 %v986_v8  ;;  %v1332_v8 = vld [vmem:[#allocation9 + $0x78] sm:$0xff] }
 0x230   :  { %8448 = vrcp.f32 %v987_v17  ;;  %v1327_v17 = vld [vmem:[#allocation9 + $0x50] sm:$0xff] }
 0x23a   :  { %v8443_v10 = vpop.eup %8442 }
 0x23b   :  { %v8445_v11 = vpop.eup %8444 }
 0x23c   :  { %v8447_v12 = vpop.eup %8446  ;;  %v996_v23 = vmul.f32 %v8445_v11, %v8443_v10  ;;  %v1330_v10 = vld [vmem:[#allocation9 + $0x68] sm:$0xff]  ;;  %v1329_v11 = vld [vmem:[#allocation9 + $0x60] sm:$0xff] }
 0x23d   :  { %v995_v22 = vmul.f32 0.0, %v8447_v12  ;;  %v8449_v29 = vpop.eup %8448  ;;  %v1328_v12 = vld [vmem:[#allocation9 + $0x58] sm:$0xff] }
 0x23f   :  { %v9044_v24 = vadd.f32 %v996_v23, %v995_v22  ;;  %v1326_v22 = vld [vmem:[#allocation9 + $0x48] sm:$0xff]  ;;  %v1325_v23 = vld [vmem:[#allocation9 + $0x40] sm:$0xff] }
 0x241   :  { %8450 = vtanh.f32 %v9044_v24 }
 0x24e   :  { %v8451_v30 = vpop.eup %8450 }
 0x24f   :  { %v9047_v31 = vmul.f32 %v8451_v30, %v8449_v29  ;;  %v1324_v29 = vld [vmem:[#allocation9 + $0x38] sm:$0xff]  ;;  %v1323_v30 = vld [vmem:[#allocation9 + $0x30] sm:$0xff] }
 0x251   :  { %v1000_v32 = vmax.f32 %v9047_v31, 0.0 }
 0x253   :  { %1215 = vmatmul.mubr.f32.vlgmr.msra.gmra.mxu0 %v1000_v32  ;;  %1286 = vmatmul.mubr.f32.vlgmr.msra.gmra.mxu1 %v1000_v32  ;;  %v1322_v32 = vld [vmem:[#allocation9 + $0x28] sm:$0xff] }
 0x254   :  { %1477 = vmatpush1.msra.mxu1 %v1472_v33  ;;  %1540 = vmatprep.mubr.f32.mxu1 %v8870_v0  ;;  %v1321_v33 = vld [vmem:[#allocation9 + $0x20] sm:$0xff] }
 0x255   :  { %1478 = vmatprep.subr.mxu1 %v1469_v34  ;;  %8133 = vmatpush3.msra.mxu0 %v1332_v8  ;;  %v1320_v34 = vld [vmem:[#allocation9 + $0x18] sm:$0xff] }
 0x256   :  { %1479 = vmatpush1.msra.mxu1 %v1468_v35  ;;  %8134 = vmatprep.subr.mxu0 %v8870_v0  ;;  %v1319_v35 = vld [vmem:[#allocation9 + $0x10] sm:$0xff] }
 0x257   :  { %1480 = vmatprep.subr.mxu1 %v1465_v36  ;;  %8135 = vmatpush3.msra.mxu0 %v1331_v9  ;;  %v1318_v36 = vld [vmem:[#allocation9 + $0x8] sm:$0xff] }
 0x258   :  { %1481 = vmatpush1.msra.mxu1 %v1464_v37  ;;  %8136 = vmatprep.subr.mxu0 %v8870_v0  ;;  %v1317_v37 = vld [vmem:[#allocation9] sm:$0xff] }
 0x259   :  { %1482 = vmatprep.subr.mxu1 %v1461_v38  ;;  %8137 = vmatpush3.msra.mxu0 %v1330_v10  ;;  %v1475_v38 = vld [vmem:[#allocation3 + $0x1f8] sm:$0xff] }
 0x25a   :  { %1483 = vmatpush1.msra.mxu1 %v1460_v40  ;;  %8138 = vmatprep.subr.mxu0 %v8870_v0  ;;  %v432_v40 = vld [vmem:[%s9592_s7] sm:$0xf] }
 0x25b   :  { %1484 = vmatprep.subr.mxu1 %v1457_v41  ;;  %8139 = vmatpush3.msra.mxu0 %v1329_v11  ;;  %v9074_v41 = vrot.slane %v432_v40, %v8964_v13  ;;  %v1474_v11 = vld [vmem:[#allocation3 + $0x1f0] sm:$0xff] }
 0x25c   :  { %1485 = vmatpush1.msra.mxu1 %v1456_v42  ;;  %8140 = vmatprep.subr.mxu0 %v8870_v0  ;;  %v9077_v42 = vrot.slane %v432_v40, %v8966_v14 }
 0x25d   :  { %1486 = vmatprep.subr.mxu1 %v1453_v43  ;;  %8141 = vmatpush3.msra.mxu0 %v1328_v12  ;;  %v1471_v12 = vld [vmem:[#allocation3 + $0x1d8] sm:$0xff] }
 0x25e   :  { %1487 = vmatpush1.msra.mxu1 %v1452_v44  ;;  %8142 = vmatprep.subr.mxu0 %v8870_v0 }
 0x25f   :  { %1488 = vmatprep.subr.mxu1 %v1449_v45  ;;  %8143 = vmatpush3.msra.mxu0 %v1327_v17  ;;  %v1470_v17 = vld [vmem:[#allocation3 + $0x1d0] sm:$0xff] }
 0x260   :  { %1489 = vmatpush1.msra.mxu1 %v1448_v46  ;;  %8144 = vmatprep.subr.mxu0 %v8870_v0 }
 0x261   :  { %1490 = vmatprep.subr.mxu1 %v1445_v47  ;;  %8145 = vmatpush3.msra.mxu0 %v1326_v22  ;;  %v1467_v22 = vld [vmem:[#allocation3 + $0x1b8] sm:$0xff] }
 0x262   :  { %1491 = vmatpush1.msra.mxu1 %v1444_v48  ;;  %8164 = vmatprep.mubr.msk.f32.mxu0 %vm8873_vm0, %v8870_v0 }
 0x263   :  { %1492 = vmatprep.subr.mxu1 %v1441_v49  ;;  %8146 = vmatprep.subr.mxu0 %v8870_v0  ;;  %v9082_v49 = vrot.slane %v432_v40, %v8968_v15 }
 0x264   :  { %1493 = vmatpush1.msra.mxu1 %v1440_v50  ;;  %8147 = vmatpush3.msra.mxu0 %v1325_v23  ;;  %v1466_v23 = vld [vmem:[#allocation3 + $0x1b0] sm:$0xff] }
 0x265   :  { %1494 = vmatprep.subr.mxu1 %v1437_v53  ;;  %8148 = vmatprep.subr.mxu0 %v8870_v0  ;;  %v9086_v53 = vrot.slane %v432_v40, %v8970_v16  ;;  %v1446_v40 = vld [vmem:[#allocation3 + $0x110] sm:$0xff] }
 0x266   :  { %1495 = vmatpush1.msra.mxu1 %v1436_v54  ;;  %8149 = vmatpush3.msra.mxu0 %v1324_v29  ;;  %v1463_v29 = vld [vmem:[#allocation3 + $0x198] sm:$0xff] }
 0x267   :  { %1496 = vmatprep.subr.mxu1 %v1433_v55  ;;  %8150 = vmatprep.subr.mxu0 %v8870_v0 }
 0x268   :  { %1497 = vmatpush1.msra.mxu1 %v1432_v56  ;;  %8151 = vmatpush3.msra.mxu0 %v1323_v30  ;;  %v1462_v30 = vld [vmem:[#allocation3 + $0x190] sm:$0xff] }
 0x269   :  { %1498 = vmatprep.subr.mxu1 %v1429_v57  ;;  %8152 = vmatprep.subr.mxu0 %v8870_v0 }
 0x26a   :  { %1499 = vmatpush1.msra.mxu1 %v1428_v58  ;;  %8153 = vmatpush3.msra.mxu0 %v1322_v32  ;;  %v1459_v32 = vld [vmem:[#allocation3 + $0x178] sm:$0xff] }
 0x26b   :  { %1500 = vmatprep.subr.mxu1 %v1425_v60  ;;  %8154 = vmatprep.subr.mxu0 %v8870_v0 }
 0x26c   :  { %1501 = vmatpush1.msra.mxu1 %v1424_v61  ;;  %8155 = vmatpush3.msra.mxu0 %v1321_v33  ;;  %v1458_v33 = vld [vmem:[#allocation3 + $0x170] sm:$0xff] }
 0x26d   :  { %1502 = vmatprep.subr.mxu1 %v1421_v63  ;;  %8156 = vmatprep.subr.mxu0 %v8870_v0 }
 0x26e   :  { %1503 = vmatpush1.msra.mxu1 %v1420_v2  ;;  %8157 = vmatpush3.msra.mxu0 %v1320_v34  ;;  %v1455_v34 = vld [vmem:[#allocation3 + $0x158] sm:$0xff] }
 0x26f   :  { %1504 = vmatprep.subr.mxu1 %v1417_v3  ;;  %8158 = vmatprep.subr.mxu0 %v8870_v0 }
 0x270   :  { %1505 = vmatpush1.msra.mxu1 %v1416_v5  ;;  %8159 = vmatpush3.msra.mxu0 %v1319_v35  ;;  %v1454_v35 = vld [vmem:[#allocation3 + $0x150] sm:$0xff] }
 0x271   :  { %1506 = vmatprep.subr.mxu1 %v1413_v6  ;;  %8160 = vmatprep.subr.mxu0 %v8870_v0 }
 0x272   :  { %1507 = vmatpush1.msra.mxu1 %v1412_v7  ;;  %8161 = vmatpush3.msra.mxu0 %v1318_v36  ;;  %v1451_v36 = vld [vmem:[#allocation3 + $0x138] sm:$0xff] }
 0x273   :  { %1541 = vmatmul.mubr.f32.vlgmr.msra.gmra.mxu1 %v9019_v4  ;;  %8162 = vmatprep.subr.mxu0 %v8870_v0 }
 0x274   :  { %1854 = vmatprep.mubr.f32.mxu1 %v9047_v31  ;;  %8163 = vmatpush3.msra.mxu0 %v1317_v37  ;;  %v1450_v37 = vld [vmem:[#allocation3 + $0x130] sm:$0xff] }
 0x275   :  { %1547 = vmatprep.subr.mxu0 %v1475_v38  ;;  %v1447_v38 = vld [vmem:[#allocation3 + $0x118] sm:$0xff] }
 0x313   :  { %v1216_v43 = vpop.f32.mrf.mxu0  ;;  %v1287_v50 = vpop.f32.mrf.mxu1 }
 0x314   :  { %v1217_v44 = vadd.f32 %v1216_v43, %v9074_v41  ;;  %v1288_v13 = vadd.f32 %v1287_v50, %v9082_v49  ;;  %v1443_v43 = vld [vmem:[#allocation3 + $0xf8] sm:$0xff] }
 0x315   :  { %v1218_v45 = vpop.f32.mrf.mxu0  ;;  %v1289_v14 = vpop.f32.mrf.mxu1  ;;  %v1431_v50 = vld [vmem:[#allocation3 + $0x98] sm:$0xff] }
 0x316   :  { %v7943_v46 = vmul.f32 -1.442695, %v1217_v44  ;;  %v1219_v47 = vadd.f32 %v1218_v45, %v9077_v42  ;;  %v7945_v54 = vmul.f32 -1.442695, %v1288_v13  ;;  %v1290_v56 = vadd.f32 %v1289_v14, %v9086_v53  ;;  %v1442_v44 = vld [vmem:[#allocation3 + $0xf0] sm:$0xff]  ;;  %v1439_v45 = vld [vmem:[#allocation3 + $0xd8] sm:$0xff] }
 0x317   :  { %v1430_v13 = vld [vmem:[#allocation3 + $0x90] sm:$0xff]  ;;  %v1427_v14 = vld [vmem:[#allocation3 + $0x78] sm:$0xff] }
 0x318   :  { %8452 = vpow2.f32 %v7943_v46  ;;  %v7944_v48 = vmul.f32 -1.442695, %v1219_v47  ;;  %v1438_v46 = vld [vmem:[#allocation3 + $0xd0] sm:$0xff]  ;;  %v1435_v47 = vld [vmem:[#allocation3 + $0xb8] sm:$0xff] }
 0x31a   :  { %8454 = vpow2.f32 %v7944_v48  ;;  %v1434_v48 = vld [vmem:[#allocation3 + $0xb0] sm:$0xff] }
 0x31b   :  { %8456 = vpow2.f32 %v7945_v54  ;;  %v1426_v54 = vld [vmem:[#allocation3 + $0x70] sm:$0xff] }
 0x325   :  { %v8453_v55 = vpop.eup %8452 }
 0x326   :  { %v1301_v57 = vadd.f32 1.0, %v8453_v55  ;;  %v1423_v55 = vld [vmem:[#allocation3 + $0x58] sm:$0xff] }
 0x327   :  { %v8455_v58 = vpop.eup %8454 }
 0x328   :  { %8458 = vrcp.f32 %v1301_v57  ;;  %v1302_v60 = vadd.f32 1.0, %v8455_v58  ;;  %v8457_v15 = vpop.eup %8456  ;;  %v1419_v57 = vld [vmem:[#allocation3 + $0x38] sm:$0xff]  ;;  %v1418_v58 = vld [vmem:[#allocation3 + $0x30] sm:$0xff] }
 0x329   :  { %8460 = vtanh.f32 %v1290_v56  ;;  %v1303_v3 = vadd.f32 1.0, %v8457_v15  ;;  %v1422_v56 = vld [vmem:[#allocation3 + $0x50] sm:$0xff] }
 0x32a   :  { %8462 = vrcp.f32 %v1302_v60  ;;  %v1415_v60 = vld [vmem:[#allocation3 + $0x18] sm:$0xff]  ;;  %v1414_v15 = vld [vmem:[#allocation3 + $0x10] sm:$0xff] }
 0x32b   :  { %8464 = vrcp.f32 %v1303_v3  ;;  %v1724_v3 = vld [vmem:[#allocation6 + $0x1f0] sm:$0xff] }
 0x335   :  { %v8459_v61 = vpop.eup %8458 }
 0x336   :  { %v8461_v63 = vpop.eup %8460 }
 0x337   :  { %v8463_v2 = vpop.eup %8462  ;;  %v1312_v16 = vmul.f32 %v8461_v63, %v8459_v61  ;;  %v1723_v61 = vld [vmem:[#allocation6 + $0x1e8] sm:$0xff]  ;;  %v1725_v63 = vld [vmem:[#allocation6 + $0x1f8] sm:$0xff] }
 0x338   :  { %v1311_v5 = vmul.f32 0.0, %v8463_v2  ;;  %v8465_v7 = vpop.eup %8464  ;;  %1790 = vmatprep.subr.mxu1 %v1723_v61  ;;  %v1722_v2 = vld [vmem:[#allocation6 + $0x1e0] sm:$0xff] }
 0x339   :  { %1791 = vmatpush1.msra.mxu1 %v1722_v2  ;;  %v1682_v61 = vld [vmem:[#allocation6 + $0xa0] sm:$0xff]  ;;  %v1679_v2 = vld [vmem:[#allocation6 + $0x88] sm:$0xff] }
 0x33a   :  { %v9089_v6 = vadd.f32 %v1312_v16, %v1311_v5  ;;  %v1719_v5 = vld [vmem:[#allocation6 + $0x1c8] sm:$0xff]  ;;  %v1721_v16 = vld [vmem:[#allocation6 + $0x1d8] sm:$0xff] }
 0x33b   :  { %1792 = vmatprep.subr.mxu1 %v1719_v5  ;;  %v1678_v5 = vld [vmem:[#allocation6 + $0x80] sm:$0xff] }
 0x33c   :  { %8466 = vtanh.f32 %v9089_v6 }
 0x349   :  { %v8467_v8 = vpop.eup %8466 }
 0x34a   :  { %v9092_v9 = vmul.f32 %v8467_v8, %v8465_v7  ;;  %v1718_v7 = vld [vmem:[#allocation6 + $0x1c0] sm:$0xff]  ;;  %v1720_v8 = vld [vmem:[#allocation6 + $0x1d0] sm:$0xff] }
 0x34b   :  { %1793 = vmatpush1.msra.mxu1 %v1718_v7  ;;  %v1675_v7 = vld [vmem:[#allocation6 + $0x68] sm:$0xff] }
 0x34c   :  { %v1316_v10 = vmax.f32 %v9092_v9, 0.0 }
 0x34e   :  { %8165 = vmatmul.mubr.f32.vlgmr.msra.gmra.mxu0 %v1316_v10  ;;  %v1715_v10 = vld [vmem:[#allocation6 + $0x1a8] sm:$0xff] }
 0x34f   :  { %1548 = vmatpush1.msra.mxu0 %v1474_v11  ;;  %1611 = vmatprep.mubr.f32.mxu0 %v8870_v0  ;;  %v1716_v11 = vld [vmem:[#allocation6 + $0x1b0] sm:$0xff] }
 0x350   :  { %1549 = vmatprep.subr.mxu0 %v1471_v12  ;;  %1794 = vmatprep.subr.mxu1 %v1715_v10  ;;  %v1711_v12 = vld [vmem:[#allocation6 + $0x188] sm:$0xff]  ;;  %v1674_v10 = vld [vmem:[#allocation6 + $0x60] sm:$0xff] }
 0x351   :  { %1550 = vmatpush1.msra.mxu0 %v1470_v17  ;;  %v1713_v17 = vld [vmem:[#allocation6 + $0x198] sm:$0xff] }
 0x352   :  { %1551 = vmatprep.subr.mxu0 %v1467_v22  ;;  %v1710_v22 = vld [vmem:[#allocation6 + $0x180] sm:$0xff] }
 0x353   :  { %1552 = vmatpush1.msra.mxu0 %v1466_v23  ;;  %v1712_v23 = vld [vmem:[#allocation6 + $0x190] sm:$0xff] }
 0x354   :  { %1553 = vmatprep.subr.mxu0 %v1463_v29  ;;  %v1707_v29 = vld [vmem:[#allocation6 + $0x168] sm:$0xff] }
 0x355   :  { %1554 = vmatpush1.msra.mxu0 %v1462_v30  ;;  %v1709_v30 = vld [vmem:[#allocation6 + $0x178] sm:$0xff] }
 0x356   :  { %1555 = vmatprep.subr.mxu0 %v1459_v32  ;;  %v1706_v32 = vld [vmem:[#allocation6 + $0x160] sm:$0xff] }
 0x357   :  { %1556 = vmatpush1.msra.mxu0 %v1458_v33  ;;  %v1708_v33 = vld [vmem:[#allocation6 + $0x170] sm:$0xff] }
 0x358   :  { %1557 = vmatprep.subr.mxu0 %v1455_v34  ;;  %v1703_v34 = vld [vmem:[#allocation6 + $0x148] sm:$0xff] }
 0x359   :  { %1558 = vmatpush1.msra.mxu0 %v1454_v35  ;;  %v1705_v35 = vld [vmem:[#allocation6 + $0x158] sm:$0xff] }
 0x35a   :  { %1559 = vmatprep.subr.mxu0 %v1451_v36  ;;  %v1702_v36 = vld [vmem:[#allocation6 + $0x140] sm:$0xff] }
 0x35b   :  { %1560 = vmatpush1.msra.mxu0 %v1450_v37  ;;  %v1704_v37 = vld [vmem:[#allocation6 + $0x150] sm:$0xff] }
 0x35c   :  { %1561 = vmatprep.subr.mxu0 %v1447_v38  ;;  %v1699_v38 = vld [vmem:[#allocation6 + $0x128] sm:$0xff] }
 0x35d   :  { %1562 = vmatpush1.msra.mxu0 %v1446_v40  ;;  %v1701_v40 = vld [vmem:[#allocation6 + $0x138] sm:$0xff] }
 0x35e   :  { %1563 = vmatprep.subr.mxu0 %v1443_v43  ;;  %v1698_v43 = vld [vmem:[#allocation6 + $0x120] sm:$0xff] }
 0x35f   :  { %1564 = vmatpush1.msra.mxu0 %v1442_v44  ;;  %v1700_v44 = vld [vmem:[#allocation6 + $0x130] sm:$0xff] }
 0x360   :  { %1565 = vmatprep.subr.mxu0 %v1439_v45  ;;  %v1695_v45 = vld [vmem:[#allocation6 + $0x108] sm:$0xff] }
 0x361   :  { %1566 = vmatpush1.msra.mxu0 %v1438_v46  ;;  %v1697_v46 = vld [vmem:[#allocation6 + $0x118] sm:$0xff] }
 0x362   :  { %1567 = vmatprep.subr.mxu0 %v1435_v47  ;;  %v1694_v47 = vld [vmem:[#allocation6 + $0x100] sm:$0xff] }
 0x363   :  { %1568 = vmatpush1.msra.mxu0 %v1434_v48  ;;  %v1696_v48 = vld [vmem:[#allocation6 + $0x110] sm:$0xff] }
 0x364   :  { %1569 = vmatprep.subr.mxu0 %v1431_v50  ;;  %v1691_v50 = vld [vmem:[#allocation6 + $0xe8] sm:$0xff] }
 0x365   :  { %1570 = vmatpush1.msra.mxu0 %v1430_v13  ;;  %v1693_v13 = vld [vmem:[#allocation6 + $0xf8] sm:$0xff] }
 0x366   :  { %1571 = vmatprep.subr.mxu0 %v1427_v14  ;;  %v1690_v14 = vld [vmem:[#allocation6 + $0xe0] sm:$0xff] }
 0x367   :  { %1572 = vmatpush1.msra.mxu0 %v1426_v54  ;;  %v1692_v54 = vld [vmem:[#allocation6 + $0xf0] sm:$0xff] }
 0x368   :  { %1573 = vmatprep.subr.mxu0 %v1423_v55  ;;  %v1687_v55 = vld [vmem:[#allocation6 + $0xc8] sm:$0xff] }
 0x369   :  { %1574 = vmatpush1.msra.mxu0 %v1422_v56  ;;  %v1689_v56 = vld [vmem:[#allocation6 + $0xd8] sm:$0xff] }
 0x36a   :  { %1575 = vmatprep.subr.mxu0 %v1419_v57  ;;  %v1686_v57 = vld [vmem:[#allocation6 + $0xc0] sm:$0xff] }
 0x36b   :  { %1576 = vmatpush1.msra.mxu0 %v1418_v58  ;;  %v1688_v58 = vld [vmem:[#allocation6 + $0xd0] sm:$0xff] }
 0x36c   :  { %1577 = vmatprep.subr.mxu0 %v1415_v60  ;;  %v1683_v60 = vld [vmem:[#allocation6 + $0xa8] sm:$0xff] }
 0x36d   :  { %1578 = vmatpush1.msra.mxu0 %v1414_v15  ;;  %v1685_v15 = vld [vmem:[#allocation6 + $0xb8] sm:$0xff] }
 0x36e   :  { %1612 = vmatmul.mubr.f32.vlgmr.msra.gmra.mxu0 %v9019_v4  ;;  %1861 = vmatprep.subr.mxu0 %v1725_v63  ;;  %v1717_v4 = vld [vmem:[#allocation6 + $0x1b8] sm:$0xff]  ;;  %v1684_v63 = vld [vmem:[#allocation6 + $0xb0] sm:$0xff] }
 0x36f   :  { %1925 = vmatprep.mubr.f32.mxu0 %v9047_v31  ;;  %1862 = vmatpush1.msra.mxu0 %v1724_v3  ;;  %v1714_v31 = vld [vmem:[#allocation6 + $0x1a0] sm:$0xff]  ;;  %v1681_v3 = vld [vmem:[#allocation6 + $0x98] sm:$0xff] }
 0x370   :  { %1863 = vmatprep.subr.mxu0 %v1721_v16  ;;  %1795 = vmatpush1.msra.mxu1 %v1714_v31  ;;  %v1680_v16 = vld [vmem:[#allocation6 + $0x90] sm:$0xff]  ;;  %v1671_v31 = vld [vmem:[#allocation6 + $0x48] sm:$0xff] }
 0x371   :  { %1864 = vmatpush1.msra.mxu0 %v1720_v8  ;;  %1796 = vmatprep.subr.mxu1 %v1711_v12  ;;  %v1677_v8 = vld [vmem:[#allocation6 + $0x78] sm:$0xff]  ;;  %v1670_v12 = vld [vmem:[#allocation6 + $0x40] sm:$0xff] }
 0x372   :  { %1865 = vmatprep.subr.mxu0 %v1717_v4  ;;  %1797 = vmatpush1.msra.mxu1 %v1710_v22  ;;  %v1676_v4 = vld [vmem:[#allocation6 + $0x70] sm:$0xff]  ;;  %v1667_v22 = vld [vmem:[#allocation6 + $0x28] sm:$0xff] }
 0x373   :  { %1866 = vmatpush1.msra.mxu0 %v1716_v11  ;;  %1798 = vmatprep.subr.mxu1 %v1707_v29  ;;  %v1673_v11 = vld [vmem:[#allocation6 + $0x58] sm:$0xff]  ;;  %v1666_v29 = vld [vmem:[#allocation6 + $0x20] sm:$0xff] }
 0x374   :  { %1867 = vmatprep.subr.mxu0 %v1713_v17  ;;  %1799 = vmatpush1.msra.mxu1 %v1706_v32  ;;  %v1672_v17 = vld [vmem:[#allocation6 + $0x50] sm:$0xff]  ;;  %v1663_v32 = vld [vmem:[#allocation6 + $0x8] sm:$0xff] }
 0x375   :  { %1868 = vmatpush1.msra.mxu0 %v1712_v23  ;;  %1800 = vmatprep.subr.mxu1 %v1703_v34  ;;  %v1669_v23 = vld [vmem:[#allocation6 + $0x38] sm:$0xff]  ;;  %v1662_v34 = vld [vmem:[#allocation6] sm:$0xff] }
 0x376   :  { %1869 = vmatprep.subr.mxu0 %v1709_v30  ;;  %1801 = vmatpush1.msra.mxu1 %v1702_v36  ;;  %v1668_v30 = vld [vmem:[#allocation6 + $0x30] sm:$0xff]  ;;  %v1787_v36 = vld [vmem:[#allocation6 + $0x3e8] sm:$0xff] }
 0x377   :  { %1870 = vmatpush1.msra.mxu0 %v1708_v33  ;;  %1802 = vmatprep.subr.mxu1 %v1699_v38  ;;  %v1665_v33 = vld [vmem:[#allocation6 + $0x18] sm:$0xff]  ;;  %v1786_v38 = vld [vmem:[#allocation6 + $0x3e0] sm:$0xff] }
 0x378   :  { %1871 = vmatprep.subr.mxu0 %v1705_v35  ;;  %1803 = vmatpush1.msra.mxu1 %v1698_v43  ;;  %v1664_v35 = vld [vmem:[#allocation6 + $0x10] sm:$0xff]  ;;  %v1783_v43 = vld [vmem:[#allocation6 + $0x3c8] sm:$0xff] }
 0x379   :  { %1872 = vmatpush1.msra.mxu0 %v1704_v37  ;;  %1804 = vmatprep.subr.mxu1 %v1695_v45  ;;  %v1789_v37 = vld [vmem:[#allocation6 + $0x3f8] sm:$0xff]  ;;  %v1782_v45 = vld [vmem:[#allocation6 + $0x3c0] sm:$0xff] }
 0x37a   :  { %1873 = vmatprep.subr.mxu0 %v1701_v40  ;;  %1805 = vmatpush1.msra.mxu1 %v1694_v47  ;;  %v1788_v40 = vld [vmem:[#allocation6 + $0x3f0] sm:$0xff]  ;;  %v1779_v47 = vld [vmem:[#allocation6 + $0x3a8] sm:$0xff] }
 0x37b   :  { %1874 = vmatpush1.msra.mxu0 %v1700_v44  ;;  %1806 = vmatprep.subr.mxu1 %v1691_v50  ;;  %v1785_v44 = vld [vmem:[#allocation6 + $0x3d8] sm:$0xff]  ;;  %v1778_v50 = vld [vmem:[#allocation6 + $0x3a0] sm:$0xff] }
 0x37c   :  { %1875 = vmatprep.subr.mxu0 %v1697_v46  ;;  %1807 = vmatpush1.msra.mxu1 %v1690_v14  ;;  %v1784_v46 = vld [vmem:[#allocation6 + $0x3d0] sm:$0xff]  ;;  %v1775_v14 = vld [vmem:[#allocation6 + $0x388] sm:$0xff] }
 0x37d   :  { %1876 = vmatpush1.msra.mxu0 %v1696_v48  ;;  %1808 = vmatprep.subr.mxu1 %v1687_v55  ;;  %v1781_v48 = vld [vmem:[#allocation6 + $0x3b8] sm:$0xff]  ;;  %v1774_v55 = vld [vmem:[#allocation6 + $0x380] sm:$0xff] }
 0x37e   :  { %1877 = vmatprep.subr.mxu0 %v1693_v13  ;;  %1809 = vmatpush1.msra.mxu1 %v1686_v57  ;;  %v1780_v13 = vld [vmem:[#allocation6 + $0x3b0] sm:$0xff]  ;;  %v1771_v57 = vld [vmem:[#allocation6 + $0x368] sm:$0xff] }
 0x37f   :  { %1878 = vmatpush1.msra.mxu0 %v1692_v54  ;;  %1810 = vmatprep.subr.mxu1 %v1683_v60  ;;  %v1777_v54 = vld [vmem:[#allocation6 + $0x398] sm:$0xff]  ;;  %v1770_v60 = vld [vmem:[#allocation6 + $0x360] sm:$0xff] }
 0x380   :  { %1879 = vmatprep.subr.mxu0 %v1689_v56  ;;  %1811 = vmatpush1.msra.mxu1 %v1682_v61  ;;  %v1776_v56 = vld [vmem:[#allocation6 + $0x390] sm:$0xff]  ;;  %v1767_v61 = vld [vmem:[#allocation6 + $0x348] sm:$0xff] }
 0x381   :  { %1880 = vmatpush1.msra.mxu0 %v1688_v58  ;;  %1812 = vmatprep.subr.mxu1 %v1679_v2  ;;  %v1773_v58 = vld [vmem:[#allocation6 + $0x378] sm:$0xff]  ;;  %v1766_v2 = vld [vmem:[#allocation6 + $0x340] sm:$0xff] }
 0x382   :  { %1881 = vmatprep.subr.mxu0 %v1685_v15  ;;  %1813 = vmatpush1.msra.mxu1 %v1678_v5  ;;  %v1772_v15 = vld [vmem:[#allocation6 + $0x370] sm:$0xff]  ;;  %v1763_v5 = vld [vmem:[#allocation6 + $0x328] sm:$0xff] }
 0x383   :  { %1882 = vmatpush1.msra.mxu0 %v1684_v63  ;;  %1814 = vmatprep.subr.mxu1 %v1675_v7  ;;  %v1769_v63 = vld [vmem:[#allocation6 + $0x358] sm:$0xff]  ;;  %v1762_v7 = vld [vmem:[#allocation6 + $0x320] sm:$0xff] }
 0x384   :  { %1883 = vmatprep.subr.mxu0 %v1681_v3  ;;  %1815 = vmatpush1.msra.mxu1 %v1674_v10  ;;  %v1768_v3 = vld [vmem:[#allocation6 + $0x350] sm:$0xff]  ;;  %v1759_v10 = vld [vmem:[#allocation6 + $0x308] sm:$0xff] }
 0x385   :  { %1884 = vmatpush1.msra.mxu0 %v1680_v16  ;;  %1816 = vmatprep.subr.mxu1 %v1671_v31  ;;  %v1765_v16 = vld [vmem:[#allocation6 + $0x338] sm:$0xff]  ;;  %v1758_v31 = vld [vmem:[#allocation6 + $0x300] sm:$0xff] }
 0x386   :  { %1885 = vmatprep.subr.mxu0 %v1677_v8  ;;  %1817 = vmatpush1.msra.mxu1 %v1670_v12  ;;  %v1764_v8 = vld [vmem:[#allocation6 + $0x330] sm:$0xff]  ;;  %v1755_v12 = vld [vmem:[#allocation6 + $0x2e8] sm:$0xff] }
 0x387   :  { %1886 = vmatpush1.msra.mxu0 %v1676_v4  ;;  %1818 = vmatprep.subr.mxu1 %v1667_v22  ;;  %v1761_v4 = vld [vmem:[#allocation6 + $0x318] sm:$0xff]  ;;  %v1754_v22 = vld [vmem:[#allocation6 + $0x2e0] sm:$0xff] }
 0x388   :  { %1887 = vmatprep.subr.mxu0 %v1673_v11  ;;  %1819 = vmatpush1.msra.mxu1 %v1666_v29  ;;  %v1760_v11 = vld [vmem:[#allocation6 + $0x310] sm:$0xff]  ;;  %v1751_v29 = vld [vmem:[#allocation6 + $0x2c8] sm:$0xff] }
 0x389   :  { %1888 = vmatpush1.msra.mxu0 %v1672_v17  ;;  %1820 = vmatprep.subr.mxu1 %v1663_v32  ;;  %v1757_v17 = vld [vmem:[#allocation6 + $0x2f8] sm:$0xff]  ;;  %v1750_v32 = vld [vmem:[#allocation6 + $0x2c0] sm:$0xff] }
 0x38a   :  { %1889 = vmatprep.subr.mxu0 %v1669_v23  ;;  %1821 = vmatpush1.msra.mxu1 %v1662_v34  ;;  %v1756_v23 = vld [vmem:[#allocation6 + $0x2f0] sm:$0xff]  ;;  %v1747_v34 = vld [vmem:[#allocation6 + $0x2a8] sm:$0xff] }
 0x38b   :  { %1890 = vmatpush1.msra.mxu0 %v1668_v30  ;;  %1822 = vmatprep.subr.mxu1 %v1787_v36  ;;  %v1753_v30 = vld [vmem:[#allocation6 + $0x2d8] sm:$0xff]  ;;  %v1746_v36 = vld [vmem:[#allocation6 + $0x2a0] sm:$0xff] }
 0x38c   :  { %1891 = vmatprep.subr.mxu0 %v1665_v33  ;;  %1823 = vmatpush2.msra.mxu1 %v1786_v38  ;;  %v1752_v33 = vld [vmem:[#allocation6 + $0x2d0] sm:$0xff]  ;;  %v1743_v38 = vld [vmem:[#allocation6 + $0x288] sm:$0xff] }
 0x38d   :  { %1892 = vmatpush1.msra.mxu0 %v1664_v35  ;;  %1824 = vmatprep.subr.mxu1 %v1783_v43  ;;  %v1749_v35 = vld [vmem:[#allocation6 + $0x2b8] sm:$0xff]  ;;  %v1742_v43 = vld [vmem:[#allocation6 + $0x280] sm:$0xff] }
 0x38e   :  { %1893 = vmatprep.subr.mxu0 %v1789_v37  ;;  %1825 = vmatpush2.msra.mxu1 %v1782_v45  ;;  %v1748_v37 = vld [vmem:[#allocation6 + $0x2b0] sm:$0xff]  ;;  %v1739_v45 = vld [vmem:[#allocation6 + $0x268] sm:$0xff] }
 0x38f   :  { %1894 = vmatpush2.msra.mxu0 %v1788_v40  ;;  %1826 = vmatprep.subr.mxu1 %v1779_v47  ;;  %v1745_v40 = vld [vmem:[#allocation6 + $0x298] sm:$0xff]  ;;  %v1738_v47 = vld [vmem:[#allocation6 + $0x260] sm:$0xff] }
 0x390   :  { %1895 = vmatprep.subr.mxu0 %v1785_v44  ;;  %1827 = vmatpush2.msra.mxu1 %v1778_v50  ;;  %v1744_v44 = vld [vmem:[#allocation6 + $0x290] sm:$0xff]  ;;  %v1735_v50 = vld [vmem:[#allocation6 + $0x248] sm:$0xff] }
 0x391   :  { %1896 = vmatpush2.msra.mxu0 %v1784_v46  ;;  %1828 = vmatprep.subr.mxu1 %v1775_v14  ;;  %v1741_v46 = vld [vmem:[#allocation6 + $0x278] sm:$0xff]  ;;  %v1734_v14 = vld [vmem:[#allocation6 + $0x240] sm:$0xff] }
 0x392   :  { %1897 = vmatprep.subr.mxu0 %v1781_v48  ;;  %1829 = vmatpush2.msra.mxu1 %v1774_v55  ;;  %v1740_v48 = vld [vmem:[#allocation6 + $0x270] sm:$0xff]  ;;  %v1731_v55 = vld [vmem:[#allocation6 + $0x228] sm:$0xff] }
 0x393   :  { %1898 = vmatpush2.msra.mxu0 %v1780_v13  ;;  %1830 = vmatprep.subr.mxu1 %v1771_v57  ;;  %v1737_v13 = vld [vmem:[#allocation6 + $0x258] sm:$0xff]  ;;  %v1730_v57 = vld [vmem:[#allocation6 + $0x220] sm:$0xff] }
 0x394   :  { %1899 = vmatprep.subr.mxu0 %v1777_v54  ;;  %1831 = vmatpush2.msra.mxu1 %v1770_v60  ;;  %v1736_v54 = vld [vmem:[#allocation6 + $0x250] sm:$0xff]  ;;  %v1727_v60 = vld [vmem:[#allocation6 + $0x208] sm:$0xff] }
 0x395   :  { %1900 = vmatpush2.msra.mxu0 %v1776_v56  ;;  %1832 = vmatprep.subr.mxu1 %v1767_v61  ;;  %v1733_v56 = vld [vmem:[#allocation6 + $0x238] sm:$0xff]  ;;  %v1726_v61 = vld [vmem:[#allocation6 + $0x200] sm:$0xff] }
 0x396   :  { %1901 = vmatprep.subr.mxu0 %v1773_v58  ;;  %1833 = vmatpush2.msra.mxu1 %v1766_v2  ;;  %v1732_v58 = vld [vmem:[#allocation6 + $0x230] sm:$0xff]  ;;  %v2020_v2 = vld [vmem:[#allocation8 + $0x1f8] sm:$0xff] }
 0x397   :  { %1902 = vmatpush2.msra.mxu0 %v1772_v15  ;;  %1834 = vmatprep.subr.mxu1 %v1763_v5  ;;  %v1729_v15 = vld [vmem:[#allocation6 + $0x218] sm:$0xff]  ;;  %v7946_v5 = vld [vmem:[%s9594_s9] ss:$0 sm:$0xff] }
 0x398   :  { %1903 = vmatprep.subr.mxu0 %v1769_v63  ;;  %1835 = vmatpush2.msra.mxu1 %v1762_v7  ;;  %v1728_v63 = vld [vmem:[#allocation6 + $0x210] sm:$0xff] }
 0x399   :  { %1904 = vmatpush2.msra.mxu0 %v1768_v3  ;;  %1836 = vmatprep.subr.mxu1 %v1759_v10  ;;  %v2018_v3 = vld [vmem:[#allocation8 + $0x1e8] sm:$0xff]  ;;  %v108_v10 = vpop.permute.xlu0 %107 }
 0x39a   :  { %1905 = vmatprep.subr.mxu0 %v1765_v16  ;;  %1837 = vmatpush2.msra.mxu1 %v1758_v31  ;;  %v166_v31 = vmul.f32 %v8979_v19, %v108_v10 }
 0x39b   :  { %1906 = vmatpush2.msra.mxu0 %v1764_v8  ;;  %1838 = vmatprep.subr.mxu1 %v1755_v12  ;;  %v168_v12 = vmul.f32 %v8985_v21, %v108_v10 }
 0x39c   :  { %1907 = vmatprep.subr.mxu0 %v1761_v4  ;;  %1839 = vmatpush2.msra.mxu1 %v1754_v22  ;;  %v165_v4 = vmul.f32 %v8976_v18, %v108_v10 }
 0x39d   :  { %1908 = vmatpush2.msra.mxu0 %v1760_v11  ;;  %1840 = vmatprep.subr.mxu1 %v1751_v29  ;;  %v167_v11 = vmul.f32 %v8982_v20, %v108_v10  ;;  %v2013_v10 = vld [vmem:[#allocation8 + $0x1c0] sm:$0xff] }
 0x39e   :  { %1909 = vmatprep.subr.mxu0 %v1757_v17  ;;  %1841 = vmatpush2.msra.mxu1 %v1750_v32  ;;  %v1542_v17 = vpop.f32.mrf.mxu1  ;;  %v219_v22 = vadd.f32 %v8991_v25, %v165_v4  ;;  %v2012_v4 = vld [vmem:[#allocation8 + $0x1b8] sm:$0xff] }
 0x39f   :  { %1910 = vmatpush2.msra.mxu0 %v1756_v23  ;;  %1842 = vmatprep.subr.mxu1 %v1747_v34  ;;  %v220_v23 = vadd.f32 %v8994_v26, %v166_v31  ;;  %v221_v29 = vadd.f32 %v8997_v27, %v167_v11  ;;  %v2010_v31 = vld [vmem:[#allocation8 + $0x1a8] sm:$0xff]  ;;  %v2011_v11 = vld [vmem:[#allocation8 + $0x1b0] sm:$0xff] }
 0x3a0   :  { %1911 = vmatprep.subr.mxu0 %v1753_v30  ;;  %1843 = vmatpush2.msra.mxu1 %v1746_v36  ;;  %v222_v30 = vadd.f32 %v9000_v28, %v168_v12  ;;  %v1544_v32 = vpop.f32.mrf.mxu1  ;;  %v2009_v12 = vld [vmem:[#allocation8 + $0x1a0] sm:$0xff] }
 0x3a1   :  { %1912 = vmatpush2.msra.mxu0 %v1752_v33  ;;  %1844 = vmatprep.subr.mxu1 %v1743_v38  ;;  %v296_v33 = vcombine.low %v219_v22, %v220_v23  ;;  %v1622_v36 = vcombine.low %v1542_v17, %v1544_v32  ;;  %v2008_v17 = vld [vmem:[#allocation8 + $0x198] sm:$0xff]  ;;  %v2006_v22 = vld [vmem:[#allocation8 + $0x188] sm:$0xff]  ;;  %v2005_v23 = vld [vmem:[#allocation8 + $0x180] sm:$0xff] }
 0x3a2   :  { %1913 = vmatprep.subr.mxu0 %v1749_v35  ;;  %1845 = vmatpush2.msra.mxu1 %v1742_v43  ;;  %v297_v34 = vcombine.low %v221_v29, %v222_v30  ;;  %v2004_v29 = vld [vmem:[#allocation8 + $0x178] sm:$0xff]  ;;  %v2002_v30 = vld [vmem:[#allocation8 + $0x168] sm:$0xff]  ;;  %v2003_v32 = vld [vmem:[#allocation8 + $0x170] sm:$0xff] }
 0x3a3   :  { %1914 = vmatpush2.msra.mxu0 %v1748_v37  ;;  %1846 = vmatprep.subr.mxu1 %v1739_v45  ;;  %v304_v38 = vrot.slane %v296_v33, %v9010_v39  ;;  %v2001_v33 = vld [vmem:[#allocation8 + $0x160] sm:$0xff] }
 0x3a4   :  { %1915 = vmatprep.subr.mxu0 %v1745_v40  ;;  %1847 = vmatpush2.msra.mxu1 %v1738_v47  ;;  %v311_v40 = vrot.slane %v297_v34, %v9010_v39  ;;  %v2000_v34 = vld [vmem:[#allocation8 + $0x158] sm:$0xff] }
 0x3a5   :  { %1916 = vmatpush2.msra.mxu0 %v1744_v44  ;;  %1848 = vmatprep.subr.mxu1 %v1735_v50  ;;  %v1630_v44 = vrot.slane %v1622_v36, %v9010_v39  ;;  %v1999_v36 = vld [vmem:[#allocation8 + $0x150] sm:$0xff] }
 0x3a6   :  { %1917 = vmatprep.subr.mxu0 %v1741_v46  ;;  %1849 = vmatpush2.msra.mxu1 %v1734_v14  ;;  %v312_v46 = vcombine.low %v304_v38, %v311_v40  ;;  %v1996_v38 = vld [vmem:[#allocation8 + $0x138] sm:$0xff]  ;;  %v1994_v40 = vld [vmem:[#allocation8 + $0x128] sm:$0xff] }
 0x3a7   :  { %1918 = vmatpush2.msra.mxu0 %v1740_v48  ;;  %1850 = vmatprep.subr.mxu1 %v1731_v55 }
 0x3a8   :  { %1919 = vmatprep.subr.mxu0 %v1737_v13  ;;  %1851 = vmatpush2.msra.mxu1 %v1730_v57 }
 0x3a9   :  { %1920 = vmatpush2.msra.mxu0 %v1736_v54  ;;  %1852 = vmatprep.subr.mxu1 %v1727_v60 }
 0x3aa   :  { %1921 = vmatprep.subr.mxu0 %v1733_v56  ;;  %1853 = vmatpush2.msra.mxu1 %v1726_v61 }
 0x3ab   :  { %1922 = vmatpush2.msra.mxu0 %v1732_v58  ;;  %2085 = vmatprep.subr.mxu1 %v2018_v3 }
 0x3ac   :  { %1923 = vmatprep.subr.mxu0 %v1729_v15 }
 0x3ad   :  { %1924 = vmatpush2.msra.mxu0 %v1728_v63 }
 0x3ae   :  { %2156 = vmatprep.subr.mxu0 %v2020_v2 }
 0x40e   :  { %v1405_v16 = vpop.f32.mrf.mxu0 }
 0x40f   :  { %v1406_v7 = vadd.f32 %v7946_v5, %v1405_v16  ;;  %v2019_v5 = vld [vmem:[#allocation8 + $0x1f0] sm:$0xff]  ;;  %v2017_v16 = vld [vmem:[#allocation8 + $0x1e0] sm:$0xff] }
 0x410   :  { %v8166_v8 = vpop.f32.mrf.mxu0 }
 0x411   :  { %1409 = vst [vmem:[#allocation11] sm:$0x3] %v1406_v7  ;;  %v2016_v7 = vld [vmem:[#allocation8 + $0x1d8] sm:$0xff]  ;;  %v2014_v8 = vld [vmem:[#allocation8 + $0x1c8] sm:$0xff] }
 0x42e   :  { %v1613_v35 = vpop.f32.mrf.mxu0 }
 0x430   :  { %v1615_v37 = vpop.f32.mrf.mxu0 }
 0x431   :  { %v1623_v43 = vcombine.low %v1613_v35, %v1615_v37  ;;  %v1998_v35 = vld [vmem:[#allocation8 + $0x148] sm:$0xff]  ;;  %v1997_v37 = vld [vmem:[#allocation8 + $0x140] sm:$0xff] }
 0x433   :  { %v1637_v45 = vrot.slane %v1623_v43, %v9010_v39  ;;  %v1995_v43 = vld [vmem:[#allocation8 + $0x130] sm:$0xff] }
 0x435   :  { %v1638_v47 = vcombine.low %v1630_v44, %v1637_v45  ;;  %v1993_v44 = vld [vmem:[#allocation8 + $0x120] sm:$0xff]  ;;  %v1992_v45 = vld [vmem:[#allocation8 + $0x118] sm:$0xff] }
 0x437   :  { %v1640_v48 = vadd.f32 %v1638_v47, %v312_v46  ;;  %v1990_v46 = vld [vmem:[#allocation8 + $0x108] sm:$0xff]  ;;  %v1991_v47 = vld [vmem:[#allocation8 + $0x110] sm:$0xff] }
 0x439   :  { %v7947_v50 = vmul.f32 -1.442695, %v1640_v48  ;;  %v1648_v54 = vrot.slane %v1640_v48, 6  ;;  %v1989_v48 = vld [vmem:[#allocation8 + $0x100] sm:$0xff] }
 0x43b   :  { %8468 = vpow2.f32 %v7947_v50  ;;  %v1988_v50 = vld [vmem:[#allocation8 + $0xf8] sm:$0xff] }
 0x448   :  { %v8469_v13 = vpop.eup %8468 }
 0x449   :  { %v1644_v14 = vadd.f32 1.0, %v8469_v13  ;;  %v1986_v13 = vld [vmem:[#allocation8 + $0xe8] sm:$0xff] }
 0x44b   :  { %8470 = vrcp.f32 %v1644_v14  ;;  %v1987_v14 = vld [vmem:[#allocation8 + $0xf0] sm:$0xff] }
 0x44c   :  { %8472 = vtanh.f32 %v1648_v54  ;;  %v1985_v54 = vld [vmem:[#allocation8 + $0xe0] sm:$0xff] }
 0x458   :  { %v8471_v55 = vpop.eup %8470 }
 0x459   :  { %v1652_v56 = vrot.slane %v8471_v55, 2  ;;  %v8473_v57 = vpop.eup %8472  ;;  %v1658_v61 = vrot.slane %v8471_v55, 4 }
 0x45a   :  { %v1655_v60 = vmul.f32 %v8473_v57, %v8471_v55  ;;  %v1984_v55 = vld [vmem:[#allocation8 + $0xd8] sm:$0xff]  ;;  %v1983_v57 = vld [vmem:[#allocation8 + $0xd0] sm:$0xff] }
 0x45b   :  { %v1654_v58 = vmul.f32 %v1652_v56, %v9016_v1  ;;  %v2015_v1 = vld [vmem:[#allocation8 + $0x1d0] sm:$0xff]  ;;  %v1982_v56 = vld [vmem:[#allocation8 + $0xc8] sm:$0xff] }
 0x45d   :  { %v9114_v15 = vadd.f32 %v1655_v60, %v1654_v58  ;;  %v1981_v58 = vld [vmem:[#allocation8 + $0xc0] sm:$0xff]  ;;  %v1980_v60 = vld [vmem:[#allocation8 + $0xb8] sm:$0xff] }
 0x45f   :  { %8474 = vtanh.f32 %v9114_v15 }
 0x46c   :  { %v8475_v63 = vpop.eup %8474 }
 0x46d   :  { %v9117_v2 = vmul.f32 %v8475_v63, %v1658_v61  ;;  %v1978_v61 = vld [vmem:[#allocation8 + $0xa8] sm:$0xff]  ;;  %v1979_v63 = vld [vmem:[#allocation8 + $0xb0] sm:$0xff] }
 0x46f   :  { %v1661_v3 = vmax.f32 %v9117_v2, 0.0 }
 0x471   :  { %1855 = vmatmul.mubr.f32.vlgmr.msra.gmra.mxu1 %v1661_v3  ;;  %1926 = vmatmul.mubr.f32.vlgmr.msra.gmra.mxu0 %v1661_v3  ;;  %v1977_v3 = vld [vmem:[#allocation8 + $0xa0] sm:$0xff] }
 0x472   :  { %2149 = vmatprep.mubr.f32.mxu1 %v9092_v9  ;;  %2220 = vmatprep.mubr.f32.mxu0 %v9092_v9  ;;  %v2007_v9 = vld [vmem:[#allocation8 + $0x190] sm:$0xff] }
 0x473   :  { %2157 = vmatpush1.msra.mxu0 %v2019_v5  ;;  %2086 = vmatpush1.msra.mxu1 %v2017_v16  ;;  %v1976_v5 = vld [vmem:[#allocation8 + $0x98] sm:$0xff]  ;;  %v1974_v16 = vld [vmem:[#allocation8 + $0x88] sm:$0xff] }
 0x474   :  { %2158 = vmatprep.subr.mxu0 %v2016_v7  ;;  %2087 = vmatprep.subr.mxu1 %v2014_v8  ;;  %v1975_v7 = vld [vmem:[#allocation8 + $0x90] sm:$0xff]  ;;  %v1973_v8 = vld [vmem:[#allocation8 + $0x80] sm:$0xff] }
 0x475   :  { %2159 = vmatpush1.msra.mxu0 %v2015_v1  ;;  %2088 = vmatpush1.msra.mxu1 %v2013_v10  ;;  %v1972_v1 = vld [vmem:[#allocation8 + $0x78] sm:$0xff]  ;;  %v1970_v10 = vld [vmem:[#allocation8 + $0x68] sm:$0xff] }
 0x476   :  { %2160 = vmatprep.subr.mxu0 %v2012_v4  ;;  %2089 = vmatprep.subr.mxu1 %v2010_v31  ;;  %v1971_v4 = vld [vmem:[#allocation8 + $0x70] sm:$0xff]  ;;  %v1969_v31 = vld [vmem:[#allocation8 + $0x60] sm:$0xff] }
 0x477   :  { %2161 = vmatpush1.msra.mxu0 %v2011_v11  ;;  %2090 = vmatpush1.msra.mxu1 %v2009_v12  ;;  %v1968_v11 = vld [vmem:[#allocation8 + $0x58] sm:$0xff]  ;;  %v1966_v12 = vld [vmem:[#allocation8 + $0x48] sm:$0xff] }
 0x478   :  { %2162 = vmatprep.subr.mxu0 %v2008_v17  ;;  %2091 = vmatprep.subr.mxu1 %v2006_v22  ;;  %v1967_v17 = vld [vmem:[#allocation8 + $0x50] sm:$0xff]  ;;  %v1965_v22 = vld [vmem:[#allocation8 + $0x40] sm:$0xff] }
 0x479   :  { %2163 = vmatpush1.msra.mxu0 %v2007_v9  ;;  %2092 = vmatpush1.msra.mxu1 %v2005_v23  ;;  %v1964_v9 = vld [vmem:[#allocation8 + $0x38] sm:$0xff]  ;;  %v1962_v23 = vld [vmem:[#allocation8 + $0x28] sm:$0xff] }
 0x47a   :  { %2164 = vmatprep.subr.mxu0 %v2004_v29  ;;  %2093 = vmatprep.subr.mxu1 %v2002_v30  ;;  %v1963_v29 = vld [vmem:[#allocation8 + $0x30] sm:$0xff]  ;;  %v1961_v30 = vld [vmem:[#allocation8 + $0x20] sm:$0xff] }
 0x47b   :  { %2165 = vmatpush1.msra.mxu0 %v2003_v32  ;;  %2094 = vmatpush1.msra.mxu1 %v2001_v33  ;;  %v1960_v32 = vld [vmem:[#allocation8 + $0x18] sm:$0xff]  ;;  %v1958_v33 = vld [vmem:[#allocation8 + $0x8] sm:$0xff] }
 0x47c   :  { %2166 = vmatprep.subr.mxu0 %v2000_v34  ;;  %2095 = vmatprep.subr.mxu1 %v1998_v35  ;;  %v1959_v34 = vld [vmem:[#allocation8 + $0x10] sm:$0xff]  ;;  %v1957_v35 = vld [vmem:[#allocation8] sm:$0xff] }
 0x47d   :  { %2167 = vmatpush1.msra.mxu0 %v1999_v36  ;;  %2096 = vmatpush1.msra.mxu1 %v1997_v37  ;;  %v2084_v36 = vld [vmem:[#allocation8 + $0x3f8] sm:$0xff]  ;;  %v2082_v37 = vld [vmem:[#allocation8 + $0x3e8] sm:$0xff] }
 0x47e   :  { %2168 = vmatprep.subr.mxu0 %v1996_v38  ;;  %2097 = vmatprep.subr.mxu1 %v1994_v40  ;;  %v2083_v38 = vld [vmem:[#allocation8 + $0x3f0] sm:$0xff]  ;;  %v2081_v40 = vld [vmem:[#allocation8 + $0x3e0] sm:$0xff] }
 0x47f   :  { %2169 = vmatpush1.msra.mxu0 %v1995_v43  ;;  %2098 = vmatpush1.msra.mxu1 %v1993_v44  ;;  %v2080_v43 = vld [vmem:[#allocation8 + $0x3d8] sm:$0xff]  ;;  %v2078_v44 = vld [vmem:[#allocation8 + $0x3c8] sm:$0xff] }
 0x480   :  { %2170 = vmatprep.subr.mxu0 %v1992_v45  ;;  %2099 = vmatprep.subr.mxu1 %v1990_v46  ;;  %v2079_v45 = vld [vmem:[#allocation8 + $0x3d0] sm:$0xff]  ;;  %v2077_v46 = vld [vmem:[#allocation8 + $0x3c0] sm:$0xff] }
 0x481   :  { %2171 = vmatpush1.msra.mxu0 %v1991_v47  ;;  %2100 = vmatpush1.msra.mxu1 %v1989_v48  ;;  %v2076_v47 = vld [vmem:[#allocation8 + $0x3b8] sm:$0xff]  ;;  %v2074_v48 = vld [vmem:[#allocation8 + $0x3a8] sm:$0xff] }
 0x482   :  { %2172 = vmatprep.subr.mxu0 %v1988_v50  ;;  %2101 = vmatprep.subr.mxu1 %v1986_v13  ;;  %v2075_v50 = vld [vmem:[#allocation8 + $0x3b0] sm:$0xff]  ;;  %v2073_v13 = vld [vmem:[#allocation8 + $0x3a0] sm:$0xff] }
 0x483   :  { %2173 = vmatpush1.msra.mxu0 %v1987_v14  ;;  %2102 = vmatpush1.msra.mxu1 %v1985_v54  ;;  %v2072_v14 = vld [vmem:[#allocation8 + $0x398] sm:$0xff]  ;;  %v2070_v54 = vld [vmem:[#allocation8 + $0x388] sm:$0xff] }
 0x484   :  { %2174 = vmatprep.subr.mxu0 %v1984_v55  ;;  %2103 = vmatprep.subr.mxu1 %v1982_v56  ;;  %v2071_v55 = vld [vmem:[#allocation8 + $0x390] sm:$0xff]  ;;  %v2069_v56 = vld [vmem:[#allocation8 + $0x380] sm:$0xff] }
 0x485   :  { %2175 = vmatpush1.msra.mxu0 %v1983_v57  ;;  %2104 = vmatpush1.msra.mxu1 %v1981_v58  ;;  %v2068_v57 = vld [vmem:[#allocation8 + $0x378] sm:$0xff]  ;;  %v2066_v58 = vld [vmem:[#allocation8 + $0x368] sm:$0xff] }
 0x486   :  { %2176 = vmatprep.subr.mxu0 %v1980_v60  ;;  %2105 = vmatprep.subr.mxu1 %v1978_v61  ;;  %v2067_v60 = vld [vmem:[#allocation8 + $0x370] sm:$0xff]  ;;  %v2065_v61 = vld [vmem:[#allocation8 + $0x360] sm:$0xff] }
 0x487   :  { %2177 = vmatpush1.msra.mxu0 %v1979_v63  ;;  %2106 = vmatpush1.msra.mxu1 %v1977_v3  ;;  %v2064_v63 = vld [vmem:[#allocation8 + $0x358] sm:$0xff]  ;;  %v2062_v3 = vld [vmem:[#allocation8 + $0x348] sm:$0xff] }
 0x488   :  { %2178 = vmatprep.subr.mxu0 %v1976_v5  ;;  %2107 = vmatprep.subr.mxu1 %v1974_v16  ;;  %v2063_v5 = vld [vmem:[#allocation8 + $0x350] sm:$0xff]  ;;  %v2061_v16 = vld [vmem:[#allocation8 + $0x340] sm:$0xff] }
 0x489   :  { %2179 = vmatpush1.msra.mxu0 %v1975_v7  ;;  %2108 = vmatpush1.msra.mxu1 %v1973_v8  ;;  %v2060_v7 = vld [vmem:[#allocation8 + $0x338] sm:$0xff]  ;;  %v2058_v8 = vld [vmem:[#allocation8 + $0x328] sm:$0xff] }
 0x48a   :  { %2180 = vmatprep.subr.mxu0 %v1972_v1  ;;  %2109 = vmatprep.subr.mxu1 %v1970_v10  ;;  %v2059_v1 = vld [vmem:[#allocation8 + $0x330] sm:$0xff]  ;;  %v2057_v10 = vld [vmem:[#allocation8 + $0x320] sm:$0xff] }
 0x48b   :  { %2181 = vmatpush1.msra.mxu0 %v1971_v4  ;;  %2110 = vmatpush1.msra.mxu1 %v1969_v31  ;;  %v2056_v4 = vld [vmem:[#allocation8 + $0x318] sm:$0xff]  ;;  %v2054_v31 = vld [vmem:[#allocation8 + $0x308] sm:$0xff] }
 0x48c   :  { %2182 = vmatprep.subr.mxu0 %v1968_v11  ;;  %2111 = vmatprep.subr.mxu1 %v1966_v12  ;;  %v2055_v11 = vld [vmem:[#allocation8 + $0x310] sm:$0xff]  ;;  %v2053_v12 = vld [vmem:[#allocation8 + $0x300] sm:$0xff] }
 0x48d   :  { %2183 = vmatpush1.msra.mxu0 %v1967_v17  ;;  %2112 = vmatpush1.msra.mxu1 %v1965_v22  ;;  %v2052_v17 = vld [vmem:[#allocation8 + $0x2f8] sm:$0xff]  ;;  %v2050_v22 = vld [vmem:[#allocation8 + $0x2e8] sm:$0xff] }
 0x48e   :  { %2184 = vmatprep.subr.mxu0 %v1964_v9  ;;  %2113 = vmatprep.subr.mxu1 %v1962_v23  ;;  %v2051_v9 = vld [vmem:[#allocation8 + $0x2f0] sm:$0xff]  ;;  %v2049_v23 = vld [vmem:[#allocation8 + $0x2e0] sm:$0xff] }
 0x48f   :  { %2185 = vmatpush1.msra.mxu0 %v1963_v29  ;;  %2114 = vmatpush1.msra.mxu1 %v1961_v30  ;;  %v2048_v29 = vld [vmem:[#allocation8 + $0x2d8] sm:$0xff]  ;;  %v2046_v30 = vld [vmem:[#allocation8 + $0x2c8] sm:$0xff] }
 0x490   :  { %2186 = vmatprep.subr.mxu0 %v1960_v32  ;;  %2115 = vmatprep.subr.mxu1 %v1958_v33  ;;  %v2047_v32 = vld [vmem:[#allocation8 + $0x2d0] sm:$0xff]  ;;  %v2045_v33 = vld [vmem:[#allocation8 + $0x2c0] sm:$0xff] }
 0x491   :  { %2187 = vmatpush1.msra.mxu0 %v1959_v34  ;;  %2116 = vmatpush1.msra.mxu1 %v1957_v35  ;;  %v2044_v34 = vld [vmem:[#allocation8 + $0x2b8] sm:$0xff]  ;;  %v2042_v35 = vld [vmem:[#allocation8 + $0x2a8] sm:$0xff] }
 0x492   :  { %2188 = vmatprep.subr.mxu0 %v2084_v36  ;;  %2117 = vmatprep.subr.mxu1 %v2082_v37  ;;  %v2043_v36 = vld [vmem:[#allocation8 + $0x2b0] sm:$0xff]  ;;  %v2041_v37 = vld [vmem:[#allocation8 + $0x2a0] sm:$0xff] }
 0x493   :  { %2189 = vmatpush2.msra.mxu0 %v2083_v38  ;;  %2118 = vmatpush2.msra.mxu1 %v2081_v40  ;;  %v2040_v38 = vld [vmem:[#allocation8 + $0x298] sm:$0xff]  ;;  %v2038_v40 = vld [vmem:[#allocation8 + $0x288] sm:$0xff] }
 0x494   :  { %2190 = vmatprep.subr.mxu0 %v2080_v43  ;;  %2119 = vmatprep.subr.mxu1 %v2078_v44  ;;  %v2039_v43 = vld [vmem:[#allocation8 + $0x290] sm:$0xff]  ;;  %v2037_v44 = vld [vmem:[#allocation8 + $0x280] sm:$0xff] }
 0x495   :  { %2191 = vmatpush2.msra.mxu0 %v2079_v45  ;;  %2120 = vmatpush2.msra.mxu1 %v2077_v46  ;;  %v2036_v45 = vld [vmem:[#allocation8 + $0x278] sm:$0xff]  ;;  %v2034_v46 = vld [vmem:[#allocation8 + $0x268] sm:$0xff] }
 0x496   :  { %2192 = vmatprep.subr.mxu0 %v2076_v47  ;;  %2121 = vmatprep.subr.mxu1 %v2074_v48  ;;  %v2035_v47 = vld [vmem:[#allocation8 + $0x270] sm:$0xff]  ;;  %v2033_v48 = vld [vmem:[#allocation8 + $0x260] sm:$0xff] }
 0x497   :  { %2193 = vmatpush2.msra.mxu0 %v2075_v50  ;;  %2122 = vmatpush2.msra.mxu1 %v2073_v13  ;;  %v2032_v50 = vld [vmem:[#allocation8 + $0x258] sm:$0xff]  ;;  %v2030_v13 = vld [vmem:[#allocation8 + $0x248] sm:$0xff] }
 0x498   :  { %2194 = vmatprep.subr.mxu0 %v2072_v14  ;;  %2123 = vmatprep.subr.mxu1 %v2070_v54  ;;  %v2031_v14 = vld [vmem:[#allocation8 + $0x250] sm:$0xff]  ;;  %v2029_v54 = vld [vmem:[#allocation8 + $0x240] sm:$0xff] }
 0x499   :  { %2195 = vmatpush2.msra.mxu0 %v2071_v55  ;;  %2124 = vmatpush2.msra.mxu1 %v2069_v56  ;;  %v2028_v55 = vld [vmem:[#allocation8 + $0x238] sm:$0xff]  ;;  %v2026_v56 = vld [vmem:[#allocation8 + $0x228] sm:$0xff] }
 0x49a   :  { %2196 = vmatprep.subr.mxu0 %v2068_v57  ;;  %2125 = vmatprep.subr.mxu1 %v2066_v58  ;;  %v2027_v57 = vld [vmem:[#allocation8 + $0x230] sm:$0xff]  ;;  %v2025_v58 = vld [vmem:[#allocation8 + $0x220] sm:$0xff] }
 0x49b   :  { %2197 = vmatpush2.msra.mxu0 %v2067_v60  ;;  %2126 = vmatpush2.msra.mxu1 %v2065_v61  ;;  %v2024_v60 = vld [vmem:[#allocation8 + $0x218] sm:$0xff]  ;;  %v2022_v61 = vld [vmem:[#allocation8 + $0x208] sm:$0xff] }
 0x49c   :  { %2198 = vmatprep.subr.mxu0 %v2064_v63  ;;  %2127 = vmatprep.subr.mxu1 %v2062_v3  ;;  %v2023_v63 = vld [vmem:[#allocation8 + $0x210] sm:$0xff]  ;;  %v2021_v3 = vld [vmem:[#allocation8 + $0x200] sm:$0xff] }
 0x49d   :  { %2199 = vmatpush2.msra.mxu0 %v2063_v5  ;;  %2128 = vmatpush2.msra.mxu1 %v2061_v16  ;;  %v2403_v5 = vld [vmem:[#allocation3 + $0x1e8] sm:$0xff] }
 0x49e   :  { %2200 = vmatprep.subr.mxu0 %v2060_v7  ;;  %2129 = vmatprep.subr.mxu1 %v2058_v8 }
 0x49f   :  { %2201 = vmatpush2.msra.mxu0 %v2059_v1  ;;  %2130 = vmatpush2.msra.mxu1 %v2057_v10 }
 0x4a0   :  { %2202 = vmatprep.subr.mxu0 %v2056_v4  ;;  %2131 = vmatprep.subr.mxu1 %v2054_v31 }
 0x4a1   :  { %2203 = vmatpush2.msra.mxu0 %v2055_v11  ;;  %2132 = vmatpush2.msra.mxu1 %v2053_v12 }
 0x4a2   :  { %2204 = vmatprep.subr.mxu0 %v2052_v17  ;;  %2133 = vmatprep.subr.mxu1 %v2050_v22 }
 0x4a3   :  { %2205 = vmatpush2.msra.mxu0 %v2051_v9  ;;  %2134 = vmatpush2.msra.mxu1 %v2049_v23 }
 0x4a4   :  { %2206 = vmatprep.subr.mxu0 %v2048_v29  ;;  %2135 = vmatprep.subr.mxu1 %v2046_v30 }
 0x4a5   :  { %2207 = vmatpush2.msra.mxu0 %v2047_v32  ;;  %2136 = vmatpush2.msra.mxu1 %v2045_v33 }
 0x4a6   :  { %2208 = vmatprep.subr.mxu0 %v2044_v34  ;;  %2137 = vmatprep.subr.mxu1 %v2042_v35 }
 0x4a7   :  { %2209 = vmatpush2.msra.mxu0 %v2043_v36  ;;  %2138 = vmatpush2.msra.mxu1 %v2041_v37 }
 0x4a8   :  { %2210 = vmatprep.subr.mxu0 %v2040_v38  ;;  %2139 = vmatprep.subr.mxu1 %v2038_v40 }
 0x4a9   :  { %2211 = vmatpush2.msra.mxu0 %v2039_v43  ;;  %2140 = vmatpush2.msra.mxu1 %v2037_v44 }
 0x4aa   :  { %2212 = vmatprep.subr.mxu0 %v2036_v45  ;;  %2141 = vmatprep.subr.mxu1 %v2034_v46 }
 0x4ab   :  { %2213 = vmatpush2.msra.mxu0 %v2035_v47  ;;  %2142 = vmatpush2.msra.mxu1 %v2033_v48  ;;  %v2402_v47 = vld [vmem:[#allocation3 + $0x1e0] sm:$0xff]  ;;  %v2399_v48 = vld [vmem:[#allocation3 + $0x1c8] sm:$0xff] }
 0x4ac   :  { %2214 = vmatprep.subr.mxu0 %v2032_v50  ;;  %2143 = vmatprep.subr.mxu1 %v2030_v13  ;;  %v2398_v50 = vld [vmem:[#allocation3 + $0x1c0] sm:$0xff]  ;;  %v2395_v13 = vld [vmem:[#allocation3 + $0x1a8] sm:$0xff] }
 0x4ad   :  { %2215 = vmatpush2.msra.mxu0 %v2031_v14  ;;  %2144 = vmatpush2.msra.mxu1 %v2029_v54  ;;  %v2391_v14 = vld [vmem:[#allocation3 + $0x188] sm:$0xff]  ;;  %v2390_v54 = vld [vmem:[#allocation3 + $0x180] sm:$0xff] }
 0x4ae   :  { %2216 = vmatprep.subr.mxu0 %v2028_v55  ;;  %2145 = vmatprep.subr.mxu1 %v2026_v56  ;;  %v2387_v55 = vld [vmem:[#allocation3 + $0x168] sm:$0xff]  ;;  %v2386_v56 = vld [vmem:[#allocation3 + $0x160] sm:$0xff] }
 0x4af   :  { %2217 = vmatpush2.msra.mxu0 %v2027_v57  ;;  %2146 = vmatpush2.msra.mxu1 %v2025_v58  ;;  %v2383_v57 = vld [vmem:[#allocation3 + $0x148] sm:$0xff]  ;;  %v2382_v58 = vld [vmem:[#allocation3 + $0x140] sm:$0xff] }
 0x4b0   :  { %2218 = vmatprep.subr.mxu0 %v2024_v60  ;;  %2147 = vmatprep.subr.mxu1 %v2022_v61  ;;  %v2379_v60 = vld [vmem:[#allocation3 + $0x128] sm:$0xff]  ;;  %v2378_v61 = vld [vmem:[#allocation3 + $0x120] sm:$0xff] }
 0x4b1   :  { %2219 = vmatpush2.msra.mxu0 %v2023_v63  ;;  %2148 = vmatpush2.msra.mxu1 %v2021_v3  ;;  %v2375_v63 = vld [vmem:[#allocation3 + $0x108] sm:$0xff]  ;;  %v2374_v3 = vld [vmem:[#allocation3 + $0x100] sm:$0xff] }
 0x4b2   :  { %2406 = vmatprep.subr.mxu0 %v2403_v5  ;;  %8167 = vmatprep.subr.mxu1 %v8870_v0  ;;  %v2371_v5 = vld [vmem:[#allocation3 + $0xe8] sm:$0xff] }
 0x531   :  { %v1856_v16 = vpop.f32.mrf.mxu1  ;;  %v1927_v31 = vpop.f32.mrf.mxu0 }
 0x532   :  { %v1857_v7 = vadd.f32 %v1856_v16, %v9029_v51  ;;  %v1928_v11 = vadd.f32 %v1927_v31, %v9037_v59  ;;  %v2370_v16 = vld [vmem:[#allocation3 + $0xe0] sm:$0xff] }
 0x533   :  { %v1858_v8 = vpop.f32.mrf.mxu1  ;;  %v1929_v12 = vpop.f32.mrf.mxu0  ;;  %v2358_v31 = vld [vmem:[#allocation3 + $0x80] sm:$0xff] }
 0x534   :  { %v7948_v1 = vmul.f32 -1.442695, %v1857_v7  ;;  %v1859_v10 = vadd.f32 %v1858_v8, %v9032_v52  ;;  %v7950_v17 = vmul.f32 -1.442695, %v1928_v11  ;;  %v1930_v9 = vadd.f32 %v1929_v12, %v9041_v62  ;;  %v2367_v7 = vld [vmem:[#allocation3 + $0xc8] sm:$0xff]  ;;  %v2366_v8 = vld [vmem:[#allocation3 + $0xc0] sm:$0xff] }
 0x535   :  { %v2355_v11 = vld [vmem:[#allocation3 + $0x68] sm:$0xff]  ;;  %v2354_v12 = vld [vmem:[#allocation3 + $0x60] sm:$0xff] }
 0x536   :  { %8476 = vpow2.f32 %v7948_v1  ;;  %v7949_v4 = vmul.f32 -1.442695, %v1859_v10  ;;  %v2363_v1 = vld [vmem:[#allocation3 + $0xa8] sm:$0xff]  ;;  %v2362_v10 = vld [vmem:[#allocation3 + $0xa0] sm:$0xff] }
 0x538   :  { %8478 = vpow2.f32 %v7949_v4  ;;  %v2359_v4 = vld [vmem:[#allocation3 + $0x88] sm:$0xff] }
 0x539   :  { %8480 = vpow2.f32 %v7950_v17  ;;  %v2351_v17 = vld [vmem:[#allocation3 + $0x48] sm:$0xff] }
 0x543   :  { %v8477_v22 = vpop.eup %8476 }
 0x544   :  { %v1941_v23 = vadd.f32 1.0, %v8477_v22  ;;  %v2350_v22 = vld [vmem:[#allocation3 + $0x40] sm:$0xff] }
 0x545   :  { %v8479_v29 = vpop.eup %8478 }
 0x546   :  { %8482 = vrcp.f32 %v1941_v23  ;;  %v1942_v30 = vadd.f32 1.0, %v8479_v29  ;;  %v8481_v32 = vpop.eup %8480  ;;  %v2346_v23 = vld [vmem:[#allocation3 + $0x20] sm:$0xff]  ;;  %v2343_v29 = vld [vmem:[#allocation3 + $0x8] sm:$0xff] }
 0x547   :  { %8484 = vtanh.f32 %v1930_v9  ;;  %v1943_v36 = vadd.f32 1.0, %v8481_v32  ;;  %v2347_v9 = vld [vmem:[#allocation3 + $0x28] sm:$0xff]  ;;  %v2267_v32 = vld [vmem:[#allocation9 + $0x78] sm:$0xff] }
 0x548   :  { %8486 = vrcp.f32 %v1942_v30  ;;  %v2342_v30 = vld [vmem:[#allocation3] sm:$0xff] }
 0x549   :  { %8488 = vrcp.f32 %v1943_v36  ;;  %v2263_v36 = vld [vmem:[#allocation9 + $0x58] sm:$0xff] }
 0x553   :  { %v8483_v33 = vpop.eup %8482 }
 0x554   :  { %v8485_v34 = vpop.eup %8484 }
 0x555   :  { %v8487_v35 = vpop.eup %8486  ;;  %v1952_v38 = vmul.f32 %v8485_v34, %v8483_v33  ;;  %v2266_v33 = vld [vmem:[#allocation9 + $0x70] sm:$0xff]  ;;  %v2265_v34 = vld [vmem:[#allocation9 + $0x68] sm:$0xff] }
 0x556   :  { %v1951_v37 = vmul.f32 %v8487_v35, %v9044_v24  ;;  %v8489_v43 = vpop.eup %8488  ;;  %v2394_v24 = vld [vmem:[#allocation3 + $0x1a0] sm:$0xff] }
 0x557   :  { %v2264_v35 = vld [vmem:[#allocation9 + $0x60] sm:$0xff] }
 0x558   :  { %v9128_v40 = vadd.f32 %v1952_v38, %v1951_v37  ;;  %v2262_v37 = vld [vmem:[#allocation9 + $0x50] sm:$0xff]  ;;  %v2261_v38 = vld [vmem:[#allocation9 + $0x48] sm:$0xff] }
 0x55a   :  { %8490 = vtanh.f32 %v9128_v40 }
 0x567   :  { %v8491_v44 = vpop.eup %8490 }
 0x568   :  { %v9131_v45 = vmul.f32 %v8491_v44, %v8489_v43  ;;  %v2260_v43 = vld [vmem:[#allocation9 + $0x40] sm:$0xff]  ;;  %v2259_v44 = vld [vmem:[#allocation9 + $0x38] sm:$0xff] }
 0x56a   :  { %v1956_v46 = vmax.f32 %v9131_v45, 0.0 }
 0x56c   :  { %2150 = vmatmul.mubr.f32.vlgmr.msra.gmra.mxu1 %v1956_v46  ;;  %2221 = vmatmul.mubr.f32.vlgmr.msra.gmra.mxu0 %v1956_v46  ;;  %v2258_v46 = vld [vmem:[#allocation9 + $0x30] sm:$0xff] }
 0x56d   :  { %2407 = vmatpush1.msra.mxu0 %v2402_v47  ;;  %2470 = vmatprep.mubr.f32.mxu0 %v8870_v0  ;;  %v2257_v47 = vld [vmem:[#allocation9 + $0x28] sm:$0xff] }
 0x56e   :  { %2408 = vmatprep.subr.mxu0 %v2399_v48  ;;  %8199 = vmatprep.mubr.msk.f32.mxu1 %vm8873_vm0, %v8870_v0  ;;  %v2256_v48 = vld [vmem:[#allocation9 + $0x20] sm:$0xff] }
 0x56f   :  { %2409 = vmatpush1.msra.mxu0 %v2398_v50  ;;  %8168 = vmatpush3.msra.mxu1 %v2267_v32  ;;  %v2255_v50 = vld [vmem:[#allocation9 + $0x18] sm:$0xff] }
 0x570   :  { %2410 = vmatprep.subr.mxu0 %v2395_v13  ;;  %8169 = vmatprep.subr.mxu1 %v8870_v0  ;;  %v2254_v13 = vld [vmem:[#allocation9 + $0x10] sm:$0xff] }
 0x571   :  { %2411 = vmatpush1.msra.mxu0 %v2394_v24  ;;  %8170 = vmatpush3.msra.mxu1 %v2266_v33  ;;  %v2253_v24 = vld [vmem:[#allocation9 + $0x8] sm:$0xff] }
 0x572   :  { %2412 = vmatprep.subr.mxu0 %v2391_v14  ;;  %8171 = vmatprep.subr.mxu1 %v8870_v0  ;;  %v2252_v14 = vld [vmem:[#allocation9] sm:$0xff] }
 0x573   :  { %2413 = vmatpush1.msra.mxu0 %v2390_v54  ;;  %8172 = vmatpush3.msra.mxu1 %v2265_v34  ;;  %v2405_v54 = vld [vmem:[#allocation3 + $0x1f8] sm:$0xff] }
 0x574   :  { %2414 = vmatprep.subr.mxu0 %v2387_v55  ;;  %8173 = vmatprep.subr.mxu1 %v8870_v0  ;;  %v93_v55 = vld [vmem:[%s9585_s0 + $0x4] sm:$0x3] }
 0x575   :  { %2415 = vmatpush1.msra.mxu0 %v2386_v56  ;;  %8174 = vmatpush3.msra.mxu1 %v2264_v35  ;;  %v94_v56 = vld [vmem:[%s9585_s0 + $0x6] sm:$0x3] }
 0x576   :  { %2416 = vmatprep.subr.mxu0 %v2383_v57  ;;  %8175 = vmatprep.subr.mxu1 %v8870_v0  ;;  %v96_v57 = vld [vmem:[%s9585_s0 + $0xa] sm:$0x3] }
 0x577   :  { %2417 = vmatpush1.msra.mxu0 %v2382_v58  ;;  %8176 = vmatpush3.msra.mxu1 %v2263_v36  ;;  %v98_v58 = vld [vmem:[%s9585_s0 + $0xe] sm:$0x3] }
 0x578   :  { %2418 = vmatprep.subr.mxu0 %v2379_v60  ;;  %8177 = vmatprep.subr.mxu1 %v8870_v0 }
 0x579   :  { %2419 = vmatpush1.msra.mxu0 %v2378_v61  ;;  %8178 = vmatpush3.msra.mxu1 %v2262_v37 }
 0x57a   :  { %2420 = vmatprep.subr.mxu0 %v2375_v63  ;;  %8179 = vmatprep.subr.mxu1 %v8870_v0 }
 0x57b   :  { %2421 = vmatpush1.msra.mxu0 %v2374_v3  ;;  %8180 = vmatpush3.msra.mxu1 %v2261_v38 }
 0x57c   :  { %2422 = vmatprep.subr.mxu0 %v2371_v5  ;;  %8181 = vmatprep.subr.mxu1 %v8870_v0 }
 0x57d   :  { %2423 = vmatpush1.msra.mxu0 %v2370_v16  ;;  %8182 = vmatpush3.msra.mxu1 %v2260_v43  ;;  %v2404_v43 = vld [vmem:[#allocation3 + $0x1f0] sm:$0xff] }
 0x57e   :  { %2424 = vmatprep.subr.mxu0 %v2367_v7  ;;  %8183 = vmatprep.subr.mxu1 %v8870_v0 }
 0x57f   :  { %2425 = vmatpush1.msra.mxu0 %v2366_v8  ;;  %8184 = vmatpush3.msra.mxu1 %v2259_v44  ;;  %v2401_v44 = vld [vmem:[#allocation3 + $0x1d8] sm:$0xff] }
 0x580   :  { %2426 = vmatprep.subr.mxu0 %v2363_v1  ;;  %8185 = vmatprep.subr.mxu1 %v8870_v0 }
 0x581   :  { %2427 = vmatpush1.msra.mxu0 %v2362_v10  ;;  %8186 = vmatpush3.msra.mxu1 %v2258_v46  ;;  %v2400_v46 = vld [vmem:[#allocation3 + $0x1d0] sm:$0xff] }
 0x582   :  { %2428 = vmatprep.subr.mxu0 %v2359_v4  ;;  %8187 = vmatprep.subr.mxu1 %v8870_v0 }
 0x583   :  { %2429 = vmatpush1.msra.mxu0 %v2358_v31  ;;  %8188 = vmatpush3.msra.mxu1 %v2257_v47  ;;  %v2397_v47 = vld [vmem:[#allocation3 + $0x1b8] sm:$0xff] }
 0x584   :  { %2430 = vmatprep.subr.mxu0 %v2355_v11  ;;  %8189 = vmatprep.subr.mxu1 %v8870_v0 }
 0x585   :  { %2431 = vmatpush1.msra.mxu0 %v2354_v12  ;;  %8190 = vmatpush3.msra.mxu1 %v2256_v48  ;;  %v2393_v48 = vld [vmem:[#allocation3 + $0x198] sm:$0xff] }
 0x586   :  { %2432 = vmatprep.subr.mxu0 %v2351_v17  ;;  %8191 = vmatprep.subr.mxu1 %v8870_v0 }
 0x587   :  { %2433 = vmatpush1.msra.mxu0 %v2350_v22  ;;  %8192 = vmatpush3.msra.mxu1 %v2255_v50  ;;  %v2392_v50 = vld [vmem:[#allocation3 + $0x190] sm:$0xff] }
 0x588   :  { %2434 = vmatprep.subr.mxu0 %v2347_v9  ;;  %8193 = vmatprep.subr.mxu1 %v8870_v0 }
 0x589   :  { %2435 = vmatpush1.msra.mxu0 %v2346_v23  ;;  %8194 = vmatpush3.msra.mxu1 %v2254_v13  ;;  %v2389_v13 = vld [vmem:[#allocation3 + $0x178] sm:$0xff] }
 0x58a   :  { %2436 = vmatprep.subr.mxu0 %v2343_v29  ;;  %8195 = vmatprep.subr.mxu1 %v8870_v0 }
 0x58b   :  { %2437 = vmatpush1.msra.mxu0 %v2342_v30  ;;  %8196 = vmatpush3.msra.mxu1 %v2253_v24  ;;  %v2388_v24 = vld [vmem:[#allocation3 + $0x170] sm:$0xff] }
 0x58c   :  { %2471 = vmatmul.mubr.f32.vlgmr.msra.gmra.mxu0 %v9117_v2  ;;  %8197 = vmatprep.subr.mxu1 %v8870_v0 }
 0x58d   :  { %2784 = vmatprep.mubr.f32.mxu0 %v9131_v45  ;;  %8198 = vmatpush3.msra.mxu1 %v2252_v14  ;;  %v2385_v14 = vld [vmem:[#allocation3 + $0x158] sm:$0xff] }
 0x58e   :  { %2477 = vmatprep.subr.mxu1 %v2405_v54  ;;  %112 = vperm.xlu1 %8427, %v93_v55   ;;  %v2384_v54 = vld [vmem:[#allocation3 + $0x150] sm:$0xff]  ;;  %v2381_v55 = vld [vmem:[#allocation3 + $0x138] sm:$0xff] }
 0x592   :  { %117 = vperm.xlu1 %8427, %v94_v56   ;;  %v2380_v56 = vld [vmem:[#allocation3 + $0x130] sm:$0xff] }
 0x596   :  { %127 = vperm.xlu1 %8427, %v96_v57   ;;  %v2377_v57 = vld [vmem:[#allocation3 + $0x118] sm:$0xff] }
 0x59a   :  { %137 = vperm.xlu1 %8427, %v98_v58   ;;  %v2376_v58 = vld [vmem:[#allocation3 + $0x110] sm:$0xff] }
 0x62c   :  { %v2151_v60 = vpop.f32.mrf.mxu1  ;;  %v2222_v7 = vpop.f32.mrf.mxu0 }
 0x62d   :  { %v2152_v61 = vadd.f32 %v2151_v60, %v9074_v41  ;;  %v2223_v8 = vadd.f32 %v2222_v7, %v9082_v49  ;;  %v2373_v60 = vld [vmem:[#allocation3 + $0xf8] sm:$0xff] }
 0x62e   :  { %v2153_v63 = vpop.f32.mrf.mxu1  ;;  %v2224_v1 = vpop.f32.mrf.mxu0  ;;  %v2361_v7 = vld [vmem:[#allocation3 + $0x98] sm:$0xff] }
 0x62f   :  { %v7951_v3 = vmul.f32 -1.442695, %v2152_v61  ;;  %v2154_v5 = vadd.f32 %v2153_v63, %v9077_v42  ;;  %v7953_v10 = vmul.f32 -1.442695, %v2223_v8  ;;  %v2225_v31 = vadd.f32 %v2224_v1, %v9086_v53  ;;  %v2372_v61 = vld [vmem:[#allocation3 + $0xf0] sm:$0xff]  ;;  %v2369_v63 = vld [vmem:[#allocation3 + $0xd8] sm:$0xff] }
 0x630   :  { %v2360_v8 = vld [vmem:[#allocation3 + $0x90] sm:$0xff]  ;;  %v2357_v1 = vld [vmem:[#allocation3 + $0x78] sm:$0xff] }
 0x631   :  { %8492 = vpow2.f32 %v7951_v3  ;;  %v7952_v16 = vmul.f32 -1.442695, %v2154_v5  ;;  %v2368_v3 = vld [vmem:[#allocation3 + $0xd0] sm:$0xff]  ;;  %v2365_v5 = vld [vmem:[#allocation3 + $0xb8] sm:$0xff] }
 0x633   :  { %8494 = vpow2.f32 %v7952_v16  ;;  %v2364_v16 = vld [vmem:[#allocation3 + $0xb0] sm:$0xff] }
 0x634   :  { %8496 = vpow2.f32 %v7953_v10  ;;  %v2356_v10 = vld [vmem:[#allocation3 + $0x70] sm:$0xff] }
 0x63e   :  { %v8493_v4 = vpop.eup %8492 }
 0x63f   :  { %v2236_v11 = vadd.f32 1.0, %v8493_v4  ;;  %v2353_v4 = vld [vmem:[#allocation3 + $0x58] sm:$0xff] }
 0x640   :  { %v8495_v12 = vpop.eup %8494 }
 0x641   :  { %8498 = vrcp.f32 %v2236_v11  ;;  %v2237_v17 = vadd.f32 1.0, %v8495_v12  ;;  %v8497_v22 = vpop.eup %8496  ;;  %v2349_v11 = vld [vmem:[#allocation3 + $0x38] sm:$0xff]  ;;  %v2348_v12 = vld [vmem:[#allocation3 + $0x30] sm:$0xff] }
 0x642   :  { %8500 = vtanh.f32 %v2225_v31  ;;  %v2238_v30 = vadd.f32 1.0, %v8497_v22  ;;  %v2352_v31 = vld [vmem:[#allocation3 + $0x50] sm:$0xff] }
 0x643   :  { %8502 = vrcp.f32 %v2237_v17  ;;  %v2345_v17 = vld [vmem:[#allocation3 + $0x18] sm:$0xff]  ;;  %v2344_v22 = vld [vmem:[#allocation3 + $0x10] sm:$0xff] }
 0x644   :  { %8504 = vrcp.f32 %v2238_v30  ;;  %v2654_v30 = vld [vmem:[#allocation6 + $0x1f0] sm:$0xff] }
 0x64e   :  { %v8499_v9 = vpop.eup %8498 }
 0x64f   :  { %v8501_v23 = vpop.eup %8500 }
 0x650   :  { %v8503_v29 = vpop.eup %8502  ;;  %v2247_v33 = vmul.f32 %v8501_v23, %v8499_v9  ;;  %v2653_v9 = vld [vmem:[#allocation6 + $0x1e8] sm:$0xff]  ;;  %v2655_v23 = vld [vmem:[#allocation6 + $0x1f8] sm:$0xff] }
 0x651   :  { %v2246_v32 = vmul.f32 %v8503_v29, %v9089_v6  ;;  %v8505_v35 = vpop.eup %8504  ;;  %v2396_v6 = vld [vmem:[#allocation3 + $0x1b0] sm:$0xff]  ;;  %2720 = vmatprep.subr.mxu0 %v2653_v9  ;;  %v2652_v29 = vld [vmem:[#allocation6 + $0x1e0] sm:$0xff] }
 0x652   :  { %2721 = vmatpush1.msra.mxu0 %v2652_v29  ;;  %v2612_v9 = vld [vmem:[#allocation6 + $0xa0] sm:$0xff]  ;;  %v2609_v29 = vld [vmem:[#allocation6 + $0x88] sm:$0xff] }
 0x653   :  { %v9171_v34 = vadd.f32 %v2247_v33, %v2246_v32  ;;  %v2649_v32 = vld [vmem:[#allocation6 + $0x1c8] sm:$0xff]  ;;  %v2651_v33 = vld [vmem:[#allocation6 + $0x1d8] sm:$0xff] }
 0x654   :  { %2722 = vmatprep.subr.mxu0 %v2649_v32  ;;  %v2608_v32 = vld [vmem:[#allocation6 + $0x80] sm:$0xff] }
 0x655   :  { %8506 = vtanh.f32 %v9171_v34 }
 0x662   :  { %v8507_v36 = vpop.eup %8506 }
 0x663   :  { %v9174_v37 = vmul.f32 %v8507_v36, %v8505_v35  ;;  %v2648_v35 = vld [vmem:[#allocation6 + $0x1c0] sm:$0xff]  ;;  %v2650_v36 = vld [vmem:[#allocation6 + $0x1d0] sm:$0xff] }
 0x664   :  { %2723 = vmatpush1.msra.mxu0 %v2648_v35  ;;  %v2605_v35 = vld [vmem:[#allocation6 + $0x68] sm:$0xff] }
 0x665   :  { %v2251_v38 = vmax.f32 %v9174_v37, 0.0 }
 0x667   :  { %8200 = vmatmul.mubr.f32.vlgmr.msra.gmra.mxu1 %v2251_v38  ;;  %v2645_v38 = vld [vmem:[#allocation6 + $0x1a8] sm:$0xff] }
 0x668   :  { %2478 = vmatpush1.msra.mxu1 %v2404_v43  ;;  %2541 = vmatprep.mubr.f32.mxu1 %v8870_v0  ;;  %v2646_v43 = vld [vmem:[#allocation6 + $0x1b0] sm:$0xff] }
 0x669   :  { %2479 = vmatprep.subr.mxu1 %v2401_v44  ;;  %2724 = vmatprep.subr.mxu0 %v2645_v38  ;;  %v2641_v44 = vld [vmem:[#allocation6 + $0x188] sm:$0xff]  ;;  %v2604_v38 = vld [vmem:[#allocation6 + $0x60] sm:$0xff] }
 0x66a   :  { %2480 = vmatpush1.msra.mxu1 %v2400_v46  ;;  %v2643_v46 = vld [vmem:[#allocation6 + $0x198] sm:$0xff] }
 0x66b   :  { %2481 = vmatprep.subr.mxu1 %v2397_v47  ;;  %v2640_v47 = vld [vmem:[#allocation6 + $0x180] sm:$0xff] }
 0x66c   :  { %2482 = vmatpush1.msra.mxu1 %v2396_v6  ;;  %v2642_v6 = vld [vmem:[#allocation6 + $0x190] sm:$0xff] }
 0x66d   :  { %2483 = vmatprep.subr.mxu1 %v2393_v48  ;;  %v2637_v48 = vld [vmem:[#allocation6 + $0x168] sm:$0xff] }
 0x66e   :  { %2484 = vmatpush1.msra.mxu1 %v2392_v50  ;;  %v2639_v50 = vld [vmem:[#allocation6 + $0x178] sm:$0xff] }
 0x66f   :  { %2485 = vmatprep.subr.mxu1 %v2389_v13  ;;  %v2636_v13 = vld [vmem:[#allocation6 + $0x160] sm:$0xff] }
 0x670   :  { %2486 = vmatpush1.msra.mxu1 %v2388_v24  ;;  %v2638_v24 = vld [vmem:[#allocation6 + $0x170] sm:$0xff] }
 0x671   :  { %2487 = vmatprep.subr.mxu1 %v2385_v14  ;;  %v2633_v14 = vld [vmem:[#allocation6 + $0x148] sm:$0xff] }
 0x672   :  { %2488 = vmatpush1.msra.mxu1 %v2384_v54  ;;  %v2635_v54 = vld [vmem:[#allocation6 + $0x158] sm:$0xff] }
 0x673   :  { %2489 = vmatprep.subr.mxu1 %v2381_v55  ;;  %v2632_v55 = vld [vmem:[#allocation6 + $0x140] sm:$0xff] }
 0x674   :  { %2490 = vmatpush1.msra.mxu1 %v2380_v56  ;;  %v2634_v56 = vld [vmem:[#allocation6 + $0x150] sm:$0xff] }
 0x675   :  { %2491 = vmatprep.subr.mxu1 %v2377_v57  ;;  %v2629_v57 = vld [vmem:[#allocation6 + $0x128] sm:$0xff] }
 0x676   :  { %2492 = vmatpush1.msra.mxu1 %v2376_v58  ;;  %v2631_v58 = vld [vmem:[#allocation6 + $0x138] sm:$0xff] }
 0x677   :  { %2493 = vmatprep.subr.mxu1 %v2373_v60  ;;  %v2628_v60 = vld [vmem:[#allocation6 + $0x120] sm:$0xff] }
 0x678   :  { %2494 = vmatpush1.msra.mxu1 %v2372_v61  ;;  %v2630_v61 = vld [vmem:[#allocation6 + $0x130] sm:$0xff] }
 0x679   :  { %2495 = vmatprep.subr.mxu1 %v2369_v63  ;;  %v2625_v63 = vld [vmem:[#allocation6 + $0x108] sm:$0xff] }
 0x67a   :  { %2496 = vmatpush1.msra.mxu1 %v2368_v3  ;;  %v2627_v3 = vld [vmem:[#allocation6 + $0x118] sm:$0xff] }
 0x67b   :  { %2497 = vmatprep.subr.mxu1 %v2365_v5  ;;  %v2624_v5 = vld [vmem:[#allocation6 + $0x100] sm:$0xff] }
 0x67c   :  { %2498 = vmatpush1.msra.mxu1 %v2364_v16  ;;  %v2626_v16 = vld [vmem:[#allocation6 + $0x110] sm:$0xff] }
 0x67d   :  { %2499 = vmatprep.subr.mxu1 %v2361_v7  ;;  %v2621_v7 = vld [vmem:[#allocation6 + $0xe8] sm:$0xff] }
 0x67e   :  { %2500 = vmatpush1.msra.mxu1 %v2360_v8  ;;  %v2623_v8 = vld [vmem:[#allocation6 + $0xf8] sm:$0xff] }
 0x67f   :  { %2501 = vmatprep.subr.mxu1 %v2357_v1  ;;  %v2620_v1 = vld [vmem:[#allocation6 + $0xe0] sm:$0xff] }
 0x680   :  { %2502 = vmatpush1.msra.mxu1 %v2356_v10  ;;  %v2622_v10 = vld [vmem:[#allocation6 + $0xf0] sm:$0xff] }
 0x681   :  { %2503 = vmatprep.subr.mxu1 %v2353_v4  ;;  %v2617_v4 = vld [vmem:[#allocation6 + $0xc8] sm:$0xff] }
 0x682   :  { %2504 = vmatpush1.msra.mxu1 %v2352_v31  ;;  %v2619_v31 = vld [vmem:[#allocation6 + $0xd8] sm:$0xff] }
 0x683   :  { %2505 = vmatprep.subr.mxu1 %v2349_v11  ;;  %v2616_v11 = vld [vmem:[#allocation6 + $0xc0] sm:$0xff] }
 0x684   :  { %2506 = vmatpush1.msra.mxu1 %v2348_v12  ;;  %v2618_v12 = vld [vmem:[#allocation6 + $0xd0] sm:$0xff] }
 0x685   :  { %2507 = vmatprep.subr.mxu1 %v2345_v17  ;;  %v2613_v17 = vld [vmem:[#allocation6 + $0xa8] sm:$0xff] }
 0x686   :  { %2508 = vmatpush1.msra.mxu1 %v2344_v22  ;;  %v2615_v22 = vld [vmem:[#allocation6 + $0xb8] sm:$0xff] }
 0x687   :  { %2542 = vmatmul.mubr.f32.vlgmr.msra.gmra.mxu1 %v9117_v2  ;;  %2791 = vmatprep.subr.mxu1 %v2655_v23  ;;  %v2647_v2 = vld [vmem:[#allocation6 + $0x1b8] sm:$0xff]  ;;  %v2614_v23 = vld [vmem:[#allocation6 + $0xb0] sm:$0xff] }
 0x688   :  { %2855 = vmatprep.mubr.f32.mxu1 %v9131_v45  ;;  %2792 = vmatpush1.msra.mxu1 %v2654_v30  ;;  %v2644_v45 = vld [vmem:[#allocation6 + $0x1a0] sm:$0xff]  ;;  %v2611_v30 = vld [vmem:[#allocation6 + $0x98] sm:$0xff] }
 0x689   :  { %2793 = vmatprep.subr.mxu1 %v2651_v33  ;;  %2725 = vmatpush1.msra.mxu0 %v2644_v45  ;;  %v2610_v33 = vld [vmem:[#allocation6 + $0x90] sm:$0xff]  ;;  %v2601_v45 = vld [vmem:[#allocation6 + $0x48] sm:$0xff] }
 0x68a   :  { %2794 = vmatpush1.msra.mxu1 %v2650_v36  ;;  %2726 = vmatprep.subr.mxu0 %v2641_v44  ;;  %v2607_v36 = vld [vmem:[#allocation6 + $0x78] sm:$0xff]  ;;  %v2600_v44 = vld [vmem:[#allocation6 + $0x40] sm:$0xff] }
 0x68b   :  { %2795 = vmatprep.subr.mxu1 %v2647_v2  ;;  %2727 = vmatpush1.msra.mxu0 %v2640_v47  ;;  %v2606_v2 = vld [vmem:[#allocation6 + $0x70] sm:$0xff]  ;;  %v2597_v47 = vld [vmem:[#allocation6 + $0x28] sm:$0xff] }
 0x68c   :  { %2796 = vmatpush1.msra.mxu1 %v2646_v43  ;;  %2728 = vmatprep.subr.mxu0 %v2637_v48  ;;  %v2603_v43 = vld [vmem:[#allocation6 + $0x58] sm:$0xff]  ;;  %v2596_v48 = vld [vmem:[#allocation6 + $0x20] sm:$0xff] }
 0x68d   :  { %2797 = vmatprep.subr.mxu1 %v2643_v46  ;;  %2729 = vmatpush1.msra.mxu0 %v2636_v13  ;;  %v2602_v46 = vld [vmem:[#allocation6 + $0x50] sm:$0xff]  ;;  %v2593_v13 = vld [vmem:[#allocation6 + $0x8] sm:$0xff] }
 0x68e   :  { %2798 = vmatpush1.msra.mxu1 %v2642_v6  ;;  %2730 = vmatprep.subr.mxu0 %v2633_v14  ;;  %v2599_v6 = vld [vmem:[#allocation6 + $0x38] sm:$0xff]  ;;  %v2592_v14 = vld [vmem:[#allocation6] sm:$0xff] }
 0x68f   :  { %2799 = vmatprep.subr.mxu1 %v2639_v50  ;;  %2731 = vmatpush1.msra.mxu0 %v2632_v55  ;;  %v2598_v50 = vld [vmem:[#allocation6 + $0x30] sm:$0xff]  ;;  %v2717_v55 = vld [vmem:[#allocation6 + $0x3e8] sm:$0xff] }
 0x690   :  { %2800 = vmatpush1.msra.mxu1 %v2638_v24  ;;  %2732 = vmatprep.subr.mxu0 %v2629_v57  ;;  %v2595_v24 = vld [vmem:[#allocation6 + $0x18] sm:$0xff]  ;;  %v2716_v57 = vld [vmem:[#allocation6 + $0x3e0] sm:$0xff] }
 0x691   :  { %2801 = vmatprep.subr.mxu1 %v2635_v54  ;;  %2733 = vmatpush1.msra.mxu0 %v2628_v60  ;;  %v2594_v54 = vld [vmem:[#allocation6 + $0x10] sm:$0xff]  ;;  %v2713_v60 = vld [vmem:[#allocation6 + $0x3c8] sm:$0xff] }
 0x692   :  { %2802 = vmatpush1.msra.mxu1 %v2634_v56  ;;  %2734 = vmatprep.subr.mxu0 %v2625_v63  ;;  %v2719_v56 = vld [vmem:[#allocation6 + $0x3f8] sm:$0xff]  ;;  %v2712_v63 = vld [vmem:[#allocation6 + $0x3c0] sm:$0xff] }
 0x693   :  { %2803 = vmatprep.subr.mxu1 %v2631_v58  ;;  %2735 = vmatpush1.msra.mxu0 %v2624_v5  ;;  %v2718_v58 = vld [vmem:[#allocation6 + $0x3f0] sm:$0xff]  ;;  %v2709_v5 = vld [vmem:[#allocation6 + $0x3a8] sm:$0xff] }
 0x694   :  { %2804 = vmatpush1.msra.mxu1 %v2630_v61  ;;  %2736 = vmatprep.subr.mxu0 %v2621_v7  ;;  %v2715_v61 = vld [vmem:[#allocation6 + $0x3d8] sm:$0xff]  ;;  %v2708_v7 = vld [vmem:[#allocation6 + $0x3a0] sm:$0xff] }
 0x695   :  { %2805 = vmatprep.subr.mxu1 %v2627_v3  ;;  %2737 = vmatpush1.msra.mxu0 %v2620_v1  ;;  %v2714_v3 = vld [vmem:[#allocation6 + $0x3d0] sm:$0xff]  ;;  %v2705_v1 = vld [vmem:[#allocation6 + $0x388] sm:$0xff] }
 0x696   :  { %2806 = vmatpush1.msra.mxu1 %v2626_v16  ;;  %2738 = vmatprep.subr.mxu0 %v2617_v4  ;;  %v2711_v16 = vld [vmem:[#allocation6 + $0x3b8] sm:$0xff]  ;;  %v2704_v4 = vld [vmem:[#allocation6 + $0x380] sm:$0xff] }
 0x697   :  { %2807 = vmatprep.subr.mxu1 %v2623_v8  ;;  %2739 = vmatpush1.msra.mxu0 %v2616_v11  ;;  %v2710_v8 = vld [vmem:[#allocation6 + $0x3b0] sm:$0xff]  ;;  %v2701_v11 = vld [vmem:[#allocation6 + $0x368] sm:$0xff] }
 0x698   :  { %2808 = vmatpush1.msra.mxu1 %v2622_v10  ;;  %2740 = vmatprep.subr.mxu0 %v2613_v17  ;;  %v2707_v10 = vld [vmem:[#allocation6 + $0x398] sm:$0xff]  ;;  %v2700_v17 = vld [vmem:[#allocation6 + $0x360] sm:$0xff] }
 0x699   :  { %2809 = vmatprep.subr.mxu1 %v2619_v31  ;;  %2741 = vmatpush1.msra.mxu0 %v2612_v9  ;;  %v2706_v31 = vld [vmem:[#allocation6 + $0x390] sm:$0xff]  ;;  %v2697_v9 = vld [vmem:[#allocation6 + $0x348] sm:$0xff] }
 0x69a   :  { %2810 = vmatpush1.msra.mxu1 %v2618_v12  ;;  %2742 = vmatprep.subr.mxu0 %v2609_v29  ;;  %v2703_v12 = vld [vmem:[#allocation6 + $0x378] sm:$0xff]  ;;  %v2696_v29 = vld [vmem:[#allocation6 + $0x340] sm:$0xff] }
 0x69b   :  { %2811 = vmatprep.subr.mxu1 %v2615_v22  ;;  %2743 = vmatpush1.msra.mxu0 %v2608_v32  ;;  %v2702_v22 = vld [vmem:[#allocation6 + $0x370] sm:$0xff]  ;;  %v2693_v32 = vld [vmem:[#allocation6 + $0x328] sm:$0xff] }
 0x69c   :  { %2812 = vmatpush1.msra.mxu1 %v2614_v23  ;;  %2744 = vmatprep.subr.mxu0 %v2605_v35  ;;  %v2699_v23 = vld [vmem:[#allocation6 + $0x358] sm:$0xff]  ;;  %v2692_v35 = vld [vmem:[#allocation6 + $0x320] sm:$0xff] }
 0x69d   :  { %2813 = vmatprep.subr.mxu1 %v2611_v30  ;;  %2745 = vmatpush1.msra.mxu0 %v2604_v38  ;;  %v2698_v30 = vld [vmem:[#allocation6 + $0x350] sm:$0xff]  ;;  %v2689_v38 = vld [vmem:[#allocation6 + $0x308] sm:$0xff] }
 0x69e   :  { %2814 = vmatpush1.msra.mxu1 %v2610_v33  ;;  %2746 = vmatprep.subr.mxu0 %v2601_v45  ;;  %v2695_v33 = vld [vmem:[#allocation6 + $0x338] sm:$0xff]  ;;  %v2688_v45 = vld [vmem:[#allocation6 + $0x300] sm:$0xff] }
 0x69f   :  { %2815 = vmatprep.subr.mxu1 %v2607_v36  ;;  %2747 = vmatpush1.msra.mxu0 %v2600_v44  ;;  %v2694_v36 = vld [vmem:[#allocation6 + $0x330] sm:$0xff]  ;;  %v2685_v44 = vld [vmem:[#allocation6 + $0x2e8] sm:$0xff] }
 0x6a0   :  { %2816 = vmatpush1.msra.mxu1 %v2606_v2  ;;  %2748 = vmatprep.subr.mxu0 %v2597_v47  ;;  %v2691_v2 = vld [vmem:[#allocation6 + $0x318] sm:$0xff]  ;;  %v2684_v47 = vld [vmem:[#allocation6 + $0x2e0] sm:$0xff] }
 0x6a1   :  { %2817 = vmatprep.subr.mxu1 %v2603_v43  ;;  %2749 = vmatpush1.msra.mxu0 %v2596_v48  ;;  %v2690_v43 = vld [vmem:[#allocation6 + $0x310] sm:$0xff]  ;;  %v2681_v48 = vld [vmem:[#allocation6 + $0x2c8] sm:$0xff] }
 0x6a2   :  { %2818 = vmatpush1.msra.mxu1 %v2602_v46  ;;  %2750 = vmatprep.subr.mxu0 %v2593_v13  ;;  %v2687_v46 = vld [vmem:[#allocation6 + $0x2f8] sm:$0xff]  ;;  %v2680_v13 = vld [vmem:[#allocation6 + $0x2c0] sm:$0xff] }
 0x6a3   :  { %2819 = vmatprep.subr.mxu1 %v2599_v6  ;;  %2751 = vmatpush1.msra.mxu0 %v2592_v14  ;;  %v2686_v6 = vld [vmem:[#allocation6 + $0x2f0] sm:$0xff]  ;;  %v2677_v14 = vld [vmem:[#allocation6 + $0x2a8] sm:$0xff] }
 0x6a4   :  { %2820 = vmatpush1.msra.mxu1 %v2598_v50  ;;  %2752 = vmatprep.subr.mxu0 %v2717_v55  ;;  %v2683_v50 = vld [vmem:[#allocation6 + $0x2d8] sm:$0xff]  ;;  %v2676_v55 = vld [vmem:[#allocation6 + $0x2a0] sm:$0xff] }
 0x6a5   :  { %2821 = vmatprep.subr.mxu1 %v2595_v24  ;;  %2753 = vmatpush2.msra.mxu0 %v2716_v57  ;;  %v2682_v24 = vld [vmem:[#allocation6 + $0x2d0] sm:$0xff]  ;;  %v2673_v57 = vld [vmem:[#allocation6 + $0x288] sm:$0xff] }
 0x6a6   :  { %2822 = vmatpush1.msra.mxu1 %v2594_v54  ;;  %2754 = vmatprep.subr.mxu0 %v2713_v60  ;;  %v2679_v54 = vld [vmem:[#allocation6 + $0x2b8] sm:$0xff]  ;;  %v2672_v60 = vld [vmem:[#allocation6 + $0x280] sm:$0xff] }
 0x6a7   :  { %2823 = vmatprep.subr.mxu1 %v2719_v56  ;;  %2755 = vmatpush2.msra.mxu0 %v2712_v63  ;;  %v2678_v56 = vld [vmem:[#allocation6 + $0x2b0] sm:$0xff]  ;;  %v2669_v63 = vld [vmem:[#allocation6 + $0x268] sm:$0xff] }
 0x6a8   :  { %2824 = vmatpush2.msra.mxu1 %v2718_v58  ;;  %2756 = vmatprep.subr.mxu0 %v2709_v5  ;;  %v2675_v58 = vld [vmem:[#allocation6 + $0x298] sm:$0xff]  ;;  %v2668_v5 = vld [vmem:[#allocation6 + $0x260] sm:$0xff] }
 0x6a9   :  { %2825 = vmatprep.subr.mxu1 %v2715_v61  ;;  %2757 = vmatpush2.msra.mxu0 %v2708_v7  ;;  %v2674_v61 = vld [vmem:[#allocation6 + $0x290] sm:$0xff]  ;;  %v2665_v7 = vld [vmem:[#allocation6 + $0x248] sm:$0xff] }
 0x6aa   :  { %2826 = vmatpush2.msra.mxu1 %v2714_v3  ;;  %2758 = vmatprep.subr.mxu0 %v2705_v1  ;;  %v2671_v3 = vld [vmem:[#allocation6 + $0x278] sm:$0xff]  ;;  %v2664_v1 = vld [vmem:[#allocation6 + $0x240] sm:$0xff] }
 0x6ab   :  { %2827 = vmatprep.subr.mxu1 %v2711_v16  ;;  %2759 = vmatpush2.msra.mxu0 %v2704_v4  ;;  %v2670_v16 = vld [vmem:[#allocation6 + $0x270] sm:$0xff]  ;;  %v2661_v4 = vld [vmem:[#allocation6 + $0x228] sm:$0xff] }
 0x6ac   :  { %2828 = vmatpush2.msra.mxu1 %v2710_v8  ;;  %2760 = vmatprep.subr.mxu0 %v2701_v11  ;;  %v2667_v8 = vld [vmem:[#allocation6 + $0x258] sm:$0xff]  ;;  %v2660_v11 = vld [vmem:[#allocation6 + $0x220] sm:$0xff] }
 0x6ad   :  { %2829 = vmatprep.subr.mxu1 %v2707_v10  ;;  %2761 = vmatpush2.msra.mxu0 %v2700_v17  ;;  %v2666_v10 = vld [vmem:[#allocation6 + $0x250] sm:$0xff]  ;;  %v2657_v17 = vld [vmem:[#allocation6 + $0x208] sm:$0xff] }
 0x6ae   :  { %2830 = vmatpush2.msra.mxu1 %v2706_v31  ;;  %2762 = vmatprep.subr.mxu0 %v2697_v9  ;;  %v2663_v31 = vld [vmem:[#allocation6 + $0x238] sm:$0xff]  ;;  %v2656_v9 = vld [vmem:[#allocation6 + $0x200] sm:$0xff] }
 0x6af   :  { %2831 = vmatprep.subr.mxu1 %v2703_v12  ;;  %2763 = vmatpush2.msra.mxu0 %v2696_v29  ;;  %v2662_v12 = vld [vmem:[#allocation6 + $0x230] sm:$0xff]  ;;  %v2950_v29 = vld [vmem:[#allocation8 + $0x1f8] sm:$0xff] }
 0x6b0   :  { %2832 = vmatpush2.msra.mxu1 %v2702_v22  ;;  %2764 = vmatprep.subr.mxu0 %v2693_v32  ;;  %v2659_v22 = vld [vmem:[#allocation6 + $0x218] sm:$0xff] }
 0x6b1   :  { %2833 = vmatprep.subr.mxu1 %v2699_v23  ;;  %2765 = vmatpush2.msra.mxu0 %v2692_v35  ;;  %v2658_v23 = vld [vmem:[#allocation6 + $0x210] sm:$0xff] }
 0x6b2   :  { %2834 = vmatpush2.msra.mxu1 %v2698_v30  ;;  %2766 = vmatprep.subr.mxu0 %v2689_v38  ;;  %v2948_v30 = vld [vmem:[#allocation8 + $0x1e8] sm:$0xff]  ;;  %v113_v38 = vpop.permute.xlu1 %112 }
 0x6b3   :  { %2835 = vmatprep.subr.mxu1 %v2695_v33  ;;  %2767 = vmatpush2.msra.mxu0 %v2688_v45  ;;  %v8748_v33 = vld [vmem:[%s9594_s9] ss:$0 sm:$0xff]  ;;  %v170_v45 = vmul.f32 %v8979_v19, %v113_v38 }
 0x6b4   :  { %2836 = vmatpush2.msra.mxu1 %v2694_v36  ;;  %2768 = vmatprep.subr.mxu0 %v2685_v44  ;;  %v172_v44 = vmul.f32 %v8985_v21, %v113_v38 }
 0x6b5   :  { %2837 = vmatprep.subr.mxu1 %v2691_v2  ;;  %2769 = vmatpush2.msra.mxu0 %v2684_v47  ;;  %v169_v2 = vmul.f32 %v8976_v18, %v113_v38  ;;  %v224_v47 = vadd.f32 %v8994_v26, %v170_v45  ;;  %v2940_v45 = vld [vmem:[#allocation8 + $0x1a8] sm:$0xff] }
 0x6b6   :  { %2838 = vmatpush2.msra.mxu1 %v2690_v43  ;;  %2770 = vmatprep.subr.mxu0 %v2681_v48  ;;  %v171_v43 = vmul.f32 %v8982_v20, %v113_v38  ;;  %v226_v48 = vadd.f32 %v9000_v28, %v172_v44  ;;  %v2943_v38 = vld [vmem:[#allocation8 + $0x1c0] sm:$0xff] }
 0x6b7   :  { %2839 = vmatprep.subr.mxu1 %v2687_v46  ;;  %2771 = vmatpush2.msra.mxu0 %v2680_v13  ;;  %v223_v46 = vadd.f32 %v8991_v25, %v169_v2  ;;  %v2942_v2 = vld [vmem:[#allocation8 + $0x1b8] sm:$0xff]  ;;  %v2939_v44 = vld [vmem:[#allocation8 + $0x1a0] sm:$0xff] }
 0x6b8   :  { %2840 = vmatpush2.msra.mxu1 %v2686_v6  ;;  %2772 = vmatprep.subr.mxu0 %v2677_v14  ;;  %v225_v6 = vadd.f32 %v8997_v27, %v171_v43  ;;  %v2941_v43 = vld [vmem:[#allocation8 + $0x1b0] sm:$0xff] }
 0x6b9   :  { %2841 = vmatprep.subr.mxu1 %v2683_v50  ;;  %2773 = vmatpush2.msra.mxu0 %v2676_v55  ;;  %v2472_v50 = vpop.f32.mrf.mxu0  ;;  %v313_v13 = vcombine.low %v223_v46, %v224_v47  ;;  %v2938_v46 = vld [vmem:[#allocation8 + $0x198] sm:$0xff]  ;;  %v2936_v47 = vld [vmem:[#allocation8 + $0x188] sm:$0xff] }
 0x6ba   :  { %2842 = vmatpush2.msra.mxu1 %v2682_v24  ;;  %2774 = vmatprep.subr.mxu0 %v2673_v57  ;;  %v314_v24 = vcombine.low %v225_v6, %v226_v48  ;;  %v2935_v6 = vld [vmem:[#allocation8 + $0x180] sm:$0xff]  ;;  %v2934_v48 = vld [vmem:[#allocation8 + $0x178] sm:$0xff] }
 0x6bb   :  { %2843 = vmatprep.subr.mxu1 %v2679_v54  ;;  %2775 = vmatpush2.msra.mxu0 %v2672_v60  ;;  %v2474_v14 = vpop.f32.mrf.mxu0 }
 0x6bc   :  { %2844 = vmatpush2.msra.mxu1 %v2678_v56  ;;  %2776 = vmatprep.subr.mxu0 %v2669_v63  ;;  %v2552_v55 = vcombine.low %v2472_v50, %v2474_v14  ;;  %v321_v56 = vrot.slane %v313_v13, %v9010_v39  ;;  %v328_v57 = vrot.slane %v314_v24, %v9010_v39  ;;  %v2932_v50 = vld [vmem:[#allocation8 + $0x168] sm:$0xff]  ;;  %v2933_v13 = vld [vmem:[#allocation8 + $0x170] sm:$0xff]  ;;  %v2931_v24 = vld [vmem:[#allocation8 + $0x160] sm:$0xff] }
 0x6bd   :  { %2845 = vmatprep.subr.mxu1 %v2675_v58  ;;  %2777 = vmatpush2.msra.mxu0 %v2668_v5  ;;  %v2930_v14 = vld [vmem:[#allocation8 + $0x158] sm:$0xff] }
 0x6be   :  { %2846 = vmatpush2.msra.mxu1 %v2674_v61  ;;  %2778 = vmatprep.subr.mxu0 %v2665_v7  ;;  %v2560_v61 = vrot.slane %v2552_v55, %v9010_v39  ;;  %v329_v63 = vcombine.low %v321_v56, %v328_v57  ;;  %v2929_v55 = vld [vmem:[#allocation8 + $0x150] sm:$0xff]  ;;  %v2927_v56 = vld [vmem:[#allocation8 + $0x140] sm:$0xff]  ;;  %v2926_v57 = vld [vmem:[#allocation8 + $0x138] sm:$0xff] }
 0x6bf   :  { %2847 = vmatprep.subr.mxu1 %v2671_v3  ;;  %2779 = vmatpush2.msra.mxu0 %v2664_v1 }
 0x6c0   :  { %2848 = vmatpush2.msra.mxu1 %v2670_v16  ;;  %2780 = vmatprep.subr.mxu0 %v2661_v4 }
 0x6c1   :  { %2849 = vmatprep.subr.mxu1 %v2667_v8  ;;  %2781 = vmatpush2.msra.mxu0 %v2660_v11 }
 0x6c2   :  { %2850 = vmatpush2.msra.mxu1 %v2666_v10  ;;  %2782 = vmatprep.subr.mxu0 %v2657_v17 }
 0x6c3   :  { %2851 = vmatprep.subr.mxu1 %v2663_v31  ;;  %2783 = vmatpush2.msra.mxu0 %v2656_v9 }
 0x6c4   :  { %2852 = vmatpush2.msra.mxu1 %v2662_v12  ;;  %3015 = vmatprep.subr.mxu0 %v2948_v30 }
 0x6c5   :  { %2853 = vmatprep.subr.mxu1 %v2659_v22 }
 0x6c6   :  { %2854 = vmatpush2.msra.mxu1 %v2658_v23 }
 0x6c7   :  { %3086 = vmatprep.subr.mxu1 %v2950_v29 }
 0x727   :  { %v2334_v32 = vpop.f32.mrf.mxu1 }
 0x728   :  { %v2335_v35 = vadd.f32 %v8748_v33, %v2334_v32  ;;  %v2949_v32 = vld [vmem:[#allocation8 + $0x1f0] sm:$0xff]  ;;  %v2947_v33 = vld [vmem:[#allocation8 + $0x1e0] sm:$0xff] }
 0x729   :  { %v8201_v36 = vpop.f32.mrf.mxu1 }
 0x72a   :  { %2339 = vst [vmem:[#allocation11 + $0x2] sm:$0x3] %v2335_v35  ;;  %v2946_v35 = vld [vmem:[#allocation8 + $0x1d8] sm:$0xff]  ;;  %v2944_v36 = vld [vmem:[#allocation8 + $0x1c8] sm:$0xff] }
 0x747   :  { %v2543_v54 = vpop.f32.mrf.mxu1 }
 0x749   :  { %v2545_v58 = vpop.f32.mrf.mxu1 }
 0x74a   :  { %v2553_v60 = vcombine.low %v2543_v54, %v2545_v58  ;;  %v2928_v54 = vld [vmem:[#allocation8 + $0x148] sm:$0xff] }
 0x74b   :  { %v2924_v58 = vld [vmem:[#allocation8 + $0x128] sm:$0xff] }
 0x74c   :  { %v2567_v3 = vrot.slane %v2553_v60, %v9010_v39  ;;  %v2925_v60 = vld [vmem:[#allocation8 + $0x130] sm:$0xff] }
 0x74e   :  { %v2568_v5 = vcombine.low %v2560_v61, %v2567_v3  ;;  %v2923_v61 = vld [vmem:[#allocation8 + $0x120] sm:$0xff]  ;;  %v2920_v3 = vld [vmem:[#allocation8 + $0x108] sm:$0xff] }
 0x750   :  { %v2570_v16 = vadd.f32 %v2568_v5, %v329_v63  ;;  %v2922_v63 = vld [vmem:[#allocation8 + $0x118] sm:$0xff]  ;;  %v2921_v5 = vld [vmem:[#allocation8 + $0x110] sm:$0xff] }
 0x752   :  { %v7954_v7 = vmul.f32 -1.442695, %v2570_v16  ;;  %v2578_v10 = vrot.slane %v2570_v16, 6  ;;  %v2919_v16 = vld [vmem:[#allocation8 + $0x100] sm:$0xff] }
 0x754   :  { %8508 = vpow2.f32 %v7954_v7  ;;  %v2918_v7 = vld [vmem:[#allocation8 + $0xf8] sm:$0xff] }
 0x761   :  { %v8509_v8 = vpop.eup %8508 }
 0x762   :  { %v2574_v1 = vadd.f32 1.0, %v8509_v8  ;;  %v2916_v8 = vld [vmem:[#allocation8 + $0xe8] sm:$0xff] }
 0x764   :  { %8510 = vrcp.f32 %v2574_v1  ;;  %v2917_v1 = vld [vmem:[#allocation8 + $0xf0] sm:$0xff] }
 0x765   :  { %8512 = vtanh.f32 %v2578_v10  ;;  %v2915_v10 = vld [vmem:[#allocation8 + $0xe0] sm:$0xff] }
 0x771   :  { %v8511_v4 = vpop.eup %8510 }
 0x772   :  { %v2582_v31 = vrot.slane %v8511_v4, 2  ;;  %v8513_v11 = vpop.eup %8512  ;;  %v2588_v9 = vrot.slane %v8511_v4, 4 }
 0x773   :  { %v2585_v17 = vmul.f32 %v8513_v11, %v8511_v4  ;;  %v2914_v4 = vld [vmem:[#allocation8 + $0xd8] sm:$0xff]  ;;  %v2913_v11 = vld [vmem:[#allocation8 + $0xd0] sm:$0xff] }
 0x774   :  { %v2584_v12 = vmul.f32 %v2582_v31, %v9114_v15  ;;  %v2945_v15 = vld [vmem:[#allocation8 + $0x1d0] sm:$0xff]  ;;  %v2912_v31 = vld [vmem:[#allocation8 + $0xc8] sm:$0xff] }
 0x776   :  { %v9196_v22 = vadd.f32 %v2585_v17, %v2584_v12  ;;  %v2911_v12 = vld [vmem:[#allocation8 + $0xc0] sm:$0xff]  ;;  %v2910_v17 = vld [vmem:[#allocation8 + $0xb8] sm:$0xff] }
 0x778   :  { %8514 = vtanh.f32 %v9196_v22 }
 0x785   :  { %v8515_v23 = vpop.eup %8514 }
 0x786   :  { %v9199_v29 = vmul.f32 %v8515_v23, %v2588_v9  ;;  %v2908_v9 = vld [vmem:[#allocation8 + $0xa8] sm:$0xff]  ;;  %v2909_v23 = vld [vmem:[#allocation8 + $0xb0] sm:$0xff] }
 0x788   :  { %v2591_v30 = vmax.f32 %v9199_v29, 0.0 }
 0x78a   :  { %2785 = vmatmul.mubr.f32.vlgmr.msra.gmra.mxu0 %v2591_v30  ;;  %2856 = vmatmul.mubr.f32.vlgmr.msra.gmra.mxu1 %v2591_v30  ;;  %v2907_v30 = vld [vmem:[#allocation8 + $0xa0] sm:$0xff] }
 0x78b   :  { %3079 = vmatprep.mubr.f32.mxu0 %v9174_v37  ;;  %3150 = vmatprep.mubr.f32.mxu1 %v9174_v37  ;;  %v2937_v37 = vld [vmem:[#allocation8 + $0x190] sm:$0xff] }
 0x78c   :  { %3087 = vmatpush1.msra.mxu1 %v2949_v32  ;;  %3016 = vmatpush1.msra.mxu0 %v2947_v33  ;;  %v2906_v32 = vld [vmem:[#allocation8 + $0x98] sm:$0xff]  ;;  %v2904_v33 = vld [vmem:[#allocation8 + $0x88] sm:$0xff] }
 0x78d   :  { %3088 = vmatprep.subr.mxu1 %v2946_v35  ;;  %3017 = vmatprep.subr.mxu0 %v2944_v36  ;;  %v2905_v35 = vld [vmem:[#allocation8 + $0x90] sm:$0xff]  ;;  %v2903_v36 = vld [vmem:[#allocation8 + $0x80] sm:$0xff] }
 0x78e   :  { %3089 = vmatpush1.msra.mxu1 %v2945_v15  ;;  %3018 = vmatpush1.msra.mxu0 %v2943_v38  ;;  %v2902_v15 = vld [vmem:[#allocation8 + $0x78] sm:$0xff]  ;;  %v2900_v38 = vld [vmem:[#allocation8 + $0x68] sm:$0xff] }
 0x78f   :  { %3090 = vmatprep.subr.mxu1 %v2942_v2  ;;  %3019 = vmatprep.subr.mxu0 %v2940_v45  ;;  %v2901_v2 = vld [vmem:[#allocation8 + $0x70] sm:$0xff]  ;;  %v2899_v45 = vld [vmem:[#allocation8 + $0x60] sm:$0xff] }
 0x790   :  { %3091 = vmatpush1.msra.mxu1 %v2941_v43  ;;  %3020 = vmatpush1.msra.mxu0 %v2939_v44  ;;  %v2898_v43 = vld [vmem:[#allocation8 + $0x58] sm:$0xff]  ;;  %v2896_v44 = vld [vmem:[#allocation8 + $0x48] sm:$0xff] }
 0x791   :  { %3092 = vmatprep.subr.mxu1 %v2938_v46  ;;  %3021 = vmatprep.subr.mxu0 %v2936_v47  ;;  %v2897_v46 = vld [vmem:[#allocation8 + $0x50] sm:$0xff]  ;;  %v2895_v47 = vld [vmem:[#allocation8 + $0x40] sm:$0xff] }
 0x792   :  { %3093 = vmatpush1.msra.mxu1 %v2937_v37  ;;  %3022 = vmatpush1.msra.mxu0 %v2935_v6  ;;  %v2894_v37 = vld [vmem:[#allocation8 + $0x38] sm:$0xff]  ;;  %v2892_v6 = vld [vmem:[#allocation8 + $0x28] sm:$0xff] }
 0x793   :  { %3094 = vmatprep.subr.mxu1 %v2934_v48  ;;  %3023 = vmatprep.subr.mxu0 %v2932_v50  ;;  %v2893_v48 = vld [vmem:[#allocation8 + $0x30] sm:$0xff]  ;;  %v2891_v50 = vld [vmem:[#allocation8 + $0x20] sm:$0xff] }
 0x794   :  { %3095 = vmatpush1.msra.mxu1 %v2933_v13  ;;  %3024 = vmatpush1.msra.mxu0 %v2931_v24  ;;  %v2890_v13 = vld [vmem:[#allocation8 + $0x18] sm:$0xff]  ;;  %v2888_v24 = vld [vmem:[#allocation8 + $0x8] sm:$0xff] }
 0x795   :  { %3096 = vmatprep.subr.mxu1 %v2930_v14  ;;  %3025 = vmatprep.subr.mxu0 %v2928_v54  ;;  %v2889_v14 = vld [vmem:[#allocation8 + $0x10] sm:$0xff]  ;;  %v2887_v54 = vld [vmem:[#allocation8] sm:$0xff] }
 0x796   :  { %3097 = vmatpush1.msra.mxu1 %v2929_v55  ;;  %3026 = vmatpush1.msra.mxu0 %v2927_v56  ;;  %v3014_v55 = vld [vmem:[#allocation8 + $0x3f8] sm:$0xff]  ;;  %v3012_v56 = vld [vmem:[#allocation8 + $0x3e8] sm:$0xff] }
 0x797   :  { %3098 = vmatprep.subr.mxu1 %v2926_v57  ;;  %3027 = vmatprep.subr.mxu0 %v2924_v58  ;;  %v3013_v57 = vld [vmem:[#allocation8 + $0x3f0] sm:$0xff]  ;;  %v3011_v58 = vld [vmem:[#allocation8 + $0x3e0] sm:$0xff] }
 0x798   :  { %3099 = vmatpush1.msra.mxu1 %v2925_v60  ;;  %3028 = vmatpush1.msra.mxu0 %v2923_v61  ;;  %v3010_v60 = vld [vmem:[#allocation8 + $0x3d8] sm:$0xff]  ;;  %v3008_v61 = vld [vmem:[#allocation8 + $0x3c8] sm:$0xff] }
 0x799   :  { %3100 = vmatprep.subr.mxu1 %v2922_v63  ;;  %3029 = vmatprep.subr.mxu0 %v2920_v3  ;;  %v3009_v63 = vld [vmem:[#allocation8 + $0x3d0] sm:$0xff]  ;;  %v3007_v3 = vld [vmem:[#allocation8 + $0x3c0] sm:$0xff] }
 0x79a   :  { %3101 = vmatpush1.msra.mxu1 %v2921_v5  ;;  %3030 = vmatpush1.msra.mxu0 %v2919_v16  ;;  %v3006_v5 = vld [vmem:[#allocation8 + $0x3b8] sm:$0xff]  ;;  %v3004_v16 = vld [vmem:[#allocation8 + $0x3a8] sm:$0xff] }
 0x79b   :  { %3102 = vmatprep.subr.mxu1 %v2918_v7  ;;  %3031 = vmatprep.subr.mxu0 %v2916_v8  ;;  %v3005_v7 = vld [vmem:[#allocation8 + $0x3b0] sm:$0xff]  ;;  %v3003_v8 = vld [vmem:[#allocation8 + $0x3a0] sm:$0xff] }
 0x79c   :  { %3103 = vmatpush1.msra.mxu1 %v2917_v1  ;;  %3032 = vmatpush1.msra.mxu0 %v2915_v10  ;;  %v3002_v1 = vld [vmem:[#allocation8 + $0x398] sm:$0xff]  ;;  %v3000_v10 = vld [vmem:[#allocation8 + $0x388] sm:$0xff] }
 0x79d   :  { %3104 = vmatprep.subr.mxu1 %v2914_v4  ;;  %3033 = vmatprep.subr.mxu0 %v2912_v31  ;;  %v3001_v4 = vld [vmem:[#allocation8 + $0x390] sm:$0xff]  ;;  %v2999_v31 = vld [vmem:[#allocation8 + $0x380] sm:$0xff] }
 0x79e   :  { %3105 = vmatpush1.msra.mxu1 %v2913_v11  ;;  %3034 = vmatpush1.msra.mxu0 %v2911_v12  ;;  %v2998_v11 = vld [vmem:[#allocation8 + $0x378] sm:$0xff]  ;;  %v2996_v12 = vld [vmem:[#allocation8 + $0x368] sm:$0xff] }
 0x79f   :  { %3106 = vmatprep.subr.mxu1 %v2910_v17  ;;  %3035 = vmatprep.subr.mxu0 %v2908_v9  ;;  %v2997_v17 = vld [vmem:[#allocation8 + $0x370] sm:$0xff]  ;;  %v2995_v9 = vld [vmem:[#allocation8 + $0x360] sm:$0xff] }
 0x7a0   :  { %3107 = vmatpush1.msra.mxu1 %v2909_v23  ;;  %3036 = vmatpush1.msra.mxu0 %v2907_v30  ;;  %v2994_v23 = vld [vmem:[#allocation8 + $0x358] sm:$0xff]  ;;  %v2992_v30 = vld [vmem:[#allocation8 + $0x348] sm:$0xff] }
 0x7a1   :  { %3108 = vmatprep.subr.mxu1 %v2906_v32  ;;  %3037 = vmatprep.subr.mxu0 %v2904_v33  ;;  %v2993_v32 = vld [vmem:[#allocation8 + $0x350] sm:$0xff]  ;;  %v2991_v33 = vld [vmem:[#allocation8 + $0x340] sm:$0xff] }
 0x7a2   :  { %3109 = vmatpush1.msra.mxu1 %v2905_v35  ;;  %3038 = vmatpush1.msra.mxu0 %v2903_v36  ;;  %v2990_v35 = vld [vmem:[#allocation8 + $0x338] sm:$0xff]  ;;  %v2988_v36 = vld [vmem:[#allocation8 + $0x328] sm:$0xff] }
 0x7a3   :  { %3110 = vmatprep.subr.mxu1 %v2902_v15  ;;  %3039 = vmatprep.subr.mxu0 %v2900_v38  ;;  %v2989_v15 = vld [vmem:[#allocation8 + $0x330] sm:$0xff]  ;;  %v2987_v38 = vld [vmem:[#allocation8 + $0x320] sm:$0xff] }
 0x7a4   :  { %3111 = vmatpush1.msra.mxu1 %v2901_v2  ;;  %3040 = vmatpush1.msra.mxu0 %v2899_v45  ;;  %v2986_v2 = vld [vmem:[#allocation8 + $0x318] sm:$0xff]  ;;  %v2984_v45 = vld [vmem:[#allocation8 + $0x308] sm:$0xff] }
 0x7a5   :  { %3112 = vmatprep.subr.mxu1 %v2898_v43  ;;  %3041 = vmatprep.subr.mxu0 %v2896_v44  ;;  %v2985_v43 = vld [vmem:[#allocation8 + $0x310] sm:$0xff]  ;;  %v2983_v44 = vld [vmem:[#allocation8 + $0x300] sm:$0xff] }
 0x7a6   :  { %3113 = vmatpush1.msra.mxu1 %v2897_v46  ;;  %3042 = vmatpush1.msra.mxu0 %v2895_v47  ;;  %v2982_v46 = vld [vmem:[#allocation8 + $0x2f8] sm:$0xff]  ;;  %v2980_v47 = vld [vmem:[#allocation8 + $0x2e8] sm:$0xff] }
 0x7a7   :  { %3114 = vmatprep.subr.mxu1 %v2894_v37  ;;  %3043 = vmatprep.subr.mxu0 %v2892_v6  ;;  %v2981_v37 = vld [vmem:[#allocation8 + $0x2f0] sm:$0xff]  ;;  %v2979_v6 = vld [vmem:[#allocation8 + $0x2e0] sm:$0xff] }
 0x7a8   :  { %3115 = vmatpush1.msra.mxu1 %v2893_v48  ;;  %3044 = vmatpush1.msra.mxu0 %v2891_v50  ;;  %v2978_v48 = vld [vmem:[#allocation8 + $0x2d8] sm:$0xff]  ;;  %v2976_v50 = vld [vmem:[#allocation8 + $0x2c8] sm:$0xff] }
 0x7a9   :  { %3116 = vmatprep.subr.mxu1 %v2890_v13  ;;  %3045 = vmatprep.subr.mxu0 %v2888_v24  ;;  %v2977_v13 = vld [vmem:[#allocation8 + $0x2d0] sm:$0xff]  ;;  %v2975_v24 = vld [vmem:[#allocation8 + $0x2c0] sm:$0xff] }
 0x7aa   :  { %3117 = vmatpush1.msra.mxu1 %v2889_v14  ;;  %3046 = vmatpush1.msra.mxu0 %v2887_v54  ;;  %v2974_v14 = vld [vmem:[#allocation8 + $0x2b8] sm:$0xff]  ;;  %v2972_v54 = vld [vmem:[#allocation8 + $0x2a8] sm:$0xff] }
 0x7ab   :  { %3118 = vmatprep.subr.mxu1 %v3014_v55  ;;  %3047 = vmatprep.subr.mxu0 %v3012_v56  ;;  %v2973_v55 = vld [vmem:[#allocation8 + $0x2b0] sm:$0xff]  ;;  %v2971_v56 = vld [vmem:[#allocation8 + $0x2a0] sm:$0xff] }
 0x7ac   :  { %3119 = vmatpush2.msra.mxu1 %v3013_v57  ;;  %3048 = vmatpush2.msra.mxu0 %v3011_v58  ;;  %v2970_v57 = vld [vmem:[#allocation8 + $0x298] sm:$0xff]  ;;  %v2968_v58 = vld [vmem:[#allocation8 + $0x288] sm:$0xff] }
 0x7ad   :  { %3120 = vmatprep.subr.mxu1 %v3010_v60  ;;  %3049 = vmatprep.subr.mxu0 %v3008_v61  ;;  %v2969_v60 = vld [vmem:[#allocation8 + $0x290] sm:$0xff]  ;;  %v2967_v61 = vld [vmem:[#allocation8 + $0x280] sm:$0xff] }
 0x7ae   :  { %3121 = vmatpush2.msra.mxu1 %v3009_v63  ;;  %3050 = vmatpush2.msra.mxu0 %v3007_v3  ;;  %v2966_v63 = vld [vmem:[#allocation8 + $0x278] sm:$0xff]  ;;  %v2964_v3 = vld [vmem:[#allocation8 + $0x268] sm:$0xff] }
 0x7af   :  { %3122 = vmatprep.subr.mxu1 %v3006_v5  ;;  %3051 = vmatprep.subr.mxu0 %v3004_v16  ;;  %v2965_v5 = vld [vmem:[#allocation8 + $0x270] sm:$0xff]  ;;  %v2963_v16 = vld [vmem:[#allocation8 + $0x260] sm:$0xff] }
 0x7b0   :  { %3123 = vmatpush2.msra.mxu1 %v3005_v7  ;;  %3052 = vmatpush2.msra.mxu0 %v3003_v8  ;;  %v2962_v7 = vld [vmem:[#allocation8 + $0x258] sm:$0xff]  ;;  %v2960_v8 = vld [vmem:[#allocation8 + $0x248] sm:$0xff] }
 0x7b1   :  { %3124 = vmatprep.subr.mxu1 %v3002_v1  ;;  %3053 = vmatprep.subr.mxu0 %v3000_v10  ;;  %v2961_v1 = vld [vmem:[#allocation8 + $0x250] sm:$0xff]  ;;  %v2959_v10 = vld [vmem:[#allocation8 + $0x240] sm:$0xff] }
 0x7b2   :  { %3125 = vmatpush2.msra.mxu1 %v3001_v4  ;;  %3054 = vmatpush2.msra.mxu0 %v2999_v31  ;;  %v2958_v4 = vld [vmem:[#allocation8 + $0x238] sm:$0xff]  ;;  %v2956_v31 = vld [vmem:[#allocation8 + $0x228] sm:$0xff] }
 0x7b3   :  { %3126 = vmatprep.subr.mxu1 %v2998_v11  ;;  %3055 = vmatprep.subr.mxu0 %v2996_v12  ;;  %v2957_v11 = vld [vmem:[#allocation8 + $0x230] sm:$0xff]  ;;  %v2955_v12 = vld [vmem:[#allocation8 + $0x220] sm:$0xff] }
 0x7b4   :  { %3127 = vmatpush2.msra.mxu1 %v2997_v17  ;;  %3056 = vmatpush2.msra.mxu0 %v2995_v9  ;;  %v2954_v17 = vld [vmem:[#allocation8 + $0x218] sm:$0xff]  ;;  %v2952_v9 = vld [vmem:[#allocation8 + $0x208] sm:$0xff] }
 0x7b5   :  { %3128 = vmatprep.subr.mxu1 %v2994_v23  ;;  %3057 = vmatprep.subr.mxu0 %v2992_v30  ;;  %v2953_v23 = vld [vmem:[#allocation8 + $0x210] sm:$0xff]  ;;  %v2951_v30 = vld [vmem:[#allocation8 + $0x200] sm:$0xff] }
 0x7b6   :  { %3129 = vmatpush2.msra.mxu1 %v2993_v32  ;;  %3058 = vmatpush2.msra.mxu0 %v2991_v33  ;;  %v3333_v32 = vld [vmem:[#allocation3 + $0x1e8] sm:$0xff] }
 0x7b7   :  { %3130 = vmatprep.subr.mxu1 %v2990_v35  ;;  %3059 = vmatprep.subr.mxu0 %v2988_v36 }
 0x7b8   :  { %3131 = vmatpush2.msra.mxu1 %v2989_v15  ;;  %3060 = vmatpush2.msra.mxu0 %v2987_v38 }
 0x7b9   :  { %3132 = vmatprep.subr.mxu1 %v2986_v2  ;;  %3061 = vmatprep.subr.mxu0 %v2984_v45 }
 0x7ba   :  { %3133 = vmatpush2.msra.mxu1 %v2985_v43  ;;  %3062 = vmatpush2.msra.mxu0 %v2983_v44 }
 0x7bb   :  { %3134 = vmatprep.subr.mxu1 %v2982_v46  ;;  %3063 = vmatprep.subr.mxu0 %v2980_v47 }
 0x7bc   :  { %3135 = vmatpush2.msra.mxu1 %v2981_v37  ;;  %3064 = vmatpush2.msra.mxu0 %v2979_v6 }
 0x7bd   :  { %3136 = vmatprep.subr.mxu1 %v2978_v48  ;;  %3065 = vmatprep.subr.mxu0 %v2976_v50 }
 0x7be   :  { %3137 = vmatpush2.msra.mxu1 %v2977_v13  ;;  %3066 = vmatpush2.msra.mxu0 %v2975_v24 }
 0x7bf   :  { %3138 = vmatprep.subr.mxu1 %v2974_v14  ;;  %3067 = vmatprep.subr.mxu0 %v2972_v54 }
 0x7c0   :  { %3139 = vmatpush2.msra.mxu1 %v2973_v55  ;;  %3068 = vmatpush2.msra.mxu0 %v2971_v56 }
 0x7c1   :  { %3140 = vmatprep.subr.mxu1 %v2970_v57  ;;  %3069 = vmatprep.subr.mxu0 %v2968_v58 }
 0x7c2   :  { %3141 = vmatpush2.msra.mxu1 %v2969_v60  ;;  %3070 = vmatpush2.msra.mxu0 %v2967_v61 }
 0x7c3   :  { %3142 = vmatprep.subr.mxu1 %v2966_v63  ;;  %3071 = vmatprep.subr.mxu0 %v2964_v3 }
 0x7c4   :  { %3143 = vmatpush2.msra.mxu1 %v2965_v5  ;;  %3072 = vmatpush2.msra.mxu0 %v2963_v16  ;;  %v3332_v5 = vld [vmem:[#allocation3 + $0x1e0] sm:$0xff]  ;;  %v3329_v16 = vld [vmem:[#allocation3 + $0x1c8] sm:$0xff] }
 0x7c5   :  { %3144 = vmatprep.subr.mxu1 %v2962_v7  ;;  %3073 = vmatprep.subr.mxu0 %v2960_v8  ;;  %v3328_v7 = vld [vmem:[#allocation3 + $0x1c0] sm:$0xff]  ;;  %v3325_v8 = vld [vmem:[#allocation3 + $0x1a8] sm:$0xff] }
 0x7c6   :  { %3145 = vmatpush2.msra.mxu1 %v2961_v1  ;;  %3074 = vmatpush2.msra.mxu0 %v2959_v10  ;;  %v3321_v1 = vld [vmem:[#allocation3 + $0x188] sm:$0xff]  ;;  %v3320_v10 = vld [vmem:[#allocation3 + $0x180] sm:$0xff] }
 0x7c7   :  { %3146 = vmatprep.subr.mxu1 %v2958_v4  ;;  %3075 = vmatprep.subr.mxu0 %v2956_v31  ;;  %v3317_v4 = vld [vmem:[#allocation3 + $0x168] sm:$0xff]  ;;  %v3316_v31 = vld [vmem:[#allocation3 + $0x160] sm:$0xff] }
 0x7c8   :  { %3147 = vmatpush2.msra.mxu1 %v2957_v11  ;;  %3076 = vmatpush2.msra.mxu0 %v2955_v12  ;;  %v3313_v11 = vld [vmem:[#allocation3 + $0x148] sm:$0xff]  ;;  %v3312_v12 = vld [vmem:[#allocation3 + $0x140] sm:$0xff] }
 0x7c9   :  { %3148 = vmatprep.subr.mxu1 %v2954_v17  ;;  %3077 = vmatprep.subr.mxu0 %v2952_v9  ;;  %v3309_v17 = vld [vmem:[#allocation3 + $0x128] sm:$0xff]  ;;  %v3308_v9 = vld [vmem:[#allocation3 + $0x120] sm:$0xff] }
 0x7ca   :  { %3149 = vmatpush2.msra.mxu1 %v2953_v23  ;;  %3078 = vmatpush2.msra.mxu0 %v2951_v30  ;;  %v3305_v23 = vld [vmem:[#allocation3 + $0x108] sm:$0xff]  ;;  %v3304_v30 = vld [vmem:[#allocation3 + $0x100] sm:$0xff] }
 0x7cb   :  { %3336 = vmatprep.subr.mxu1 %v3333_v32  ;;  %8202 = vmatprep.subr.mxu0 %v8870_v0  ;;  %v3301_v32 = vld [vmem:[#allocation3 + $0xe8] sm:$0xff] }
 0x84a   :  { %v2786_v33 = vpop.f32.mrf.mxu0  ;;  %v2857_v45 = vpop.f32.mrf.mxu1 }
 0x84b   :  { %v2787_v35 = vadd.f32 %v2786_v33, %v9029_v51  ;;  %v2858_v43 = vadd.f32 %v2857_v45, %v9037_v59  ;;  %v3300_v33 = vld [vmem:[#allocation3 + $0xe0] sm:$0xff] }
 0x84c   :  { %v2788_v36 = vpop.f32.mrf.mxu0  ;;  %v2859_v44 = vpop.f32.mrf.mxu1  ;;  %v3288_v45 = vld [vmem:[#allocation3 + $0x80] sm:$0xff] }
 0x84d   :  { %v7955_v15 = vmul.f32 -1.442695, %v2787_v35  ;;  %v2789_v38 = vadd.f32 %v2788_v36, %v9032_v52  ;;  %v7957_v46 = vmul.f32 -1.442695, %v2858_v43  ;;  %v2860_v37 = vadd.f32 %v2859_v44, %v9041_v62  ;;  %v3297_v35 = vld [vmem:[#allocation3 + $0xc8] sm:$0xff]  ;;  %v3296_v36 = vld [vmem:[#allocation3 + $0xc0] sm:$0xff] }
 0x84e   :  { %v3285_v43 = vld [vmem:[#allocation3 + $0x68] sm:$0xff]  ;;  %v3284_v44 = vld [vmem:[#allocation3 + $0x60] sm:$0xff] }
 0x84f   :  { %8516 = vpow2.f32 %v7955_v15  ;;  %v7956_v2 = vmul.f32 -1.442695, %v2789_v38  ;;  %v3293_v15 = vld [vmem:[#allocation3 + $0xa8] sm:$0xff]  ;;  %v3292_v38 = vld [vmem:[#allocation3 + $0xa0] sm:$0xff] }
 0x851   :  { %8518 = vpow2.f32 %v7956_v2  ;;  %v3289_v2 = vld [vmem:[#allocation3 + $0x88] sm:$0xff] }
 0x852   :  { %8520 = vpow2.f32 %v7957_v46  ;;  %v3281_v46 = vld [vmem:[#allocation3 + $0x48] sm:$0xff] }
 0x85c   :  { %v8517_v47 = vpop.eup %8516 }
 0x85d   :  { %v2871_v6 = vadd.f32 1.0, %v8517_v47  ;;  %v3280_v47 = vld [vmem:[#allocation3 + $0x40] sm:$0xff] }
 0x85e   :  { %v8519_v48 = vpop.eup %8518 }
 0x85f   :  { %8522 = vrcp.f32 %v2871_v6  ;;  %v2872_v50 = vadd.f32 1.0, %v8519_v48  ;;  %v8521_v13 = vpop.eup %8520  ;;  %v3276_v6 = vld [vmem:[#allocation3 + $0x20] sm:$0xff]  ;;  %v3273_v48 = vld [vmem:[#allocation3 + $0x8] sm:$0xff] }
 0x860   :  { %8524 = vtanh.f32 %v2860_v37  ;;  %v2873_v55 = vadd.f32 1.0, %v8521_v13  ;;  %v3277_v37 = vld [vmem:[#allocation3 + $0x28] sm:$0xff]  ;;  %v3197_v13 = vld [vmem:[#allocation9 + $0x78] sm:$0xff] }
 0x861   :  { %8526 = vrcp.f32 %v2872_v50  ;;  %v3272_v50 = vld [vmem:[#allocation3] sm:$0xff] }
 0x862   :  { %8528 = vrcp.f32 %v2873_v55  ;;  %v3193_v55 = vld [vmem:[#allocation9 + $0x58] sm:$0xff] }
 0x86c   :  { %v8523_v24 = vpop.eup %8522 }
 0x86d   :  { %v8525_v14 = vpop.eup %8524 }
 0x86e   :  { %v8527_v54 = vpop.eup %8526  ;;  %v2882_v57 = vmul.f32 %v8525_v14, %v8523_v24  ;;  %v3196_v24 = vld [vmem:[#allocation9 + $0x70] sm:$0xff]  ;;  %v3195_v14 = vld [vmem:[#allocation9 + $0x68] sm:$0xff] }
 0x86f   :  { %v2881_v56 = vmul.f32 %v8527_v54, %v9128_v40  ;;  %v8529_v60 = vpop.eup %8528  ;;  %v3324_v40 = vld [vmem:[#allocation3 + $0x1a0] sm:$0xff] }
 0x870   :  { %v3194_v54 = vld [vmem:[#allocation9 + $0x60] sm:$0xff] }
 0x871   :  { %v9210_v58 = vadd.f32 %v2882_v57, %v2881_v56  ;;  %v3192_v56 = vld [vmem:[#allocation9 + $0x50] sm:$0xff]  ;;  %v3191_v57 = vld [vmem:[#allocation9 + $0x48] sm:$0xff] }
 0x873   :  { %8530 = vtanh.f32 %v9210_v58 }
 0x880   :  { %v8531_v61 = vpop.eup %8530 }
 0x881   :  { %v9213_v63 = vmul.f32 %v8531_v61, %v8529_v60  ;;  %v3190_v60 = vld [vmem:[#allocation9 + $0x40] sm:$0xff]  ;;  %v3189_v61 = vld [vmem:[#allocation9 + $0x38] sm:$0xff] }
 0x883   :  { %v2886_v3 = vmax.f32 %v9213_v63, 0.0 }
 0x885   :  { %3080 = vmatmul.mubr.f32.vlgmr.msra.gmra.mxu0 %v2886_v3  ;;  %3151 = vmatmul.mubr.f32.vlgmr.msra.gmra.mxu1 %v2886_v3  ;;  %v3188_v3 = vld [vmem:[#allocation9 + $0x30] sm:$0xff] }
 0x886   :  { %3337 = vmatpush1.msra.mxu1 %v3332_v5  ;;  %3400 = vmatprep.mubr.f32.mxu1 %v8870_v0  ;;  %v3187_v5 = vld [vmem:[#allocation9 + $0x28] sm:$0xff] }
 0x887   :  { %3338 = vmatprep.subr.mxu1 %v3329_v16  ;;  %8234 = vmatprep.mubr.msk.f32.mxu0 %vm8873_vm0, %v8870_v0  ;;  %v3186_v16 = vld [vmem:[#allocation9 + $0x20] sm:$0xff] }
 0x888   :  { %3339 = vmatpush1.msra.mxu1 %v3328_v7  ;;  %8203 = vmatpush3.msra.mxu0 %v3197_v13  ;;  %v3185_v7 = vld [vmem:[#allocation9 + $0x18] sm:$0xff] }
 0x889   :  { %3340 = vmatprep.subr.mxu1 %v3325_v8  ;;  %8204 = vmatprep.subr.mxu0 %v8870_v0  ;;  %v3184_v8 = vld [vmem:[#allocation9 + $0x10] sm:$0xff] }
 0x88a   :  { %3341 = vmatpush1.msra.mxu1 %v3324_v40  ;;  %8205 = vmatpush3.msra.mxu0 %v3196_v24  ;;  %v3183_v40 = vld [vmem:[#allocation9 + $0x8] sm:$0xff] }
 0x88b   :  { %3342 = vmatprep.subr.mxu1 %v3321_v1  ;;  %8206 = vmatprep.subr.mxu0 %v8870_v0  ;;  %v3182_v1 = vld [vmem:[#allocation9] sm:$0xff] }
 0x88c   :  { %3343 = vmatpush1.msra.mxu1 %v3320_v10  ;;  %8207 = vmatpush3.msra.mxu0 %v3195_v14  ;;  %v3335_v10 = vld [vmem:[#allocation3 + $0x1f8] sm:$0xff] }
 0x88d   :  { %3344 = vmatprep.subr.mxu1 %v3317_v4  ;;  %8208 = vmatprep.subr.mxu0 %v8870_v0 }
 0x88e   :  { %3345 = vmatpush1.msra.mxu1 %v3316_v31  ;;  %8209 = vmatpush3.msra.mxu0 %v3194_v54  ;;  %v3334_v54 = vld [vmem:[#allocation3 + $0x1f0] sm:$0xff] }
 0x88f   :  { %3346 = vmatprep.subr.mxu1 %v3313_v11  ;;  %8210 = vmatprep.subr.mxu0 %v8870_v0 }
 0x890   :  { %3347 = vmatpush1.msra.mxu1 %v3312_v12  ;;  %8211 = vmatpush3.msra.mxu0 %v3193_v55  ;;  %v3331_v55 = vld [vmem:[#allocation3 + $0x1d8] sm:$0xff] }
 0x891   :  { %3348 = vmatprep.subr.mxu1 %v3309_v17  ;;  %8212 = vmatprep.subr.mxu0 %v8870_v0 }
 0x892   :  { %3349 = vmatpush1.msra.mxu1 %v3308_v9  ;;  %8213 = vmatpush3.msra.mxu0 %v3192_v56  ;;  %v3330_v56 = vld [vmem:[#allocation3 + $0x1d0] sm:$0xff] }
 0x893   :  { %3350 = vmatprep.subr.mxu1 %v3305_v23  ;;  %8214 = vmatprep.subr.mxu0 %v8870_v0 }
 0x894   :  { %3351 = vmatpush1.msra.mxu1 %v3304_v30  ;;  %8215 = vmatpush3.msra.mxu0 %v3191_v57  ;;  %v3327_v57 = vld [vmem:[#allocation3 + $0x1b8] sm:$0xff] }
 0x895   :  { %3352 = vmatprep.subr.mxu1 %v3301_v32  ;;  %8216 = vmatprep.subr.mxu0 %v8870_v0 }
 0x896   :  { %3353 = vmatpush1.msra.mxu1 %v3300_v33  ;;  %8217 = vmatpush3.msra.mxu0 %v3190_v60  ;;  %v3323_v60 = vld [vmem:[#allocation3 + $0x198] sm:$0xff] }
 0x897   :  { %3354 = vmatprep.subr.mxu1 %v3297_v35  ;;  %8218 = vmatprep.subr.mxu0 %v8870_v0 }
 0x898   :  { %3355 = vmatpush1.msra.mxu1 %v3296_v36  ;;  %8219 = vmatpush3.msra.mxu0 %v3189_v61  ;;  %v3322_v61 = vld [vmem:[#allocation3 + $0x190] sm:$0xff] }
 0x899   :  { %3356 = vmatprep.subr.mxu1 %v3293_v15  ;;  %8220 = vmatprep.subr.mxu0 %v8870_v0 }
 0x89a   :  { %3357 = vmatpush1.msra.mxu1 %v3292_v38  ;;  %8221 = vmatpush3.msra.mxu0 %v3188_v3  ;;  %v3319_v3 = vld [vmem:[#allocation3 + $0x178] sm:$0xff] }
 0x89b   :  { %3358 = vmatprep.subr.mxu1 %v3289_v2  ;;  %8222 = vmatprep.subr.mxu0 %v8870_v0 }
 0x89c   :  { %3359 = vmatpush1.msra.mxu1 %v3288_v45  ;;  %8223 = vmatpush3.msra.mxu0 %v3187_v5  ;;  %v3318_v5 = vld [vmem:[#allocation3 + $0x170] sm:$0xff] }
 0x89d   :  { %3360 = vmatprep.subr.mxu1 %v3285_v43  ;;  %8224 = vmatprep.subr.mxu0 %v8870_v0 }
 0x89e   :  { %3361 = vmatpush1.msra.mxu1 %v3284_v44  ;;  %8225 = vmatpush3.msra.mxu0 %v3186_v16  ;;  %v3315_v16 = vld [vmem:[#allocation3 + $0x158] sm:$0xff] }
 0x89f   :  { %3362 = vmatprep.subr.mxu1 %v3281_v46  ;;  %8226 = vmatprep.subr.mxu0 %v8870_v0 }
 0x8a0   :  { %3363 = vmatpush1.msra.mxu1 %v3280_v47  ;;  %8227 = vmatpush3.msra.mxu0 %v3185_v7  ;;  %v3314_v7 = vld [vmem:[#allocation3 + $0x150] sm:$0xff] }
 0x8a1   :  { %3364 = vmatprep.subr.mxu1 %v3277_v37  ;;  %8228 = vmatprep.subr.mxu0 %v8870_v0 }
 0x8a2   :  { %3365 = vmatpush1.msra.mxu1 %v3276_v6  ;;  %8229 = vmatpush3.msra.mxu0 %v3184_v8  ;;  %v3311_v8 = vld [vmem:[#allocation3 + $0x138] sm:$0xff] }
 0x8a3   :  { %3366 = vmatprep.subr.mxu1 %v3273_v48  ;;  %8230 = vmatprep.subr.mxu0 %v8870_v0 }
 0x8a4   :  { %3367 = vmatpush1.msra.mxu1 %v3272_v50  ;;  %8231 = vmatpush3.msra.mxu0 %v3183_v40  ;;  %v3310_v40 = vld [vmem:[#allocation3 + $0x130] sm:$0xff] }
 0x8a5   :  { %3401 = vmatmul.mubr.f32.vlgmr.msra.gmra.mxu1 %v9199_v29  ;;  %8232 = vmatprep.subr.mxu0 %v8870_v0 }
 0x8a6   :  { %3714 = vmatprep.mubr.f32.mxu1 %v9213_v63  ;;  %8233 = vmatpush3.msra.mxu0 %v3182_v1  ;;  %v3307_v1 = vld [vmem:[#allocation3 + $0x118] sm:$0xff] }
 0x8a7   :  { %3407 = vmatprep.subr.mxu0 %v3335_v10  ;;  %v3306_v10 = vld [vmem:[#allocation3 + $0x110] sm:$0xff] }
 0x945   :  { %v3081_v4 = vpop.f32.mrf.mxu0  ;;  %v3152_v23 = vpop.f32.mrf.mxu1 }
 0x946   :  { %v3082_v31 = vadd.f32 %v3081_v4, %v9074_v41  ;;  %v3153_v30 = vadd.f32 %v3152_v23, %v9082_v49  ;;  %v3303_v4 = vld [vmem:[#allocation3 + $0xf8] sm:$0xff] }
 0x947   :  { %v3083_v11 = vpop.f32.mrf.mxu0  ;;  %v3154_v32 = vpop.f32.mrf.mxu1  ;;  %v3291_v23 = vld [vmem:[#allocation3 + $0x98] sm:$0xff] }
 0x948   :  { %v7958_v12 = vmul.f32 -1.442695, %v3082_v31  ;;  %v3084_v17 = vadd.f32 %v3083_v11, %v9077_v42  ;;  %v7960_v33 = vmul.f32 -1.442695, %v3153_v30  ;;  %v3155_v36 = vadd.f32 %v3154_v32, %v9086_v53  ;;  %v3302_v31 = vld [vmem:[#allocation3 + $0xf0] sm:$0xff]  ;;  %v3299_v11 = vld [vmem:[#allocation3 + $0xd8] sm:$0xff] }
 0x949   :  { %v3290_v30 = vld [vmem:[#allocation3 + $0x90] sm:$0xff]  ;;  %v3287_v32 = vld [vmem:[#allocation3 + $0x78] sm:$0xff] }
 0x94a   :  { %8532 = vpow2.f32 %v7958_v12  ;;  %v7959_v9 = vmul.f32 -1.442695, %v3084_v17  ;;  %v3298_v12 = vld [vmem:[#allocation3 + $0xd0] sm:$0xff]  ;;  %v3295_v17 = vld [vmem:[#allocation3 + $0xb8] sm:$0xff] }
 0x94c   :  { %8534 = vpow2.f32 %v7959_v9  ;;  %v3294_v9 = vld [vmem:[#allocation3 + $0xb0] sm:$0xff] }
 0x94d   :  { %8536 = vpow2.f32 %v7960_v33  ;;  %v3286_v33 = vld [vmem:[#allocation3 + $0x70] sm:$0xff] }
 0x957   :  { %v8533_v35 = vpop.eup %8532 }
 0x958   :  { %v3166_v15 = vadd.f32 1.0, %v8533_v35  ;;  %v3283_v35 = vld [vmem:[#allocation3 + $0x58] sm:$0xff] }
 0x959   :  { %v8535_v38 = vpop.eup %8534 }
 0x95a   :  { %8538 = vrcp.f32 %v3166_v15  ;;  %v3167_v2 = vadd.f32 1.0, %v8535_v38  ;;  %v8537_v45 = vpop.eup %8536  ;;  %v3279_v15 = vld [vmem:[#allocation3 + $0x38] sm:$0xff]  ;;  %v3278_v38 = vld [vmem:[#allocation3 + $0x30] sm:$0xff] }
 0x95b   :  { %8540 = vtanh.f32 %v3155_v36  ;;  %v3168_v47 = vadd.f32 1.0, %v8537_v45  ;;  %v3282_v36 = vld [vmem:[#allocation3 + $0x50] sm:$0xff] }
 0x95c   :  { %8542 = vrcp.f32 %v3167_v2  ;;  %v3275_v2 = vld [vmem:[#allocation3 + $0x18] sm:$0xff]  ;;  %v3274_v45 = vld [vmem:[#allocation3 + $0x10] sm:$0xff] }
 0x95d   :  { %8544 = vrcp.f32 %v3168_v47  ;;  %v3584_v47 = vld [vmem:[#allocation6 + $0x1f0] sm:$0xff] }
 0x967   :  { %v8539_v43 = vpop.eup %8538 }
 0x968   :  { %v8541_v44 = vpop.eup %8540 }
 0x969   :  { %v8543_v46 = vpop.eup %8542  ;;  %v3177_v6 = vmul.f32 %v8541_v44, %v8539_v43  ;;  %v3583_v43 = vld [vmem:[#allocation6 + $0x1e8] sm:$0xff]  ;;  %v3585_v44 = vld [vmem:[#allocation6 + $0x1f8] sm:$0xff] }
 0x96a   :  { %v3176_v37 = vmul.f32 %v8543_v46, %v9171_v34  ;;  %v8545_v50 = vpop.eup %8544  ;;  %v3326_v34 = vld [vmem:[#allocation3 + $0x1b0] sm:$0xff]  ;;  %3650 = vmatprep.subr.mxu1 %v3583_v43  ;;  %v3582_v46 = vld [vmem:[#allocation6 + $0x1e0] sm:$0xff] }
 0x96b   :  { %3651 = vmatpush1.msra.mxu1 %v3582_v46  ;;  %v3542_v43 = vld [vmem:[#allocation6 + $0xa0] sm:$0xff]  ;;  %v3539_v46 = vld [vmem:[#allocation6 + $0x88] sm:$0xff] }
 0x96c   :  { %v9241_v48 = vadd.f32 %v3177_v6, %v3176_v37  ;;  %v3579_v37 = vld [vmem:[#allocation6 + $0x1c8] sm:$0xff]  ;;  %v3581_v6 = vld [vmem:[#allocation6 + $0x1d8] sm:$0xff] }
 0x96d   :  { %3652 = vmatprep.subr.mxu1 %v3579_v37  ;;  %v3538_v37 = vld [vmem:[#allocation6 + $0x80] sm:$0xff] }
 0x96e   :  { %8546 = vtanh.f32 %v9241_v48 }
 0x97b   :  { %v8547_v13 = vpop.eup %8546 }
 0x97c   :  { %v9244_v24 = vmul.f32 %v8547_v13, %v8545_v50  ;;  %v3578_v50 = vld [vmem:[#allocation6 + $0x1c0] sm:$0xff]  ;;  %v3580_v13 = vld [vmem:[#allocation6 + $0x1d0] sm:$0xff] }
 0x97d   :  { %3653 = vmatpush1.msra.mxu1 %v3578_v50  ;;  %v3535_v50 = vld [vmem:[#allocation6 + $0x68] sm:$0xff] }
 0x97e   :  { %v3181_v14 = vmax.f32 %v9244_v24, 0.0 }
 0x980   :  { %8235 = vmatmul.mubr.f32.vlgmr.msra.gmra.mxu0 %v3181_v14  ;;  %v3575_v14 = vld [vmem:[#allocation6 + $0x1a8] sm:$0xff] }
 0x981   :  { %3408 = vmatpush1.msra.mxu0 %v3334_v54  ;;  %3471 = vmatprep.mubr.f32.mxu0 %v8870_v0  ;;  %v3576_v54 = vld [vmem:[#allocation6 + $0x1b0] sm:$0xff] }
 0x982   :  { %3409 = vmatprep.subr.mxu0 %v3331_v55  ;;  %3654 = vmatprep.subr.mxu1 %v3575_v14  ;;  %v3571_v55 = vld [vmem:[#allocation6 + $0x188] sm:$0xff]  ;;  %v3534_v14 = vld [vmem:[#allocation6 + $0x60] sm:$0xff] }
 0x983   :  { %3410 = vmatpush1.msra.mxu0 %v3330_v56  ;;  %v3573_v56 = vld [vmem:[#allocation6 + $0x198] sm:$0xff] }
 0x984   :  { %3411 = vmatprep.subr.mxu0 %v3327_v57  ;;  %v3570_v57 = vld [vmem:[#allocation6 + $0x180] sm:$0xff] }
 0x985   :  { %3412 = vmatpush1.msra.mxu0 %v3326_v34  ;;  %v3572_v34 = vld [vmem:[#allocation6 + $0x190] sm:$0xff] }
 0x986   :  { %3413 = vmatprep.subr.mxu0 %v3323_v60  ;;  %v3567_v60 = vld [vmem:[#allocation6 + $0x168] sm:$0xff] }
 0x987   :  { %3414 = vmatpush1.msra.mxu0 %v3322_v61  ;;  %v3569_v61 = vld [vmem:[#allocation6 + $0x178] sm:$0xff] }
 0x988   :  { %3415 = vmatprep.subr.mxu0 %v3319_v3  ;;  %v3566_v3 = vld [vmem:[#allocation6 + $0x160] sm:$0xff] }
 0x989   :  { %3416 = vmatpush1.msra.mxu0 %v3318_v5  ;;  %v3568_v5 = vld [vmem:[#allocation6 + $0x170] sm:$0xff] }
 0x98a   :  { %3417 = vmatprep.subr.mxu0 %v3315_v16  ;;  %v3563_v16 = vld [vmem:[#allocation6 + $0x148] sm:$0xff] }
 0x98b   :  { %3418 = vmatpush1.msra.mxu0 %v3314_v7  ;;  %v3565_v7 = vld [vmem:[#allocation6 + $0x158] sm:$0xff] }
 0x98c   :  { %3419 = vmatprep.subr.mxu0 %v3311_v8  ;;  %v3562_v8 = vld [vmem:[#allocation6 + $0x140] sm:$0xff] }
 0x98d   :  { %3420 = vmatpush1.msra.mxu0 %v3310_v40  ;;  %v3564_v40 = vld [vmem:[#allocation6 + $0x150] sm:$0xff] }
 0x98e   :  { %3421 = vmatprep.subr.mxu0 %v3307_v1  ;;  %v3559_v1 = vld [vmem:[#allocation6 + $0x128] sm:$0xff] }
 0x98f   :  { %3422 = vmatpush1.msra.mxu0 %v3306_v10  ;;  %v3561_v10 = vld [vmem:[#allocation6 + $0x138] sm:$0xff] }
 0x990   :  { %3423 = vmatprep.subr.mxu0 %v3303_v4  ;;  %v3558_v4 = vld [vmem:[#allocation6 + $0x120] sm:$0xff] }
 0x991   :  { %3424 = vmatpush1.msra.mxu0 %v3302_v31  ;;  %v3560_v31 = vld [vmem:[#allocation6 + $0x130] sm:$0xff] }
 0x992   :  { %3425 = vmatprep.subr.mxu0 %v3299_v11  ;;  %v3555_v11 = vld [vmem:[#allocation6 + $0x108] sm:$0xff] }
 0x993   :  { %3426 = vmatpush1.msra.mxu0 %v3298_v12  ;;  %v3557_v12 = vld [vmem:[#allocation6 + $0x118] sm:$0xff] }
 0x994   :  { %3427 = vmatprep.subr.mxu0 %v3295_v17  ;;  %v3554_v17 = vld [vmem:[#allocation6 + $0x100] sm:$0xff] }
 0x995   :  { %3428 = vmatpush1.msra.mxu0 %v3294_v9  ;;  %v3556_v9 = vld [vmem:[#allocation6 + $0x110] sm:$0xff] }
 0x996   :  { %3429 = vmatprep.subr.mxu0 %v3291_v23  ;;  %v3551_v23 = vld [vmem:[#allocation6 + $0xe8] sm:$0xff] }
 0x997   :  { %3430 = vmatpush1.msra.mxu0 %v3290_v30  ;;  %v3553_v30 = vld [vmem:[#allocation6 + $0xf8] sm:$0xff] }
 0x998   :  { %3431 = vmatprep.subr.mxu0 %v3287_v32  ;;  %v3550_v32 = vld [vmem:[#allocation6 + $0xe0] sm:$0xff] }
 0x999   :  { %3432 = vmatpush1.msra.mxu0 %v3286_v33  ;;  %v3552_v33 = vld [vmem:[#allocation6 + $0xf0] sm:$0xff] }
 0x99a   :  { %3433 = vmatprep.subr.mxu0 %v3283_v35  ;;  %v3547_v35 = vld [vmem:[#allocation6 + $0xc8] sm:$0xff] }
 0x99b   :  { %3434 = vmatpush1.msra.mxu0 %v3282_v36  ;;  %v3549_v36 = vld [vmem:[#allocation6 + $0xd8] sm:$0xff] }
 0x99c   :  { %3435 = vmatprep.subr.mxu0 %v3279_v15  ;;  %v3546_v15 = vld [vmem:[#allocation6 + $0xc0] sm:$0xff] }
 0x99d   :  { %3436 = vmatpush1.msra.mxu0 %v3278_v38  ;;  %v3548_v38 = vld [vmem:[#allocation6 + $0xd0] sm:$0xff] }
 0x99e   :  { %3437 = vmatprep.subr.mxu0 %v3275_v2  ;;  %v3543_v2 = vld [vmem:[#allocation6 + $0xa8] sm:$0xff] }
 0x99f   :  { %3438 = vmatpush1.msra.mxu0 %v3274_v45  ;;  %v3545_v45 = vld [vmem:[#allocation6 + $0xb8] sm:$0xff] }
 0x9a0   :  { %3472 = vmatmul.mubr.f32.vlgmr.msra.gmra.mxu0 %v9199_v29  ;;  %3721 = vmatprep.subr.mxu0 %v3585_v44  ;;  %v3577_v29 = vld [vmem:[#allocation6 + $0x1b8] sm:$0xff]  ;;  %v3544_v44 = vld [vmem:[#allocation6 + $0xb0] sm:$0xff] }
 0x9a1   :  { %3785 = vmatprep.mubr.f32.mxu0 %v9213_v63  ;;  %3722 = vmatpush1.msra.mxu0 %v3584_v47  ;;  %v3574_v63 = vld [vmem:[#allocation6 + $0x1a0] sm:$0xff]  ;;  %v3541_v47 = vld [vmem:[#allocation6 + $0x98] sm:$0xff] }
 0x9a2   :  { %3723 = vmatprep.subr.mxu0 %v3581_v6  ;;  %3655 = vmatpush1.msra.mxu1 %v3574_v63  ;;  %v3540_v6 = vld [vmem:[#allocation6 + $0x90] sm:$0xff]  ;;  %v3531_v63 = vld [vmem:[#allocation6 + $0x48] sm:$0xff] }
 0x9a3   :  { %3724 = vmatpush1.msra.mxu0 %v3580_v13  ;;  %3656 = vmatprep.subr.mxu1 %v3571_v55  ;;  %v3537_v13 = vld [vmem:[#allocation6 + $0x78] sm:$0xff]  ;;  %v3530_v55 = vld [vmem:[#allocation6 + $0x40] sm:$0xff] }
 0x9a4   :  { %3725 = vmatprep.subr.mxu0 %v3577_v29  ;;  %3657 = vmatpush1.msra.mxu1 %v3570_v57  ;;  %v3536_v29 = vld [vmem:[#allocation6 + $0x70] sm:$0xff]  ;;  %v3527_v57 = vld [vmem:[#allocation6 + $0x28] sm:$0xff] }
 0x9a5   :  { %3726 = vmatpush1.msra.mxu0 %v3576_v54  ;;  %3658 = vmatprep.subr.mxu1 %v3567_v60  ;;  %v3533_v54 = vld [vmem:[#allocation6 + $0x58] sm:$0xff]  ;;  %v3526_v60 = vld [vmem:[#allocation6 + $0x20] sm:$0xff] }
 0x9a6   :  { %3727 = vmatprep.subr.mxu0 %v3573_v56  ;;  %3659 = vmatpush1.msra.mxu1 %v3566_v3  ;;  %v3532_v56 = vld [vmem:[#allocation6 + $0x50] sm:$0xff]  ;;  %v3523_v3 = vld [vmem:[#allocation6 + $0x8] sm:$0xff] }
 0x9a7   :  { %3728 = vmatpush1.msra.mxu0 %v3572_v34  ;;  %3660 = vmatprep.subr.mxu1 %v3563_v16  ;;  %v3529_v34 = vld [vmem:[#allocation6 + $0x38] sm:$0xff]  ;;  %v3522_v16 = vld [vmem:[#allocation6] sm:$0xff] }
 0x9a8   :  { %3729 = vmatprep.subr.mxu0 %v3569_v61  ;;  %3661 = vmatpush1.msra.mxu1 %v3562_v8  ;;  %v3528_v61 = vld [vmem:[#allocation6 + $0x30] sm:$0xff]  ;;  %v3647_v8 = vld [vmem:[#allocation6 + $0x3e8] sm:$0xff] }
 0x9a9   :  { %3730 = vmatpush1.msra.mxu0 %v3568_v5  ;;  %3662 = vmatprep.subr.mxu1 %v3559_v1  ;;  %v3525_v5 = vld [vmem:[#allocation6 + $0x18] sm:$0xff]  ;;  %v3646_v1 = vld [vmem:[#allocation6 + $0x3e0] sm:$0xff] }
 0x9aa   :  { %3731 = vmatprep.subr.mxu0 %v3565_v7  ;;  %3663 = vmatpush1.msra.mxu1 %v3558_v4  ;;  %v3524_v7 = vld [vmem:[#allocation6 + $0x10] sm:$0xff]  ;;  %v3643_v4 = vld [vmem:[#allocation6 + $0x3c8] sm:$0xff] }
 0x9ab   :  { %3732 = vmatpush1.msra.mxu0 %v3564_v40  ;;  %3664 = vmatprep.subr.mxu1 %v3555_v11  ;;  %v3649_v40 = vld [vmem:[#allocation6 + $0x3f8] sm:$0xff]  ;;  %v3642_v11 = vld [vmem:[#allocation6 + $0x3c0] sm:$0xff] }
 0x9ac   :  { %3733 = vmatprep.subr.mxu0 %v3561_v10  ;;  %3665 = vmatpush1.msra.mxu1 %v3554_v17  ;;  %v3648_v10 = vld [vmem:[#allocation6 + $0x3f0] sm:$0xff]  ;;  %v3639_v17 = vld [vmem:[#allocation6 + $0x3a8] sm:$0xff] }
 0x9ad   :  { %3734 = vmatpush1.msra.mxu0 %v3560_v31  ;;  %3666 = vmatprep.subr.mxu1 %v3551_v23  ;;  %v3645_v31 = vld [vmem:[#allocation6 + $0x3d8] sm:$0xff]  ;;  %v3638_v23 = vld [vmem:[#allocation6 + $0x3a0] sm:$0xff] }
 0x9ae   :  { %3735 = vmatprep.subr.mxu0 %v3557_v12  ;;  %3667 = vmatpush1.msra.mxu1 %v3550_v32  ;;  %v3644_v12 = vld [vmem:[#allocation6 + $0x3d0] sm:$0xff]  ;;  %v3635_v32 = vld [vmem:[#allocation6 + $0x388] sm:$0xff] }
 0x9af   :  { %3736 = vmatpush1.msra.mxu0 %v3556_v9  ;;  %3668 = vmatprep.subr.mxu1 %v3547_v35  ;;  %v3641_v9 = vld [vmem:[#allocation6 + $0x3b8] sm:$0xff]  ;;  %v3634_v35 = vld [vmem:[#allocation6 + $0x380] sm:$0xff] }
 0x9b0   :  { %3737 = vmatprep.subr.mxu0 %v3553_v30  ;;  %3669 = vmatpush1.msra.mxu1 %v3546_v15  ;;  %v3640_v30 = vld [vmem:[#allocation6 + $0x3b0] sm:$0xff]  ;;  %v3631_v15 = vld [vmem:[#allocation6 + $0x368] sm:$0xff] }
 0x9b1   :  { %3738 = vmatpush1.msra.mxu0 %v3552_v33  ;;  %3670 = vmatprep.subr.mxu1 %v3543_v2  ;;  %v3637_v33 = vld [vmem:[#allocation6 + $0x398] sm:$0xff]  ;;  %v3630_v2 = vld [vmem:[#allocation6 + $0x360] sm:$0xff] }
 0x9b2   :  { %3739 = vmatprep.subr.mxu0 %v3549_v36  ;;  %3671 = vmatpush1.msra.mxu1 %v3542_v43  ;;  %v3636_v36 = vld [vmem:[#allocation6 + $0x390] sm:$0xff]  ;;  %v3627_v43 = vld [vmem:[#allocation6 + $0x348] sm:$0xff] }
 0x9b3   :  { %3740 = vmatpush1.msra.mxu0 %v3548_v38  ;;  %3672 = vmatprep.subr.mxu1 %v3539_v46  ;;  %v3633_v38 = vld [vmem:[#allocation6 + $0x378] sm:$0xff]  ;;  %v3626_v46 = vld [vmem:[#allocation6 + $0x340] sm:$0xff] }
 0x9b4   :  { %3741 = vmatprep.subr.mxu0 %v3545_v45  ;;  %3673 = vmatpush1.msra.mxu1 %v3538_v37  ;;  %v3632_v45 = vld [vmem:[#allocation6 + $0x370] sm:$0xff]  ;;  %v3623_v37 = vld [vmem:[#allocation6 + $0x328] sm:$0xff] }
 0x9b5   :  { %3742 = vmatpush1.msra.mxu0 %v3544_v44  ;;  %3674 = vmatprep.subr.mxu1 %v3535_v50  ;;  %v3629_v44 = vld [vmem:[#allocation6 + $0x358] sm:$0xff]  ;;  %v3622_v50 = vld [vmem:[#allocation6 + $0x320] sm:$0xff] }
 0x9b6   :  { %3743 = vmatprep.subr.mxu0 %v3541_v47  ;;  %3675 = vmatpush1.msra.mxu1 %v3534_v14  ;;  %v3628_v47 = vld [vmem:[#allocation6 + $0x350] sm:$0xff]  ;;  %v3619_v14 = vld [vmem:[#allocation6 + $0x308] sm:$0xff] }
 0x9b7   :  { %3744 = vmatpush1.msra.mxu0 %v3540_v6  ;;  %3676 = vmatprep.subr.mxu1 %v3531_v63  ;;  %v3625_v6 = vld [vmem:[#allocation6 + $0x338] sm:$0xff]  ;;  %v3618_v63 = vld [vmem:[#allocation6 + $0x300] sm:$0xff] }
 0x9b8   :  { %3745 = vmatprep.subr.mxu0 %v3537_v13  ;;  %3677 = vmatpush1.msra.mxu1 %v3530_v55  ;;  %v3624_v13 = vld [vmem:[#allocation6 + $0x330] sm:$0xff]  ;;  %v3615_v55 = vld [vmem:[#allocation6 + $0x2e8] sm:$0xff] }
 0x9b9   :  { %3746 = vmatpush1.msra.mxu0 %v3536_v29  ;;  %3678 = vmatprep.subr.mxu1 %v3527_v57  ;;  %v3621_v29 = vld [vmem:[#allocation6 + $0x318] sm:$0xff]  ;;  %v3614_v57 = vld [vmem:[#allocation6 + $0x2e0] sm:$0xff] }
 0x9ba   :  { %3747 = vmatprep.subr.mxu0 %v3533_v54  ;;  %3679 = vmatpush1.msra.mxu1 %v3526_v60  ;;  %v3620_v54 = vld [vmem:[#allocation6 + $0x310] sm:$0xff]  ;;  %v3611_v60 = vld [vmem:[#allocation6 + $0x2c8] sm:$0xff] }
 0x9bb   :  { %3748 = vmatpush1.msra.mxu0 %v3532_v56  ;;  %3680 = vmatprep.subr.mxu1 %v3523_v3  ;;  %v3617_v56 = vld [vmem:[#allocation6 + $0x2f8] sm:$0xff]  ;;  %v3610_v3 = vld [vmem:[#allocation6 + $0x2c0] sm:$0xff] }
 0x9bc   :  { %3749 = vmatprep.subr.mxu0 %v3529_v34  ;;  %3681 = vmatpush1.msra.mxu1 %v3522_v16  ;;  %v3616_v34 = vld [vmem:[#allocation6 + $0x2f0] sm:$0xff]  ;;  %v3607_v16 = vld [vmem:[#allocation6 + $0x2a8] sm:$0xff] }
 0x9bd   :  { %3750 = vmatpush1.msra.mxu0 %v3528_v61  ;;  %3682 = vmatprep.subr.mxu1 %v3647_v8  ;;  %v3613_v61 = vld [vmem:[#allocation6 + $0x2d8] sm:$0xff]  ;;  %v3606_v8 = vld [vmem:[#allocation6 + $0x2a0] sm:$0xff] }
 0x9be   :  { %3751 = vmatprep.subr.mxu0 %v3525_v5  ;;  %3683 = vmatpush2.msra.mxu1 %v3646_v1  ;;  %v3612_v5 = vld [vmem:[#allocation6 + $0x2d0] sm:$0xff]  ;;  %v3603_v1 = vld [vmem:[#allocation6 + $0x288] sm:$0xff] }
 0x9bf   :  { %3752 = vmatpush1.msra.mxu0 %v3524_v7  ;;  %3684 = vmatprep.subr.mxu1 %v3643_v4  ;;  %v3609_v7 = vld [vmem:[#allocation6 + $0x2b8] sm:$0xff]  ;;  %v3602_v4 = vld [vmem:[#allocation6 + $0x280] sm:$0xff] }
 0x9c0   :  { %3753 = vmatprep.subr.mxu0 %v3649_v40  ;;  %3685 = vmatpush2.msra.mxu1 %v3642_v11  ;;  %v3608_v40 = vld [vmem:[#allocation6 + $0x2b0] sm:$0xff]  ;;  %v3599_v11 = vld [vmem:[#allocation6 + $0x268] sm:$0xff] }
 0x9c1   :  { %3754 = vmatpush2.msra.mxu0 %v3648_v10  ;;  %3686 = vmatprep.subr.mxu1 %v3639_v17  ;;  %v3605_v10 = vld [vmem:[#allocation6 + $0x298] sm:$0xff]  ;;  %v3598_v17 = vld [vmem:[#allocation6 + $0x260] sm:$0xff] }
 0x9c2   :  { %3755 = vmatprep.subr.mxu0 %v3645_v31  ;;  %3687 = vmatpush2.msra.mxu1 %v3638_v23  ;;  %v3604_v31 = vld [vmem:[#allocation6 + $0x290] sm:$0xff]  ;;  %v3595_v23 = vld [vmem:[#allocation6 + $0x248] sm:$0xff] }
 0x9c3   :  { %3756 = vmatpush2.msra.mxu0 %v3644_v12  ;;  %3688 = vmatprep.subr.mxu1 %v3635_v32  ;;  %v3601_v12 = vld [vmem:[#allocation6 + $0x278] sm:$0xff]  ;;  %v3594_v32 = vld [vmem:[#allocation6 + $0x240] sm:$0xff] }
 0x9c4   :  { %3757 = vmatprep.subr.mxu0 %v3641_v9  ;;  %3689 = vmatpush2.msra.mxu1 %v3634_v35  ;;  %v3600_v9 = vld [vmem:[#allocation6 + $0x270] sm:$0xff]  ;;  %v3591_v35 = vld [vmem:[#allocation6 + $0x228] sm:$0xff] }
 0x9c5   :  { %3758 = vmatpush2.msra.mxu0 %v3640_v30  ;;  %3690 = vmatprep.subr.mxu1 %v3631_v15  ;;  %v3597_v30 = vld [vmem:[#allocation6 + $0x258] sm:$0xff]  ;;  %v3590_v15 = vld [vmem:[#allocation6 + $0x220] sm:$0xff] }
 0x9c6   :  { %3759 = vmatprep.subr.mxu0 %v3637_v33  ;;  %3691 = vmatpush2.msra.mxu1 %v3630_v2  ;;  %v3596_v33 = vld [vmem:[#allocation6 + $0x250] sm:$0xff]  ;;  %v3587_v2 = vld [vmem:[#allocation6 + $0x208] sm:$0xff] }
 0x9c7   :  { %3760 = vmatpush2.msra.mxu0 %v3636_v36  ;;  %3692 = vmatprep.subr.mxu1 %v3627_v43  ;;  %v3593_v36 = vld [vmem:[#allocation6 + $0x238] sm:$0xff]  ;;  %v3586_v43 = vld [vmem:[#allocation6 + $0x200] sm:$0xff] }
 0x9c8   :  { %3761 = vmatprep.subr.mxu0 %v3633_v38  ;;  %3693 = vmatpush2.msra.mxu1 %v3626_v46  ;;  %v3592_v38 = vld [vmem:[#allocation6 + $0x230] sm:$0xff]  ;;  %v3880_v46 = vld [vmem:[#allocation8 + $0x1f8] sm:$0xff] }
 0x9c9   :  { %3762 = vmatpush2.msra.mxu0 %v3632_v45  ;;  %3694 = vmatprep.subr.mxu1 %v3623_v37  ;;  %v3589_v45 = vld [vmem:[#allocation6 + $0x218] sm:$0xff] }
 0x9ca   :  { %3763 = vmatprep.subr.mxu0 %v3629_v44  ;;  %3695 = vmatpush2.msra.mxu1 %v3622_v50  ;;  %v3588_v44 = vld [vmem:[#allocation6 + $0x210] sm:$0xff] }
 0x9cb   :  { %3764 = vmatpush2.msra.mxu0 %v3628_v47  ;;  %3696 = vmatprep.subr.mxu1 %v3619_v14  ;;  %v3878_v47 = vld [vmem:[#allocation8 + $0x1e8] sm:$0xff]  ;;  %v118_v14 = vpop.permute.xlu1 %117 }
 0x9cc   :  { %3765 = vmatprep.subr.mxu0 %v3625_v6  ;;  %3697 = vmatpush2.msra.mxu1 %v3618_v63  ;;  %v8749_v6 = vld [vmem:[%s9594_s9] ss:$0 sm:$0xff]  ;;  %v174_v63 = vmul.f32 %v8979_v19, %v118_v14 }
 0x9cd   :  { %3766 = vmatpush2.msra.mxu0 %v3624_v13  ;;  %3698 = vmatprep.subr.mxu1 %v3615_v55  ;;  %v176_v55 = vmul.f32 %v8985_v21, %v118_v14 }
 0x9ce   :  { %3767 = vmatprep.subr.mxu0 %v3621_v29  ;;  %3699 = vmatpush2.msra.mxu1 %v3614_v57  ;;  %v173_v29 = vmul.f32 %v8976_v18, %v118_v14 }
 0x9cf   :  { %3768 = vmatpush2.msra.mxu0 %v3620_v54  ;;  %3700 = vmatprep.subr.mxu1 %v3611_v60  ;;  %v175_v54 = vmul.f32 %v8982_v20, %v118_v14  ;;  %v3873_v14 = vld [vmem:[#allocation8 + $0x1c0] sm:$0xff] }
 0x9d0   :  { %3769 = vmatprep.subr.mxu0 %v3617_v56  ;;  %3701 = vmatpush2.msra.mxu1 %v3610_v3  ;;  %v3402_v56 = vpop.f32.mrf.mxu1  ;;  %v227_v57 = vadd.f32 %v8991_v25, %v173_v29  ;;  %v3872_v29 = vld [vmem:[#allocation8 + $0x1b8] sm:$0xff] }
 0x9d1   :  { %3770 = vmatpush2.msra.mxu0 %v3616_v34  ;;  %3702 = vmatprep.subr.mxu1 %v3607_v16  ;;  %v228_v34 = vadd.f32 %v8994_v26, %v174_v63  ;;  %v229_v60 = vadd.f32 %v8997_v27, %v175_v54  ;;  %v3870_v63 = vld [vmem:[#allocation8 + $0x1a8] sm:$0xff]  ;;  %v3871_v54 = vld [vmem:[#allocation8 + $0x1b0] sm:$0xff] }
 0x9d2   :  { %3771 = vmatprep.subr.mxu0 %v3613_v61  ;;  %3703 = vmatpush2.msra.mxu1 %v3606_v8  ;;  %v230_v61 = vadd.f32 %v9000_v28, %v176_v55  ;;  %v3404_v3 = vpop.f32.mrf.mxu1  ;;  %v3869_v55 = vld [vmem:[#allocation8 + $0x1a0] sm:$0xff] }
 0x9d3   :  { %3772 = vmatpush2.msra.mxu0 %v3612_v5  ;;  %3704 = vmatprep.subr.mxu1 %v3603_v1  ;;  %v330_v5 = vcombine.low %v227_v57, %v228_v34  ;;  %v3482_v8 = vcombine.low %v3402_v56, %v3404_v3  ;;  %v3868_v56 = vld [vmem:[#allocation8 + $0x198] sm:$0xff]  ;;  %v3866_v57 = vld [vmem:[#allocation8 + $0x188] sm:$0xff]  ;;  %v3865_v34 = vld [vmem:[#allocation8 + $0x180] sm:$0xff] }
 0x9d4   :  { %3773 = vmatprep.subr.mxu0 %v3609_v7  ;;  %3705 = vmatpush2.msra.mxu1 %v3602_v4  ;;  %v331_v16 = vcombine.low %v229_v60, %v230_v61  ;;  %v3864_v60 = vld [vmem:[#allocation8 + $0x178] sm:$0xff]  ;;  %v3862_v61 = vld [vmem:[#allocation8 + $0x168] sm:$0xff]  ;;  %v3863_v3 = vld [vmem:[#allocation8 + $0x170] sm:$0xff] }
 0x9d5   :  { %3774 = vmatpush2.msra.mxu0 %v3608_v40  ;;  %3706 = vmatprep.subr.mxu1 %v3599_v11  ;;  %v338_v1 = vrot.slane %v330_v5, %v9010_v39  ;;  %v3861_v5 = vld [vmem:[#allocation8 + $0x160] sm:$0xff] }
 0x9d6   :  { %3775 = vmatprep.subr.mxu0 %v3605_v10  ;;  %3707 = vmatpush2.msra.mxu1 %v3598_v17  ;;  %v345_v10 = vrot.slane %v331_v16, %v9010_v39  ;;  %v3860_v16 = vld [vmem:[#allocation8 + $0x158] sm:$0xff] }
 0x9d7   :  { %3776 = vmatpush2.msra.mxu0 %v3604_v31  ;;  %3708 = vmatprep.subr.mxu1 %v3595_v23  ;;  %v3490_v31 = vrot.slane %v3482_v8, %v9010_v39  ;;  %v3859_v8 = vld [vmem:[#allocation8 + $0x150] sm:$0xff] }
 0x9d8   :  { %3777 = vmatprep.subr.mxu0 %v3601_v12  ;;  %3709 = vmatpush2.msra.mxu1 %v3594_v32  ;;  %v346_v12 = vcombine.low %v338_v1, %v345_v10  ;;  %v3856_v1 = vld [vmem:[#allocation8 + $0x138] sm:$0xff]  ;;  %v3854_v10 = vld [vmem:[#allocation8 + $0x128] sm:$0xff] }
 0x9d9   :  { %3778 = vmatpush2.msra.mxu0 %v3600_v9  ;;  %3710 = vmatprep.subr.mxu1 %v3591_v35 }
 0x9da   :  { %3779 = vmatprep.subr.mxu0 %v3597_v30  ;;  %3711 = vmatpush2.msra.mxu1 %v3590_v15 }
 0x9db   :  { %3780 = vmatpush2.msra.mxu0 %v3596_v33  ;;  %3712 = vmatprep.subr.mxu1 %v3587_v2 }
 0x9dc   :  { %3781 = vmatprep.subr.mxu0 %v3593_v36  ;;  %3713 = vmatpush2.msra.mxu1 %v3586_v43 }
 0x9dd   :  { %3782 = vmatpush2.msra.mxu0 %v3592_v38  ;;  %3945 = vmatprep.subr.mxu1 %v3878_v47 }
 0x9de   :  { %3783 = vmatprep.subr.mxu0 %v3589_v45 }
 0x9df   :  { %3784 = vmatpush2.msra.mxu0 %v3588_v44 }
 0x9e0   :  { %4016 = vmatprep.subr.mxu0 %v3880_v46 }
 0xa40   :  { %v3264_v37 = vpop.f32.mrf.mxu0 }
 0xa41   :  { %v3265_v50 = vadd.f32 %v8749_v6, %v3264_v37  ;;  %v3879_v37 = vld [vmem:[#allocation8 + $0x1f0] sm:$0xff]  ;;  %v3877_v6 = vld [vmem:[#allocation8 + $0x1e0] sm:$0xff] }
 0xa42   :  { %v8236_v13 = vpop.f32.mrf.mxu0 }
 0xa43   :  { %3269 = vst [vmem:[#allocation11 + $0x4] sm:$0x3] %v3265_v50  ;;  %v3876_v50 = vld [vmem:[#allocation8 + $0x1d8] sm:$0xff]  ;;  %v3874_v13 = vld [vmem:[#allocation8 + $0x1c8] sm:$0xff] }
 0xa60   :  { %v3473_v7 = vpop.f32.mrf.mxu0 }
 0xa62   :  { %v3475_v40 = vpop.f32.mrf.mxu0 }
 0xa63   :  { %v3483_v4 = vcombine.low %v3473_v7, %v3475_v40  ;;  %v3858_v7 = vld [vmem:[#allocation8 + $0x148] sm:$0xff]  ;;  %v3857_v40 = vld [vmem:[#allocation8 + $0x140] sm:$0xff] }
 0xa65   :  { %v3497_v11 = vrot.slane %v3483_v4, %v9010_v39  ;;  %v3855_v4 = vld [vmem:[#allocation8 + $0x130] sm:$0xff] }
 0xa67   :  { %v3498_v17 = vcombine.low %v3490_v31, %v3497_v11  ;;  %v3853_v31 = vld [vmem:[#allocation8 + $0x120] sm:$0xff]  ;;  %v3852_v11 = vld [vmem:[#allocation8 + $0x118] sm:$0xff] }
 0xa69   :  { %v3500_v9 = vadd.f32 %v3498_v17, %v346_v12  ;;  %v3850_v12 = vld [vmem:[#allocation8 + $0x108] sm:$0xff]  ;;  %v3851_v17 = vld [vmem:[#allocation8 + $0x110] sm:$0xff] }
 0xa6b   :  { %v7961_v23 = vmul.f32 -1.442695, %v3500_v9  ;;  %v3508_v33 = vrot.slane %v3500_v9, 6  ;;  %v3849_v9 = vld [vmem:[#allocation8 + $0x100] sm:$0xff] }
 0xa6d   :  { %8548 = vpow2.f32 %v7961_v23  ;;  %v3848_v23 = vld [vmem:[#allocation8 + $0xf8] sm:$0xff] }
 0xa7a   :  { %v8549_v30 = vpop.eup %8548 }
 0xa7b   :  { %v3504_v32 = vadd.f32 1.0, %v8549_v30  ;;  %v3846_v30 = vld [vmem:[#allocation8 + $0xe8] sm:$0xff] }
 0xa7d   :  { %8550 = vrcp.f32 %v3504_v32  ;;  %v3847_v32 = vld [vmem:[#allocation8 + $0xf0] sm:$0xff] }
 0xa7e   :  { %8552 = vtanh.f32 %v3508_v33  ;;  %v3845_v33 = vld [vmem:[#allocation8 + $0xe0] sm:$0xff] }
 0xa8a   :  { %v8551_v35 = vpop.eup %8550 }
 0xa8b   :  { %v3512_v36 = vrot.slane %v8551_v35, 2  ;;  %v8553_v15 = vpop.eup %8552  ;;  %v3518_v43 = vrot.slane %v8551_v35, 4 }
 0xa8c   :  { %v3515_v2 = vmul.f32 %v8553_v15, %v8551_v35  ;;  %v3844_v35 = vld [vmem:[#allocation8 + $0xd8] sm:$0xff]  ;;  %v3843_v15 = vld [vmem:[#allocation8 + $0xd0] sm:$0xff] }
 0xa8d   :  { %v3514_v38 = vmul.f32 %v3512_v36, %v9196_v22  ;;  %v3875_v22 = vld [vmem:[#allocation8 + $0x1d0] sm:$0xff]  ;;  %v3842_v36 = vld [vmem:[#allocation8 + $0xc8] sm:$0xff] }
 0xa8f   :  { %v9266_v45 = vadd.f32 %v3515_v2, %v3514_v38  ;;  %v3841_v38 = vld [vmem:[#allocation8 + $0xc0] sm:$0xff]  ;;  %v3840_v2 = vld [vmem:[#allocation8 + $0xb8] sm:$0xff] }
 0xa91   :  { %8554 = vtanh.f32 %v9266_v45 }
 0xa9e   :  { %v8555_v44 = vpop.eup %8554 }
 0xa9f   :  { %v9269_v46 = vmul.f32 %v8555_v44, %v3518_v43  ;;  %v3838_v43 = vld [vmem:[#allocation8 + $0xa8] sm:$0xff]  ;;  %v3839_v44 = vld [vmem:[#allocation8 + $0xb0] sm:$0xff] }
 0xaa1   :  { %v3521_v47 = vmax.f32 %v9269_v46, 0.0 }
 0xaa3   :  { %3715 = vmatmul.mubr.f32.vlgmr.msra.gmra.mxu1 %v3521_v47  ;;  %3786 = vmatmul.mubr.f32.vlgmr.msra.gmra.mxu0 %v3521_v47  ;;  %v3837_v47 = vld [vmem:[#allocation8 + $0xa0] sm:$0xff] }
 0xaa4   :  { %4009 = vmatprep.mubr.f32.mxu1 %v9244_v24  ;;  %4080 = vmatprep.mubr.f32.mxu0 %v9244_v24  ;;  %v3867_v24 = vld [vmem:[#allocation8 + $0x190] sm:$0xff] }
 0xaa5   :  { %4017 = vmatpush1.msra.mxu0 %v3879_v37  ;;  %3946 = vmatpush1.msra.mxu1 %v3877_v6  ;;  %v3836_v37 = vld [vmem:[#allocation8 + $0x98] sm:$0xff]  ;;  %v3834_v6 = vld [vmem:[#allocation8 + $0x88] sm:$0xff] }
 0xaa6   :  { %4018 = vmatprep.subr.mxu0 %v3876_v50  ;;  %3947 = vmatprep.subr.mxu1 %v3874_v13  ;;  %v3835_v50 = vld [vmem:[#allocation8 + $0x90] sm:$0xff]  ;;  %v3833_v13 = vld [vmem:[#allocation8 + $0x80] sm:$0xff] }
 0xaa7   :  { %4019 = vmatpush1.msra.mxu0 %v3875_v22  ;;  %3948 = vmatpush1.msra.mxu1 %v3873_v14  ;;  %v3832_v22 = vld [vmem:[#allocation8 + $0x78] sm:$0xff]  ;;  %v3830_v14 = vld [vmem:[#allocation8 + $0x68] sm:$0xff] }
 0xaa8   :  { %4020 = vmatprep.subr.mxu0 %v3872_v29  ;;  %3949 = vmatprep.subr.mxu1 %v3870_v63  ;;  %v3831_v29 = vld [vmem:[#allocation8 + $0x70] sm:$0xff]  ;;  %v3829_v63 = vld [vmem:[#allocation8 + $0x60] sm:$0xff] }
 0xaa9   :  { %4021 = vmatpush1.msra.mxu0 %v3871_v54  ;;  %3950 = vmatpush1.msra.mxu1 %v3869_v55  ;;  %v3828_v54 = vld [vmem:[#allocation8 + $0x58] sm:$0xff]  ;;  %v3826_v55 = vld [vmem:[#allocation8 + $0x48] sm:$0xff] }
 0xaaa   :  { %4022 = vmatprep.subr.mxu0 %v3868_v56  ;;  %3951 = vmatprep.subr.mxu1 %v3866_v57  ;;  %v3827_v56 = vld [vmem:[#allocation8 + $0x50] sm:$0xff]  ;;  %v3825_v57 = vld [vmem:[#allocation8 + $0x40] sm:$0xff] }
 0xaab   :  { %4023 = vmatpush1.msra.mxu0 %v3867_v24  ;;  %3952 = vmatpush1.msra.mxu1 %v3865_v34  ;;  %v3824_v24 = vld [vmem:[#allocation8 + $0x38] sm:$0xff]  ;;  %v3822_v34 = vld [vmem:[#allocation8 + $0x28] sm:$0xff] }
 0xaac   :  { %4024 = vmatprep.subr.mxu0 %v3864_v60  ;;  %3953 = vmatprep.subr.mxu1 %v3862_v61  ;;  %v3823_v60 = vld [vmem:[#allocation8 + $0x30] sm:$0xff]  ;;  %v3821_v61 = vld [vmem:[#allocation8 + $0x20] sm:$0xff] }
 0xaad   :  { %4025 = vmatpush1.msra.mxu0 %v3863_v3  ;;  %3954 = vmatpush1.msra.mxu1 %v3861_v5  ;;  %v3820_v3 = vld [vmem:[#allocation8 + $0x18] sm:$0xff]  ;;  %v3818_v5 = vld [vmem:[#allocation8 + $0x8] sm:$0xff] }
 0xaae   :  { %4026 = vmatprep.subr.mxu0 %v3860_v16  ;;  %3955 = vmatprep.subr.mxu1 %v3858_v7  ;;  %v3819_v16 = vld [vmem:[#allocation8 + $0x10] sm:$0xff]  ;;  %v3817_v7 = vld [vmem:[#allocation8] sm:$0xff] }
 0xaaf   :  { %4027 = vmatpush1.msra.mxu0 %v3859_v8  ;;  %3956 = vmatpush1.msra.mxu1 %v3857_v40  ;;  %v3944_v8 = vld [vmem:[#allocation8 + $0x3f8] sm:$0xff]  ;;  %v3942_v40 = vld [vmem:[#allocation8 + $0x3e8] sm:$0xff] }
 0xab0   :  { %4028 = vmatprep.subr.mxu0 %v3856_v1  ;;  %3957 = vmatprep.subr.mxu1 %v3854_v10  ;;  %v3943_v1 = vld [vmem:[#allocation8 + $0x3f0] sm:$0xff]  ;;  %v3941_v10 = vld [vmem:[#allocation8 + $0x3e0] sm:$0xff] }
 0xab1   :  { %4029 = vmatpush1.msra.mxu0 %v3855_v4  ;;  %3958 = vmatpush1.msra.mxu1 %v3853_v31  ;;  %v3940_v4 = vld [vmem:[#allocation8 + $0x3d8] sm:$0xff]  ;;  %v3938_v31 = vld [vmem:[#allocation8 + $0x3c8] sm:$0xff] }
 0xab2   :  { %4030 = vmatprep.subr.mxu0 %v3852_v11  ;;  %3959 = vmatprep.subr.mxu1 %v3850_v12  ;;  %v3939_v11 = vld [vmem:[#allocation8 + $0x3d0] sm:$0xff]  ;;  %v3937_v12 = vld [vmem:[#allocation8 + $0x3c0] sm:$0xff] }
 0xab3   :  { %4031 = vmatpush1.msra.mxu0 %v3851_v17  ;;  %3960 = vmatpush1.msra.mxu1 %v3849_v9  ;;  %v3936_v17 = vld [vmem:[#allocation8 + $0x3b8] sm:$0xff]  ;;  %v3934_v9 = vld [vmem:[#allocation8 + $0x3a8] sm:$0xff] }
 0xab4   :  { %4032 = vmatprep.subr.mxu0 %v3848_v23  ;;  %3961 = vmatprep.subr.mxu1 %v3846_v30  ;;  %v3935_v23 = vld [vmem:[#allocation8 + $0x3b0] sm:$0xff]  ;;  %v3933_v30 = vld [vmem:[#allocation8 + $0x3a0] sm:$0xff] }
 0xab5   :  { %4033 = vmatpush1.msra.mxu0 %v3847_v32  ;;  %3962 = vmatpush1.msra.mxu1 %v3845_v33  ;;  %v3932_v32 = vld [vmem:[#allocation8 + $0x398] sm:$0xff]  ;;  %v3930_v33 = vld [vmem:[#allocation8 + $0x388] sm:$0xff] }
 0xab6   :  { %4034 = vmatprep.subr.mxu0 %v3844_v35  ;;  %3963 = vmatprep.subr.mxu1 %v3842_v36  ;;  %v3931_v35 = vld [vmem:[#allocation8 + $0x390] sm:$0xff]  ;;  %v3929_v36 = vld [vmem:[#allocation8 + $0x380] sm:$0xff] }
 0xab7   :  { %4035 = vmatpush1.msra.mxu0 %v3843_v15  ;;  %3964 = vmatpush1.msra.mxu1 %v3841_v38  ;;  %v3928_v15 = vld [vmem:[#allocation8 + $0x378] sm:$0xff]  ;;  %v3926_v38 = vld [vmem:[#allocation8 + $0x368] sm:$0xff] }
 0xab8   :  { %4036 = vmatprep.subr.mxu0 %v3840_v2  ;;  %3965 = vmatprep.subr.mxu1 %v3838_v43  ;;  %v3927_v2 = vld [vmem:[#allocation8 + $0x370] sm:$0xff]  ;;  %v3925_v43 = vld [vmem:[#allocation8 + $0x360] sm:$0xff] }
 0xab9   :  { %4037 = vmatpush1.msra.mxu0 %v3839_v44  ;;  %3966 = vmatpush1.msra.mxu1 %v3837_v47  ;;  %v3924_v44 = vld [vmem:[#allocation8 + $0x358] sm:$0xff]  ;;  %v3922_v47 = vld [vmem:[#allocation8 + $0x348] sm:$0xff] }
 0xaba   :  { %4038 = vmatprep.subr.mxu0 %v3836_v37  ;;  %3967 = vmatprep.subr.mxu1 %v3834_v6  ;;  %v3923_v37 = vld [vmem:[#allocation8 + $0x350] sm:$0xff]  ;;  %v3921_v6 = vld [vmem:[#allocation8 + $0x340] sm:$0xff] }
 0xabb   :  { %4039 = vmatpush1.msra.mxu0 %v3835_v50  ;;  %3968 = vmatpush1.msra.mxu1 %v3833_v13  ;;  %v3920_v50 = vld [vmem:[#allocation8 + $0x338] sm:$0xff]  ;;  %v3918_v13 = vld [vmem:[#allocation8 + $0x328] sm:$0xff] }
 0xabc   :  { %4040 = vmatprep.subr.mxu0 %v3832_v22  ;;  %3969 = vmatprep.subr.mxu1 %v3830_v14  ;;  %v3919_v22 = vld [vmem:[#allocation8 + $0x330] sm:$0xff]  ;;  %v3917_v14 = vld [vmem:[#allocation8 + $0x320] sm:$0xff] }
 0xabd   :  { %4041 = vmatpush1.msra.mxu0 %v3831_v29  ;;  %3970 = vmatpush1.msra.mxu1 %v3829_v63  ;;  %v3916_v29 = vld [vmem:[#allocation8 + $0x318] sm:$0xff]  ;;  %v3914_v63 = vld [vmem:[#allocation8 + $0x308] sm:$0xff] }
 0xabe   :  { %4042 = vmatprep.subr.mxu0 %v3828_v54  ;;  %3971 = vmatprep.subr.mxu1 %v3826_v55  ;;  %v3915_v54 = vld [vmem:[#allocation8 + $0x310] sm:$0xff]  ;;  %v3913_v55 = vld [vmem:[#allocation8 + $0x300] sm:$0xff] }
 0xabf   :  { %4043 = vmatpush1.msra.mxu0 %v3827_v56  ;;  %3972 = vmatpush1.msra.mxu1 %v3825_v57  ;;  %v3912_v56 = vld [vmem:[#allocation8 + $0x2f8] sm:$0xff]  ;;  %v3910_v57 = vld [vmem:[#allocation8 + $0x2e8] sm:$0xff] }
 0xac0   :  { %4044 = vmatprep.subr.mxu0 %v3824_v24  ;;  %3973 = vmatprep.subr.mxu1 %v3822_v34  ;;  %v3911_v24 = vld [vmem:[#allocation8 + $0x2f0] sm:$0xff]  ;;  %v3909_v34 = vld [vmem:[#allocation8 + $0x2e0] sm:$0xff] }
 0xac1   :  { %4045 = vmatpush1.msra.mxu0 %v3823_v60  ;;  %3974 = vmatpush1.msra.mxu1 %v3821_v61  ;;  %v3908_v60 = vld [vmem:[#allocation8 + $0x2d8] sm:$0xff]  ;;  %v3906_v61 = vld [vmem:[#allocation8 + $0x2c8] sm:$0xff] }
 0xac2   :  { %4046 = vmatprep.subr.mxu0 %v3820_v3  ;;  %3975 = vmatprep.subr.mxu1 %v3818_v5  ;;  %v3907_v3 = vld [vmem:[#allocation8 + $0x2d0] sm:$0xff]  ;;  %v3905_v5 = vld [vmem:[#allocation8 + $0x2c0] sm:$0xff] }
 0xac3   :  { %4047 = vmatpush1.msra.mxu0 %v3819_v16  ;;  %3976 = vmatpush1.msra.mxu1 %v3817_v7  ;;  %v3904_v16 = vld [vmem:[#allocation8 + $0x2b8] sm:$0xff]  ;;  %v3902_v7 = vld [vmem:[#allocation8 + $0x2a8] sm:$0xff] }
 0xac4   :  { %4048 = vmatprep.subr.mxu0 %v3944_v8  ;;  %3977 = vmatprep.subr.mxu1 %v3942_v40  ;;  %v3903_v8 = vld [vmem:[#allocation8 + $0x2b0] sm:$0xff]  ;;  %v3901_v40 = vld [vmem:[#allocation8 + $0x2a0] sm:$0xff] }
 0xac5   :  { %4049 = vmatpush2.msra.mxu0 %v3943_v1  ;;  %3978 = vmatpush2.msra.mxu1 %v3941_v10  ;;  %v3900_v1 = vld [vmem:[#allocation8 + $0x298] sm:$0xff]  ;;  %v3898_v10 = vld [vmem:[#allocation8 + $0x288] sm:$0xff] }
 0xac6   :  { %4050 = vmatprep.subr.mxu0 %v3940_v4  ;;  %3979 = vmatprep.subr.mxu1 %v3938_v31  ;;  %v3899_v4 = vld [vmem:[#allocation8 + $0x290] sm:$0xff]  ;;  %v3897_v31 = vld [vmem:[#allocation8 + $0x280] sm:$0xff] }
 0xac7   :  { %4051 = vmatpush2.msra.mxu0 %v3939_v11  ;;  %3980 = vmatpush2.msra.mxu1 %v3937_v12  ;;  %v3896_v11 = vld [vmem:[#allocation8 + $0x278] sm:$0xff]  ;;  %v3894_v12 = vld [vmem:[#allocation8 + $0x268] sm:$0xff] }
 0xac8   :  { %4052 = vmatprep.subr.mxu0 %v3936_v17  ;;  %3981 = vmatprep.subr.mxu1 %v3934_v9  ;;  %v3895_v17 = vld [vmem:[#allocation8 + $0x270] sm:$0xff]  ;;  %v3893_v9 = vld [vmem:[#allocation8 + $0x260] sm:$0xff] }
 0xac9   :  { %4053 = vmatpush2.msra.mxu0 %v3935_v23  ;;  %3982 = vmatpush2.msra.mxu1 %v3933_v30  ;;  %v3892_v23 = vld [vmem:[#allocation8 + $0x258] sm:$0xff]  ;;  %v3890_v30 = vld [vmem:[#allocation8 + $0x248] sm:$0xff] }
 0xaca   :  { %4054 = vmatprep.subr.mxu0 %v3932_v32  ;;  %3983 = vmatprep.subr.mxu1 %v3930_v33  ;;  %v3891_v32 = vld [vmem:[#allocation8 + $0x250] sm:$0xff]  ;;  %v3889_v33 = vld [vmem:[#allocation8 + $0x240] sm:$0xff] }
 0xacb   :  { %4055 = vmatpush2.msra.mxu0 %v3931_v35  ;;  %3984 = vmatpush2.msra.mxu1 %v3929_v36  ;;  %v3888_v35 = vld [vmem:[#allocation8 + $0x238] sm:$0xff]  ;;  %v3886_v36 = vld [vmem:[#allocation8 + $0x228] sm:$0xff] }
 0xacc   :  { %4056 = vmatprep.subr.mxu0 %v3928_v15  ;;  %3985 = vmatprep.subr.mxu1 %v3926_v38  ;;  %v3887_v15 = vld [vmem:[#allocation8 + $0x230] sm:$0xff]  ;;  %v3885_v38 = vld [vmem:[#allocation8 + $0x220] sm:$0xff] }
 0xacd   :  { %4057 = vmatpush2.msra.mxu0 %v3927_v2  ;;  %3986 = vmatpush2.msra.mxu1 %v3925_v43  ;;  %v3884_v2 = vld [vmem:[#allocation8 + $0x218] sm:$0xff]  ;;  %v3882_v43 = vld [vmem:[#allocation8 + $0x208] sm:$0xff] }
 0xace   :  { %4058 = vmatprep.subr.mxu0 %v3924_v44  ;;  %3987 = vmatprep.subr.mxu1 %v3922_v47  ;;  %v3883_v44 = vld [vmem:[#allocation8 + $0x210] sm:$0xff]  ;;  %v3881_v47 = vld [vmem:[#allocation8 + $0x200] sm:$0xff] }
 0xacf   :  { %4059 = vmatpush2.msra.mxu0 %v3923_v37  ;;  %3988 = vmatpush2.msra.mxu1 %v3921_v6  ;;  %v4263_v37 = vld [vmem:[#allocation3 + $0x1e8] sm:$0xff] }
 0xad0   :  { %4060 = vmatprep.subr.mxu0 %v3920_v50  ;;  %3989 = vmatprep.subr.mxu1 %v3918_v13 }
 0xad1   :  { %4061 = vmatpush2.msra.mxu0 %v3919_v22  ;;  %3990 = vmatpush2.msra.mxu1 %v3917_v14 }
 0xad2   :  { %4062 = vmatprep.subr.mxu0 %v3916_v29  ;;  %3991 = vmatprep.subr.mxu1 %v3914_v63 }
 0xad3   :  { %4063 = vmatpush2.msra.mxu0 %v3915_v54  ;;  %3992 = vmatpush2.msra.mxu1 %v3913_v55 }
 0xad4   :  { %4064 = vmatprep.subr.mxu0 %v3912_v56  ;;  %3993 = vmatprep.subr.mxu1 %v3910_v57 }
 0xad5   :  { %4065 = vmatpush2.msra.mxu0 %v3911_v24  ;;  %3994 = vmatpush2.msra.mxu1 %v3909_v34 }
 0xad6   :  { %4066 = vmatprep.subr.mxu0 %v3908_v60  ;;  %3995 = vmatprep.subr.mxu1 %v3906_v61 }
 0xad7   :  { %4067 = vmatpush2.msra.mxu0 %v3907_v3  ;;  %3996 = vmatpush2.msra.mxu1 %v3905_v5 }
 0xad8   :  { %4068 = vmatprep.subr.mxu0 %v3904_v16  ;;  %3997 = vmatprep.subr.mxu1 %v3902_v7 }
 0xad9   :  { %4069 = vmatpush2.msra.mxu0 %v3903_v8  ;;  %3998 = vmatpush2.msra.mxu1 %v3901_v40 }
 0xada   :  { %4070 = vmatprep.subr.mxu0 %v3900_v1  ;;  %3999 = vmatprep.subr.mxu1 %v3898_v10 }
 0xadb   :  { %4071 = vmatpush2.msra.mxu0 %v3899_v4  ;;  %4000 = vmatpush2.msra.mxu1 %v3897_v31 }
 0xadc   :  { %4072 = vmatprep.subr.mxu0 %v3896_v11  ;;  %4001 = vmatprep.subr.mxu1 %v3894_v12 }
 0xadd   :  { %4073 = vmatpush2.msra.mxu0 %v3895_v17  ;;  %4002 = vmatpush2.msra.mxu1 %v3893_v9  ;;  %v4262_v17 = vld [vmem:[#allocation3 + $0x1e0] sm:$0xff]  ;;  %v4259_v9 = vld [vmem:[#allocation3 + $0x1c8] sm:$0xff] }
 0xade   :  { %4074 = vmatprep.subr.mxu0 %v3892_v23  ;;  %4003 = vmatprep.subr.mxu1 %v3890_v30  ;;  %v4258_v23 = vld [vmem:[#allocation3 + $0x1c0] sm:$0xff]  ;;  %v4255_v30 = vld [vmem:[#allocation3 + $0x1a8] sm:$0xff] }
 0xadf   :  { %4075 = vmatpush2.msra.mxu0 %v3891_v32  ;;  %4004 = vmatpush2.msra.mxu1 %v3889_v33  ;;  %v4251_v32 = vld [vmem:[#allocation3 + $0x188] sm:$0xff]  ;;  %v4250_v33 = vld [vmem:[#allocation3 + $0x180] sm:$0xff] }
 0xae0   :  { %4076 = vmatprep.subr.mxu0 %v3888_v35  ;;  %4005 = vmatprep.subr.mxu1 %v3886_v36  ;;  %v4247_v35 = vld [vmem:[#allocation3 + $0x168] sm:$0xff]  ;;  %v4246_v36 = vld [vmem:[#allocation3 + $0x160] sm:$0xff] }
 0xae1   :  { %4077 = vmatpush2.msra.mxu0 %v3887_v15  ;;  %4006 = vmatpush2.msra.mxu1 %v3885_v38  ;;  %v4243_v15 = vld [vmem:[#allocation3 + $0x148] sm:$0xff]  ;;  %v4242_v38 = vld [vmem:[#allocation3 + $0x140] sm:$0xff] }
 0xae2   :  { %4078 = vmatprep.subr.mxu0 %v3884_v2  ;;  %4007 = vmatprep.subr.mxu1 %v3882_v43  ;;  %v4239_v2 = vld [vmem:[#allocation3 + $0x128] sm:$0xff]  ;;  %v4238_v43 = vld [vmem:[#allocation3 + $0x120] sm:$0xff] }
 0xae3   :  { %4079 = vmatpush2.msra.mxu0 %v3883_v44  ;;  %4008 = vmatpush2.msra.mxu1 %v3881_v47  ;;  %v4235_v44 = vld [vmem:[#allocation3 + $0x108] sm:$0xff]  ;;  %v4234_v47 = vld [vmem:[#allocation3 + $0x100] sm:$0xff] }
 0xae4   :  { %4266 = vmatprep.subr.mxu0 %v4263_v37  ;;  %8237 = vmatprep.subr.mxu1 %v8870_v0  ;;  %v4231_v37 = vld [vmem:[#allocation3 + $0xe8] sm:$0xff] }
 0xb63   :  { %v3716_v6 = vpop.f32.mrf.mxu1  ;;  %v3787_v63 = vpop.f32.mrf.mxu0 }
 0xb64   :  { %v3717_v50 = vadd.f32 %v3716_v6, %v9029_v51  ;;  %v3788_v54 = vadd.f32 %v3787_v63, %v9037_v59  ;;  %v4230_v6 = vld [vmem:[#allocation3 + $0xe0] sm:$0xff] }
 0xb65   :  { %v3718_v13 = vpop.f32.mrf.mxu1  ;;  %v3789_v55 = vpop.f32.mrf.mxu0  ;;  %v4218_v63 = vld [vmem:[#allocation3 + $0x80] sm:$0xff] }
 0xb66   :  { %v7962_v22 = vmul.f32 -1.442695, %v3717_v50  ;;  %v3719_v14 = vadd.f32 %v3718_v13, %v9032_v52  ;;  %v7964_v56 = vmul.f32 -1.442695, %v3788_v54  ;;  %v3790_v24 = vadd.f32 %v3789_v55, %v9041_v62  ;;  %v4227_v50 = vld [vmem:[#allocation3 + $0xc8] sm:$0xff]  ;;  %v4226_v13 = vld [vmem:[#allocation3 + $0xc0] sm:$0xff] }
 0xb67   :  { %v4215_v54 = vld [vmem:[#allocation3 + $0x68] sm:$0xff]  ;;  %v4214_v55 = vld [vmem:[#allocation3 + $0x60] sm:$0xff] }
 0xb68   :  { %8556 = vpow2.f32 %v7962_v22  ;;  %v7963_v29 = vmul.f32 -1.442695, %v3719_v14  ;;  %v4223_v22 = vld [vmem:[#allocation3 + $0xa8] sm:$0xff]  ;;  %v4222_v14 = vld [vmem:[#allocation3 + $0xa0] sm:$0xff] }
 0xb6a   :  { %8558 = vpow2.f32 %v7963_v29  ;;  %v4219_v29 = vld [vmem:[#allocation3 + $0x88] sm:$0xff] }
 0xb6b   :  { %8560 = vpow2.f32 %v7964_v56  ;;  %v4211_v56 = vld [vmem:[#allocation3 + $0x48] sm:$0xff] }
 0xb75   :  { %v8557_v57 = vpop.eup %8556 }
 0xb76   :  { %v3801_v34 = vadd.f32 1.0, %v8557_v57  ;;  %v4210_v57 = vld [vmem:[#allocation3 + $0x40] sm:$0xff] }
 0xb77   :  { %v8559_v60 = vpop.eup %8558 }
 0xb78   :  { %8562 = vrcp.f32 %v3801_v34  ;;  %v3802_v61 = vadd.f32 1.0, %v8559_v60  ;;  %v8561_v3 = vpop.eup %8560  ;;  %v4206_v34 = vld [vmem:[#allocation3 + $0x20] sm:$0xff]  ;;  %v4203_v60 = vld [vmem:[#allocation3 + $0x8] sm:$0xff] }
 0xb79   :  { %8564 = vtanh.f32 %v3790_v24  ;;  %v3803_v8 = vadd.f32 1.0, %v8561_v3  ;;  %v4207_v24 = vld [vmem:[#allocation3 + $0x28] sm:$0xff]  ;;  %v4127_v3 = vld [vmem:[#allocation9 + $0x78] sm:$0xff] }
 0xb7a   :  { %8566 = vrcp.f32 %v3802_v61  ;;  %v4202_v61 = vld [vmem:[#allocation3] sm:$0xff] }
 0xb7b   :  { %8568 = vrcp.f32 %v3803_v8  ;;  %v4123_v8 = vld [vmem:[#allocation9 + $0x58] sm:$0xff] }
 0xb85   :  { %v8563_v5 = vpop.eup %8562 }
 0xb86   :  { %v8565_v16 = vpop.eup %8564 }
 0xb87   :  { %v8567_v7 = vpop.eup %8566  ;;  %v3812_v1 = vmul.f32 %v8565_v16, %v8563_v5  ;;  %v4126_v5 = vld [vmem:[#allocation9 + $0x70] sm:$0xff]  ;;  %v4125_v16 = vld [vmem:[#allocation9 + $0x68] sm:$0xff] }
 0xb88   :  { %v3811_v40 = vmul.f32 %v8567_v7, %v9210_v58  ;;  %v8569_v4 = vpop.eup %8568  ;;  %v4254_v58 = vld [vmem:[#allocation3 + $0x1a0] sm:$0xff] }
 0xb89   :  { %v4124_v7 = vld [vmem:[#allocation9 + $0x60] sm:$0xff] }
 0xb8a   :  { %v9280_v10 = vadd.f32 %v3812_v1, %v3811_v40  ;;  %v4122_v40 = vld [vmem:[#allocation9 + $0x50] sm:$0xff]  ;;  %v4121_v1 = vld [vmem:[#allocation9 + $0x48] sm:$0xff] }
 0xb8c   :  { %8570 = vtanh.f32 %v9280_v10 }
 0xb99   :  { %v8571_v31 = vpop.eup %8570 }
 0xb9a   :  { %v9283_v11 = vmul.f32 %v8571_v31, %v8569_v4  ;;  %v4120_v4 = vld [vmem:[#allocation9 + $0x40] sm:$0xff]  ;;  %v4119_v31 = vld [vmem:[#allocation9 + $0x38] sm:$0xff] }
 0xb9c   :  { %v3816_v12 = vmax.f32 %v9283_v11, 0.0 }
 0xb9e   :  { %4010 = vmatmul.mubr.f32.vlgmr.msra.gmra.mxu1 %v3816_v12  ;;  %4081 = vmatmul.mubr.f32.vlgmr.msra.gmra.mxu0 %v3816_v12  ;;  %v4118_v12 = vld [vmem:[#allocation9 + $0x30] sm:$0xff] }
 0xb9f   :  { %4267 = vmatpush1.msra.mxu0 %v4262_v17  ;;  %4330 = vmatprep.mubr.f32.mxu0 %v8870_v0  ;;  %v4117_v17 = vld [vmem:[#allocation9 + $0x28] sm:$0xff] }
 0xba0   :  { %4268 = vmatprep.subr.mxu0 %v4259_v9  ;;  %8269 = vmatprep.mubr.msk.f32.mxu1 %vm8873_vm0, %v8870_v0  ;;  %v4116_v9 = vld [vmem:[#allocation9 + $0x20] sm:$0xff] }
 0xba1   :  { %4269 = vmatpush1.msra.mxu0 %v4258_v23  ;;  %8238 = vmatpush3.msra.mxu1 %v4127_v3  ;;  %v4115_v23 = vld [vmem:[#allocation9 + $0x18] sm:$0xff] }
 0xba2   :  { %4270 = vmatprep.subr.mxu0 %v4255_v30  ;;  %8239 = vmatprep.subr.mxu1 %v8870_v0  ;;  %v4114_v30 = vld [vmem:[#allocation9 + $0x10] sm:$0xff] }
 0xba3   :  { %4271 = vmatpush1.msra.mxu0 %v4254_v58  ;;  %8240 = vmatpush3.msra.mxu1 %v4126_v5  ;;  %v4113_v58 = vld [vmem:[#allocation9 + $0x8] sm:$0xff] }
 0xba4   :  { %4272 = vmatprep.subr.mxu0 %v4251_v32  ;;  %8241 = vmatprep.subr.mxu1 %v8870_v0  ;;  %v4112_v32 = vld [vmem:[#allocation9] sm:$0xff] }
 0xba5   :  { %4273 = vmatpush1.msra.mxu0 %v4250_v33  ;;  %8242 = vmatpush3.msra.mxu1 %v4125_v16  ;;  %v4265_v33 = vld [vmem:[#allocation3 + $0x1f8] sm:$0xff] }
 0xba6   :  { %4274 = vmatprep.subr.mxu0 %v4247_v35  ;;  %8243 = vmatprep.subr.mxu1 %v8870_v0 }
 0xba7   :  { %4275 = vmatpush1.msra.mxu0 %v4246_v36  ;;  %8244 = vmatpush3.msra.mxu1 %v4124_v7  ;;  %v4264_v7 = vld [vmem:[#allocation3 + $0x1f0] sm:$0xff] }
 0xba8   :  { %4276 = vmatprep.subr.mxu0 %v4243_v15  ;;  %8245 = vmatprep.subr.mxu1 %v8870_v0 }
 0xba9   :  { %4277 = vmatpush1.msra.mxu0 %v4242_v38  ;;  %8246 = vmatpush3.msra.mxu1 %v4123_v8  ;;  %v4261_v8 = vld [vmem:[#allocation3 + $0x1d8] sm:$0xff] }
 0xbaa   :  { %4278 = vmatprep.subr.mxu0 %v4239_v2  ;;  %8247 = vmatprep.subr.mxu1 %v8870_v0 }
 0xbab   :  { %4279 = vmatpush1.msra.mxu0 %v4238_v43  ;;  %8248 = vmatpush3.msra.mxu1 %v4122_v40  ;;  %v4260_v40 = vld [vmem:[#allocation3 + $0x1d0] sm:$0xff] }
 0xbac   :  { %4280 = vmatprep.subr.mxu0 %v4235_v44  ;;  %8249 = vmatprep.subr.mxu1 %v8870_v0 }
 0xbad   :  { %4281 = vmatpush1.msra.mxu0 %v4234_v47  ;;  %8250 = vmatpush3.msra.mxu1 %v4121_v1  ;;  %v4257_v1 = vld [vmem:[#allocation3 + $0x1b8] sm:$0xff] }
 0xbae   :  { %4282 = vmatprep.subr.mxu0 %v4231_v37  ;;  %8251 = vmatprep.subr.mxu1 %v8870_v0 }
 0xbaf   :  { %4283 = vmatpush1.msra.mxu0 %v4230_v6  ;;  %8252 = vmatpush3.msra.mxu1 %v4120_v4  ;;  %v4253_v4 = vld [vmem:[#allocation3 + $0x198] sm:$0xff] }
 0xbb0   :  { %4284 = vmatprep.subr.mxu0 %v4227_v50  ;;  %8253 = vmatprep.subr.mxu1 %v8870_v0 }
 0xbb1   :  { %4285 = vmatpush1.msra.mxu0 %v4226_v13  ;;  %8254 = vmatpush3.msra.mxu1 %v4119_v31  ;;  %v4252_v31 = vld [vmem:[#allocation3 + $0x190] sm:$0xff] }
 0xbb2   :  { %4286 = vmatprep.subr.mxu0 %v4223_v22  ;;  %8255 = vmatprep.subr.mxu1 %v8870_v0 }
 0xbb3   :  { %4287 = vmatpush1.msra.mxu0 %v4222_v14  ;;  %8256 = vmatpush3.msra.mxu1 %v4118_v12  ;;  %v4249_v12 = vld [vmem:[#allocation3 + $0x178] sm:$0xff] }
 0xbb4   :  { %4288 = vmatprep.subr.mxu0 %v4219_v29  ;;  %8257 = vmatprep.subr.mxu1 %v8870_v0 }
 0xbb5   :  { %4289 = vmatpush1.msra.mxu0 %v4218_v63  ;;  %8258 = vmatpush3.msra.mxu1 %v4117_v17  ;;  %v4248_v17 = vld [vmem:[#allocation3 + $0x170] sm:$0xff] }
 0xbb6   :  { %4290 = vmatprep.subr.mxu0 %v4215_v54  ;;  %8259 = vmatprep.subr.mxu1 %v8870_v0 }
 0xbb7   :  { %4291 = vmatpush1.msra.mxu0 %v4214_v55  ;;  %8260 = vmatpush3.msra.mxu1 %v4116_v9  ;;  %v4245_v9 = vld [vmem:[#allocation3 + $0x158] sm:$0xff] }
 0xbb8   :  { %4292 = vmatprep.subr.mxu0 %v4211_v56  ;;  %8261 = vmatprep.subr.mxu1 %v8870_v0 }
 0xbb9   :  { %4293 = vmatpush1.msra.mxu0 %v4210_v57  ;;  %8262 = vmatpush3.msra.mxu1 %v4115_v23  ;;  %v4244_v23 = vld [vmem:[#allocation3 + $0x150] sm:$0xff] }
 0xbba   :  { %4294 = vmatprep.subr.mxu0 %v4207_v24  ;;  %8263 = vmatprep.subr.mxu1 %v8870_v0 }
 0xbbb   :  { %4295 = vmatpush1.msra.mxu0 %v4206_v34  ;;  %8264 = vmatpush3.msra.mxu1 %v4114_v30  ;;  %v4241_v30 = vld [vmem:[#allocation3 + $0x138] sm:$0xff] }
 0xbbc   :  { %4296 = vmatprep.subr.mxu0 %v4203_v60  ;;  %8265 = vmatprep.subr.mxu1 %v8870_v0 }
 0xbbd   :  { %4297 = vmatpush1.msra.mxu0 %v4202_v61  ;;  %8266 = vmatpush3.msra.mxu1 %v4113_v58  ;;  %v4240_v58 = vld [vmem:[#allocation3 + $0x130] sm:$0xff] }
 0xbbe   :  { %4331 = vmatmul.mubr.f32.vlgmr.msra.gmra.mxu0 %v9269_v46  ;;  %8267 = vmatprep.subr.mxu1 %v8870_v0 }
 0xbbf   :  { %4644 = vmatprep.mubr.f32.mxu0 %v9283_v11  ;;  %8268 = vmatpush3.msra.mxu1 %v4112_v32  ;;  %v4237_v32 = vld [vmem:[#allocation3 + $0x118] sm:$0xff] }
 0xbc0   :  { %4337 = vmatprep.subr.mxu1 %v4265_v33  ;;  %v4236_v33 = vld [vmem:[#allocation3 + $0x110] sm:$0xff] }
 0xc5e   :  { %v4011_v35 = vpop.f32.mrf.mxu1  ;;  %v4082_v44 = vpop.f32.mrf.mxu0 }
 0xc5f   :  { %v4012_v36 = vadd.f32 %v4011_v35, %v9074_v41  ;;  %v4083_v47 = vadd.f32 %v4082_v44, %v9082_v49  ;;  %v4233_v35 = vld [vmem:[#allocation3 + $0xf8] sm:$0xff] }
 0xc60   :  { %v4013_v15 = vpop.f32.mrf.mxu1  ;;  %v4084_v37 = vpop.f32.mrf.mxu0  ;;  %v4221_v44 = vld [vmem:[#allocation3 + $0x98] sm:$0xff] }
 0xc61   :  { %v7965_v38 = vmul.f32 -1.442695, %v4012_v36  ;;  %v4014_v2 = vadd.f32 %v4013_v15, %v9077_v42  ;;  %v7967_v6 = vmul.f32 -1.442695, %v4083_v47  ;;  %v4085_v13 = vadd.f32 %v4084_v37, %v9086_v53  ;;  %v4232_v36 = vld [vmem:[#allocation3 + $0xf0] sm:$0xff]  ;;  %v4229_v15 = vld [vmem:[#allocation3 + $0xd8] sm:$0xff] }
 0xc62   :  { %v4220_v47 = vld [vmem:[#allocation3 + $0x90] sm:$0xff]  ;;  %v4217_v37 = vld [vmem:[#allocation3 + $0x78] sm:$0xff] }
 0xc63   :  { %8572 = vpow2.f32 %v7965_v38  ;;  %v7966_v43 = vmul.f32 -1.442695, %v4014_v2  ;;  %v4228_v38 = vld [vmem:[#allocation3 + $0xd0] sm:$0xff]  ;;  %v4225_v2 = vld [vmem:[#allocation3 + $0xb8] sm:$0xff] }
 0xc65   :  { %8574 = vpow2.f32 %v7966_v43  ;;  %v4224_v43 = vld [vmem:[#allocation3 + $0xb0] sm:$0xff] }
 0xc66   :  { %8576 = vpow2.f32 %v7967_v6  ;;  %v4216_v6 = vld [vmem:[#allocation3 + $0x70] sm:$0xff] }
 0xc70   :  { %v8573_v50 = vpop.eup %8572 }
 0xc71   :  { %v4096_v22 = vadd.f32 1.0, %v8573_v50  ;;  %v4213_v50 = vld [vmem:[#allocation3 + $0x58] sm:$0xff] }
 0xc72   :  { %v8575_v14 = vpop.eup %8574 }
 0xc73   :  { %8578 = vrcp.f32 %v4096_v22  ;;  %v4097_v29 = vadd.f32 1.0, %v8575_v14  ;;  %v8577_v63 = vpop.eup %8576  ;;  %v4209_v22 = vld [vmem:[#allocation3 + $0x38] sm:$0xff]  ;;  %v4208_v14 = vld [vmem:[#allocation3 + $0x30] sm:$0xff] }
 0xc74   :  { %8580 = vtanh.f32 %v4085_v13  ;;  %v4098_v57 = vadd.f32 1.0, %v8577_v63  ;;  %v4212_v13 = vld [vmem:[#allocation3 + $0x50] sm:$0xff] }
 0xc75   :  { %8582 = vrcp.f32 %v4097_v29  ;;  %v4205_v29 = vld [vmem:[#allocation3 + $0x18] sm:$0xff]  ;;  %v4204_v63 = vld [vmem:[#allocation3 + $0x10] sm:$0xff] }
 0xc76   :  { %8584 = vrcp.f32 %v4098_v57  ;;  %v4514_v57 = vld [vmem:[#allocation6 + $0x1f0] sm:$0xff] }
 0xc80   :  { %v8579_v54 = vpop.eup %8578 }
 0xc81   :  { %v8581_v55 = vpop.eup %8580 }
 0xc82   :  { %v8583_v56 = vpop.eup %8582  ;;  %v4107_v34 = vmul.f32 %v8581_v55, %v8579_v54  ;;  %v4513_v54 = vld [vmem:[#allocation6 + $0x1e8] sm:$0xff]  ;;  %v4515_v55 = vld [vmem:[#allocation6 + $0x1f8] sm:$0xff] }
 0xc83   :  { %v4106_v24 = vmul.f32 %v8583_v56, %v9241_v48  ;;  %v8585_v61 = vpop.eup %8584  ;;  %v4256_v48 = vld [vmem:[#allocation3 + $0x1b0] sm:$0xff]  ;;  %4580 = vmatprep.subr.mxu0 %v4513_v54  ;;  %v4512_v56 = vld [vmem:[#allocation6 + $0x1e0] sm:$0xff] }
 0xc84   :  { %4581 = vmatpush1.msra.mxu0 %v4512_v56  ;;  %v4472_v54 = vld [vmem:[#allocation6 + $0xa0] sm:$0xff]  ;;  %v4469_v56 = vld [vmem:[#allocation6 + $0x88] sm:$0xff] }
 0xc85   :  { %v9311_v60 = vadd.f32 %v4107_v34, %v4106_v24  ;;  %v4509_v24 = vld [vmem:[#allocation6 + $0x1c8] sm:$0xff]  ;;  %v4511_v34 = vld [vmem:[#allocation6 + $0x1d8] sm:$0xff] }
 0xc86   :  { %4582 = vmatprep.subr.mxu0 %v4509_v24  ;;  %v4468_v24 = vld [vmem:[#allocation6 + $0x80] sm:$0xff] }
 0xc87   :  { %8586 = vtanh.f32 %v9311_v60 }
 0xc94   :  { %v8587_v3 = vpop.eup %8586 }
 0xc95   :  { %v9314_v5 = vmul.f32 %v8587_v3, %v8585_v61  ;;  %v4508_v61 = vld [vmem:[#allocation6 + $0x1c0] sm:$0xff]  ;;  %v4510_v3 = vld [vmem:[#allocation6 + $0x1d0] sm:$0xff] }
 0xc96   :  { %4583 = vmatpush1.msra.mxu0 %v4508_v61  ;;  %v4465_v61 = vld [vmem:[#allocation6 + $0x68] sm:$0xff] }
 0xc97   :  { %v4111_v16 = vmax.f32 %v9314_v5, 0.0 }
 0xc99   :  { %8270 = vmatmul.mubr.f32.vlgmr.msra.gmra.mxu1 %v4111_v16  ;;  %v4505_v16 = vld [vmem:[#allocation6 + $0x1a8] sm:$0xff] }
 0xc9a   :  { %4338 = vmatpush1.msra.mxu1 %v4264_v7  ;;  %4401 = vmatprep.mubr.f32.mxu1 %v8870_v0  ;;  %v4506_v7 = vld [vmem:[#allocation6 + $0x1b0] sm:$0xff] }
 0xc9b   :  { %4339 = vmatprep.subr.mxu1 %v4261_v8  ;;  %4584 = vmatprep.subr.mxu0 %v4505_v16  ;;  %v4501_v8 = vld [vmem:[#allocation6 + $0x188] sm:$0xff]  ;;  %v4464_v16 = vld [vmem:[#allocation6 + $0x60] sm:$0xff] }
 0xc9c   :  { %4340 = vmatpush1.msra.mxu1 %v4260_v40  ;;  %v4503_v40 = vld [vmem:[#allocation6 + $0x198] sm:$0xff] }
 0xc9d   :  { %4341 = vmatprep.subr.mxu1 %v4257_v1  ;;  %v4500_v1 = vld [vmem:[#allocation6 + $0x180] sm:$0xff] }
 0xc9e   :  { %4342 = vmatpush1.msra.mxu1 %v4256_v48  ;;  %v4502_v48 = vld [vmem:[#allocation6 + $0x190] sm:$0xff] }
 0xc9f   :  { %4343 = vmatprep.subr.mxu1 %v4253_v4  ;;  %v4497_v4 = vld [vmem:[#allocation6 + $0x168] sm:$0xff] }
 0xca0   :  { %4344 = vmatpush1.msra.mxu1 %v4252_v31  ;;  %v4499_v31 = vld [vmem:[#allocation6 + $0x178] sm:$0xff] }
 0xca1   :  { %4345 = vmatprep.subr.mxu1 %v4249_v12  ;;  %v4496_v12 = vld [vmem:[#allocation6 + $0x160] sm:$0xff] }
 0xca2   :  { %4346 = vmatpush1.msra.mxu1 %v4248_v17  ;;  %v4498_v17 = vld [vmem:[#allocation6 + $0x170] sm:$0xff] }
 0xca3   :  { %4347 = vmatprep.subr.mxu1 %v4245_v9  ;;  %v4493_v9 = vld [vmem:[#allocation6 + $0x148] sm:$0xff] }
 0xca4   :  { %4348 = vmatpush1.msra.mxu1 %v4244_v23  ;;  %v4495_v23 = vld [vmem:[#allocation6 + $0x158] sm:$0xff] }
 0xca5   :  { %4349 = vmatprep.subr.mxu1 %v4241_v30  ;;  %v4492_v30 = vld [vmem:[#allocation6 + $0x140] sm:$0xff] }
 0xca6   :  { %4350 = vmatpush1.msra.mxu1 %v4240_v58  ;;  %v4494_v58 = vld [vmem:[#allocation6 + $0x150] sm:$0xff] }
 0xca7   :  { %4351 = vmatprep.subr.mxu1 %v4237_v32  ;;  %v4489_v32 = vld [vmem:[#allocation6 + $0x128] sm:$0xff] }
 0xca8   :  { %4352 = vmatpush1.msra.mxu1 %v4236_v33  ;;  %v4491_v33 = vld [vmem:[#allocation6 + $0x138] sm:$0xff] }
 0xca9   :  { %4353 = vmatprep.subr.mxu1 %v4233_v35  ;;  %v4488_v35 = vld [vmem:[#allocation6 + $0x120] sm:$0xff] }
 0xcaa   :  { %4354 = vmatpush1.msra.mxu1 %v4232_v36  ;;  %v4490_v36 = vld [vmem:[#allocation6 + $0x130] sm:$0xff] }
 0xcab   :  { %4355 = vmatprep.subr.mxu1 %v4229_v15  ;;  %v4485_v15 = vld [vmem:[#allocation6 + $0x108] sm:$0xff] }
 0xcac   :  { %4356 = vmatpush1.msra.mxu1 %v4228_v38  ;;  %v4487_v38 = vld [vmem:[#allocation6 + $0x118] sm:$0xff] }
 0xcad   :  { %4357 = vmatprep.subr.mxu1 %v4225_v2  ;;  %v4484_v2 = vld [vmem:[#allocation6 + $0x100] sm:$0xff] }
 0xcae   :  { %4358 = vmatpush1.msra.mxu1 %v4224_v43  ;;  %v4486_v43 = vld [vmem:[#allocation6 + $0x110] sm:$0xff] }
 0xcaf   :  { %4359 = vmatprep.subr.mxu1 %v4221_v44  ;;  %v4481_v44 = vld [vmem:[#allocation6 + $0xe8] sm:$0xff] }
 0xcb0   :  { %4360 = vmatpush1.msra.mxu1 %v4220_v47  ;;  %v4483_v47 = vld [vmem:[#allocation6 + $0xf8] sm:$0xff] }
 0xcb1   :  { %4361 = vmatprep.subr.mxu1 %v4217_v37  ;;  %v4480_v37 = vld [vmem:[#allocation6 + $0xe0] sm:$0xff] }
 0xcb2   :  { %4362 = vmatpush1.msra.mxu1 %v4216_v6  ;;  %v4482_v6 = vld [vmem:[#allocation6 + $0xf0] sm:$0xff] }
 0xcb3   :  { %4363 = vmatprep.subr.mxu1 %v4213_v50  ;;  %v4477_v50 = vld [vmem:[#allocation6 + $0xc8] sm:$0xff] }
 0xcb4   :  { %4364 = vmatpush1.msra.mxu1 %v4212_v13  ;;  %v4479_v13 = vld [vmem:[#allocation6 + $0xd8] sm:$0xff] }
 0xcb5   :  { %4365 = vmatprep.subr.mxu1 %v4209_v22  ;;  %v4476_v22 = vld [vmem:[#allocation6 + $0xc0] sm:$0xff] }
 0xcb6   :  { %4366 = vmatpush1.msra.mxu1 %v4208_v14  ;;  %v4478_v14 = vld [vmem:[#allocation6 + $0xd0] sm:$0xff] }
 0xcb7   :  { %4367 = vmatprep.subr.mxu1 %v4205_v29  ;;  %v4473_v29 = vld [vmem:[#allocation6 + $0xa8] sm:$0xff] }
 0xcb8   :  { %4368 = vmatpush1.msra.mxu1 %v4204_v63  ;;  %v4475_v63 = vld [vmem:[#allocation6 + $0xb8] sm:$0xff] }
 0xcb9   :  { %4402 = vmatmul.mubr.f32.vlgmr.msra.gmra.mxu1 %v9269_v46  ;;  %4651 = vmatprep.subr.mxu1 %v4515_v55  ;;  %v4507_v46 = vld [vmem:[#allocation6 + $0x1b8] sm:$0xff]  ;;  %v4474_v55 = vld [vmem:[#allocation6 + $0xb0] sm:$0xff] }
 0xcba   :  { %4715 = vmatprep.mubr.f32.mxu1 %v9283_v11  ;;  %4652 = vmatpush1.msra.mxu1 %v4514_v57  ;;  %v4504_v11 = vld [vmem:[#allocation6 + $0x1a0] sm:$0xff]  ;;  %v4471_v57 = vld [vmem:[#allocation6 + $0x98] sm:$0xff] }
 0xcbb   :  { %4653 = vmatprep.subr.mxu1 %v4511_v34  ;;  %4585 = vmatpush1.msra.mxu0 %v4504_v11  ;;  %v4470_v34 = vld [vmem:[#allocation6 + $0x90] sm:$0xff]  ;;  %v4461_v11 = vld [vmem:[#allocation6 + $0x48] sm:$0xff] }
 0xcbc   :  { %4654 = vmatpush1.msra.mxu1 %v4510_v3  ;;  %4586 = vmatprep.subr.mxu0 %v4501_v8  ;;  %v4467_v3 = vld [vmem:[#allocation6 + $0x78] sm:$0xff]  ;;  %v4460_v8 = vld [vmem:[#allocation6 + $0x40] sm:$0xff] }
 0xcbd   :  { %4655 = vmatprep.subr.mxu1 %v4507_v46  ;;  %4587 = vmatpush1.msra.mxu0 %v4500_v1  ;;  %v4466_v46 = vld [vmem:[#allocation6 + $0x70] sm:$0xff]  ;;  %v4457_v1 = vld [vmem:[#allocation6 + $0x28] sm:$0xff] }
 0xcbe   :  { %4656 = vmatpush1.msra.mxu1 %v4506_v7  ;;  %4588 = vmatprep.subr.mxu0 %v4497_v4  ;;  %v4463_v7 = vld [vmem:[#allocation6 + $0x58] sm:$0xff]  ;;  %v4456_v4 = vld [vmem:[#allocation6 + $0x20] sm:$0xff] }
 0xcbf   :  { %4657 = vmatprep.subr.mxu1 %v4503_v40  ;;  %4589 = vmatpush1.msra.mxu0 %v4496_v12  ;;  %v4462_v40 = vld [vmem:[#allocation6 + $0x50] sm:$0xff]  ;;  %v4453_v12 = vld [vmem:[#allocation6 + $0x8] sm:$0xff] }
 0xcc0   :  { %4658 = vmatpush1.msra.mxu1 %v4502_v48  ;;  %4590 = vmatprep.subr.mxu0 %v4493_v9  ;;  %v4459_v48 = vld [vmem:[#allocation6 + $0x38] sm:$0xff]  ;;  %v4452_v9 = vld [vmem:[#allocation6] sm:$0xff] }
 0xcc1   :  { %4659 = vmatprep.subr.mxu1 %v4499_v31  ;;  %4591 = vmatpush1.msra.mxu0 %v4492_v30  ;;  %v4458_v31 = vld [vmem:[#allocation6 + $0x30] sm:$0xff]  ;;  %v4577_v30 = vld [vmem:[#allocation6 + $0x3e8] sm:$0xff] }
 0xcc2   :  { %4660 = vmatpush1.msra.mxu1 %v4498_v17  ;;  %4592 = vmatprep.subr.mxu0 %v4489_v32  ;;  %v4455_v17 = vld [vmem:[#allocation6 + $0x18] sm:$0xff]  ;;  %v4576_v32 = vld [vmem:[#allocation6 + $0x3e0] sm:$0xff] }
 0xcc3   :  { %4661 = vmatprep.subr.mxu1 %v4495_v23  ;;  %4593 = vmatpush1.msra.mxu0 %v4488_v35  ;;  %v4454_v23 = vld [vmem:[#allocation6 + $0x10] sm:$0xff]  ;;  %v4573_v35 = vld [vmem:[#allocation6 + $0x3c8] sm:$0xff] }
 0xcc4   :  { %4662 = vmatpush1.msra.mxu1 %v4494_v58  ;;  %4594 = vmatprep.subr.mxu0 %v4485_v15  ;;  %v4579_v58 = vld [vmem:[#allocation6 + $0x3f8] sm:$0xff]  ;;  %v4572_v15 = vld [vmem:[#allocation6 + $0x3c0] sm:$0xff] }
 0xcc5   :  { %4663 = vmatprep.subr.mxu1 %v4491_v33  ;;  %4595 = vmatpush1.msra.mxu0 %v4484_v2  ;;  %v4578_v33 = vld [vmem:[#allocation6 + $0x3f0] sm:$0xff]  ;;  %v4569_v2 = vld [vmem:[#allocation6 + $0x3a8] sm:$0xff] }
 0xcc6   :  { %4664 = vmatpush1.msra.mxu1 %v4490_v36  ;;  %4596 = vmatprep.subr.mxu0 %v4481_v44  ;;  %v4575_v36 = vld [vmem:[#allocation6 + $0x3d8] sm:$0xff]  ;;  %v4568_v44 = vld [vmem:[#allocation6 + $0x3a0] sm:$0xff] }
 0xcc7   :  { %4665 = vmatprep.subr.mxu1 %v4487_v38  ;;  %4597 = vmatpush1.msra.mxu0 %v4480_v37  ;;  %v4574_v38 = vld [vmem:[#allocation6 + $0x3d0] sm:$0xff]  ;;  %v4565_v37 = vld [vmem:[#allocation6 + $0x388] sm:$0xff] }
 0xcc8   :  { %4666 = vmatpush1.msra.mxu1 %v4486_v43  ;;  %4598 = vmatprep.subr.mxu0 %v4477_v50  ;;  %v4571_v43 = vld [vmem:[#allocation6 + $0x3b8] sm:$0xff]  ;;  %v4564_v50 = vld [vmem:[#allocation6 + $0x380] sm:$0xff] }
 0xcc9   :  { %4667 = vmatprep.subr.mxu1 %v4483_v47  ;;  %4599 = vmatpush1.msra.mxu0 %v4476_v22  ;;  %v4570_v47 = vld [vmem:[#allocation6 + $0x3b0] sm:$0xff]  ;;  %v4561_v22 = vld [vmem:[#allocation6 + $0x368] sm:$0xff] }
 0xcca   :  { %4668 = vmatpush1.msra.mxu1 %v4482_v6  ;;  %4600 = vmatprep.subr.mxu0 %v4473_v29  ;;  %v4567_v6 = vld [vmem:[#allocation6 + $0x398] sm:$0xff]  ;;  %v4560_v29 = vld [vmem:[#allocation6 + $0x360] sm:$0xff] }
 0xccb   :  { %4669 = vmatprep.subr.mxu1 %v4479_v13  ;;  %4601 = vmatpush1.msra.mxu0 %v4472_v54  ;;  %v4566_v13 = vld [vmem:[#allocation6 + $0x390] sm:$0xff]  ;;  %v4557_v54 = vld [vmem:[#allocation6 + $0x348] sm:$0xff] }
 0xccc   :  { %4670 = vmatpush1.msra.mxu1 %v4478_v14  ;;  %4602 = vmatprep.subr.mxu0 %v4469_v56  ;;  %v4563_v14 = vld [vmem:[#allocation6 + $0x378] sm:$0xff]  ;;  %v4556_v56 = vld [vmem:[#allocation6 + $0x340] sm:$0xff] }
 0xccd   :  { %4671 = vmatprep.subr.mxu1 %v4475_v63  ;;  %4603 = vmatpush1.msra.mxu0 %v4468_v24  ;;  %v4562_v63 = vld [vmem:[#allocation6 + $0x370] sm:$0xff]  ;;  %v4553_v24 = vld [vmem:[#allocation6 + $0x328] sm:$0xff] }
 0xcce   :  { %4672 = vmatpush1.msra.mxu1 %v4474_v55  ;;  %4604 = vmatprep.subr.mxu0 %v4465_v61  ;;  %v4559_v55 = vld [vmem:[#allocation6 + $0x358] sm:$0xff]  ;;  %v4552_v61 = vld [vmem:[#allocation6 + $0x320] sm:$0xff] }
 0xccf   :  { %4673 = vmatprep.subr.mxu1 %v4471_v57  ;;  %4605 = vmatpush1.msra.mxu0 %v4464_v16  ;;  %v4558_v57 = vld [vmem:[#allocation6 + $0x350] sm:$0xff]  ;;  %v4549_v16 = vld [vmem:[#allocation6 + $0x308] sm:$0xff] }
 0xcd0   :  { %4674 = vmatpush1.msra.mxu1 %v4470_v34  ;;  %4606 = vmatprep.subr.mxu0 %v4461_v11  ;;  %v4555_v34 = vld [vmem:[#allocation6 + $0x338] sm:$0xff]  ;;  %v4548_v11 = vld [vmem:[#allocation6 + $0x300] sm:$0xff] }
 0xcd1   :  { %4675 = vmatprep.subr.mxu1 %v4467_v3  ;;  %4607 = vmatpush1.msra.mxu0 %v4460_v8  ;;  %v4554_v3 = vld [vmem:[#allocation6 + $0x330] sm:$0xff]  ;;  %v4545_v8 = vld [vmem:[#allocation6 + $0x2e8] sm:$0xff] }
 0xcd2   :  { %4676 = vmatpush1.msra.mxu1 %v4466_v46  ;;  %4608 = vmatprep.subr.mxu0 %v4457_v1  ;;  %v4551_v46 = vld [vmem:[#allocation6 + $0x318] sm:$0xff]  ;;  %v4544_v1 = vld [vmem:[#allocation6 + $0x2e0] sm:$0xff] }
 0xcd3   :  { %4677 = vmatprep.subr.mxu1 %v4463_v7  ;;  %4609 = vmatpush1.msra.mxu0 %v4456_v4  ;;  %v4550_v7 = vld [vmem:[#allocation6 + $0x310] sm:$0xff]  ;;  %v4541_v4 = vld [vmem:[#allocation6 + $0x2c8] sm:$0xff] }
 0xcd4   :  { %4678 = vmatpush1.msra.mxu1 %v4462_v40  ;;  %4610 = vmatprep.subr.mxu0 %v4453_v12  ;;  %v4547_v40 = vld [vmem:[#allocation6 + $0x2f8] sm:$0xff]  ;;  %v4540_v12 = vld [vmem:[#allocation6 + $0x2c0] sm:$0xff] }
 0xcd5   :  { %4679 = vmatprep.subr.mxu1 %v4459_v48  ;;  %4611 = vmatpush1.msra.mxu0 %v4452_v9  ;;  %v4546_v48 = vld [vmem:[#allocation6 + $0x2f0] sm:$0xff]  ;;  %v4537_v9 = vld [vmem:[#allocation6 + $0x2a8] sm:$0xff] }
 0xcd6   :  { %4680 = vmatpush1.msra.mxu1 %v4458_v31  ;;  %4612 = vmatprep.subr.mxu0 %v4577_v30  ;;  %v4543_v31 = vld [vmem:[#allocation6 + $0x2d8] sm:$0xff]  ;;  %v4536_v30 = vld [vmem:[#allocation6 + $0x2a0] sm:$0xff] }
 0xcd7   :  { %4681 = vmatprep.subr.mxu1 %v4455_v17  ;;  %4613 = vmatpush2.msra.mxu0 %v4576_v32  ;;  %v4542_v17 = vld [vmem:[#allocation6 + $0x2d0] sm:$0xff]  ;;  %v4533_v32 = vld [vmem:[#allocation6 + $0x288] sm:$0xff] }
 0xcd8   :  { %4682 = vmatpush1.msra.mxu1 %v4454_v23  ;;  %4614 = vmatprep.subr.mxu0 %v4573_v35  ;;  %v4539_v23 = vld [vmem:[#allocation6 + $0x2b8] sm:$0xff]  ;;  %v4532_v35 = vld [vmem:[#allocation6 + $0x280] sm:$0xff] }
 0xcd9   :  { %4683 = vmatprep.subr.mxu1 %v4579_v58  ;;  %4615 = vmatpush2.msra.mxu0 %v4572_v15  ;;  %v4538_v58 = vld [vmem:[#allocation6 + $0x2b0] sm:$0xff]  ;;  %v4529_v15 = vld [vmem:[#allocation6 + $0x268] sm:$0xff] }
 0xcda   :  { %4684 = vmatpush2.msra.mxu1 %v4578_v33  ;;  %4616 = vmatprep.subr.mxu0 %v4569_v2  ;;  %v4535_v33 = vld [vmem:[#allocation6 + $0x298] sm:$0xff]  ;;  %v4528_v2 = vld [vmem:[#allocation6 + $0x260] sm:$0xff] }
 0xcdb   :  { %4685 = vmatprep.subr.mxu1 %v4575_v36  ;;  %4617 = vmatpush2.msra.mxu0 %v4568_v44  ;;  %v4534_v36 = vld [vmem:[#allocation6 + $0x290] sm:$0xff]  ;;  %v4525_v44 = vld [vmem:[#allocation6 + $0x248] sm:$0xff] }
 0xcdc   :  { %4686 = vmatpush2.msra.mxu1 %v4574_v38  ;;  %4618 = vmatprep.subr.mxu0 %v4565_v37  ;;  %v4531_v38 = vld [vmem:[#allocation6 + $0x278] sm:$0xff]  ;;  %v4524_v37 = vld [vmem:[#allocation6 + $0x240] sm:$0xff] }
 0xcdd   :  { %4687 = vmatprep.subr.mxu1 %v4571_v43  ;;  %4619 = vmatpush2.msra.mxu0 %v4564_v50  ;;  %v4530_v43 = vld [vmem:[#allocation6 + $0x270] sm:$0xff]  ;;  %v4521_v50 = vld [vmem:[#allocation6 + $0x228] sm:$0xff] }
 0xcde   :  { %4688 = vmatpush2.msra.mxu1 %v4570_v47  ;;  %4620 = vmatprep.subr.mxu0 %v4561_v22  ;;  %v4527_v47 = vld [vmem:[#allocation6 + $0x258] sm:$0xff]  ;;  %v4520_v22 = vld [vmem:[#allocation6 + $0x220] sm:$0xff] }
 0xcdf   :  { %4689 = vmatprep.subr.mxu1 %v4567_v6  ;;  %4621 = vmatpush2.msra.mxu0 %v4560_v29  ;;  %v4526_v6 = vld [vmem:[#allocation6 + $0x250] sm:$0xff]  ;;  %v4517_v29 = vld [vmem:[#allocation6 + $0x208] sm:$0xff] }
 0xce0   :  { %4690 = vmatpush2.msra.mxu1 %v4566_v13  ;;  %4622 = vmatprep.subr.mxu0 %v4557_v54  ;;  %v4523_v13 = vld [vmem:[#allocation6 + $0x238] sm:$0xff]  ;;  %v4516_v54 = vld [vmem:[#allocation6 + $0x200] sm:$0xff] }
 0xce1   :  { %4691 = vmatprep.subr.mxu1 %v4563_v14  ;;  %4623 = vmatpush2.msra.mxu0 %v4556_v56  ;;  %v4522_v14 = vld [vmem:[#allocation6 + $0x230] sm:$0xff]  ;;  %v4810_v56 = vld [vmem:[#allocation8 + $0x1f8] sm:$0xff] }
 0xce2   :  { %4692 = vmatpush2.msra.mxu1 %v4562_v63  ;;  %4624 = vmatprep.subr.mxu0 %v4553_v24  ;;  %v4519_v63 = vld [vmem:[#allocation6 + $0x218] sm:$0xff] }
 0xce3   :  { %4693 = vmatprep.subr.mxu1 %v4559_v55  ;;  %4625 = vmatpush2.msra.mxu0 %v4552_v61  ;;  %v4518_v55 = vld [vmem:[#allocation6 + $0x210] sm:$0xff] }
 0xce4   :  { %4694 = vmatpush2.msra.mxu1 %v4558_v57  ;;  %4626 = vmatprep.subr.mxu0 %v4549_v16  ;;  %v4808_v57 = vld [vmem:[#allocation8 + $0x1e8] sm:$0xff]  ;;  %v123_v16 = vpop.permute.xlu0 %122 }
 0xce5   :  { %4695 = vmatprep.subr.mxu1 %v4555_v34  ;;  %4627 = vmatpush2.msra.mxu0 %v4548_v11  ;;  %v8750_v34 = vld [vmem:[%s9594_s9] ss:$0 sm:$0xff]  ;;  %v178_v11 = vmul.f32 %v8979_v19, %v123_v16 }
 0xce6   :  { %4696 = vmatpush2.msra.mxu1 %v4554_v3  ;;  %4628 = vmatprep.subr.mxu0 %v4545_v8  ;;  %v180_v8 = vmul.f32 %v8985_v21, %v123_v16 }
 0xce7   :  { %4697 = vmatprep.subr.mxu1 %v4551_v46  ;;  %4629 = vmatpush2.msra.mxu0 %v4544_v1  ;;  %v177_v46 = vmul.f32 %v8976_v18, %v123_v16 }
 0xce8   :  { %4698 = vmatpush2.msra.mxu1 %v4550_v7  ;;  %4630 = vmatprep.subr.mxu0 %v4541_v4  ;;  %v179_v7 = vmul.f32 %v8982_v20, %v123_v16  ;;  %v4803_v16 = vld [vmem:[#allocation8 + $0x1c0] sm:$0xff] }
 0xce9   :  { %4699 = vmatprep.subr.mxu1 %v4547_v40  ;;  %4631 = vmatpush2.msra.mxu0 %v4540_v12  ;;  %v4332_v40 = vpop.f32.mrf.mxu0  ;;  %v231_v1 = vadd.f32 %v8991_v25, %v177_v46  ;;  %v4802_v46 = vld [vmem:[#allocation8 + $0x1b8] sm:$0xff] }
 0xcea   :  { %4700 = vmatpush2.msra.mxu1 %v4546_v48  ;;  %4632 = vmatprep.subr.mxu0 %v4537_v9  ;;  %v232_v48 = vadd.f32 %v8994_v26, %v178_v11  ;;  %v233_v4 = vadd.f32 %v8997_v27, %v179_v7  ;;  %v4800_v11 = vld [vmem:[#allocation8 + $0x1a8] sm:$0xff]  ;;  %v4801_v7 = vld [vmem:[#allocation8 + $0x1b0] sm:$0xff] }
 0xceb   :  { %4701 = vmatprep.subr.mxu1 %v4543_v31  ;;  %4633 = vmatpush2.msra.mxu0 %v4536_v30  ;;  %v234_v31 = vadd.f32 %v9000_v28, %v180_v8  ;;  %v4334_v12 = vpop.f32.mrf.mxu0  ;;  %v4799_v8 = vld [vmem:[#allocation8 + $0x1a0] sm:$0xff] }
 0xcec   :  { %4702 = vmatpush2.msra.mxu1 %v4542_v17  ;;  %4634 = vmatprep.subr.mxu0 %v4533_v32  ;;  %v347_v17 = vcombine.low %v231_v1, %v232_v48  ;;  %v4412_v30 = vcombine.low %v4332_v40, %v4334_v12  ;;  %v4798_v40 = vld [vmem:[#allocation8 + $0x198] sm:$0xff]  ;;  %v4796_v1 = vld [vmem:[#allocation8 + $0x188] sm:$0xff]  ;;  %v4795_v48 = vld [vmem:[#allocation8 + $0x180] sm:$0xff] }
 0xced   :  { %4703 = vmatprep.subr.mxu1 %v4539_v23  ;;  %4635 = vmatpush2.msra.mxu0 %v4532_v35  ;;  %v348_v9 = vcombine.low %v233_v4, %v234_v31  ;;  %v4794_v4 = vld [vmem:[#allocation8 + $0x178] sm:$0xff]  ;;  %v4792_v31 = vld [vmem:[#allocation8 + $0x168] sm:$0xff]  ;;  %v4793_v12 = vld [vmem:[#allocation8 + $0x170] sm:$0xff] }
 0xcee   :  { %4704 = vmatpush2.msra.mxu1 %v4538_v58  ;;  %4636 = vmatprep.subr.mxu0 %v4529_v15  ;;  %v355_v32 = vrot.slane %v347_v17, %v9010_v39  ;;  %v4791_v17 = vld [vmem:[#allocation8 + $0x160] sm:$0xff] }
 0xcef   :  { %4705 = vmatprep.subr.mxu1 %v4535_v33  ;;  %4637 = vmatpush2.msra.mxu0 %v4528_v2  ;;  %v362_v33 = vrot.slane %v348_v9, %v9010_v39  ;;  %v4790_v9 = vld [vmem:[#allocation8 + $0x158] sm:$0xff] }
 0xcf0   :  { %4706 = vmatpush2.msra.mxu1 %v4534_v36  ;;  %4638 = vmatprep.subr.mxu0 %v4525_v44  ;;  %v4420_v36 = vrot.slane %v4412_v30, %v9010_v39  ;;  %v4789_v30 = vld [vmem:[#allocation8 + $0x150] sm:$0xff] }
 0xcf1   :  { %4707 = vmatprep.subr.mxu1 %v4531_v38  ;;  %4639 = vmatpush2.msra.mxu0 %v4524_v37  ;;  %v363_v38 = vcombine.low %v355_v32, %v362_v33  ;;  %v4786_v32 = vld [vmem:[#allocation8 + $0x138] sm:$0xff]  ;;  %v4784_v33 = vld [vmem:[#allocation8 + $0x128] sm:$0xff] }
 0xcf2   :  { %4708 = vmatpush2.msra.mxu1 %v4530_v43  ;;  %4640 = vmatprep.subr.mxu0 %v4521_v50 }
 0xcf3   :  { %4709 = vmatprep.subr.mxu1 %v4527_v47  ;;  %4641 = vmatpush2.msra.mxu0 %v4520_v22 }
 0xcf4   :  { %4710 = vmatpush2.msra.mxu1 %v4526_v6  ;;  %4642 = vmatprep.subr.mxu0 %v4517_v29 }
 0xcf5   :  { %4711 = vmatprep.subr.mxu1 %v4523_v13  ;;  %4643 = vmatpush2.msra.mxu0 %v4516_v54 }
 0xcf6   :  { %4712 = vmatpush2.msra.mxu1 %v4522_v14  ;;  %4875 = vmatprep.subr.mxu0 %v4808_v57 }
 0xcf7   :  { %4713 = vmatprep.subr.mxu1 %v4519_v63 }
 0xcf8   :  { %4714 = vmatpush2.msra.mxu1 %v4518_v55 }
 0xcf9   :  { %4946 = vmatprep.subr.mxu1 %v4810_v56 }
 0xd59   :  { %v4194_v24 = vpop.f32.mrf.mxu1 }
 0xd5a   :  { %v4195_v61 = vadd.f32 %v8750_v34, %v4194_v24  ;;  %v4809_v24 = vld [vmem:[#allocation8 + $0x1f0] sm:$0xff]  ;;  %v4807_v34 = vld [vmem:[#allocation8 + $0x1e0] sm:$0xff] }
 0xd5b   :  { %v8271_v3 = vpop.f32.mrf.mxu1 }
 0xd5c   :  { %4199 = vst [vmem:[#allocation11 + $0x6] sm:$0x3] %v4195_v61  ;;  %v4806_v61 = vld [vmem:[#allocation8 + $0x1d8] sm:$0xff]  ;;  %v4804_v3 = vld [vmem:[#allocation8 + $0x1c8] sm:$0xff] }
 0xd79   :  { %v4403_v23 = vpop.f32.mrf.mxu1 }
 0xd7b   :  { %v4405_v58 = vpop.f32.mrf.mxu1 }
 0xd7c   :  { %v4413_v35 = vcombine.low %v4403_v23, %v4405_v58  ;;  %v4788_v23 = vld [vmem:[#allocation8 + $0x148] sm:$0xff]  ;;  %v4787_v58 = vld [vmem:[#allocation8 + $0x140] sm:$0xff] }
 0xd7e   :  { %v4427_v15 = vrot.slane %v4413_v35, %v9010_v39  ;;  %v4785_v35 = vld [vmem:[#allocation8 + $0x130] sm:$0xff] }
 0xd80   :  { %v4428_v2 = vcombine.low %v4420_v36, %v4427_v15  ;;  %v4783_v36 = vld [vmem:[#allocation8 + $0x120] sm:$0xff]  ;;  %v4782_v15 = vld [vmem:[#allocation8 + $0x118] sm:$0xff] }
 0xd82   :  { %v4430_v43 = vadd.f32 %v4428_v2, %v363_v38  ;;  %v4780_v38 = vld [vmem:[#allocation8 + $0x108] sm:$0xff]  ;;  %v4781_v2 = vld [vmem:[#allocation8 + $0x110] sm:$0xff] }
 0xd84   :  { %v7968_v44 = vmul.f32 -1.442695, %v4430_v43  ;;  %v4438_v6 = vrot.slane %v4430_v43, 6  ;;  %v4779_v43 = vld [vmem:[#allocation8 + $0x100] sm:$0xff] }
 0xd86   :  { %8588 = vpow2.f32 %v7968_v44  ;;  %v4778_v44 = vld [vmem:[#allocation8 + $0xf8] sm:$0xff] }
 0xd93   :  { %v8589_v47 = vpop.eup %8588 }
 0xd94   :  { %v4434_v37 = vadd.f32 1.0, %v8589_v47  ;;  %v4776_v47 = vld [vmem:[#allocation8 + $0xe8] sm:$0xff] }
 0xd96   :  { %8590 = vrcp.f32 %v4434_v37  ;;  %v4777_v37 = vld [vmem:[#allocation8 + $0xf0] sm:$0xff] }
 0xd97   :  { %8592 = vtanh.f32 %v4438_v6  ;;  %v4775_v6 = vld [vmem:[#allocation8 + $0xe0] sm:$0xff] }
 0xda3   :  { %v8591_v50 = vpop.eup %8590 }
 0xda4   :  { %v4442_v13 = vrot.slane %v8591_v50, 2  ;;  %v8593_v22 = vpop.eup %8592  ;;  %v4448_v54 = vrot.slane %v8591_v50, 4 }
 0xda5   :  { %v4445_v29 = vmul.f32 %v8593_v22, %v8591_v50  ;;  %v4774_v50 = vld [vmem:[#allocation8 + $0xd8] sm:$0xff]  ;;  %v4773_v22 = vld [vmem:[#allocation8 + $0xd0] sm:$0xff] }
 0xda6   :  { %v4444_v14 = vmul.f32 %v4442_v13, %v9266_v45  ;;  %v4805_v45 = vld [vmem:[#allocation8 + $0x1d0] sm:$0xff]  ;;  %v4772_v13 = vld [vmem:[#allocation8 + $0xc8] sm:$0xff] }
 0xda8   :  { %v9336_v63 = vadd.f32 %v4445_v29, %v4444_v14  ;;  %v4771_v14 = vld [vmem:[#allocation8 + $0xc0] sm:$0xff]  ;;  %v4770_v29 = vld [vmem:[#allocation8 + $0xb8] sm:$0xff] }
 0xdaa   :  { %8594 = vtanh.f32 %v9336_v63 }
 0xdb7   :  { %v8595_v55 = vpop.eup %8594 }
 0xdb8   :  { %v9339_v56 = vmul.f32 %v8595_v55, %v4448_v54  ;;  %v4768_v54 = vld [vmem:[#allocation8 + $0xa8] sm:$0xff]  ;;  %v4769_v55 = vld [vmem:[#allocation8 + $0xb0] sm:$0xff] }
 0xdba   :  { %v4451_v57 = vmax.f32 %v9339_v56, 0.0 }
 0xdbc   :  { %4645 = vmatmul.mubr.f32.vlgmr.msra.gmra.mxu0 %v4451_v57  ;;  %4716 = vmatmul.mubr.f32.vlgmr.msra.gmra.mxu1 %v4451_v57  ;;  %v4767_v57 = vld [vmem:[#allocation8 + $0xa0] sm:$0xff] }
 0xdbd   :  { %4939 = vmatprep.mubr.f32.mxu0 %v9314_v5  ;;  %5010 = vmatprep.mubr.f32.mxu1 %v9314_v5  ;;  %v4797_v5 = vld [vmem:[#allocation8 + $0x190] sm:$0xff] }
 0xdbe   :  { %4947 = vmatpush1.msra.mxu1 %v4809_v24  ;;  %4876 = vmatpush1.msra.mxu0 %v4807_v34  ;;  %v4766_v24 = vld [vmem:[#allocation8 + $0x98] sm:$0xff]  ;;  %v4764_v34 = vld [vmem:[#allocation8 + $0x88] sm:$0xff] }
 0xdbf   :  { %4948 = vmatprep.subr.mxu1 %v4806_v61  ;;  %4877 = vmatprep.subr.mxu0 %v4804_v3  ;;  %v4765_v61 = vld [vmem:[#allocation8 + $0x90] sm:$0xff]  ;;  %v4763_v3 = vld [vmem:[#allocation8 + $0x80] sm:$0xff] }
 0xdc0   :  { %4949 = vmatpush1.msra.mxu1 %v4805_v45  ;;  %4878 = vmatpush1.msra.mxu0 %v4803_v16  ;;  %v4762_v45 = vld [vmem:[#allocation8 + $0x78] sm:$0xff]  ;;  %v4760_v16 = vld [vmem:[#allocation8 + $0x68] sm:$0xff] }
 0xdc1   :  { %4950 = vmatprep.subr.mxu1 %v4802_v46  ;;  %4879 = vmatprep.subr.mxu0 %v4800_v11  ;;  %v4761_v46 = vld [vmem:[#allocation8 + $0x70] sm:$0xff]  ;;  %v4759_v11 = vld [vmem:[#allocation8 + $0x60] sm:$0xff] }
 0xdc2   :  { %4951 = vmatpush1.msra.mxu1 %v4801_v7  ;;  %4880 = vmatpush1.msra.mxu0 %v4799_v8  ;;  %v4758_v7 = vld [vmem:[#allocation8 + $0x58] sm:$0xff]  ;;  %v4756_v8 = vld [vmem:[#allocation8 + $0x48] sm:$0xff] }
 0xdc3   :  { %4952 = vmatprep.subr.mxu1 %v4798_v40  ;;  %4881 = vmatprep.subr.mxu0 %v4796_v1  ;;  %v4757_v40 = vld [vmem:[#allocation8 + $0x50] sm:$0xff]  ;;  %v4755_v1 = vld [vmem:[#allocation8 + $0x40] sm:$0xff] }
 0xdc4   :  { %4953 = vmatpush1.msra.mxu1 %v4797_v5  ;;  %4882 = vmatpush1.msra.mxu0 %v4795_v48  ;;  %v4754_v5 = vld [vmem:[#allocation8 + $0x38] sm:$0xff]  ;;  %v4752_v48 = vld [vmem:[#allocation8 + $0x28] sm:$0xff] }
 0xdc5   :  { %4954 = vmatprep.subr.mxu1 %v4794_v4  ;;  %4883 = vmatprep.subr.mxu0 %v4792_v31  ;;  %v4753_v4 = vld [vmem:[#allocation8 + $0x30] sm:$0xff]  ;;  %v4751_v31 = vld [vmem:[#allocation8 + $0x20] sm:$0xff] }
 0xdc6   :  { %4955 = vmatpush1.msra.mxu1 %v4793_v12  ;;  %4884 = vmatpush1.msra.mxu0 %v4791_v17  ;;  %v4750_v12 = vld [vmem:[#allocation8 + $0x18] sm:$0xff]  ;;  %v4748_v17 = vld [vmem:[#allocation8 + $0x8] sm:$0xff] }
 0xdc7   :  { %4956 = vmatprep.subr.mxu1 %v4790_v9  ;;  %4885 = vmatprep.subr.mxu0 %v4788_v23  ;;  %v4749_v9 = vld [vmem:[#allocation8 + $0x10] sm:$0xff]  ;;  %v4747_v23 = vld [vmem:[#allocation8] sm:$0xff] }
 0xdc8   :  { %4957 = vmatpush1.msra.mxu1 %v4789_v30  ;;  %4886 = vmatpush1.msra.mxu0 %v4787_v58  ;;  %v4874_v30 = vld [vmem:[#allocation8 + $0x3f8] sm:$0xff]  ;;  %v4872_v58 = vld [vmem:[#allocation8 + $0x3e8] sm:$0xff] }
 0xdc9   :  { %4958 = vmatprep.subr.mxu1 %v4786_v32  ;;  %4887 = vmatprep.subr.mxu0 %v4784_v33  ;;  %v4873_v32 = vld [vmem:[#allocation8 + $0x3f0] sm:$0xff]  ;;  %v4871_v33 = vld [vmem:[#allocation8 + $0x3e0] sm:$0xff] }
 0xdca   :  { %4959 = vmatpush1.msra.mxu1 %v4785_v35  ;;  %4888 = vmatpush1.msra.mxu0 %v4783_v36  ;;  %v4870_v35 = vld [vmem:[#allocation8 + $0x3d8] sm:$0xff]  ;;  %v4868_v36 = vld [vmem:[#allocation8 + $0x3c8] sm:$0xff] }
 0xdcb   :  { %4960 = vmatprep.subr.mxu1 %v4782_v15  ;;  %4889 = vmatprep.subr.mxu0 %v4780_v38  ;;  %v4869_v15 = vld [vmem:[#allocation8 + $0x3d0] sm:$0xff]  ;;  %v4867_v38 = vld [vmem:[#allocation8 + $0x3c0] sm:$0xff] }
 0xdcc   :  { %4961 = vmatpush1.msra.mxu1 %v4781_v2  ;;  %4890 = vmatpush1.msra.mxu0 %v4779_v43  ;;  %v4866_v2 = vld [vmem:[#allocation8 + $0x3b8] sm:$0xff]  ;;  %v4864_v43 = vld [vmem:[#allocation8 + $0x3a8] sm:$0xff] }
 0xdcd   :  { %4962 = vmatprep.subr.mxu1 %v4778_v44  ;;  %4891 = vmatprep.subr.mxu0 %v4776_v47  ;;  %v4865_v44 = vld [vmem:[#allocation8 + $0x3b0] sm:$0xff]  ;;  %v4863_v47 = vld [vmem:[#allocation8 + $0x3a0] sm:$0xff] }
 0xdce   :  { %4963 = vmatpush1.msra.mxu1 %v4777_v37  ;;  %4892 = vmatpush1.msra.mxu0 %v4775_v6  ;;  %v4862_v37 = vld [vmem:[#allocation8 + $0x398] sm:$0xff]  ;;  %v4860_v6 = vld [vmem:[#allocation8 + $0x388] sm:$0xff] }
 0xdcf   :  { %4964 = vmatprep.subr.mxu1 %v4774_v50  ;;  %4893 = vmatprep.subr.mxu0 %v4772_v13  ;;  %v4861_v50 = vld [vmem:[#allocation8 + $0x390] sm:$0xff]  ;;  %v4859_v13 = vld [vmem:[#allocation8 + $0x380] sm:$0xff] }
 0xdd0   :  { %4965 = vmatpush1.msra.mxu1 %v4773_v22  ;;  %4894 = vmatpush1.msra.mxu0 %v4771_v14  ;;  %v4858_v22 = vld [vmem:[#allocation8 + $0x378] sm:$0xff]  ;;  %v4856_v14 = vld [vmem:[#allocation8 + $0x368] sm:$0xff] }
 0xdd1   :  { %4966 = vmatprep.subr.mxu1 %v4770_v29  ;;  %4895 = vmatprep.subr.mxu0 %v4768_v54  ;;  %v4857_v29 = vld [vmem:[#allocation8 + $0x370] sm:$0xff]  ;;  %v4855_v54 = vld [vmem:[#allocation8 + $0x360] sm:$0xff] }
 0xdd2   :  { %4967 = vmatpush1.msra.mxu1 %v4769_v55  ;;  %4896 = vmatpush1.msra.mxu0 %v4767_v57  ;;  %v4854_v55 = vld [vmem:[#allocation8 + $0x358] sm:$0xff]  ;;  %v4852_v57 = vld [vmem:[#allocation8 + $0x348] sm:$0xff] }
 0xdd3   :  { %4968 = vmatprep.subr.mxu1 %v4766_v24  ;;  %4897 = vmatprep.subr.mxu0 %v4764_v34  ;;  %v4853_v24 = vld [vmem:[#allocation8 + $0x350] sm:$0xff]  ;;  %v4851_v34 = vld [vmem:[#allocation8 + $0x340] sm:$0xff] }
 0xdd4   :  { %4969 = vmatpush1.msra.mxu1 %v4765_v61  ;;  %4898 = vmatpush1.msra.mxu0 %v4763_v3  ;;  %v4850_v61 = vld [vmem:[#allocation8 + $0x338] sm:$0xff]  ;;  %v4848_v3 = vld [vmem:[#allocation8 + $0x328] sm:$0xff] }
 0xdd5   :  { %4970 = vmatprep.subr.mxu1 %v4762_v45  ;;  %4899 = vmatprep.subr.mxu0 %v4760_v16  ;;  %v4849_v45 = vld [vmem:[#allocation8 + $0x330] sm:$0xff]  ;;  %v4847_v16 = vld [vmem:[#allocation8 + $0x320] sm:$0xff] }
 0xdd6   :  { %4971 = vmatpush1.msra.mxu1 %v4761_v46  ;;  %4900 = vmatpush1.msra.mxu0 %v4759_v11  ;;  %v4846_v46 = vld [vmem:[#allocation8 + $0x318] sm:$0xff]  ;;  %v4844_v11 = vld [vmem:[#allocation8 + $0x308] sm:$0xff] }
 0xdd7   :  { %4972 = vmatprep.subr.mxu1 %v4758_v7  ;;  %4901 = vmatprep.subr.mxu0 %v4756_v8  ;;  %v4845_v7 = vld [vmem:[#allocation8 + $0x310] sm:$0xff]  ;;  %v4843_v8 = vld [vmem:[#allocation8 + $0x300] sm:$0xff] }
 0xdd8   :  { %4973 = vmatpush1.msra.mxu1 %v4757_v40  ;;  %4902 = vmatpush1.msra.mxu0 %v4755_v1  ;;  %v4842_v40 = vld [vmem:[#allocation8 + $0x2f8] sm:$0xff]  ;;  %v4840_v1 = vld [vmem:[#allocation8 + $0x2e8] sm:$0xff] }
 0xdd9   :  { %4974 = vmatprep.subr.mxu1 %v4754_v5  ;;  %4903 = vmatprep.subr.mxu0 %v4752_v48  ;;  %v4841_v5 = vld [vmem:[#allocation8 + $0x2f0] sm:$0xff]  ;;  %v4839_v48 = vld [vmem:[#allocation8 + $0x2e0] sm:$0xff] }
 0xdda   :  { %4975 = vmatpush1.msra.mxu1 %v4753_v4  ;;  %4904 = vmatpush1.msra.mxu0 %v4751_v31  ;;  %v4838_v4 = vld [vmem:[#allocation8 + $0x2d8] sm:$0xff]  ;;  %v4836_v31 = vld [vmem:[#allocation8 + $0x2c8] sm:$0xff] }
 0xddb   :  { %4976 = vmatprep.subr.mxu1 %v4750_v12  ;;  %4905 = vmatprep.subr.mxu0 %v4748_v17  ;;  %v4837_v12 = vld [vmem:[#allocation8 + $0x2d0] sm:$0xff]  ;;  %v4835_v17 = vld [vmem:[#allocation8 + $0x2c0] sm:$0xff] }
 0xddc   :  { %4977 = vmatpush1.msra.mxu1 %v4749_v9  ;;  %4906 = vmatpush1.msra.mxu0 %v4747_v23  ;;  %v4834_v9 = vld [vmem:[#allocation8 + $0x2b8] sm:$0xff]  ;;  %v4832_v23 = vld [vmem:[#allocation8 + $0x2a8] sm:$0xff] }
 0xddd   :  { %4978 = vmatprep.subr.mxu1 %v4874_v30  ;;  %4907 = vmatprep.subr.mxu0 %v4872_v58  ;;  %v4833_v30 = vld [vmem:[#allocation8 + $0x2b0] sm:$0xff]  ;;  %v4831_v58 = vld [vmem:[#allocation8 + $0x2a0] sm:$0xff] }
 0xdde   :  { %4979 = vmatpush2.msra.mxu1 %v4873_v32  ;;  %4908 = vmatpush2.msra.mxu0 %v4871_v33  ;;  %v4830_v32 = vld [vmem:[#allocation8 + $0x298] sm:$0xff]  ;;  %v4828_v33 = vld [vmem:[#allocation8 + $0x288] sm:$0xff] }
 0xddf   :  { %4980 = vmatprep.subr.mxu1 %v4870_v35  ;;  %4909 = vmatprep.subr.mxu0 %v4868_v36  ;;  %v4829_v35 = vld [vmem:[#allocation8 + $0x290] sm:$0xff]  ;;  %v4827_v36 = vld [vmem:[#allocation8 + $0x280] sm:$0xff] }
 0xde0   :  { %4981 = vmatpush2.msra.mxu1 %v4869_v15  ;;  %4910 = vmatpush2.msra.mxu0 %v4867_v38  ;;  %v4826_v15 = vld [vmem:[#allocation8 + $0x278] sm:$0xff]  ;;  %v4824_v38 = vld [vmem:[#allocation8 + $0x268] sm:$0xff] }
 0xde1   :  { %4982 = vmatprep.subr.mxu1 %v4866_v2  ;;  %4911 = vmatprep.subr.mxu0 %v4864_v43  ;;  %v4825_v2 = vld [vmem:[#allocation8 + $0x270] sm:$0xff]  ;;  %v4823_v43 = vld [vmem:[#allocation8 + $0x260] sm:$0xff] }
 0xde2   :  { %4983 = vmatpush2.msra.mxu1 %v4865_v44  ;;  %4912 = vmatpush2.msra.mxu0 %v4863_v47  ;;  %v4822_v44 = vld [vmem:[#allocation8 + $0x258] sm:$0xff]  ;;  %v4820_v47 = vld [vmem:[#allocation8 + $0x248] sm:$0xff] }
 0xde3   :  { %4984 = vmatprep.subr.mxu1 %v4862_v37  ;;  %4913 = vmatprep.subr.mxu0 %v4860_v6  ;;  %v4821_v37 = vld [vmem:[#allocation8 + $0x250] sm:$0xff]  ;;  %v4819_v6 = vld [vmem:[#allocation8 + $0x240] sm:$0xff] }
 0xde4   :  { %4985 = vmatpush2.msra.mxu1 %v4861_v50  ;;  %4914 = vmatpush2.msra.mxu0 %v4859_v13  ;;  %v4818_v50 = vld [vmem:[#allocation8 + $0x238] sm:$0xff]  ;;  %v4816_v13 = vld [vmem:[#allocation8 + $0x228] sm:$0xff] }
 0xde5   :  { %4986 = vmatprep.subr.mxu1 %v4858_v22  ;;  %4915 = vmatprep.subr.mxu0 %v4856_v14  ;;  %v4817_v22 = vld [vmem:[#allocation8 + $0x230] sm:$0xff]  ;;  %v4815_v14 = vld [vmem:[#allocation8 + $0x220] sm:$0xff] }
 0xde6   :  { %4987 = vmatpush2.msra.mxu1 %v4857_v29  ;;  %4916 = vmatpush2.msra.mxu0 %v4855_v54  ;;  %v4814_v29 = vld [vmem:[#allocation8 + $0x218] sm:$0xff]  ;;  %v4812_v54 = vld [vmem:[#allocation8 + $0x208] sm:$0xff] }
 0xde7   :  { %4988 = vmatprep.subr.mxu1 %v4854_v55  ;;  %4917 = vmatprep.subr.mxu0 %v4852_v57  ;;  %v4813_v55 = vld [vmem:[#allocation8 + $0x210] sm:$0xff]  ;;  %v4811_v57 = vld [vmem:[#allocation8 + $0x200] sm:$0xff] }
 0xde8   :  { %4989 = vmatpush2.msra.mxu1 %v4853_v24  ;;  %4918 = vmatpush2.msra.mxu0 %v4851_v34  ;;  %v5193_v24 = vld [vmem:[#allocation3 + $0x1e8] sm:$0xff] }
 0xde9   :  { %4990 = vmatprep.subr.mxu1 %v4850_v61  ;;  %4919 = vmatprep.subr.mxu0 %v4848_v3 }
 0xdea   :  { %4991 = vmatpush2.msra.mxu1 %v4849_v45  ;;  %4920 = vmatpush2.msra.mxu0 %v4847_v16 }
 0xdeb   :  { %4992 = vmatprep.subr.mxu1 %v4846_v46  ;;  %4921 = vmatprep.subr.mxu0 %v4844_v11 }
 0xdec   :  { %4993 = vmatpush2.msra.mxu1 %v4845_v7  ;;  %4922 = vmatpush2.msra.mxu0 %v4843_v8 }
 0xded   :  { %4994 = vmatprep.subr.mxu1 %v4842_v40  ;;  %4923 = vmatprep.subr.mxu0 %v4840_v1 }
 0xdee   :  { %4995 = vmatpush2.msra.mxu1 %v4841_v5  ;;  %4924 = vmatpush2.msra.mxu0 %v4839_v48 }
 0xdef   :  { %4996 = vmatprep.subr.mxu1 %v4838_v4  ;;  %4925 = vmatprep.subr.mxu0 %v4836_v31 }
 0xdf0   :  { %4997 = vmatpush2.msra.mxu1 %v4837_v12  ;;  %4926 = vmatpush2.msra.mxu0 %v4835_v17 }
 0xdf1   :  { %4998 = vmatprep.subr.mxu1 %v4834_v9  ;;  %4927 = vmatprep.subr.mxu0 %v4832_v23 }
 0xdf2   :  { %4999 = vmatpush2.msra.mxu1 %v4833_v30  ;;  %4928 = vmatpush2.msra.mxu0 %v4831_v58 }
 0xdf3   :  { %5000 = vmatprep.subr.mxu1 %v4830_v32  ;;  %4929 = vmatprep.subr.mxu0 %v4828_v33 }
 0xdf4   :  { %5001 = vmatpush2.msra.mxu1 %v4829_v35  ;;  %4930 = vmatpush2.msra.mxu0 %v4827_v36 }
 0xdf5   :  { %5002 = vmatprep.subr.mxu1 %v4826_v15  ;;  %4931 = vmatprep.subr.mxu0 %v4824_v38 }
 0xdf6   :  { %5003 = vmatpush2.msra.mxu1 %v4825_v2  ;;  %4932 = vmatpush2.msra.mxu0 %v4823_v43  ;;  %v5192_v2 = vld [vmem:[#allocation3 + $0x1e0] sm:$0xff]  ;;  %v5189_v43 = vld [vmem:[#allocation3 + $0x1c8] sm:$0xff] }
 0xdf7   :  { %5004 = vmatprep.subr.mxu1 %v4822_v44  ;;  %4933 = vmatprep.subr.mxu0 %v4820_v47  ;;  %v5188_v44 = vld [vmem:[#allocation3 + $0x1c0] sm:$0xff]  ;;  %v5185_v47 = vld [vmem:[#allocation3 + $0x1a8] sm:$0xff] }
 0xdf8   :  { %5005 = vmatpush2.msra.mxu1 %v4821_v37  ;;  %4934 = vmatpush2.msra.mxu0 %v4819_v6  ;;  %v5181_v37 = vld [vmem:[#allocation3 + $0x188] sm:$0xff]  ;;  %v5180_v6 = vld [vmem:[#allocation3 + $0x180] sm:$0xff] }
 0xdf9   :  { %5006 = vmatprep.subr.mxu1 %v4818_v50  ;;  %4935 = vmatprep.subr.mxu0 %v4816_v13  ;;  %v5177_v50 = vld [vmem:[#allocation3 + $0x168] sm:$0xff]  ;;  %v5176_v13 = vld [vmem:[#allocation3 + $0x160] sm:$0xff] }
 0xdfa   :  { %5007 = vmatpush2.msra.mxu1 %v4817_v22  ;;  %4936 = vmatpush2.msra.mxu0 %v4815_v14  ;;  %v5173_v22 = vld [vmem:[#allocation3 + $0x148] sm:$0xff]  ;;  %v5172_v14 = vld [vmem:[#allocation3 + $0x140] sm:$0xff] }
 0xdfb   :  { %5008 = vmatprep.subr.mxu1 %v4814_v29  ;;  %4937 = vmatprep.subr.mxu0 %v4812_v54  ;;  %v5169_v29 = vld [vmem:[#allocation3 + $0x128] sm:$0xff]  ;;  %v5168_v54 = vld [vmem:[#allocation3 + $0x120] sm:$0xff] }
 0xdfc   :  { %5009 = vmatpush2.msra.mxu1 %v4813_v55  ;;  %4938 = vmatpush2.msra.mxu0 %v4811_v57  ;;  %v5165_v55 = vld [vmem:[#allocation3 + $0x108] sm:$0xff]  ;;  %v5164_v57 = vld [vmem:[#allocation3 + $0x100] sm:$0xff] }
 0xdfd   :  { %5196 = vmatprep.subr.mxu1 %v5193_v24  ;;  %8272 = vmatprep.subr.mxu0 %v8870_v0  ;;  %v5161_v24 = vld [vmem:[#allocation3 + $0xe8] sm:$0xff] }
 0xe7c   :  { %v4646_v34 = vpop.f32.mrf.mxu0  ;;  %v4717_v11 = vpop.f32.mrf.mxu1 }
 0xe7d   :  { %v4647_v61 = vadd.f32 %v4646_v34, %v9029_v51  ;;  %v4718_v7 = vadd.f32 %v4717_v11, %v9037_v59  ;;  %v5160_v34 = vld [vmem:[#allocation3 + $0xe0] sm:$0xff] }
 0xe7e   :  { %v4648_v3 = vpop.f32.mrf.mxu0  ;;  %v4719_v8 = vpop.f32.mrf.mxu1  ;;  %v5148_v11 = vld [vmem:[#allocation3 + $0x80] sm:$0xff] }
 0xe7f   :  { %v7969_v45 = vmul.f32 -1.442695, %v4647_v61  ;;  %v4649_v16 = vadd.f32 %v4648_v3, %v9032_v52  ;;  %v7971_v40 = vmul.f32 -1.442695, %v4718_v7  ;;  %v4720_v5 = vadd.f32 %v4719_v8, %v9041_v62  ;;  %v5157_v61 = vld [vmem:[#allocation3 + $0xc8] sm:$0xff]  ;;  %v5156_v3 = vld [vmem:[#allocation3 + $0xc0] sm:$0xff] }
 0xe80   :  { %v5145_v7 = vld [vmem:[#allocation3 + $0x68] sm:$0xff]  ;;  %v5144_v8 = vld [vmem:[#allocation3 + $0x60] sm:$0xff] }
 0xe81   :  { %8596 = vpow2.f32 %v7969_v45  ;;  %v7970_v46 = vmul.f32 -1.442695, %v4649_v16  ;;  %v5153_v45 = vld [vmem:[#allocation3 + $0xa8] sm:$0xff]  ;;  %v5152_v16 = vld [vmem:[#allocation3 + $0xa0] sm:$0xff] }
 0xe83   :  { %8598 = vpow2.f32 %v7970_v46  ;;  %v5149_v46 = vld [vmem:[#allocation3 + $0x88] sm:$0xff] }
 0xe84   :  { %8600 = vpow2.f32 %v7971_v40  ;;  %v5141_v40 = vld [vmem:[#allocation3 + $0x48] sm:$0xff] }
 0xe8e   :  { %v8597_v1 = vpop.eup %8596 }
 0xe8f   :  { %v4731_v48 = vadd.f32 1.0, %v8597_v1  ;;  %v5140_v1 = vld [vmem:[#allocation3 + $0x40] sm:$0xff] }
 0xe90   :  { %v8599_v4 = vpop.eup %8598 }
 0xe91   :  { %8602 = vrcp.f32 %v4731_v48  ;;  %v4732_v31 = vadd.f32 1.0, %v8599_v4  ;;  %v8601_v12 = vpop.eup %8600  ;;  %v5136_v48 = vld [vmem:[#allocation3 + $0x20] sm:$0xff]  ;;  %v5133_v4 = vld [vmem:[#allocation3 + $0x8] sm:$0xff] }
 0xe92   :  { %8604 = vtanh.f32 %v4720_v5  ;;  %v4733_v30 = vadd.f32 1.0, %v8601_v12  ;;  %v5137_v5 = vld [vmem:[#allocation3 + $0x28] sm:$0xff]  ;;  %v5057_v12 = vld [vmem:[#allocation9 + $0x78] sm:$0xff] }
 0xe93   :  { %8606 = vrcp.f32 %v4732_v31  ;;  %v5132_v31 = vld [vmem:[#allocation3] sm:$0xff] }
 0xe94   :  { %8608 = vrcp.f32 %v4733_v30  ;;  %v5053_v30 = vld [vmem:[#allocation9 + $0x58] sm:$0xff] }
 0xe9e   :  { %v8603_v17 = vpop.eup %8602 }
 0xe9f   :  { %v8605_v9 = vpop.eup %8604 }
 0xea0   :  { %v8607_v23 = vpop.eup %8606  ;;  %v4742_v32 = vmul.f32 %v8605_v9, %v8603_v17  ;;  %v5056_v17 = vld [vmem:[#allocation9 + $0x70] sm:$0xff]  ;;  %v5055_v9 = vld [vmem:[#allocation9 + $0x68] sm:$0xff] }
 0xea1   :  { %v4741_v58 = vmul.f32 %v8607_v23, %v9280_v10  ;;  %v8609_v35 = vpop.eup %8608  ;;  %v5184_v10 = vld [vmem:[#allocation3 + $0x1a0] sm:$0xff] }
 0xea2   :  { %v5054_v23 = vld [vmem:[#allocation9 + $0x60] sm:$0xff] }
 0xea3   :  { %v9350_v33 = vadd.f32 %v4742_v32, %v4741_v58  ;;  %v5052_v58 = vld [vmem:[#allocation9 + $0x50] sm:$0xff]  ;;  %v5051_v32 = vld [vmem:[#allocation9 + $0x48] sm:$0xff] }
 0xea5   :  { %8610 = vtanh.f32 %v9350_v33 }
 0xeb2   :  { %v8611_v36 = vpop.eup %8610 }
 0xeb3   :  { %v9353_v15 = vmul.f32 %v8611_v36, %v8609_v35  ;;  %v5050_v35 = vld [vmem:[#allocation9 + $0x40] sm:$0xff]  ;;  %v5049_v36 = vld [vmem:[#allocation9 + $0x38] sm:$0xff] }
 0xeb5   :  { %v4746_v38 = vmax.f32 %v9353_v15, 0.0 }
 0xeb7   :  { %4940 = vmatmul.mubr.f32.vlgmr.msra.gmra.mxu0 %v4746_v38  ;;  %5011 = vmatmul.mubr.f32.vlgmr.msra.gmra.mxu1 %v4746_v38  ;;  %v5048_v38 = vld [vmem:[#allocation9 + $0x30] sm:$0xff] }
 0xeb8   :  { %5197 = vmatpush1.msra.mxu1 %v5192_v2  ;;  %5260 = vmatprep.mubr.f32.mxu1 %v8870_v0  ;;  %v5047_v2 = vld [vmem:[#allocation9 + $0x28] sm:$0xff] }
 0xeb9   :  { %5198 = vmatprep.subr.mxu1 %v5189_v43  ;;  %8304 = vmatprep.mubr.msk.f32.mxu0 %vm8873_vm0, %v8870_v0  ;;  %v5046_v43 = vld [vmem:[#allocation9 + $0x20] sm:$0xff] }
 0xeba   :  { %5199 = vmatpush1.msra.mxu1 %v5188_v44  ;;  %8273 = vmatpush3.msra.mxu0 %v5057_v12  ;;  %v5045_v44 = vld [vmem:[#allocation9 + $0x18] sm:$0xff] }
 0xebb   :  { %5200 = vmatprep.subr.mxu1 %v5185_v47  ;;  %8274 = vmatprep.subr.mxu0 %v8870_v0  ;;  %v5044_v47 = vld [vmem:[#allocation9 + $0x10] sm:$0xff] }
 0xebc   :  { %5201 = vmatpush1.msra.mxu1 %v5184_v10  ;;  %8275 = vmatpush3.msra.mxu0 %v5056_v17  ;;  %v5043_v10 = vld [vmem:[#allocation9 + $0x8] sm:$0xff] }
 0xebd   :  { %5202 = vmatprep.subr.mxu1 %v5181_v37  ;;  %8276 = vmatprep.subr.mxu0 %v8870_v0  ;;  %v5042_v37 = vld [vmem:[#allocation9] sm:$0xff] }
 0xebe   :  { %5203 = vmatpush1.msra.mxu1 %v5180_v6  ;;  %8277 = vmatpush3.msra.mxu0 %v5055_v9  ;;  %v5195_v6 = vld [vmem:[#allocation3 + $0x1f8] sm:$0xff] }
 0xebf   :  { %5204 = vmatprep.subr.mxu1 %v5177_v50  ;;  %8278 = vmatprep.subr.mxu0 %v8870_v0 }
 0xec0   :  { %5205 = vmatpush1.msra.mxu1 %v5176_v13  ;;  %8279 = vmatpush3.msra.mxu0 %v5054_v23  ;;  %v5194_v23 = vld [vmem:[#allocation3 + $0x1f0] sm:$0xff] }
 0xec1   :  { %5206 = vmatprep.subr.mxu1 %v5173_v22  ;;  %8280 = vmatprep.subr.mxu0 %v8870_v0 }
 0xec2   :  { %5207 = vmatpush1.msra.mxu1 %v5172_v14  ;;  %8281 = vmatpush3.msra.mxu0 %v5053_v30  ;;  %v5191_v30 = vld [vmem:[#allocation3 + $0x1d8] sm:$0xff] }
 0xec3   :  { %5208 = vmatprep.subr.mxu1 %v5169_v29  ;;  %8282 = vmatprep.subr.mxu0 %v8870_v0 }
 0xec4   :  { %5209 = vmatpush1.msra.mxu1 %v5168_v54  ;;  %8283 = vmatpush3.msra.mxu0 %v5052_v58  ;;  %v5190_v58 = vld [vmem:[#allocation3 + $0x1d0] sm:$0xff] }
 0xec5   :  { %5210 = vmatprep.subr.mxu1 %v5165_v55  ;;  %8284 = vmatprep.subr.mxu0 %v8870_v0 }
 0xec6   :  { %5211 = vmatpush1.msra.mxu1 %v5164_v57  ;;  %8285 = vmatpush3.msra.mxu0 %v5051_v32  ;;  %v5187_v32 = vld [vmem:[#allocation3 + $0x1b8] sm:$0xff] }
 0xec7   :  { %5212 = vmatprep.subr.mxu1 %v5161_v24  ;;  %8286 = vmatprep.subr.mxu0 %v8870_v0 }
 0xec8   :  { %5213 = vmatpush1.msra.mxu1 %v5160_v34  ;;  %8287 = vmatpush3.msra.mxu0 %v5050_v35  ;;  %v5183_v35 = vld [vmem:[#allocation3 + $0x198] sm:$0xff] }
 0xec9   :  { %5214 = vmatprep.subr.mxu1 %v5157_v61  ;;  %8288 = vmatprep.subr.mxu0 %v8870_v0 }
 0xeca   :  { %5215 = vmatpush1.msra.mxu1 %v5156_v3  ;;  %8289 = vmatpush3.msra.mxu0 %v5049_v36  ;;  %v5182_v36 = vld [vmem:[#allocation3 + $0x190] sm:$0xff] }
 0xecb   :  { %5216 = vmatprep.subr.mxu1 %v5153_v45  ;;  %8290 = vmatprep.subr.mxu0 %v8870_v0 }
 0xecc   :  { %5217 = vmatpush1.msra.mxu1 %v5152_v16  ;;  %8291 = vmatpush3.msra.mxu0 %v5048_v38  ;;  %v5179_v38 = vld [vmem:[#allocation3 + $0x178] sm:$0xff] }
 0xecd   :  { %5218 = vmatprep.subr.mxu1 %v5149_v46  ;;  %8292 = vmatprep.subr.mxu0 %v8870_v0 }
 0xece   :  { %5219 = vmatpush1.msra.mxu1 %v5148_v11  ;;  %8293 = vmatpush3.msra.mxu0 %v5047_v2  ;;  %v5178_v2 = vld [vmem:[#allocation3 + $0x170] sm:$0xff] }
 0xecf   :  { %5220 = vmatprep.subr.mxu1 %v5145_v7  ;;  %8294 = vmatprep.subr.mxu0 %v8870_v0 }
 0xed0   :  { %5221 = vmatpush1.msra.mxu1 %v5144_v8  ;;  %8295 = vmatpush3.msra.mxu0 %v5046_v43  ;;  %v5175_v43 = vld [vmem:[#allocation3 + $0x158] sm:$0xff] }
 0xed1   :  { %5222 = vmatprep.subr.mxu1 %v5141_v40  ;;  %8296 = vmatprep.subr.mxu0 %v8870_v0 }
 0xed2   :  { %5223 = vmatpush1.msra.mxu1 %v5140_v1  ;;  %8297 = vmatpush3.msra.mxu0 %v5045_v44  ;;  %v5174_v44 = vld [vmem:[#allocation3 + $0x150] sm:$0xff] }
 0xed3   :  { %5224 = vmatprep.subr.mxu1 %v5137_v5  ;;  %8298 = vmatprep.subr.mxu0 %v8870_v0 }
 0xed4   :  { %5225 = vmatpush1.msra.mxu1 %v5136_v48  ;;  %8299 = vmatpush3.msra.mxu0 %v5044_v47  ;;  %v5171_v47 = vld [vmem:[#allocation3 + $0x138] sm:$0xff] }
 0xed5   :  { %5226 = vmatprep.subr.mxu1 %v5133_v4  ;;  %8300 = vmatprep.subr.mxu0 %v8870_v0 }
 0xed6   :  { %5227 = vmatpush1.msra.mxu1 %v5132_v31  ;;  %8301 = vmatpush3.msra.mxu0 %v5043_v10  ;;  %v5170_v10 = vld [vmem:[#allocation3 + $0x130] sm:$0xff] }
 0xed7   :  { %5261 = vmatmul.mubr.f32.vlgmr.msra.gmra.mxu1 %v9339_v56  ;;  %8302 = vmatprep.subr.mxu0 %v8870_v0 }
 0xed8   :  { %5574 = vmatprep.mubr.f32.mxu1 %v9353_v15  ;;  %8303 = vmatpush3.msra.mxu0 %v5042_v37  ;;  %v5167_v37 = vld [vmem:[#allocation3 + $0x118] sm:$0xff] }
 0xed9   :  { %5267 = vmatprep.subr.mxu0 %v5195_v6  ;;  %v5166_v6 = vld [vmem:[#allocation3 + $0x110] sm:$0xff] }
 0xf77   :  { %v4941_v50 = vpop.f32.mrf.mxu0  ;;  %v5012_v55 = vpop.f32.mrf.mxu1 }
 0xf78   :  { %v4942_v13 = vadd.f32 %v4941_v50, %v9074_v41  ;;  %v5013_v57 = vadd.f32 %v5012_v55, %v9082_v49  ;;  %v5163_v50 = vld [vmem:[#allocation3 + $0xf8] sm:$0xff] }
 0xf79   :  { %v4943_v22 = vpop.f32.mrf.mxu0  ;;  %v5014_v24 = vpop.f32.mrf.mxu1  ;;  %v5151_v55 = vld [vmem:[#allocation3 + $0x98] sm:$0xff] }
 0xf7a   :  { %v7972_v14 = vmul.f32 -1.442695, %v4942_v13  ;;  %v4944_v29 = vadd.f32 %v4943_v22, %v9077_v42  ;;  %v7974_v34 = vmul.f32 -1.442695, %v5013_v57  ;;  %v5015_v3 = vadd.f32 %v5014_v24, %v9086_v53  ;;  %v5162_v13 = vld [vmem:[#allocation3 + $0xf0] sm:$0xff]  ;;  %v5159_v22 = vld [vmem:[#allocation3 + $0xd8] sm:$0xff] }
 0xf7b   :  { %v5150_v57 = vld [vmem:[#allocation3 + $0x90] sm:$0xff]  ;;  %v5147_v24 = vld [vmem:[#allocation3 + $0x78] sm:$0xff] }
 0xf7c   :  { %8612 = vpow2.f32 %v7972_v14  ;;  %v7973_v54 = vmul.f32 -1.442695, %v4944_v29  ;;  %v5158_v14 = vld [vmem:[#allocation3 + $0xd0] sm:$0xff]  ;;  %v5155_v29 = vld [vmem:[#allocation3 + $0xb8] sm:$0xff] }
 0xf7e   :  { %8614 = vpow2.f32 %v7973_v54  ;;  %v5154_v54 = vld [vmem:[#allocation3 + $0xb0] sm:$0xff] }
 0xf7f   :  { %8616 = vpow2.f32 %v7974_v34  ;;  %v5146_v34 = vld [vmem:[#allocation3 + $0x70] sm:$0xff] }
 0xf89   :  { %v8613_v61 = vpop.eup %8612 }
 0xf8a   :  { %v5026_v45 = vadd.f32 1.0, %v8613_v61  ;;  %v5143_v61 = vld [vmem:[#allocation3 + $0x58] sm:$0xff] }
 0xf8b   :  { %v8615_v16 = vpop.eup %8614 }
 0xf8c   :  { %8618 = vrcp.f32 %v5026_v45  ;;  %v5027_v46 = vadd.f32 1.0, %v8615_v16  ;;  %v8617_v11 = vpop.eup %8616  ;;  %v5139_v45 = vld [vmem:[#allocation3 + $0x38] sm:$0xff]  ;;  %v5138_v16 = vld [vmem:[#allocation3 + $0x30] sm:$0xff] }
 0xf8d   :  { %8620 = vtanh.f32 %v5015_v3  ;;  %v5028_v1 = vadd.f32 1.0, %v8617_v11  ;;  %v5142_v3 = vld [vmem:[#allocation3 + $0x50] sm:$0xff] }
 0xf8e   :  { %8622 = vrcp.f32 %v5027_v46  ;;  %v5135_v46 = vld [vmem:[#allocation3 + $0x18] sm:$0xff]  ;;  %v5134_v11 = vld [vmem:[#allocation3 + $0x10] sm:$0xff] }
 0xf8f   :  { %8624 = vrcp.f32 %v5028_v1  ;;  %v5444_v1 = vld [vmem:[#allocation6 + $0x1f0] sm:$0xff] }
 0xf99   :  { %v8619_v7 = vpop.eup %8618 }
 0xf9a   :  { %v8621_v8 = vpop.eup %8620 }
 0xf9b   :  { %v8623_v40 = vpop.eup %8622  ;;  %v5037_v48 = vmul.f32 %v8621_v8, %v8619_v7  ;;  %v5443_v7 = vld [vmem:[#allocation6 + $0x1e8] sm:$0xff]  ;;  %v5445_v8 = vld [vmem:[#allocation6 + $0x1f8] sm:$0xff] }
 0xf9c   :  { %v5036_v5 = vmul.f32 %v8623_v40, %v9311_v60  ;;  %v8625_v31 = vpop.eup %8624  ;;  %v5186_v60 = vld [vmem:[#allocation3 + $0x1b0] sm:$0xff]  ;;  %5510 = vmatprep.subr.mxu1 %v5443_v7  ;;  %v5442_v40 = vld [vmem:[#allocation6 + $0x1e0] sm:$0xff] }
 0xf9d   :  { %5511 = vmatpush1.msra.mxu1 %v5442_v40  ;;  %v5402_v7 = vld [vmem:[#allocation6 + $0xa0] sm:$0xff]  ;;  %v5399_v40 = vld [vmem:[#allocation6 + $0x88] sm:$0xff] }
 0xf9e   :  { %v9381_v4 = vadd.f32 %v5037_v48, %v5036_v5  ;;  %v5439_v5 = vld [vmem:[#allocation6 + $0x1c8] sm:$0xff]  ;;  %v5441_v48 = vld [vmem:[#allocation6 + $0x1d8] sm:$0xff] }
 0xf9f   :  { %5512 = vmatprep.subr.mxu1 %v5439_v5  ;;  %v5398_v5 = vld [vmem:[#allocation6 + $0x80] sm:$0xff] }
 0xfa0   :  { %8626 = vtanh.f32 %v9381_v4 }
 0xfad   :  { %v8627_v12 = vpop.eup %8626 }
 0xfae   :  { %v9384_v17 = vmul.f32 %v8627_v12, %v8625_v31  ;;  %v5438_v31 = vld [vmem:[#allocation6 + $0x1c0] sm:$0xff]  ;;  %v5440_v12 = vld [vmem:[#allocation6 + $0x1d0] sm:$0xff] }
 0xfaf   :  { %5513 = vmatpush1.msra.mxu1 %v5438_v31  ;;  %v5395_v31 = vld [vmem:[#allocation6 + $0x68] sm:$0xff] }
 0xfb0   :  { %v5041_v9 = vmax.f32 %v9384_v17, 0.0 }
 0xfb2   :  { %8305 = vmatmul.mubr.f32.vlgmr.msra.gmra.mxu0 %v5041_v9  ;;  %v5435_v9 = vld [vmem:[#allocation6 + $0x1a8] sm:$0xff] }
 0xfb3   :  { %5268 = vmatpush1.msra.mxu0 %v5194_v23  ;;  %5331 = vmatprep.mubr.f32.mxu0 %v8870_v0  ;;  %v5436_v23 = vld [vmem:[#allocation6 + $0x1b0] sm:$0xff] }
 0xfb4   :  { %5269 = vmatprep.subr.mxu0 %v5191_v30  ;;  %5514 = vmatprep.subr.mxu1 %v5435_v9  ;;  %v5431_v30 = vld [vmem:[#allocation6 + $0x188] sm:$0xff]  ;;  %v5394_v9 = vld [vmem:[#allocation6 + $0x60] sm:$0xff] }
 0xfb5   :  { %5270 = vmatpush1.msra.mxu0 %v5190_v58  ;;  %v5433_v58 = vld [vmem:[#allocation6 + $0x198] sm:$0xff] }
 0xfb6   :  { %5271 = vmatprep.subr.mxu0 %v5187_v32  ;;  %v5430_v32 = vld [vmem:[#allocation6 + $0x180] sm:$0xff] }
 0xfb7   :  { %5272 = vmatpush1.msra.mxu0 %v5186_v60  ;;  %v5432_v60 = vld [vmem:[#allocation6 + $0x190] sm:$0xff] }
 0xfb8   :  { %5273 = vmatprep.subr.mxu0 %v5183_v35  ;;  %v5427_v35 = vld [vmem:[#allocation6 + $0x168] sm:$0xff] }
 0xfb9   :  { %5274 = vmatpush1.msra.mxu0 %v5182_v36  ;;  %v5429_v36 = vld [vmem:[#allocation6 + $0x178] sm:$0xff] }
 0xfba   :  { %5275 = vmatprep.subr.mxu0 %v5179_v38  ;;  %v5426_v38 = vld [vmem:[#allocation6 + $0x160] sm:$0xff] }
 0xfbb   :  { %5276 = vmatpush1.msra.mxu0 %v5178_v2  ;;  %v5428_v2 = vld [vmem:[#allocation6 + $0x170] sm:$0xff] }
 0xfbc   :  { %5277 = vmatprep.subr.mxu0 %v5175_v43  ;;  %v5423_v43 = vld [vmem:[#allocation6 + $0x148] sm:$0xff] }
 0xfbd   :  { %5278 = vmatpush1.msra.mxu0 %v5174_v44  ;;  %v5425_v44 = vld [vmem:[#allocation6 + $0x158] sm:$0xff] }
 0xfbe   :  { %5279 = vmatprep.subr.mxu0 %v5171_v47  ;;  %v5422_v47 = vld [vmem:[#allocation6 + $0x140] sm:$0xff] }
 0xfbf   :  { %5280 = vmatpush1.msra.mxu0 %v5170_v10  ;;  %v5424_v10 = vld [vmem:[#allocation6 + $0x150] sm:$0xff] }
 0xfc0   :  { %5281 = vmatprep.subr.mxu0 %v5167_v37  ;;  %v5419_v37 = vld [vmem:[#allocation6 + $0x128] sm:$0xff] }
 0xfc1   :  { %5282 = vmatpush1.msra.mxu0 %v5166_v6  ;;  %v5421_v6 = vld [vmem:[#allocation6 + $0x138] sm:$0xff] }
 0xfc2   :  { %5283 = vmatprep.subr.mxu0 %v5163_v50  ;;  %v5418_v50 = vld [vmem:[#allocation6 + $0x120] sm:$0xff] }
 0xfc3   :  { %5284 = vmatpush1.msra.mxu0 %v5162_v13  ;;  %v5420_v13 = vld [vmem:[#allocation6 + $0x130] sm:$0xff] }
 0xfc4   :  { %5285 = vmatprep.subr.mxu0 %v5159_v22  ;;  %v5415_v22 = vld [vmem:[#allocation6 + $0x108] sm:$0xff] }
 0xfc5   :  { %5286 = vmatpush1.msra.mxu0 %v5158_v14  ;;  %v5417_v14 = vld [vmem:[#allocation6 + $0x118] sm:$0xff] }
 0xfc6   :  { %5287 = vmatprep.subr.mxu0 %v5155_v29  ;;  %v5414_v29 = vld [vmem:[#allocation6 + $0x100] sm:$0xff] }
 0xfc7   :  { %5288 = vmatpush1.msra.mxu0 %v5154_v54  ;;  %v5416_v54 = vld [vmem:[#allocation6 + $0x110] sm:$0xff] }
 0xfc8   :  { %5289 = vmatprep.subr.mxu0 %v5151_v55  ;;  %v5411_v55 = vld [vmem:[#allocation6 + $0xe8] sm:$0xff] }
 0xfc9   :  { %5290 = vmatpush1.msra.mxu0 %v5150_v57  ;;  %v5413_v57 = vld [vmem:[#allocation6 + $0xf8] sm:$0xff] }
 0xfca   :  { %5291 = vmatprep.subr.mxu0 %v5147_v24  ;;  %v5410_v24 = vld [vmem:[#allocation6 + $0xe0] sm:$0xff] }
 0xfcb   :  { %5292 = vmatpush1.msra.mxu0 %v5146_v34  ;;  %v5412_v34 = vld [vmem:[#allocation6 + $0xf0] sm:$0xff] }
 0xfcc   :  { %5293 = vmatprep.subr.mxu0 %v5143_v61  ;;  %v5407_v61 = vld [vmem:[#allocation6 + $0xc8] sm:$0xff] }
 0xfcd   :  { %5294 = vmatpush1.msra.mxu0 %v5142_v3  ;;  %v5409_v3 = vld [vmem:[#allocation6 + $0xd8] sm:$0xff] }
 0xfce   :  { %5295 = vmatprep.subr.mxu0 %v5139_v45  ;;  %v5406_v45 = vld [vmem:[#allocation6 + $0xc0] sm:$0xff] }
 0xfcf   :  { %5296 = vmatpush1.msra.mxu0 %v5138_v16  ;;  %v5408_v16 = vld [vmem:[#allocation6 + $0xd0] sm:$0xff] }
 0xfd0   :  { %5297 = vmatprep.subr.mxu0 %v5135_v46  ;;  %v5403_v46 = vld [vmem:[#allocation6 + $0xa8] sm:$0xff] }
 0xfd1   :  { %5298 = vmatpush1.msra.mxu0 %v5134_v11  ;;  %v5405_v11 = vld [vmem:[#allocation6 + $0xb8] sm:$0xff] }
 0xfd2   :  { %5332 = vmatmul.mubr.f32.vlgmr.msra.gmra.mxu0 %v9339_v56  ;;  %5581 = vmatprep.subr.mxu0 %v5445_v8  ;;  %v5437_v56 = vld [vmem:[#allocation6 + $0x1b8] sm:$0xff]  ;;  %v5404_v8 = vld [vmem:[#allocation6 + $0xb0] sm:$0xff] }
 0xfd3   :  { %5645 = vmatprep.mubr.f32.mxu0 %v9353_v15  ;;  %5582 = vmatpush1.msra.mxu0 %v5444_v1  ;;  %v5434_v15 = vld [vmem:[#allocation6 + $0x1a0] sm:$0xff]  ;;  %v5401_v1 = vld [vmem:[#allocation6 + $0x98] sm:$0xff] }
 0xfd4   :  { %5583 = vmatprep.subr.mxu0 %v5441_v48  ;;  %5515 = vmatpush1.msra.mxu1 %v5434_v15  ;;  %v5400_v48 = vld [vmem:[#allocation6 + $0x90] sm:$0xff]  ;;  %v5391_v15 = vld [vmem:[#allocation6 + $0x48] sm:$0xff] }
 0xfd5   :  { %5584 = vmatpush1.msra.mxu0 %v5440_v12  ;;  %5516 = vmatprep.subr.mxu1 %v5431_v30  ;;  %v5397_v12 = vld [vmem:[#allocation6 + $0x78] sm:$0xff]  ;;  %v5390_v30 = vld [vmem:[#allocation6 + $0x40] sm:$0xff] }
 0xfd6   :  { %5585 = vmatprep.subr.mxu0 %v5437_v56  ;;  %5517 = vmatpush1.msra.mxu1 %v5430_v32  ;;  %v5396_v56 = vld [vmem:[#allocation6 + $0x70] sm:$0xff]  ;;  %v5387_v32 = vld [vmem:[#allocation6 + $0x28] sm:$0xff] }
 0xfd7   :  { %5586 = vmatpush1.msra.mxu0 %v5436_v23  ;;  %5518 = vmatprep.subr.mxu1 %v5427_v35  ;;  %v5393_v23 = vld [vmem:[#allocation6 + $0x58] sm:$0xff]  ;;  %v5386_v35 = vld [vmem:[#allocation6 + $0x20] sm:$0xff] }
 0xfd8   :  { %5587 = vmatprep.subr.mxu0 %v5433_v58  ;;  %5519 = vmatpush1.msra.mxu1 %v5426_v38  ;;  %v5392_v58 = vld [vmem:[#allocation6 + $0x50] sm:$0xff]  ;;  %v5383_v38 = vld [vmem:[#allocation6 + $0x8] sm:$0xff] }
 0xfd9   :  { %5588 = vmatpush1.msra.mxu0 %v5432_v60  ;;  %5520 = vmatprep.subr.mxu1 %v5423_v43  ;;  %v5389_v60 = vld [vmem:[#allocation6 + $0x38] sm:$0xff]  ;;  %v5382_v43 = vld [vmem:[#allocation6] sm:$0xff] }
 0xfda   :  { %5589 = vmatprep.subr.mxu0 %v5429_v36  ;;  %5521 = vmatpush1.msra.mxu1 %v5422_v47  ;;  %v5388_v36 = vld [vmem:[#allocation6 + $0x30] sm:$0xff]  ;;  %v5507_v47 = vld [vmem:[#allocation6 + $0x3e8] sm:$0xff] }
 0xfdb   :  { %5590 = vmatpush1.msra.mxu0 %v5428_v2  ;;  %5522 = vmatprep.subr.mxu1 %v5419_v37  ;;  %v5385_v2 = vld [vmem:[#allocation6 + $0x18] sm:$0xff]  ;;  %v5506_v37 = vld [vmem:[#allocation6 + $0x3e0] sm:$0xff] }
 0xfdc   :  { %5591 = vmatprep.subr.mxu0 %v5425_v44  ;;  %5523 = vmatpush1.msra.mxu1 %v5418_v50  ;;  %v5384_v44 = vld [vmem:[#allocation6 + $0x10] sm:$0xff]  ;;  %v5503_v50 = vld [vmem:[#allocation6 + $0x3c8] sm:$0xff] }
 0xfdd   :  { %5592 = vmatpush1.msra.mxu0 %v5424_v10  ;;  %5524 = vmatprep.subr.mxu1 %v5415_v22  ;;  %v5509_v10 = vld [vmem:[#allocation6 + $0x3f8] sm:$0xff]  ;;  %v5502_v22 = vld [vmem:[#allocation6 + $0x3c0] sm:$0xff] }
 0xfde   :  { %5593 = vmatprep.subr.mxu0 %v5421_v6  ;;  %5525 = vmatpush1.msra.mxu1 %v5414_v29  ;;  %v5508_v6 = vld [vmem:[#allocation6 + $0x3f0] sm:$0xff]  ;;  %v5499_v29 = vld [vmem:[#allocation6 + $0x3a8] sm:$0xff] }
 0xfdf   :  { %5594 = vmatpush1.msra.mxu0 %v5420_v13  ;;  %5526 = vmatprep.subr.mxu1 %v5411_v55  ;;  %v5505_v13 = vld [vmem:[#allocation6 + $0x3d8] sm:$0xff]  ;;  %v5498_v55 = vld [vmem:[#allocation6 + $0x3a0] sm:$0xff] }
 0xfe0   :  { %5595 = vmatprep.subr.mxu0 %v5417_v14  ;;  %5527 = vmatpush1.msra.mxu1 %v5410_v24  ;;  %v5504_v14 = vld [vmem:[#allocation6 + $0x3d0] sm:$0xff]  ;;  %v5495_v24 = vld [vmem:[#allocation6 + $0x388] sm:$0xff] }
 0xfe1   :  { %5596 = vmatpush1.msra.mxu0 %v5416_v54  ;;  %5528 = vmatprep.subr.mxu1 %v5407_v61  ;;  %v5501_v54 = vld [vmem:[#allocation6 + $0x3b8] sm:$0xff]  ;;  %v5494_v61 = vld [vmem:[#allocation6 + $0x380] sm:$0xff] }
 0xfe2   :  { %5597 = vmatprep.subr.mxu0 %v5413_v57  ;;  %5529 = vmatpush1.msra.mxu1 %v5406_v45  ;;  %v5500_v57 = vld [vmem:[#allocation6 + $0x3b0] sm:$0xff]  ;;  %v5491_v45 = vld [vmem:[#allocation6 + $0x368] sm:$0xff] }
 0xfe3   :  { %5598 = vmatpush1.msra.mxu0 %v5412_v34  ;;  %5530 = vmatprep.subr.mxu1 %v5403_v46  ;;  %v5497_v34 = vld [vmem:[#allocation6 + $0x398] sm:$0xff]  ;;  %v5490_v46 = vld [vmem:[#allocation6 + $0x360] sm:$0xff] }
 0xfe4   :  { %5599 = vmatprep.subr.mxu0 %v5409_v3  ;;  %5531 = vmatpush1.msra.mxu1 %v5402_v7  ;;  %v5496_v3 = vld [vmem:[#allocation6 + $0x390] sm:$0xff]  ;;  %v5487_v7 = vld [vmem:[#allocation6 + $0x348] sm:$0xff] }
 0xfe5   :  { %5600 = vmatpush1.msra.mxu0 %v5408_v16  ;;  %5532 = vmatprep.subr.mxu1 %v5399_v40  ;;  %v5493_v16 = vld [vmem:[#allocation6 + $0x378] sm:$0xff]  ;;  %v5486_v40 = vld [vmem:[#allocation6 + $0x340] sm:$0xff] }
 0xfe6   :  { %5601 = vmatprep.subr.mxu0 %v5405_v11  ;;  %5533 = vmatpush1.msra.mxu1 %v5398_v5  ;;  %v5492_v11 = vld [vmem:[#allocation6 + $0x370] sm:$0xff]  ;;  %v5483_v5 = vld [vmem:[#allocation6 + $0x328] sm:$0xff] }
 0xfe7   :  { %5602 = vmatpush1.msra.mxu0 %v5404_v8  ;;  %5534 = vmatprep.subr.mxu1 %v5395_v31  ;;  %v5489_v8 = vld [vmem:[#allocation6 + $0x358] sm:$0xff]  ;;  %v5482_v31 = vld [vmem:[#allocation6 + $0x320] sm:$0xff] }
 0xfe8   :  { %5603 = vmatprep.subr.mxu0 %v5401_v1  ;;  %5535 = vmatpush1.msra.mxu1 %v5394_v9  ;;  %v5488_v1 = vld [vmem:[#allocation6 + $0x350] sm:$0xff]  ;;  %v5479_v9 = vld [vmem:[#allocation6 + $0x308] sm:$0xff] }
 0xfe9   :  { %5604 = vmatpush1.msra.mxu0 %v5400_v48  ;;  %5536 = vmatprep.subr.mxu1 %v5391_v15  ;;  %v5485_v48 = vld [vmem:[#allocation6 + $0x338] sm:$0xff]  ;;  %v5478_v15 = vld [vmem:[#allocation6 + $0x300] sm:$0xff] }
 0xfea   :  { %5605 = vmatprep.subr.mxu0 %v5397_v12  ;;  %5537 = vmatpush1.msra.mxu1 %v5390_v30  ;;  %v5484_v12 = vld [vmem:[#allocation6 + $0x330] sm:$0xff]  ;;  %v5475_v30 = vld [vmem:[#allocation6 + $0x2e8] sm:$0xff] }
 0xfeb   :  { %5606 = vmatpush1.msra.mxu0 %v5396_v56  ;;  %5538 = vmatprep.subr.mxu1 %v5387_v32  ;;  %v5481_v56 = vld [vmem:[#allocation6 + $0x318] sm:$0xff]  ;;  %v5474_v32 = vld [vmem:[#allocation6 + $0x2e0] sm:$0xff] }
 0xfec   :  { %5607 = vmatprep.subr.mxu0 %v5393_v23  ;;  %5539 = vmatpush1.msra.mxu1 %v5386_v35  ;;  %v5480_v23 = vld [vmem:[#allocation6 + $0x310] sm:$0xff]  ;;  %v5471_v35 = vld [vmem:[#allocation6 + $0x2c8] sm:$0xff] }
 0xfed   :  { %5608 = vmatpush1.msra.mxu0 %v5392_v58  ;;  %5540 = vmatprep.subr.mxu1 %v5383_v38  ;;  %v5477_v58 = vld [vmem:[#allocation6 + $0x2f8] sm:$0xff]  ;;  %v5470_v38 = vld [vmem:[#allocation6 + $0x2c0] sm:$0xff] }
 0xfee   :  { %5609 = vmatprep.subr.mxu0 %v5389_v60  ;;  %5541 = vmatpush1.msra.mxu1 %v5382_v43  ;;  %v5476_v60 = vld [vmem:[#allocation6 + $0x2f0] sm:$0xff]  ;;  %v5467_v43 = vld [vmem:[#allocation6 + $0x2a8] sm:$0xff] }
 0xfef   :  { %5610 = vmatpush1.msra.mxu0 %v5388_v36  ;;  %5542 = vmatprep.subr.mxu1 %v5507_v47  ;;  %v5473_v36 = vld [vmem:[#allocation6 + $0x2d8] sm:$0xff]  ;;  %v5466_v47 = vld [vmem:[#allocation6 + $0x2a0] sm:$0xff] }
 0xff0   :  { %5611 = vmatprep.subr.mxu0 %v5385_v2  ;;  %5543 = vmatpush2.msra.mxu1 %v5506_v37  ;;  %v5472_v2 = vld [vmem:[#allocation6 + $0x2d0] sm:$0xff]  ;;  %v5463_v37 = vld [vmem:[#allocation6 + $0x288] sm:$0xff] }
 0xff1   :  { %5612 = vmatpush1.msra.mxu0 %v5384_v44  ;;  %5544 = vmatprep.subr.mxu1 %v5503_v50  ;;  %v5469_v44 = vld [vmem:[#allocation6 + $0x2b8] sm:$0xff]  ;;  %v5462_v50 = vld [vmem:[#allocation6 + $0x280] sm:$0xff] }
 0xff2   :  { %5613 = vmatprep.subr.mxu0 %v5509_v10  ;;  %5545 = vmatpush2.msra.mxu1 %v5502_v22  ;;  %v5468_v10 = vld [vmem:[#allocation6 + $0x2b0] sm:$0xff]  ;;  %v5459_v22 = vld [vmem:[#allocation6 + $0x268] sm:$0xff] }
 0xff3   :  { %5614 = vmatpush2.msra.mxu0 %v5508_v6  ;;  %5546 = vmatprep.subr.mxu1 %v5499_v29  ;;  %v5465_v6 = vld [vmem:[#allocation6 + $0x298] sm:$0xff]  ;;  %v5458_v29 = vld [vmem:[#allocation6 + $0x260] sm:$0xff] }
 0xff4   :  { %5615 = vmatprep.subr.mxu0 %v5505_v13  ;;  %5547 = vmatpush2.msra.mxu1 %v5498_v55  ;;  %v5464_v13 = vld [vmem:[#allocation6 + $0x290] sm:$0xff]  ;;  %v5455_v55 = vld [vmem:[#allocation6 + $0x248] sm:$0xff] }
 0xff5   :  { %5616 = vmatpush2.msra.mxu0 %v5504_v14  ;;  %5548 = vmatprep.subr.mxu1 %v5495_v24  ;;  %v5461_v14 = vld [vmem:[#allocation6 + $0x278] sm:$0xff]  ;;  %v5454_v24 = vld [vmem:[#allocation6 + $0x240] sm:$0xff] }
 0xff6   :  { %5617 = vmatprep.subr.mxu0 %v5501_v54  ;;  %5549 = vmatpush2.msra.mxu1 %v5494_v61  ;;  %v5460_v54 = vld [vmem:[#allocation6 + $0x270] sm:$0xff]  ;;  %v5451_v61 = vld [vmem:[#allocation6 + $0x228] sm:$0xff] }
 0xff7   :  { %5618 = vmatpush2.msra.mxu0 %v5500_v57  ;;  %5550 = vmatprep.subr.mxu1 %v5491_v45  ;;  %v5457_v57 = vld [vmem:[#allocation6 + $0x258] sm:$0xff]  ;;  %v5450_v45 = vld [vmem:[#allocation6 + $0x220] sm:$0xff] }
 0xff8   :  { %5619 = vmatprep.subr.mxu0 %v5497_v34  ;;  %5551 = vmatpush2.msra.mxu1 %v5490_v46  ;;  %v5456_v34 = vld [vmem:[#allocation6 + $0x250] sm:$0xff]  ;;  %v5447_v46 = vld [vmem:[#allocation6 + $0x208] sm:$0xff] }
 0xff9   :  { %5620 = vmatpush2.msra.mxu0 %v5496_v3  ;;  %5552 = vmatprep.subr.mxu1 %v5487_v7  ;;  %v5453_v3 = vld [vmem:[#allocation6 + $0x238] sm:$0xff]  ;;  %v5446_v7 = vld [vmem:[#allocation6 + $0x200] sm:$0xff] }
 0xffa   :  { %5621 = vmatprep.subr.mxu0 %v5493_v16  ;;  %5553 = vmatpush2.msra.mxu1 %v5486_v40  ;;  %v5452_v16 = vld [vmem:[#allocation6 + $0x230] sm:$0xff]  ;;  %v5740_v40 = vld [vmem:[#allocation8 + $0x1f8] sm:$0xff] }
 0xffb   :  { %5622 = vmatpush2.msra.mxu0 %v5492_v11  ;;  %5554 = vmatprep.subr.mxu1 %v5483_v5  ;;  %v5449_v11 = vld [vmem:[#allocation6 + $0x218] sm:$0xff] }
 0xffc   :  { %5623 = vmatprep.subr.mxu0 %v5489_v8  ;;  %5555 = vmatpush2.msra.mxu1 %v5482_v31  ;;  %v5448_v8 = vld [vmem:[#allocation6 + $0x210] sm:$0xff] }
 0xffd   :  { %5624 = vmatpush2.msra.mxu0 %v5488_v1  ;;  %5556 = vmatprep.subr.mxu1 %v5479_v9  ;;  %v5738_v1 = vld [vmem:[#allocation8 + $0x1e8] sm:$0xff]  ;;  %v128_v9 = vpop.permute.xlu1 %127 }
 0xffe   :  { %5625 = vmatprep.subr.mxu0 %v5485_v48  ;;  %5557 = vmatpush2.msra.mxu1 %v5478_v15  ;;  %v8751_v48 = vld [vmem:[%s9594_s9] ss:$0 sm:$0xff]  ;;  %v182_v15 = vmul.f32 %v8979_v19, %v128_v9 }
 0xfff   :  { %5626 = vmatpush2.msra.mxu0 %v5484_v12  ;;  %5558 = vmatprep.subr.mxu1 %v5475_v30  ;;  %v184_v30 = vmul.f32 %v8985_v21, %v128_v9 }
0x1000   :  { %5627 = vmatprep.subr.mxu0 %v5481_v56  ;;  %5559 = vmatpush2.msra.mxu1 %v5474_v32  ;;  %v181_v56 = vmul.f32 %v8976_v18, %v128_v9 }
0x1001   :  { %5628 = vmatpush2.msra.mxu0 %v5480_v23  ;;  %5560 = vmatprep.subr.mxu1 %v5471_v35  ;;  %v183_v23 = vmul.f32 %v8982_v20, %v128_v9  ;;  %v5733_v9 = vld [vmem:[#allocation8 + $0x1c0] sm:$0xff] }
0x1002   :  { %5629 = vmatprep.subr.mxu0 %v5477_v58  ;;  %5561 = vmatpush2.msra.mxu1 %v5470_v38  ;;  %v5262_v58 = vpop.f32.mrf.mxu1  ;;  %v235_v32 = vadd.f32 %v8991_v25, %v181_v56  ;;  %v5732_v56 = vld [vmem:[#allocation8 + $0x1b8] sm:$0xff] }
0x1003   :  { %5630 = vmatpush2.msra.mxu0 %v5476_v60  ;;  %5562 = vmatprep.subr.mxu1 %v5467_v43  ;;  %v236_v60 = vadd.f32 %v8994_v26, %v182_v15  ;;  %v237_v35 = vadd.f32 %v8997_v27, %v183_v23  ;;  %v5730_v15 = vld [vmem:[#allocation8 + $0x1a8] sm:$0xff]  ;;  %v5731_v23 = vld [vmem:[#allocation8 + $0x1b0] sm:$0xff] }
0x1004   :  { %5631 = vmatprep.subr.mxu0 %v5473_v36  ;;  %5563 = vmatpush2.msra.mxu1 %v5466_v47  ;;  %v238_v36 = vadd.f32 %v9000_v28, %v184_v30  ;;  %v5264_v38 = vpop.f32.mrf.mxu1  ;;  %v5729_v30 = vld [vmem:[#allocation8 + $0x1a0] sm:$0xff] }
0x1005   :  { %5632 = vmatpush2.msra.mxu0 %v5472_v2  ;;  %5564 = vmatprep.subr.mxu1 %v5463_v37  ;;  %v364_v2 = vcombine.low %v235_v32, %v236_v60  ;;  %v5342_v47 = vcombine.low %v5262_v58, %v5264_v38  ;;  %v5728_v58 = vld [vmem:[#allocation8 + $0x198] sm:$0xff]  ;;  %v5726_v32 = vld [vmem:[#allocation8 + $0x188] sm:$0xff]  ;;  %v5725_v60 = vld [vmem:[#allocation8 + $0x180] sm:$0xff] }
0x1006   :  { %5633 = vmatprep.subr.mxu0 %v5469_v44  ;;  %5565 = vmatpush2.msra.mxu1 %v5462_v50  ;;  %v365_v43 = vcombine.low %v237_v35, %v238_v36  ;;  %v5724_v35 = vld [vmem:[#allocation8 + $0x178] sm:$0xff]  ;;  %v5722_v36 = vld [vmem:[#allocation8 + $0x168] sm:$0xff]  ;;  %v5723_v38 = vld [vmem:[#allocation8 + $0x170] sm:$0xff] }
0x1007   :  { %5634 = vmatpush2.msra.mxu0 %v5468_v10  ;;  %5566 = vmatprep.subr.mxu1 %v5459_v22  ;;  %v372_v37 = vrot.slane %v364_v2, %v9010_v39  ;;  %v5721_v2 = vld [vmem:[#allocation8 + $0x160] sm:$0xff] }
0x1008   :  { %5635 = vmatprep.subr.mxu0 %v5465_v6  ;;  %5567 = vmatpush2.msra.mxu1 %v5458_v29  ;;  %v379_v6 = vrot.slane %v365_v43, %v9010_v39  ;;  %v5720_v43 = vld [vmem:[#allocation8 + $0x158] sm:$0xff] }
0x1009   :  { %5636 = vmatpush2.msra.mxu0 %v5464_v13  ;;  %5568 = vmatprep.subr.mxu1 %v5455_v55  ;;  %v5350_v13 = vrot.slane %v5342_v47, %v9010_v39  ;;  %v5719_v47 = vld [vmem:[#allocation8 + $0x150] sm:$0xff] }
0x100a   :  { %5637 = vmatprep.subr.mxu0 %v5461_v14  ;;  %5569 = vmatpush2.msra.mxu1 %v5454_v24  ;;  %v380_v14 = vcombine.low %v372_v37, %v379_v6  ;;  %v5716_v37 = vld [vmem:[#allocation8 + $0x138] sm:$0xff]  ;;  %v5714_v6 = vld [vmem:[#allocation8 + $0x128] sm:$0xff] }
0x100b   :  { %5638 = vmatpush2.msra.mxu0 %v5460_v54  ;;  %5570 = vmatprep.subr.mxu1 %v5451_v61 }
0x100c   :  { %5639 = vmatprep.subr.mxu0 %v5457_v57  ;;  %5571 = vmatpush2.msra.mxu1 %v5450_v45 }
0x100d   :  { %5640 = vmatpush2.msra.mxu0 %v5456_v34  ;;  %5572 = vmatprep.subr.mxu1 %v5447_v46 }
0x100e   :  { %5641 = vmatprep.subr.mxu0 %v5453_v3  ;;  %5573 = vmatpush2.msra.mxu1 %v5446_v7 }
0x100f   :  { %5642 = vmatpush2.msra.mxu0 %v5452_v16  ;;  %5805 = vmatprep.subr.mxu1 %v5738_v1 }
0x1010   :  { %5643 = vmatprep.subr.mxu0 %v5449_v11 }
0x1011   :  { %5644 = vmatpush2.msra.mxu0 %v5448_v8 }
0x1012   :  { %5876 = vmatprep.subr.mxu0 %v5740_v40 }
0x1072   :  { %v5124_v5 = vpop.f32.mrf.mxu0 }
0x1073   :  { %v5125_v31 = vadd.f32 %v8751_v48, %v5124_v5  ;;  %v5739_v5 = vld [vmem:[#allocation8 + $0x1f0] sm:$0xff]  ;;  %v5737_v48 = vld [vmem:[#allocation8 + $0x1e0] sm:$0xff] }
0x1074   :  { %v8306_v12 = vpop.f32.mrf.mxu0 }
0x1075   :  { %5129 = vst [vmem:[#allocation11 + $0x8] sm:$0x3] %v5125_v31  ;;  %v5736_v31 = vld [vmem:[#allocation8 + $0x1d8] sm:$0xff]  ;;  %v5734_v12 = vld [vmem:[#allocation8 + $0x1c8] sm:$0xff] }
0x1092   :  { %v5333_v44 = vpop.f32.mrf.mxu0 }
0x1094   :  { %v5335_v10 = vpop.f32.mrf.mxu0 }
0x1095   :  { %v5343_v50 = vcombine.low %v5333_v44, %v5335_v10  ;;  %v5718_v44 = vld [vmem:[#allocation8 + $0x148] sm:$0xff]  ;;  %v5717_v10 = vld [vmem:[#allocation8 + $0x140] sm:$0xff] }
0x1097   :  { %v5357_v22 = vrot.slane %v5343_v50, %v9010_v39  ;;  %v5715_v50 = vld [vmem:[#allocation8 + $0x130] sm:$0xff] }
0x1099   :  { %v5358_v29 = vcombine.low %v5350_v13, %v5357_v22  ;;  %v5713_v13 = vld [vmem:[#allocation8 + $0x120] sm:$0xff]  ;;  %v5712_v22 = vld [vmem:[#allocation8 + $0x118] sm:$0xff] }
0x109b   :  { %v5360_v54 = vadd.f32 %v5358_v29, %v380_v14  ;;  %v5710_v14 = vld [vmem:[#allocation8 + $0x108] sm:$0xff]  ;;  %v5711_v29 = vld [vmem:[#allocation8 + $0x110] sm:$0xff] }
0x109d   :  { %v7975_v55 = vmul.f32 -1.442695, %v5360_v54  ;;  %v5368_v34 = vrot.slane %v5360_v54, 6  ;;  %v5709_v54 = vld [vmem:[#allocation8 + $0x100] sm:$0xff] }
0x109f   :  { %8628 = vpow2.f32 %v7975_v55  ;;  %v5708_v55 = vld [vmem:[#allocation8 + $0xf8] sm:$0xff] }
0x10ac   :  { %v8629_v57 = vpop.eup %8628 }
0x10ad   :  { %v5364_v24 = vadd.f32 1.0, %v8629_v57  ;;  %v5706_v57 = vld [vmem:[#allocation8 + $0xe8] sm:$0xff] }
0x10af   :  { %8630 = vrcp.f32 %v5364_v24  ;;  %v5707_v24 = vld [vmem:[#allocation8 + $0xf0] sm:$0xff] }
0x10b0   :  { %8632 = vtanh.f32 %v5368_v34  ;;  %v5705_v34 = vld [vmem:[#allocation8 + $0xe0] sm:$0xff] }
0x10bc   :  { %v8631_v61 = vpop.eup %8630 }
0x10bd   :  { %v5372_v3 = vrot.slane %v8631_v61, 2  ;;  %v8633_v45 = vpop.eup %8632  ;;  %v5378_v7 = vrot.slane %v8631_v61, 4 }
0x10be   :  { %v5375_v46 = vmul.f32 %v8633_v45, %v8631_v61  ;;  %v5704_v61 = vld [vmem:[#allocation8 + $0xd8] sm:$0xff]  ;;  %v5703_v45 = vld [vmem:[#allocation8 + $0xd0] sm:$0xff] }
0x10bf   :  { %v5374_v16 = vmul.f32 %v5372_v3, %v9336_v63  ;;  %v5735_v63 = vld [vmem:[#allocation8 + $0x1d0] sm:$0xff]  ;;  %v5702_v3 = vld [vmem:[#allocation8 + $0xc8] sm:$0xff] }
0x10c1   :  { %v9406_v11 = vadd.f32 %v5375_v46, %v5374_v16  ;;  %v5701_v16 = vld [vmem:[#allocation8 + $0xc0] sm:$0xff]  ;;  %v5700_v46 = vld [vmem:[#allocation8 + $0xb8] sm:$0xff] }
0x10c3   :  { %8634 = vtanh.f32 %v9406_v11 }
0x10d0   :  { %v8635_v8 = vpop.eup %8634 }
0x10d1   :  { %v9409_v40 = vmul.f32 %v8635_v8, %v5378_v7  ;;  %v5698_v7 = vld [vmem:[#allocation8 + $0xa8] sm:$0xff]  ;;  %v5699_v8 = vld [vmem:[#allocation8 + $0xb0] sm:$0xff] }
0x10d3   :  { %v5381_v1 = vmax.f32 %v9409_v40, 0.0 }
0x10d5   :  { %5575 = vmatmul.mubr.f32.vlgmr.msra.gmra.mxu1 %v5381_v1  ;;  %5646 = vmatmul.mubr.f32.vlgmr.msra.gmra.mxu0 %v5381_v1  ;;  %v5697_v1 = vld [vmem:[#allocation8 + $0xa0] sm:$0xff] }
0x10d6   :  { %5869 = vmatprep.mubr.f32.mxu1 %v9384_v17  ;;  %5940 = vmatprep.mubr.f32.mxu0 %v9384_v17  ;;  %v5727_v17 = vld [vmem:[#allocation8 + $0x190] sm:$0xff] }
0x10d7   :  { %5877 = vmatpush1.msra.mxu0 %v5739_v5  ;;  %5806 = vmatpush1.msra.mxu1 %v5737_v48  ;;  %v5696_v5 = vld [vmem:[#allocation8 + $0x98] sm:$0xff]  ;;  %v5694_v48 = vld [vmem:[#allocation8 + $0x88] sm:$0xff] }
0x10d8   :  { %5878 = vmatprep.subr.mxu0 %v5736_v31  ;;  %5807 = vmatprep.subr.mxu1 %v5734_v12  ;;  %v5695_v31 = vld [vmem:[#allocation8 + $0x90] sm:$0xff]  ;;  %v5693_v12 = vld [vmem:[#allocation8 + $0x80] sm:$0xff] }
0x10d9   :  { %5879 = vmatpush1.msra.mxu0 %v5735_v63  ;;  %5808 = vmatpush1.msra.mxu1 %v5733_v9  ;;  %v5692_v63 = vld [vmem:[#allocation8 + $0x78] sm:$0xff]  ;;  %v5690_v9 = vld [vmem:[#allocation8 + $0x68] sm:$0xff] }
0x10da   :  { %5880 = vmatprep.subr.mxu0 %v5732_v56  ;;  %5809 = vmatprep.subr.mxu1 %v5730_v15  ;;  %v5691_v56 = vld [vmem:[#allocation8 + $0x70] sm:$0xff]  ;;  %v5689_v15 = vld [vmem:[#allocation8 + $0x60] sm:$0xff] }
0x10db   :  { %5881 = vmatpush1.msra.mxu0 %v5731_v23  ;;  %5810 = vmatpush1.msra.mxu1 %v5729_v30  ;;  %v5688_v23 = vld [vmem:[#allocation8 + $0x58] sm:$0xff]  ;;  %v5686_v30 = vld [vmem:[#allocation8 + $0x48] sm:$0xff] }
0x10dc   :  { %5882 = vmatprep.subr.mxu0 %v5728_v58  ;;  %5811 = vmatprep.subr.mxu1 %v5726_v32  ;;  %v5687_v58 = vld [vmem:[#allocation8 + $0x50] sm:$0xff]  ;;  %v5685_v32 = vld [vmem:[#allocation8 + $0x40] sm:$0xff] }
0x10dd   :  { %5883 = vmatpush1.msra.mxu0 %v5727_v17  ;;  %5812 = vmatpush1.msra.mxu1 %v5725_v60  ;;  %v5684_v17 = vld [vmem:[#allocation8 + $0x38] sm:$0xff]  ;;  %v5682_v60 = vld [vmem:[#allocation8 + $0x28] sm:$0xff] }
0x10de   :  { %5884 = vmatprep.subr.mxu0 %v5724_v35  ;;  %5813 = vmatprep.subr.mxu1 %v5722_v36  ;;  %v5683_v35 = vld [vmem:[#allocation8 + $0x30] sm:$0xff]  ;;  %v5681_v36 = vld [vmem:[#allocation8 + $0x20] sm:$0xff] }
0x10df   :  { %5885 = vmatpush1.msra.mxu0 %v5723_v38  ;;  %5814 = vmatpush1.msra.mxu1 %v5721_v2  ;;  %v5680_v38 = vld [vmem:[#allocation8 + $0x18] sm:$0xff]  ;;  %v5678_v2 = vld [vmem:[#allocation8 + $0x8] sm:$0xff] }
0x10e0   :  { %5886 = vmatprep.subr.mxu0 %v5720_v43  ;;  %5815 = vmatprep.subr.mxu1 %v5718_v44  ;;  %v5679_v43 = vld [vmem:[#allocation8 + $0x10] sm:$0xff]  ;;  %v5677_v44 = vld [vmem:[#allocation8] sm:$0xff] }
0x10e1   :  { %5887 = vmatpush1.msra.mxu0 %v5719_v47  ;;  %5816 = vmatpush1.msra.mxu1 %v5717_v10  ;;  %v5804_v47 = vld [vmem:[#allocation8 + $0x3f8] sm:$0xff]  ;;  %v5802_v10 = vld [vmem:[#allocation8 + $0x3e8] sm:$0xff] }
0x10e2   :  { %5888 = vmatprep.subr.mxu0 %v5716_v37  ;;  %5817 = vmatprep.subr.mxu1 %v5714_v6  ;;  %v5803_v37 = vld [vmem:[#allocation8 + $0x3f0] sm:$0xff]  ;;  %v5801_v6 = vld [vmem:[#allocation8 + $0x3e0] sm:$0xff] }
0x10e3   :  { %5889 = vmatpush1.msra.mxu0 %v5715_v50  ;;  %5818 = vmatpush1.msra.mxu1 %v5713_v13  ;;  %v5800_v50 = vld [vmem:[#allocation8 + $0x3d8] sm:$0xff]  ;;  %v5798_v13 = vld [vmem:[#allocation8 + $0x3c8] sm:$0xff] }
0x10e4   :  { %5890 = vmatprep.subr.mxu0 %v5712_v22  ;;  %5819 = vmatprep.subr.mxu1 %v5710_v14  ;;  %v5799_v22 = vld [vmem:[#allocation8 + $0x3d0] sm:$0xff]  ;;  %v5797_v14 = vld [vmem:[#allocation8 + $0x3c0] sm:$0xff] }
0x10e5   :  { %5891 = vmatpush1.msra.mxu0 %v5711_v29  ;;  %5820 = vmatpush1.msra.mxu1 %v5709_v54  ;;  %v5796_v29 = vld [vmem:[#allocation8 + $0x3b8] sm:$0xff]  ;;  %v5794_v54 = vld [vmem:[#allocation8 + $0x3a8] sm:$0xff] }
0x10e6   :  { %5892 = vmatprep.subr.mxu0 %v5708_v55  ;;  %5821 = vmatprep.subr.mxu1 %v5706_v57  ;;  %v5795_v55 = vld [vmem:[#allocation8 + $0x3b0] sm:$0xff]  ;;  %v5793_v57 = vld [vmem:[#allocation8 + $0x3a0] sm:$0xff] }
0x10e7   :  { %5893 = vmatpush1.msra.mxu0 %v5707_v24  ;;  %5822 = vmatpush1.msra.mxu1 %v5705_v34  ;;  %v5792_v24 = vld [vmem:[#allocation8 + $0x398] sm:$0xff]  ;;  %v5790_v34 = vld [vmem:[#allocation8 + $0x388] sm:$0xff] }
0x10e8   :  { %5894 = vmatprep.subr.mxu0 %v5704_v61  ;;  %5823 = vmatprep.subr.mxu1 %v5702_v3  ;;  %v5791_v61 = vld [vmem:[#allocation8 + $0x390] sm:$0xff]  ;;  %v5789_v3 = vld [vmem:[#allocation8 + $0x380] sm:$0xff] }
0x10e9   :  { %5895 = vmatpush1.msra.mxu0 %v5703_v45  ;;  %5824 = vmatpush1.msra.mxu1 %v5701_v16  ;;  %v5788_v45 = vld [vmem:[#allocation8 + $0x378] sm:$0xff]  ;;  %v5786_v16 = vld [vmem:[#allocation8 + $0x368] sm:$0xff] }
0x10ea   :  { %5896 = vmatprep.subr.mxu0 %v5700_v46  ;;  %5825 = vmatprep.subr.mxu1 %v5698_v7  ;;  %v5787_v46 = vld [vmem:[#allocation8 + $0x370] sm:$0xff]  ;;  %v5785_v7 = vld [vmem:[#allocation8 + $0x360] sm:$0xff] }
0x10eb   :  { %5897 = vmatpush1.msra.mxu0 %v5699_v8  ;;  %5826 = vmatpush1.msra.mxu1 %v5697_v1  ;;  %v5784_v8 = vld [vmem:[#allocation8 + $0x358] sm:$0xff]  ;;  %v5782_v1 = vld [vmem:[#allocation8 + $0x348] sm:$0xff] }
0x10ec   :  { %5898 = vmatprep.subr.mxu0 %v5696_v5  ;;  %5827 = vmatprep.subr.mxu1 %v5694_v48  ;;  %v5783_v5 = vld [vmem:[#allocation8 + $0x350] sm:$0xff]  ;;  %v5781_v48 = vld [vmem:[#allocation8 + $0x340] sm:$0xff] }
0x10ed   :  { %5899 = vmatpush1.msra.mxu0 %v5695_v31  ;;  %5828 = vmatpush1.msra.mxu1 %v5693_v12  ;;  %v5780_v31 = vld [vmem:[#allocation8 + $0x338] sm:$0xff]  ;;  %v5778_v12 = vld [vmem:[#allocation8 + $0x328] sm:$0xff] }
0x10ee   :  { %5900 = vmatprep.subr.mxu0 %v5692_v63  ;;  %5829 = vmatprep.subr.mxu1 %v5690_v9  ;;  %v5779_v63 = vld [vmem:[#allocation8 + $0x330] sm:$0xff]  ;;  %v5777_v9 = vld [vmem:[#allocation8 + $0x320] sm:$0xff] }
0x10ef   :  { %5901 = vmatpush1.msra.mxu0 %v5691_v56  ;;  %5830 = vmatpush1.msra.mxu1 %v5689_v15  ;;  %v5776_v56 = vld [vmem:[#allocation8 + $0x318] sm:$0xff]  ;;  %v5774_v15 = vld [vmem:[#allocation8 + $0x308] sm:$0xff] }
0x10f0   :  { %5902 = vmatprep.subr.mxu0 %v5688_v23  ;;  %5831 = vmatprep.subr.mxu1 %v5686_v30  ;;  %v5775_v23 = vld [vmem:[#allocation8 + $0x310] sm:$0xff]  ;;  %v5773_v30 = vld [vmem:[#allocation8 + $0x300] sm:$0xff] }
0x10f1   :  { %5903 = vmatpush1.msra.mxu0 %v5687_v58  ;;  %5832 = vmatpush1.msra.mxu1 %v5685_v32  ;;  %v5772_v58 = vld [vmem:[#allocation8 + $0x2f8] sm:$0xff]  ;;  %v5770_v32 = vld [vmem:[#allocation8 + $0x2e8] sm:$0xff] }
0x10f2   :  { %5904 = vmatprep.subr.mxu0 %v5684_v17  ;;  %5833 = vmatprep.subr.mxu1 %v5682_v60  ;;  %v5771_v17 = vld [vmem:[#allocation8 + $0x2f0] sm:$0xff]  ;;  %v5769_v60 = vld [vmem:[#allocation8 + $0x2e0] sm:$0xff] }
0x10f3   :  { %5905 = vmatpush1.msra.mxu0 %v5683_v35  ;;  %5834 = vmatpush1.msra.mxu1 %v5681_v36  ;;  %v5768_v35 = vld [vmem:[#allocation8 + $0x2d8] sm:$0xff]  ;;  %v5766_v36 = vld [vmem:[#allocation8 + $0x2c8] sm:$0xff] }
0x10f4   :  { %5906 = vmatprep.subr.mxu0 %v5680_v38  ;;  %5835 = vmatprep.subr.mxu1 %v5678_v2  ;;  %v5767_v38 = vld [vmem:[#allocation8 + $0x2d0] sm:$0xff]  ;;  %v5765_v2 = vld [vmem:[#allocation8 + $0x2c0] sm:$0xff] }
0x10f5   :  { %5907 = vmatpush1.msra.mxu0 %v5679_v43  ;;  %5836 = vmatpush1.msra.mxu1 %v5677_v44  ;;  %v5764_v43 = vld [vmem:[#allocation8 + $0x2b8] sm:$0xff]  ;;  %v5762_v44 = vld [vmem:[#allocation8 + $0x2a8] sm:$0xff] }
0x10f6   :  { %5908 = vmatprep.subr.mxu0 %v5804_v47  ;;  %5837 = vmatprep.subr.mxu1 %v5802_v10  ;;  %v5763_v47 = vld [vmem:[#allocation8 + $0x2b0] sm:$0xff]  ;;  %v5761_v10 = vld [vmem:[#allocation8 + $0x2a0] sm:$0xff] }
0x10f7   :  { %5909 = vmatpush2.msra.mxu0 %v5803_v37  ;;  %5838 = vmatpush2.msra.mxu1 %v5801_v6  ;;  %v5760_v37 = vld [vmem:[#allocation8 + $0x298] sm:$0xff]  ;;  %v5758_v6 = vld [vmem:[#allocation8 + $0x288] sm:$0xff] }
0x10f8   :  { %5910 = vmatprep.subr.mxu0 %v5800_v50  ;;  %5839 = vmatprep.subr.mxu1 %v5798_v13  ;;  %v5759_v50 = vld [vmem:[#allocation8 + $0x290] sm:$0xff]  ;;  %v5757_v13 = vld [vmem:[#allocation8 + $0x280] sm:$0xff] }
0x10f9   :  { %5911 = vmatpush2.msra.mxu0 %v5799_v22  ;;  %5840 = vmatpush2.msra.mxu1 %v5797_v14  ;;  %v5756_v22 = vld [vmem:[#allocation8 + $0x278] sm:$0xff]  ;;  %v5754_v14 = vld [vmem:[#allocation8 + $0x268] sm:$0xff] }
0x10fa   :  { %5912 = vmatprep.subr.mxu0 %v5796_v29  ;;  %5841 = vmatprep.subr.mxu1 %v5794_v54  ;;  %v5755_v29 = vld [vmem:[#allocation8 + $0x270] sm:$0xff]  ;;  %v5753_v54 = vld [vmem:[#allocation8 + $0x260] sm:$0xff] }
0x10fb   :  { %5913 = vmatpush2.msra.mxu0 %v5795_v55  ;;  %5842 = vmatpush2.msra.mxu1 %v5793_v57  ;;  %v5752_v55 = vld [vmem:[#allocation8 + $0x258] sm:$0xff]  ;;  %v5750_v57 = vld [vmem:[#allocation8 + $0x248] sm:$0xff] }
0x10fc   :  { %5914 = vmatprep.subr.mxu0 %v5792_v24  ;;  %5843 = vmatprep.subr.mxu1 %v5790_v34  ;;  %v5751_v24 = vld [vmem:[#allocation8 + $0x250] sm:$0xff]  ;;  %v5749_v34 = vld [vmem:[#allocation8 + $0x240] sm:$0xff] }
0x10fd   :  { %5915 = vmatpush2.msra.mxu0 %v5791_v61  ;;  %5844 = vmatpush2.msra.mxu1 %v5789_v3  ;;  %v5748_v61 = vld [vmem:[#allocation8 + $0x238] sm:$0xff]  ;;  %v5746_v3 = vld [vmem:[#allocation8 + $0x228] sm:$0xff] }
0x10fe   :  { %5916 = vmatprep.subr.mxu0 %v5788_v45  ;;  %5845 = vmatprep.subr.mxu1 %v5786_v16  ;;  %v5747_v45 = vld [vmem:[#allocation8 + $0x230] sm:$0xff]  ;;  %v5745_v16 = vld [vmem:[#allocation8 + $0x220] sm:$0xff] }
0x10ff   :  { %5917 = vmatpush2.msra.mxu0 %v5787_v46  ;;  %5846 = vmatpush2.msra.mxu1 %v5785_v7  ;;  %v5744_v46 = vld [vmem:[#allocation8 + $0x218] sm:$0xff]  ;;  %v5742_v7 = vld [vmem:[#allocation8 + $0x208] sm:$0xff] }
0x1100   :  { %5918 = vmatprep.subr.mxu0 %v5784_v8  ;;  %5847 = vmatprep.subr.mxu1 %v5782_v1  ;;  %v5743_v8 = vld [vmem:[#allocation8 + $0x210] sm:$0xff]  ;;  %v5741_v1 = vld [vmem:[#allocation8 + $0x200] sm:$0xff] }
0x1101   :  { %5919 = vmatpush2.msra.mxu0 %v5783_v5  ;;  %5848 = vmatpush2.msra.mxu1 %v5781_v48  ;;  %v6123_v5 = vld [vmem:[#allocation3 + $0x1e8] sm:$0xff] }
0x1102   :  { %5920 = vmatprep.subr.mxu0 %v5780_v31  ;;  %5849 = vmatprep.subr.mxu1 %v5778_v12 }
0x1103   :  { %5921 = vmatpush2.msra.mxu0 %v5779_v63  ;;  %5850 = vmatpush2.msra.mxu1 %v5777_v9 }
0x1104   :  { %5922 = vmatprep.subr.mxu0 %v5776_v56  ;;  %5851 = vmatprep.subr.mxu1 %v5774_v15 }
0x1105   :  { %5923 = vmatpush2.msra.mxu0 %v5775_v23  ;;  %5852 = vmatpush2.msra.mxu1 %v5773_v30 }
0x1106   :  { %5924 = vmatprep.subr.mxu0 %v5772_v58  ;;  %5853 = vmatprep.subr.mxu1 %v5770_v32 }
0x1107   :  { %5925 = vmatpush2.msra.mxu0 %v5771_v17  ;;  %5854 = vmatpush2.msra.mxu1 %v5769_v60 }
0x1108   :  { %5926 = vmatprep.subr.mxu0 %v5768_v35  ;;  %5855 = vmatprep.subr.mxu1 %v5766_v36 }
0x1109   :  { %5927 = vmatpush2.msra.mxu0 %v5767_v38  ;;  %5856 = vmatpush2.msra.mxu1 %v5765_v2 }
0x110a   :  { %5928 = vmatprep.subr.mxu0 %v5764_v43  ;;  %5857 = vmatprep.subr.mxu1 %v5762_v44 }
0x110b   :  { %5929 = vmatpush2.msra.mxu0 %v5763_v47  ;;  %5858 = vmatpush2.msra.mxu1 %v5761_v10 }
0x110c   :  { %5930 = vmatprep.subr.mxu0 %v5760_v37  ;;  %5859 = vmatprep.subr.mxu1 %v5758_v6 }
0x110d   :  { %5931 = vmatpush2.msra.mxu0 %v5759_v50  ;;  %5860 = vmatpush2.msra.mxu1 %v5757_v13 }
0x110e   :  { %5932 = vmatprep.subr.mxu0 %v5756_v22  ;;  %5861 = vmatprep.subr.mxu1 %v5754_v14 }
0x110f   :  { %5933 = vmatpush2.msra.mxu0 %v5755_v29  ;;  %5862 = vmatpush2.msra.mxu1 %v5753_v54  ;;  %v6122_v29 = vld [vmem:[#allocation3 + $0x1e0] sm:$0xff]  ;;  %v6119_v54 = vld [vmem:[#allocation3 + $0x1c8] sm:$0xff] }
0x1110   :  { %5934 = vmatprep.subr.mxu0 %v5752_v55  ;;  %5863 = vmatprep.subr.mxu1 %v5750_v57  ;;  %v6118_v55 = vld [vmem:[#allocation3 + $0x1c0] sm:$0xff]  ;;  %v6115_v57 = vld [vmem:[#allocation3 + $0x1a8] sm:$0xff] }
0x1111   :  { %5935 = vmatpush2.msra.mxu0 %v5751_v24  ;;  %5864 = vmatpush2.msra.mxu1 %v5749_v34  ;;  %v6111_v24 = vld [vmem:[#allocation3 + $0x188] sm:$0xff]  ;;  %v6110_v34 = vld [vmem:[#allocation3 + $0x180] sm:$0xff] }
0x1112   :  { %5936 = vmatprep.subr.mxu0 %v5748_v61  ;;  %5865 = vmatprep.subr.mxu1 %v5746_v3  ;;  %v6107_v61 = vld [vmem:[#allocation3 + $0x168] sm:$0xff]  ;;  %v6106_v3 = vld [vmem:[#allocation3 + $0x160] sm:$0xff] }
0x1113   :  { %5937 = vmatpush2.msra.mxu0 %v5747_v45  ;;  %5866 = vmatpush2.msra.mxu1 %v5745_v16  ;;  %v6103_v45 = vld [vmem:[#allocation3 + $0x148] sm:$0xff]  ;;  %v6102_v16 = vld [vmem:[#allocation3 + $0x140] sm:$0xff] }
0x1114   :  { %5938 = vmatprep.subr.mxu0 %v5744_v46  ;;  %5867 = vmatprep.subr.mxu1 %v5742_v7  ;;  %v6099_v46 = vld [vmem:[#allocation3 + $0x128] sm:$0xff]  ;;  %v6098_v7 = vld [vmem:[#allocation3 + $0x120] sm:$0xff] }
0x1115   :  { %5939 = vmatpush2.msra.mxu0 %v5743_v8  ;;  %5868 = vmatpush2.msra.mxu1 %v5741_v1  ;;  %v6095_v8 = vld [vmem:[#allocation3 + $0x108] sm:$0xff]  ;;  %v6094_v1 = vld [vmem:[#allocation3 + $0x100] sm:$0xff] }
0x1116   :  { %6126 = vmatprep.subr.mxu0 %v6123_v5  ;;  %8307 = vmatprep.subr.mxu1 %v8870_v0  ;;  %v6091_v5 = vld [vmem:[#allocation3 + $0xe8] sm:$0xff] }
0x1195   :  { %v5576_v48 = vpop.f32.mrf.mxu1  ;;  %v5647_v15 = vpop.f32.mrf.mxu0 }
0x1196   :  { %v5577_v31 = vadd.f32 %v5576_v48, %v9029_v51  ;;  %v5648_v23 = vadd.f32 %v5647_v15, %v9037_v59  ;;  %v6090_v48 = vld [vmem:[#allocation3 + $0xe0] sm:$0xff] }
0x1197   :  { %v5578_v12 = vpop.f32.mrf.mxu1  ;;  %v5649_v30 = vpop.f32.mrf.mxu0  ;;  %v6078_v15 = vld [vmem:[#allocation3 + $0x80] sm:$0xff] }
0x1198   :  { %v7976_v63 = vmul.f32 -1.442695, %v5577_v31  ;;  %v5579_v9 = vadd.f32 %v5578_v12, %v9032_v52  ;;  %v7978_v58 = vmul.f32 -1.442695, %v5648_v23  ;;  %v5650_v17 = vadd.f32 %v5649_v30, %v9041_v62  ;;  %v6087_v31 = vld [vmem:[#allocation3 + $0xc8] sm:$0xff]  ;;  %v6086_v12 = vld [vmem:[#allocation3 + $0xc0] sm:$0xff] }
0x1199   :  { %v6075_v23 = vld [vmem:[#allocation3 + $0x68] sm:$0xff]  ;;  %v6074_v30 = vld [vmem:[#allocation3 + $0x60] sm:$0xff] }
0x119a   :  { %8636 = vpow2.f32 %v7976_v63  ;;  %v7977_v56 = vmul.f32 -1.442695, %v5579_v9  ;;  %v6083_v63 = vld [vmem:[#allocation3 + $0xa8] sm:$0xff]  ;;  %v6082_v9 = vld [vmem:[#allocation3 + $0xa0] sm:$0xff] }
0x119c   :  { %8638 = vpow2.f32 %v7977_v56  ;;  %v6079_v56 = vld [vmem:[#allocation3 + $0x88] sm:$0xff] }
0x119d   :  { %8640 = vpow2.f32 %v7978_v58  ;;  %v6071_v58 = vld [vmem:[#allocation3 + $0x48] sm:$0xff] }
0x11a7   :  { %v8637_v32 = vpop.eup %8636 }
0x11a8   :  { %v5661_v60 = vadd.f32 1.0, %v8637_v32  ;;  %v6070_v32 = vld [vmem:[#allocation3 + $0x40] sm:$0xff] }
0x11a9   :  { %v8639_v35 = vpop.eup %8638 }
0x11aa   :  { %8642 = vrcp.f32 %v5661_v60  ;;  %v5662_v36 = vadd.f32 1.0, %v8639_v35  ;;  %v8641_v38 = vpop.eup %8640  ;;  %v6066_v60 = vld [vmem:[#allocation3 + $0x20] sm:$0xff]  ;;  %v6063_v35 = vld [vmem:[#allocation3 + $0x8] sm:$0xff] }
0x11ab   :  { %8644 = vtanh.f32 %v5650_v17  ;;  %v5663_v47 = vadd.f32 1.0, %v8641_v38  ;;  %v6067_v17 = vld [vmem:[#allocation3 + $0x28] sm:$0xff]  ;;  %v5987_v38 = vld [vmem:[#allocation9 + $0x78] sm:$0xff] }
0x11ac   :  { %8646 = vrcp.f32 %v5662_v36  ;;  %v6062_v36 = vld [vmem:[#allocation3] sm:$0xff] }
0x11ad   :  { %8648 = vrcp.f32 %v5663_v47  ;;  %v5983_v47 = vld [vmem:[#allocation9 + $0x58] sm:$0xff] }
0x11b7   :  { %v8643_v2 = vpop.eup %8642 }
0x11b8   :  { %v8645_v43 = vpop.eup %8644 }
0x11b9   :  { %v8647_v44 = vpop.eup %8646  ;;  %v5672_v37 = vmul.f32 %v8645_v43, %v8643_v2  ;;  %v5986_v2 = vld [vmem:[#allocation9 + $0x70] sm:$0xff]  ;;  %v5985_v43 = vld [vmem:[#allocation9 + $0x68] sm:$0xff] }
0x11ba   :  { %v5671_v10 = vmul.f32 %v8647_v44, %v9350_v33  ;;  %v8649_v50 = vpop.eup %8648  ;;  %v6114_v33 = vld [vmem:[#allocation3 + $0x1a0] sm:$0xff] }
0x11bb   :  { %v5984_v44 = vld [vmem:[#allocation9 + $0x60] sm:$0xff] }
0x11bc   :  { %v9420_v6 = vadd.f32 %v5672_v37, %v5671_v10  ;;  %v5982_v10 = vld [vmem:[#allocation9 + $0x50] sm:$0xff]  ;;  %v5981_v37 = vld [vmem:[#allocation9 + $0x48] sm:$0xff] }
0x11be   :  { %8650 = vtanh.f32 %v9420_v6 }
0x11cb   :  { %v8651_v13 = vpop.eup %8650 }
0x11cc   :  { %v9423_v22 = vmul.f32 %v8651_v13, %v8649_v50  ;;  %v5980_v50 = vld [vmem:[#allocation9 + $0x40] sm:$0xff]  ;;  %v5979_v13 = vld [vmem:[#allocation9 + $0x38] sm:$0xff] }
0x11ce   :  { %v5676_v14 = vmax.f32 %v9423_v22, 0.0 }
0x11d0   :  { %5870 = vmatmul.mubr.f32.vlgmr.msra.gmra.mxu1 %v5676_v14  ;;  %5941 = vmatmul.mubr.f32.vlgmr.msra.gmra.mxu0 %v5676_v14  ;;  %v5978_v14 = vld [vmem:[#allocation9 + $0x30] sm:$0xff] }
0x11d1   :  { %6127 = vmatpush1.msra.mxu0 %v6122_v29  ;;  %6190 = vmatprep.mubr.f32.mxu0 %v8870_v0  ;;  %v5977_v29 = vld [vmem:[#allocation9 + $0x28] sm:$0xff] }
0x11d2   :  { %6128 = vmatprep.subr.mxu0 %v6119_v54  ;;  %8339 = vmatprep.mubr.msk.f32.mxu1 %vm8873_vm0, %v8870_v0  ;;  %v5976_v54 = vld [vmem:[#allocation9 + $0x20] sm:$0xff] }
0x11d3   :  { %6129 = vmatpush1.msra.mxu0 %v6118_v55  ;;  %8308 = vmatpush3.msra.mxu1 %v5987_v38  ;;  %v5975_v55 = vld [vmem:[#allocation9 + $0x18] sm:$0xff] }
0x11d4   :  { %6130 = vmatprep.subr.mxu0 %v6115_v57  ;;  %8309 = vmatprep.subr.mxu1 %v8870_v0  ;;  %v5974_v57 = vld [vmem:[#allocation9 + $0x10] sm:$0xff] }
0x11d5   :  { %6131 = vmatpush1.msra.mxu0 %v6114_v33  ;;  %8310 = vmatpush3.msra.mxu1 %v5986_v2  ;;  %v5973_v33 = vld [vmem:[#allocation9 + $0x8] sm:$0xff] }
0x11d6   :  { %6132 = vmatprep.subr.mxu0 %v6111_v24  ;;  %8311 = vmatprep.subr.mxu1 %v8870_v0  ;;  %v5972_v24 = vld [vmem:[#allocation9] sm:$0xff] }
0x11d7   :  { %6133 = vmatpush1.msra.mxu0 %v6110_v34  ;;  %8312 = vmatpush3.msra.mxu1 %v5985_v43  ;;  %v6125_v34 = vld [vmem:[#allocation3 + $0x1f8] sm:$0xff] }
0x11d8   :  { %6134 = vmatprep.subr.mxu0 %v6107_v61  ;;  %8313 = vmatprep.subr.mxu1 %v8870_v0 }
0x11d9   :  { %6135 = vmatpush1.msra.mxu0 %v6106_v3  ;;  %8314 = vmatpush3.msra.mxu1 %v5984_v44  ;;  %v6124_v44 = vld [vmem:[#allocation3 + $0x1f0] sm:$0xff] }
0x11da   :  { %6136 = vmatprep.subr.mxu0 %v6103_v45  ;;  %8315 = vmatprep.subr.mxu1 %v8870_v0 }
0x11db   :  { %6137 = vmatpush1.msra.mxu0 %v6102_v16  ;;  %8316 = vmatpush3.msra.mxu1 %v5983_v47  ;;  %v6121_v47 = vld [vmem:[#allocation3 + $0x1d8] sm:$0xff] }
0x11dc   :  { %6138 = vmatprep.subr.mxu0 %v6099_v46  ;;  %8317 = vmatprep.subr.mxu1 %v8870_v0 }
0x11dd   :  { %6139 = vmatpush1.msra.mxu0 %v6098_v7  ;;  %8318 = vmatpush3.msra.mxu1 %v5982_v10  ;;  %v6120_v10 = vld [vmem:[#allocation3 + $0x1d0] sm:$0xff] }
0x11de   :  { %6140 = vmatprep.subr.mxu0 %v6095_v8  ;;  %8319 = vmatprep.subr.mxu1 %v8870_v0 }
0x11df   :  { %6141 = vmatpush1.msra.mxu0 %v6094_v1  ;;  %8320 = vmatpush3.msra.mxu1 %v5981_v37  ;;  %v6117_v37 = vld [vmem:[#allocation3 + $0x1b8] sm:$0xff] }
0x11e0   :  { %6142 = vmatprep.subr.mxu0 %v6091_v5  ;;  %8321 = vmatprep.subr.mxu1 %v8870_v0 }
0x11e1   :  { %6143 = vmatpush1.msra.mxu0 %v6090_v48  ;;  %8322 = vmatpush3.msra.mxu1 %v5980_v50  ;;  %v6113_v50 = vld [vmem:[#allocation3 + $0x198] sm:$0xff] }
0x11e2   :  { %6144 = vmatprep.subr.mxu0 %v6087_v31  ;;  %8323 = vmatprep.subr.mxu1 %v8870_v0 }
0x11e3   :  { %6145 = vmatpush1.msra.mxu0 %v6086_v12  ;;  %8324 = vmatpush3.msra.mxu1 %v5979_v13  ;;  %v6112_v13 = vld [vmem:[#allocation3 + $0x190] sm:$0xff] }
0x11e4   :  { %6146 = vmatprep.subr.mxu0 %v6083_v63  ;;  %8325 = vmatprep.subr.mxu1 %v8870_v0 }
0x11e5   :  { %6147 = vmatpush1.msra.mxu0 %v6082_v9  ;;  %8326 = vmatpush3.msra.mxu1 %v5978_v14  ;;  %v6109_v14 = vld [vmem:[#allocation3 + $0x178] sm:$0xff] }
0x11e6   :  { %6148 = vmatprep.subr.mxu0 %v6079_v56  ;;  %8327 = vmatprep.subr.mxu1 %v8870_v0 }
0x11e7   :  { %6149 = vmatpush1.msra.mxu0 %v6078_v15  ;;  %8328 = vmatpush3.msra.mxu1 %v5977_v29  ;;  %v6108_v29 = vld [vmem:[#allocation3 + $0x170] sm:$0xff] }
0x11e8   :  { %6150 = vmatprep.subr.mxu0 %v6075_v23  ;;  %8329 = vmatprep.subr.mxu1 %v8870_v0 }
0x11e9   :  { %6151 = vmatpush1.msra.mxu0 %v6074_v30  ;;  %8330 = vmatpush3.msra.mxu1 %v5976_v54  ;;  %v6105_v54 = vld [vmem:[#allocation3 + $0x158] sm:$0xff] }
0x11ea   :  { %6152 = vmatprep.subr.mxu0 %v6071_v58  ;;  %8331 = vmatprep.subr.mxu1 %v8870_v0 }
0x11eb   :  { %6153 = vmatpush1.msra.mxu0 %v6070_v32  ;;  %8332 = vmatpush3.msra.mxu1 %v5975_v55  ;;  %v6104_v55 = vld [vmem:[#allocation3 + $0x150] sm:$0xff] }
0x11ec   :  { %6154 = vmatprep.subr.mxu0 %v6067_v17  ;;  %8333 = vmatprep.subr.mxu1 %v8870_v0 }
0x11ed   :  { %6155 = vmatpush1.msra.mxu0 %v6066_v60  ;;  %8334 = vmatpush3.msra.mxu1 %v5974_v57  ;;  %v6101_v57 = vld [vmem:[#allocation3 + $0x138] sm:$0xff] }
0x11ee   :  { %6156 = vmatprep.subr.mxu0 %v6063_v35  ;;  %8335 = vmatprep.subr.mxu1 %v8870_v0 }
0x11ef   :  { %6157 = vmatpush1.msra.mxu0 %v6062_v36  ;;  %8336 = vmatpush3.msra.mxu1 %v5973_v33  ;;  %v6100_v33 = vld [vmem:[#allocation3 + $0x130] sm:$0xff] }
0x11f0   :  { %6191 = vmatmul.mubr.f32.vlgmr.msra.gmra.mxu0 %v9409_v40  ;;  %8337 = vmatprep.subr.mxu1 %v8870_v0 }
0x11f1   :  { %6504 = vmatprep.mubr.f32.mxu0 %v9423_v22  ;;  %8338 = vmatpush3.msra.mxu1 %v5972_v24  ;;  %v6097_v24 = vld [vmem:[#allocation3 + $0x118] sm:$0xff] }
0x11f2   :  { %6197 = vmatprep.subr.mxu1 %v6125_v34  ;;  %v6096_v34 = vld [vmem:[#allocation3 + $0x110] sm:$0xff] }
0x1290   :  { %v5871_v61 = vpop.f32.mrf.mxu1  ;;  %v5942_v8 = vpop.f32.mrf.mxu0 }
0x1291   :  { %v5872_v3 = vadd.f32 %v5871_v61, %v9074_v41  ;;  %v5943_v1 = vadd.f32 %v5942_v8, %v9082_v49  ;;  %v6093_v61 = vld [vmem:[#allocation3 + $0xf8] sm:$0xff] }
0x1292   :  { %v5873_v45 = vpop.f32.mrf.mxu1  ;;  %v5944_v5 = vpop.f32.mrf.mxu0  ;;  %v6081_v8 = vld [vmem:[#allocation3 + $0x98] sm:$0xff] }
0x1293   :  { %v7979_v16 = vmul.f32 -1.442695, %v5872_v3  ;;  %v5874_v46 = vadd.f32 %v5873_v45, %v9077_v42  ;;  %v7981_v48 = vmul.f32 -1.442695, %v5943_v1  ;;  %v5945_v12 = vadd.f32 %v5944_v5, %v9086_v53  ;;  %v6092_v3 = vld [vmem:[#allocation3 + $0xf0] sm:$0xff]  ;;  %v6089_v45 = vld [vmem:[#allocation3 + $0xd8] sm:$0xff] }
0x1294   :  { %v6080_v1 = vld [vmem:[#allocation3 + $0x90] sm:$0xff]  ;;  %v6077_v5 = vld [vmem:[#allocation3 + $0x78] sm:$0xff] }
0x1295   :  { %8652 = vpow2.f32 %v7979_v16  ;;  %v7980_v7 = vmul.f32 -1.442695, %v5874_v46  ;;  %v6088_v16 = vld [vmem:[#allocation3 + $0xd0] sm:$0xff]  ;;  %v6085_v46 = vld [vmem:[#allocation3 + $0xb8] sm:$0xff] }
0x1297   :  { %8654 = vpow2.f32 %v7980_v7  ;;  %v6084_v7 = vld [vmem:[#allocation3 + $0xb0] sm:$0xff] }
0x1298   :  { %8656 = vpow2.f32 %v7981_v48  ;;  %v6076_v48 = vld [vmem:[#allocation3 + $0x70] sm:$0xff] }
0x12a2   :  { %v8653_v31 = vpop.eup %8652 }
0x12a3   :  { %v5956_v63 = vadd.f32 1.0, %v8653_v31  ;;  %v6073_v31 = vld [vmem:[#allocation3 + $0x58] sm:$0xff] }
0x12a4   :  { %v8655_v9 = vpop.eup %8654 }
0x12a5   :  { %8658 = vrcp.f32 %v5956_v63  ;;  %v5957_v56 = vadd.f32 1.0, %v8655_v9  ;;  %v8657_v15 = vpop.eup %8656  ;;  %v6069_v63 = vld [vmem:[#allocation3 + $0x38] sm:$0xff]  ;;  %v6068_v9 = vld [vmem:[#allocation3 + $0x30] sm:$0xff] }
0x12a6   :  { %8660 = vtanh.f32 %v5945_v12  ;;  %v5958_v32 = vadd.f32 1.0, %v8657_v15  ;;  %v6072_v12 = vld [vmem:[#allocation3 + $0x50] sm:$0xff] }
0x12a7   :  { %8662 = vrcp.f32 %v5957_v56  ;;  %v6065_v56 = vld [vmem:[#allocation3 + $0x18] sm:$0xff]  ;;  %v6064_v15 = vld [vmem:[#allocation3 + $0x10] sm:$0xff] }
0x12a8   :  { %8664 = vrcp.f32 %v5958_v32  ;;  %v6374_v32 = vld [vmem:[#allocation6 + $0x1f0] sm:$0xff] }
0x12b2   :  { %v8659_v23 = vpop.eup %8658 }
0x12b3   :  { %v8661_v30 = vpop.eup %8660 }
0x12b4   :  { %v8663_v58 = vpop.eup %8662  ;;  %v5967_v60 = vmul.f32 %v8661_v30, %v8659_v23  ;;  %v6373_v23 = vld [vmem:[#allocation6 + $0x1e8] sm:$0xff]  ;;  %v6375_v30 = vld [vmem:[#allocation6 + $0x1f8] sm:$0xff] }
0x12b5   :  { %v5966_v17 = vmul.f32 %v8663_v58, %v9381_v4  ;;  %v8665_v36 = vpop.eup %8664  ;;  %v6116_v4 = vld [vmem:[#allocation3 + $0x1b0] sm:$0xff]  ;;  %6440 = vmatprep.subr.mxu0 %v6373_v23  ;;  %v6372_v58 = vld [vmem:[#allocation6 + $0x1e0] sm:$0xff] }
0x12b6   :  { %6441 = vmatpush1.msra.mxu0 %v6372_v58  ;;  %v6332_v23 = vld [vmem:[#allocation6 + $0xa0] sm:$0xff]  ;;  %v6329_v58 = vld [vmem:[#allocation6 + $0x88] sm:$0xff] }
0x12b7   :  { %v9451_v35 = vadd.f32 %v5967_v60, %v5966_v17  ;;  %v6369_v17 = vld [vmem:[#allocation6 + $0x1c8] sm:$0xff]  ;;  %v6371_v60 = vld [vmem:[#allocation6 + $0x1d8] sm:$0xff] }
0x12b8   :  { %6442 = vmatprep.subr.mxu0 %v6369_v17  ;;  %v6328_v17 = vld [vmem:[#allocation6 + $0x80] sm:$0xff] }
0x12b9   :  { %8666 = vtanh.f32 %v9451_v35 }
0x12c6   :  { %v8667_v38 = vpop.eup %8666 }
0x12c7   :  { %v9454_v2 = vmul.f32 %v8667_v38, %v8665_v36  ;;  %v6368_v36 = vld [vmem:[#allocation6 + $0x1c0] sm:$0xff]  ;;  %v6370_v38 = vld [vmem:[#allocation6 + $0x1d0] sm:$0xff] }
0x12c8   :  { %6443 = vmatpush1.msra.mxu0 %v6368_v36  ;;  %v6325_v36 = vld [vmem:[#allocation6 + $0x68] sm:$0xff] }
0x12c9   :  { %v5971_v43 = vmax.f32 %v9454_v2, 0.0 }
0x12cb   :  { %8340 = vmatmul.mubr.f32.vlgmr.msra.gmra.mxu1 %v5971_v43  ;;  %v6365_v43 = vld [vmem:[#allocation6 + $0x1a8] sm:$0xff] }
0x12cc   :  { %6198 = vmatpush1.msra.mxu1 %v6124_v44  ;;  %6261 = vmatprep.mubr.f32.mxu1 %v8870_v0  ;;  %v6366_v44 = vld [vmem:[#allocation6 + $0x1b0] sm:$0xff] }
0x12cd   :  { %6199 = vmatprep.subr.mxu1 %v6121_v47  ;;  %6444 = vmatprep.subr.mxu0 %v6365_v43  ;;  %v6361_v47 = vld [vmem:[#allocation6 + $0x188] sm:$0xff]  ;;  %v6324_v43 = vld [vmem:[#allocation6 + $0x60] sm:$0xff] }
0x12ce   :  { %6200 = vmatpush1.msra.mxu1 %v6120_v10  ;;  %v6363_v10 = vld [vmem:[#allocation6 + $0x198] sm:$0xff] }
0x12cf   :  { %6201 = vmatprep.subr.mxu1 %v6117_v37  ;;  %v6360_v37 = vld [vmem:[#allocation6 + $0x180] sm:$0xff] }
0x12d0   :  { %6202 = vmatpush1.msra.mxu1 %v6116_v4  ;;  %v6362_v4 = vld [vmem:[#allocation6 + $0x190] sm:$0xff] }
0x12d1   :  { %6203 = vmatprep.subr.mxu1 %v6113_v50  ;;  %v6357_v50 = vld [vmem:[#allocation6 + $0x168] sm:$0xff] }
0x12d2   :  { %6204 = vmatpush1.msra.mxu1 %v6112_v13  ;;  %v6359_v13 = vld [vmem:[#allocation6 + $0x178] sm:$0xff] }
0x12d3   :  { %6205 = vmatprep.subr.mxu1 %v6109_v14  ;;  %v6356_v14 = vld [vmem:[#allocation6 + $0x160] sm:$0xff] }
0x12d4   :  { %6206 = vmatpush1.msra.mxu1 %v6108_v29  ;;  %v6358_v29 = vld [vmem:[#allocation6 + $0x170] sm:$0xff] }
0x12d5   :  { %6207 = vmatprep.subr.mxu1 %v6105_v54  ;;  %v6353_v54 = vld [vmem:[#allocation6 + $0x148] sm:$0xff] }
0x12d6   :  { %6208 = vmatpush1.msra.mxu1 %v6104_v55  ;;  %v6355_v55 = vld [vmem:[#allocation6 + $0x158] sm:$0xff] }
0x12d7   :  { %6209 = vmatprep.subr.mxu1 %v6101_v57  ;;  %v6352_v57 = vld [vmem:[#allocation6 + $0x140] sm:$0xff] }
0x12d8   :  { %6210 = vmatpush1.msra.mxu1 %v6100_v33  ;;  %v6354_v33 = vld [vmem:[#allocation6 + $0x150] sm:$0xff] }
0x12d9   :  { %6211 = vmatprep.subr.mxu1 %v6097_v24  ;;  %v6349_v24 = vld [vmem:[#allocation6 + $0x128] sm:$0xff] }
0x12da   :  { %6212 = vmatpush1.msra.mxu1 %v6096_v34  ;;  %v6351_v34 = vld [vmem:[#allocation6 + $0x138] sm:$0xff] }
0x12db   :  { %6213 = vmatprep.subr.mxu1 %v6093_v61  ;;  %v6348_v61 = vld [vmem:[#allocation6 + $0x120] sm:$0xff] }
0x12dc   :  { %6214 = vmatpush1.msra.mxu1 %v6092_v3  ;;  %v6350_v3 = vld [vmem:[#allocation6 + $0x130] sm:$0xff] }
0x12dd   :  { %6215 = vmatprep.subr.mxu1 %v6089_v45  ;;  %v6345_v45 = vld [vmem:[#allocation6 + $0x108] sm:$0xff] }
0x12de   :  { %6216 = vmatpush1.msra.mxu1 %v6088_v16  ;;  %v6347_v16 = vld [vmem:[#allocation6 + $0x118] sm:$0xff] }
0x12df   :  { %6217 = vmatprep.subr.mxu1 %v6085_v46  ;;  %v6344_v46 = vld [vmem:[#allocation6 + $0x100] sm:$0xff] }
0x12e0   :  { %6218 = vmatpush1.msra.mxu1 %v6084_v7  ;;  %v6346_v7 = vld [vmem:[#allocation6 + $0x110] sm:$0xff] }
0x12e1   :  { %6219 = vmatprep.subr.mxu1 %v6081_v8  ;;  %v6341_v8 = vld [vmem:[#allocation6 + $0xe8] sm:$0xff] }
0x12e2   :  { %6220 = vmatpush1.msra.mxu1 %v6080_v1  ;;  %v6343_v1 = vld [vmem:[#allocation6 + $0xf8] sm:$0xff] }
0x12e3   :  { %6221 = vmatprep.subr.mxu1 %v6077_v5  ;;  %v6340_v5 = vld [vmem:[#allocation6 + $0xe0] sm:$0xff] }
0x12e4   :  { %6222 = vmatpush1.msra.mxu1 %v6076_v48  ;;  %v6342_v48 = vld [vmem:[#allocation6 + $0xf0] sm:$0xff] }
0x12e5   :  { %6223 = vmatprep.subr.mxu1 %v6073_v31  ;;  %v6337_v31 = vld [vmem:[#allocation6 + $0xc8] sm:$0xff] }
0x12e6   :  { %6224 = vmatpush1.msra.mxu1 %v6072_v12  ;;  %v6339_v12 = vld [vmem:[#allocation6 + $0xd8] sm:$0xff] }
0x12e7   :  { %6225 = vmatprep.subr.mxu1 %v6069_v63  ;;  %v6336_v63 = vld [vmem:[#allocation6 + $0xc0] sm:$0xff] }
0x12e8   :  { %6226 = vmatpush1.msra.mxu1 %v6068_v9  ;;  %v6338_v9 = vld [vmem:[#allocation6 + $0xd0] sm:$0xff] }
0x12e9   :  { %6227 = vmatprep.subr.mxu1 %v6065_v56  ;;  %v6333_v56 = vld [vmem:[#allocation6 + $0xa8] sm:$0xff] }
0x12ea   :  { %6228 = vmatpush1.msra.mxu1 %v6064_v15  ;;  %v6335_v15 = vld [vmem:[#allocation6 + $0xb8] sm:$0xff] }
0x12eb   :  { %6262 = vmatmul.mubr.f32.vlgmr.msra.gmra.mxu1 %v9409_v40  ;;  %6511 = vmatprep.subr.mxu1 %v6375_v30  ;;  %v6367_v40 = vld [vmem:[#allocation6 + $0x1b8] sm:$0xff]  ;;  %v6334_v30 = vld [vmem:[#allocation6 + $0xb0] sm:$0xff] }
0x12ec   :  { %6575 = vmatprep.mubr.f32.mxu1 %v9423_v22  ;;  %6512 = vmatpush1.msra.mxu1 %v6374_v32  ;;  %v6364_v22 = vld [vmem:[#allocation6 + $0x1a0] sm:$0xff]  ;;  %v6331_v32 = vld [vmem:[#allocation6 + $0x98] sm:$0xff] }
0x12ed   :  { %6513 = vmatprep.subr.mxu1 %v6371_v60  ;;  %6445 = vmatpush1.msra.mxu0 %v6364_v22  ;;  %v6330_v60 = vld [vmem:[#allocation6 + $0x90] sm:$0xff]  ;;  %v6321_v22 = vld [vmem:[#allocation6 + $0x48] sm:$0xff] }
0x12ee   :  { %6514 = vmatpush1.msra.mxu1 %v6370_v38  ;;  %6446 = vmatprep.subr.mxu0 %v6361_v47  ;;  %v6327_v38 = vld [vmem:[#allocation6 + $0x78] sm:$0xff]  ;;  %v6320_v47 = vld [vmem:[#allocation6 + $0x40] sm:$0xff] }
0x12ef   :  { %6515 = vmatprep.subr.mxu1 %v6367_v40  ;;  %6447 = vmatpush1.msra.mxu0 %v6360_v37  ;;  %v6326_v40 = vld [vmem:[#allocation6 + $0x70] sm:$0xff]  ;;  %v6317_v37 = vld [vmem:[#allocation6 + $0x28] sm:$0xff] }
0x12f0   :  { %6516 = vmatpush1.msra.mxu1 %v6366_v44  ;;  %6448 = vmatprep.subr.mxu0 %v6357_v50  ;;  %v6323_v44 = vld [vmem:[#allocation6 + $0x58] sm:$0xff]  ;;  %v6316_v50 = vld [vmem:[#allocation6 + $0x20] sm:$0xff] }
0x12f1   :  { %6517 = vmatprep.subr.mxu1 %v6363_v10  ;;  %6449 = vmatpush1.msra.mxu0 %v6356_v14  ;;  %v6322_v10 = vld [vmem:[#allocation6 + $0x50] sm:$0xff]  ;;  %v6313_v14 = vld [vmem:[#allocation6 + $0x8] sm:$0xff] }
0x12f2   :  { %6518 = vmatpush1.msra.mxu1 %v6362_v4  ;;  %6450 = vmatprep.subr.mxu0 %v6353_v54  ;;  %v6319_v4 = vld [vmem:[#allocation6 + $0x38] sm:$0xff]  ;;  %v6312_v54 = vld [vmem:[#allocation6] sm:$0xff] }
0x12f3   :  { %6519 = vmatprep.subr.mxu1 %v6359_v13  ;;  %6451 = vmatpush1.msra.mxu0 %v6352_v57  ;;  %v6318_v13 = vld [vmem:[#allocation6 + $0x30] sm:$0xff]  ;;  %v6437_v57 = vld [vmem:[#allocation6 + $0x3e8] sm:$0xff] }
0x12f4   :  { %6520 = vmatpush1.msra.mxu1 %v6358_v29  ;;  %6452 = vmatprep.subr.mxu0 %v6349_v24  ;;  %v6315_v29 = vld [vmem:[#allocation6 + $0x18] sm:$0xff]  ;;  %v6436_v24 = vld [vmem:[#allocation6 + $0x3e0] sm:$0xff] }
0x12f5   :  { %6521 = vmatprep.subr.mxu1 %v6355_v55  ;;  %6453 = vmatpush1.msra.mxu0 %v6348_v61  ;;  %v6314_v55 = vld [vmem:[#allocation6 + $0x10] sm:$0xff]  ;;  %v6433_v61 = vld [vmem:[#allocation6 + $0x3c8] sm:$0xff] }
0x12f6   :  { %6522 = vmatpush1.msra.mxu1 %v6354_v33  ;;  %6454 = vmatprep.subr.mxu0 %v6345_v45  ;;  %v6439_v33 = vld [vmem:[#allocation6 + $0x3f8] sm:$0xff]  ;;  %v6432_v45 = vld [vmem:[#allocation6 + $0x3c0] sm:$0xff] }
0x12f7   :  { %6523 = vmatprep.subr.mxu1 %v6351_v34  ;;  %6455 = vmatpush1.msra.mxu0 %v6344_v46  ;;  %v6438_v34 = vld [vmem:[#allocation6 + $0x3f0] sm:$0xff]  ;;  %v6429_v46 = vld [vmem:[#allocation6 + $0x3a8] sm:$0xff] }
0x12f8   :  { %6524 = vmatpush1.msra.mxu1 %v6350_v3  ;;  %6456 = vmatprep.subr.mxu0 %v6341_v8  ;;  %v6435_v3 = vld [vmem:[#allocation6 + $0x3d8] sm:$0xff]  ;;  %v6428_v8 = vld [vmem:[#allocation6 + $0x3a0] sm:$0xff] }
0x12f9   :  { %6525 = vmatprep.subr.mxu1 %v6347_v16  ;;  %6457 = vmatpush1.msra.mxu0 %v6340_v5  ;;  %v6434_v16 = vld [vmem:[#allocation6 + $0x3d0] sm:$0xff]  ;;  %v6425_v5 = vld [vmem:[#allocation6 + $0x388] sm:$0xff] }
0x12fa   :  { %6526 = vmatpush1.msra.mxu1 %v6346_v7  ;;  %6458 = vmatprep.subr.mxu0 %v6337_v31  ;;  %v6431_v7 = vld [vmem:[#allocation6 + $0x3b8] sm:$0xff]  ;;  %v6424_v31 = vld [vmem:[#allocation6 + $0x380] sm:$0xff] }
0x12fb   :  { %6527 = vmatprep.subr.mxu1 %v6343_v1  ;;  %6459 = vmatpush1.msra.mxu0 %v6336_v63  ;;  %v6430_v1 = vld [vmem:[#allocation6 + $0x3b0] sm:$0xff]  ;;  %v6421_v63 = vld [vmem:[#allocation6 + $0x368] sm:$0xff] }
0x12fc   :  { %6528 = vmatpush1.msra.mxu1 %v6342_v48  ;;  %6460 = vmatprep.subr.mxu0 %v6333_v56  ;;  %v6427_v48 = vld [vmem:[#allocation6 + $0x398] sm:$0xff]  ;;  %v6420_v56 = vld [vmem:[#allocation6 + $0x360] sm:$0xff] }
0x12fd   :  { %6529 = vmatprep.subr.mxu1 %v6339_v12  ;;  %6461 = vmatpush1.msra.mxu0 %v6332_v23  ;;  %v6426_v12 = vld [vmem:[#allocation6 + $0x390] sm:$0xff]  ;;  %v6417_v23 = vld [vmem:[#allocation6 + $0x348] sm:$0xff] }
0x12fe   :  { %6530 = vmatpush1.msra.mxu1 %v6338_v9  ;;  %6462 = vmatprep.subr.mxu0 %v6329_v58  ;;  %v6423_v9 = vld [vmem:[#allocation6 + $0x378] sm:$0xff]  ;;  %v6416_v58 = vld [vmem:[#allocation6 + $0x340] sm:$0xff] }
0x12ff   :  { %6531 = vmatprep.subr.mxu1 %v6335_v15  ;;  %6463 = vmatpush1.msra.mxu0 %v6328_v17  ;;  %v6422_v15 = vld [vmem:[#allocation6 + $0x370] sm:$0xff]  ;;  %v6413_v17 = vld [vmem:[#allocation6 + $0x328] sm:$0xff] }
0x1300   :  { %6532 = vmatpush1.msra.mxu1 %v6334_v30  ;;  %6464 = vmatprep.subr.mxu0 %v6325_v36  ;;  %v6419_v30 = vld [vmem:[#allocation6 + $0x358] sm:$0xff]  ;;  %v6412_v36 = vld [vmem:[#allocation6 + $0x320] sm:$0xff] }
0x1301   :  { %6533 = vmatprep.subr.mxu1 %v6331_v32  ;;  %6465 = vmatpush1.msra.mxu0 %v6324_v43  ;;  %v6418_v32 = vld [vmem:[#allocation6 + $0x350] sm:$0xff]  ;;  %v6409_v43 = vld [vmem:[#allocation6 + $0x308] sm:$0xff] }
0x1302   :  { %6534 = vmatpush1.msra.mxu1 %v6330_v60  ;;  %6466 = vmatprep.subr.mxu0 %v6321_v22  ;;  %v6415_v60 = vld [vmem:[#allocation6 + $0x338] sm:$0xff]  ;;  %v6408_v22 = vld [vmem:[#allocation6 + $0x300] sm:$0xff] }
0x1303   :  { %6535 = vmatprep.subr.mxu1 %v6327_v38  ;;  %6467 = vmatpush1.msra.mxu0 %v6320_v47  ;;  %v6414_v38 = vld [vmem:[#allocation6 + $0x330] sm:$0xff]  ;;  %v6405_v47 = vld [vmem:[#allocation6 + $0x2e8] sm:$0xff] }
0x1304   :  { %6536 = vmatpush1.msra.mxu1 %v6326_v40  ;;  %6468 = vmatprep.subr.mxu0 %v6317_v37  ;;  %v6411_v40 = vld [vmem:[#allocation6 + $0x318] sm:$0xff]  ;;  %v6404_v37 = vld [vmem:[#allocation6 + $0x2e0] sm:$0xff] }
0x1305   :  { %6537 = vmatprep.subr.mxu1 %v6323_v44  ;;  %6469 = vmatpush1.msra.mxu0 %v6316_v50  ;;  %v6410_v44 = vld [vmem:[#allocation6 + $0x310] sm:$0xff]  ;;  %v6401_v50 = vld [vmem:[#allocation6 + $0x2c8] sm:$0xff] }
0x1306   :  { %6538 = vmatpush1.msra.mxu1 %v6322_v10  ;;  %6470 = vmatprep.subr.mxu0 %v6313_v14  ;;  %v6407_v10 = vld [vmem:[#allocation6 + $0x2f8] sm:$0xff]  ;;  %v6400_v14 = vld [vmem:[#allocation6 + $0x2c0] sm:$0xff] }
0x1307   :  { %6539 = vmatprep.subr.mxu1 %v6319_v4  ;;  %6471 = vmatpush1.msra.mxu0 %v6312_v54  ;;  %v6406_v4 = vld [vmem:[#allocation6 + $0x2f0] sm:$0xff]  ;;  %v6397_v54 = vld [vmem:[#allocation6 + $0x2a8] sm:$0xff] }
0x1308   :  { %6540 = vmatpush1.msra.mxu1 %v6318_v13  ;;  %6472 = vmatprep.subr.mxu0 %v6437_v57  ;;  %v6403_v13 = vld [vmem:[#allocation6 + $0x2d8] sm:$0xff]  ;;  %v6396_v57 = vld [vmem:[#allocation6 + $0x2a0] sm:$0xff] }
0x1309   :  { %6541 = vmatprep.subr.mxu1 %v6315_v29  ;;  %6473 = vmatpush2.msra.mxu0 %v6436_v24  ;;  %v6402_v29 = vld [vmem:[#allocation6 + $0x2d0] sm:$0xff]  ;;  %v6393_v24 = vld [vmem:[#allocation6 + $0x288] sm:$0xff] }
0x130a   :  { %6542 = vmatpush1.msra.mxu1 %v6314_v55  ;;  %6474 = vmatprep.subr.mxu0 %v6433_v61  ;;  %v6399_v55 = vld [vmem:[#allocation6 + $0x2b8] sm:$0xff]  ;;  %v6392_v61 = vld [vmem:[#allocation6 + $0x280] sm:$0xff] }
0x130b   :  { %6543 = vmatprep.subr.mxu1 %v6439_v33  ;;  %6475 = vmatpush2.msra.mxu0 %v6432_v45  ;;  %v6398_v33 = vld [vmem:[#allocation6 + $0x2b0] sm:$0xff]  ;;  %v6389_v45 = vld [vmem:[#allocation6 + $0x268] sm:$0xff] }
0x130c   :  { %6544 = vmatpush2.msra.mxu1 %v6438_v34  ;;  %6476 = vmatprep.subr.mxu0 %v6429_v46  ;;  %v6395_v34 = vld [vmem:[#allocation6 + $0x298] sm:$0xff]  ;;  %v6388_v46 = vld [vmem:[#allocation6 + $0x260] sm:$0xff] }
0x130d   :  { %6545 = vmatprep.subr.mxu1 %v6435_v3  ;;  %6477 = vmatpush2.msra.mxu0 %v6428_v8  ;;  %v6394_v3 = vld [vmem:[#allocation6 + $0x290] sm:$0xff]  ;;  %v6385_v8 = vld [vmem:[#allocation6 + $0x248] sm:$0xff] }
0x130e   :  { %6546 = vmatpush2.msra.mxu1 %v6434_v16  ;;  %6478 = vmatprep.subr.mxu0 %v6425_v5  ;;  %v6391_v16 = vld [vmem:[#allocation6 + $0x278] sm:$0xff]  ;;  %v6384_v5 = vld [vmem:[#allocation6 + $0x240] sm:$0xff] }
0x130f   :  { %6547 = vmatprep.subr.mxu1 %v6431_v7  ;;  %6479 = vmatpush2.msra.mxu0 %v6424_v31  ;;  %v6390_v7 = vld [vmem:[#allocation6 + $0x270] sm:$0xff]  ;;  %v6381_v31 = vld [vmem:[#allocation6 + $0x228] sm:$0xff] }
0x1310   :  { %6548 = vmatpush2.msra.mxu1 %v6430_v1  ;;  %6480 = vmatprep.subr.mxu0 %v6421_v63  ;;  %v6387_v1 = vld [vmem:[#allocation6 + $0x258] sm:$0xff]  ;;  %v6380_v63 = vld [vmem:[#allocation6 + $0x220] sm:$0xff] }
0x1311   :  { %6549 = vmatprep.subr.mxu1 %v6427_v48  ;;  %6481 = vmatpush2.msra.mxu0 %v6420_v56  ;;  %v6386_v48 = vld [vmem:[#allocation6 + $0x250] sm:$0xff]  ;;  %v6377_v56 = vld [vmem:[#allocation6 + $0x208] sm:$0xff] }
0x1312   :  { %6550 = vmatpush2.msra.mxu1 %v6426_v12  ;;  %6482 = vmatprep.subr.mxu0 %v6417_v23  ;;  %v6383_v12 = vld [vmem:[#allocation6 + $0x238] sm:$0xff]  ;;  %v6376_v23 = vld [vmem:[#allocation6 + $0x200] sm:$0xff] }
0x1313   :  { %6551 = vmatprep.subr.mxu1 %v6423_v9  ;;  %6483 = vmatpush2.msra.mxu0 %v6416_v58  ;;  %v6382_v9 = vld [vmem:[#allocation6 + $0x230] sm:$0xff]  ;;  %v6670_v58 = vld [vmem:[#allocation8 + $0x1f8] sm:$0xff] }
0x1314   :  { %6552 = vmatpush2.msra.mxu1 %v6422_v15  ;;  %6484 = vmatprep.subr.mxu0 %v6413_v17  ;;  %v6379_v15 = vld [vmem:[#allocation6 + $0x218] sm:$0xff] }
0x1315   :  { %6553 = vmatprep.subr.mxu1 %v6419_v30  ;;  %6485 = vmatpush2.msra.mxu0 %v6412_v36  ;;  %v6378_v30 = vld [vmem:[#allocation6 + $0x210] sm:$0xff] }
0x1316   :  { %6554 = vmatpush2.msra.mxu1 %v6418_v32  ;;  %6486 = vmatprep.subr.mxu0 %v6409_v43  ;;  %v6668_v32 = vld [vmem:[#allocation8 + $0x1e8] sm:$0xff]  ;;  %v133_v43 = vpop.permute.xlu0 %132 }
0x1317   :  { %6555 = vmatprep.subr.mxu1 %v6415_v60  ;;  %6487 = vmatpush2.msra.mxu0 %v6408_v22  ;;  %v8752_v60 = vld [vmem:[%s9594_s9] ss:$0 sm:$0xff]  ;;  %v186_v22 = vmul.f32 %v8979_v19, %v133_v43 }
0x1318   :  { %6556 = vmatpush2.msra.mxu1 %v6414_v38  ;;  %6488 = vmatprep.subr.mxu0 %v6405_v47  ;;  %v188_v47 = vmul.f32 %v8985_v21, %v133_v43 }
0x1319   :  { %6557 = vmatprep.subr.mxu1 %v6411_v40  ;;  %6489 = vmatpush2.msra.mxu0 %v6404_v37  ;;  %v185_v40 = vmul.f32 %v8976_v18, %v133_v43 }
0x131a   :  { %6558 = vmatpush2.msra.mxu1 %v6410_v44  ;;  %6490 = vmatprep.subr.mxu0 %v6401_v50  ;;  %v187_v44 = vmul.f32 %v8982_v20, %v133_v43  ;;  %v6663_v43 = vld [vmem:[#allocation8 + $0x1c0] sm:$0xff] }
0x131b   :  { %6559 = vmatprep.subr.mxu1 %v6407_v10  ;;  %6491 = vmatpush2.msra.mxu0 %v6400_v14  ;;  %v6192_v10 = vpop.f32.mrf.mxu0  ;;  %v239_v37 = vadd.f32 %v8991_v25, %v185_v40  ;;  %v6662_v40 = vld [vmem:[#allocation8 + $0x1b8] sm:$0xff] }
0x131c   :  { %6560 = vmatpush2.msra.mxu1 %v6406_v4  ;;  %6492 = vmatprep.subr.mxu0 %v6397_v54  ;;  %v240_v4 = vadd.f32 %v8994_v26, %v186_v22  ;;  %v241_v50 = vadd.f32 %v8997_v27, %v187_v44  ;;  %v6660_v22 = vld [vmem:[#allocation8 + $0x1a8] sm:$0xff]  ;;  %v6661_v44 = vld [vmem:[#allocation8 + $0x1b0] sm:$0xff] }
0x131d   :  { %6561 = vmatprep.subr.mxu1 %v6403_v13  ;;  %6493 = vmatpush2.msra.mxu0 %v6396_v57  ;;  %v242_v13 = vadd.f32 %v9000_v28, %v188_v47  ;;  %v6194_v14 = vpop.f32.mrf.mxu0  ;;  %v6659_v47 = vld [vmem:[#allocation8 + $0x1a0] sm:$0xff] }
0x131e   :  { %6562 = vmatpush2.msra.mxu1 %v6402_v29  ;;  %6494 = vmatprep.subr.mxu0 %v6393_v24  ;;  %v381_v29 = vcombine.low %v239_v37, %v240_v4  ;;  %v6272_v57 = vcombine.low %v6192_v10, %v6194_v14  ;;  %v6658_v10 = vld [vmem:[#allocation8 + $0x198] sm:$0xff]  ;;  %v6656_v37 = vld [vmem:[#allocation8 + $0x188] sm:$0xff]  ;;  %v6655_v4 = vld [vmem:[#allocation8 + $0x180] sm:$0xff] }
0x131f   :  { %6563 = vmatprep.subr.mxu1 %v6399_v55  ;;  %6495 = vmatpush2.msra.mxu0 %v6392_v61  ;;  %v382_v54 = vcombine.low %v241_v50, %v242_v13  ;;  %v6654_v50 = vld [vmem:[#allocation8 + $0x178] sm:$0xff]  ;;  %v6652_v13 = vld [vmem:[#allocation8 + $0x168] sm:$0xff]  ;;  %v6653_v14 = vld [vmem:[#allocation8 + $0x170] sm:$0xff] }
0x1320   :  { %6564 = vmatpush2.msra.mxu1 %v6398_v33  ;;  %6496 = vmatprep.subr.mxu0 %v6389_v45  ;;  %v389_v24 = vrot.slane %v381_v29, %v9010_v39  ;;  %v6651_v29 = vld [vmem:[#allocation8 + $0x160] sm:$0xff] }
0x1321   :  { %6565 = vmatprep.subr.mxu1 %v6395_v34  ;;  %6497 = vmatpush2.msra.mxu0 %v6388_v46  ;;  %v396_v34 = vrot.slane %v382_v54, %v9010_v39  ;;  %v6650_v54 = vld [vmem:[#allocation8 + $0x158] sm:$0xff] }
0x1322   :  { %6566 = vmatpush2.msra.mxu1 %v6394_v3  ;;  %6498 = vmatprep.subr.mxu0 %v6385_v8  ;;  %v6280_v3 = vrot.slane %v6272_v57, %v9010_v39  ;;  %v6649_v57 = vld [vmem:[#allocation8 + $0x150] sm:$0xff] }
0x1323   :  { %6567 = vmatprep.subr.mxu1 %v6391_v16  ;;  %6499 = vmatpush2.msra.mxu0 %v6384_v5  ;;  %v397_v16 = vcombine.low %v389_v24, %v396_v34  ;;  %v6646_v24 = vld [vmem:[#allocation8 + $0x138] sm:$0xff]  ;;  %v6644_v34 = vld [vmem:[#allocation8 + $0x128] sm:$0xff] }
0x1324   :  { %6568 = vmatpush2.msra.mxu1 %v6390_v7  ;;  %6500 = vmatprep.subr.mxu0 %v6381_v31 }
0x1325   :  { %6569 = vmatprep.subr.mxu1 %v6387_v1  ;;  %6501 = vmatpush2.msra.mxu0 %v6380_v63 }
0x1326   :  { %6570 = vmatpush2.msra.mxu1 %v6386_v48  ;;  %6502 = vmatprep.subr.mxu0 %v6377_v56 }
0x1327   :  { %6571 = vmatprep.subr.mxu1 %v6383_v12  ;;  %6503 = vmatpush2.msra.mxu0 %v6376_v23 }
0x1328   :  { %6572 = vmatpush2.msra.mxu1 %v6382_v9  ;;  %6735 = vmatprep.subr.mxu0 %v6668_v32 }
0x1329   :  { %6573 = vmatprep.subr.mxu1 %v6379_v15 }
0x132a   :  { %6574 = vmatpush2.msra.mxu1 %v6378_v30 }
0x132b   :  { %6806 = vmatprep.subr.mxu1 %v6670_v58 }
0x138b   :  { %v6054_v17 = vpop.f32.mrf.mxu1 }
0x138c   :  { %v6055_v36 = vadd.f32 %v8752_v60, %v6054_v17  ;;  %v6669_v17 = vld [vmem:[#allocation8 + $0x1f0] sm:$0xff]  ;;  %v6667_v60 = vld [vmem:[#allocation8 + $0x1e0] sm:$0xff] }
0x138d   :  { %v8341_v38 = vpop.f32.mrf.mxu1 }
0x138e   :  { %6059 = vst [vmem:[#allocation11 + $0xa] sm:$0x3] %v6055_v36  ;;  %v6666_v36 = vld [vmem:[#allocation8 + $0x1d8] sm:$0xff]  ;;  %v6664_v38 = vld [vmem:[#allocation8 + $0x1c8] sm:$0xff] }
0x13ab   :  { %v6263_v55 = vpop.f32.mrf.mxu1 }
0x13ad   :  { %v6265_v33 = vpop.f32.mrf.mxu1 }
0x13ae   :  { %v6273_v61 = vcombine.low %v6263_v55, %v6265_v33  ;;  %v6648_v55 = vld [vmem:[#allocation8 + $0x148] sm:$0xff]  ;;  %v6647_v33 = vld [vmem:[#allocation8 + $0x140] sm:$0xff] }
0x13b0   :  { %v6287_v45 = vrot.slane %v6273_v61, %v9010_v39  ;;  %v6645_v61 = vld [vmem:[#allocation8 + $0x130] sm:$0xff] }
0x13b2   :  { %v6288_v46 = vcombine.low %v6280_v3, %v6287_v45  ;;  %v6643_v3 = vld [vmem:[#allocation8 + $0x120] sm:$0xff]  ;;  %v6642_v45 = vld [vmem:[#allocation8 + $0x118] sm:$0xff] }
0x13b4   :  { %v6290_v7 = vadd.f32 %v6288_v46, %v397_v16  ;;  %v6640_v16 = vld [vmem:[#allocation8 + $0x108] sm:$0xff]  ;;  %v6641_v46 = vld [vmem:[#allocation8 + $0x110] sm:$0xff] }
0x13b6   :  { %v7982_v8 = vmul.f32 -1.442695, %v6290_v7  ;;  %v6298_v48 = vrot.slane %v6290_v7, 6  ;;  %v6639_v7 = vld [vmem:[#allocation8 + $0x100] sm:$0xff] }
0x13b8   :  { %8668 = vpow2.f32 %v7982_v8  ;;  %v6638_v8 = vld [vmem:[#allocation8 + $0xf8] sm:$0xff] }
0x13c5   :  { %v8669_v1 = vpop.eup %8668 }
0x13c6   :  { %v6294_v5 = vadd.f32 1.0, %v8669_v1  ;;  %v6636_v1 = vld [vmem:[#allocation8 + $0xe8] sm:$0xff] }
0x13c8   :  { %8670 = vrcp.f32 %v6294_v5  ;;  %v6637_v5 = vld [vmem:[#allocation8 + $0xf0] sm:$0xff] }
0x13c9   :  { %8672 = vtanh.f32 %v6298_v48  ;;  %v6635_v48 = vld [vmem:[#allocation8 + $0xe0] sm:$0xff] }
0x13d5   :  { %v8671_v31 = vpop.eup %8670 }
0x13d6   :  { %v6302_v12 = vrot.slane %v8671_v31, 2  ;;  %v8673_v63 = vpop.eup %8672  ;;  %v6308_v23 = vrot.slane %v8671_v31, 4 }
0x13d7   :  { %v6305_v56 = vmul.f32 %v8673_v63, %v8671_v31  ;;  %v6634_v31 = vld [vmem:[#allocation8 + $0xd8] sm:$0xff]  ;;  %v6633_v63 = vld [vmem:[#allocation8 + $0xd0] sm:$0xff] }
0x13d8   :  { %v6304_v9 = vmul.f32 %v6302_v12, %v9406_v11  ;;  %v6665_v11 = vld [vmem:[#allocation8 + $0x1d0] sm:$0xff]  ;;  %v6632_v12 = vld [vmem:[#allocation8 + $0xc8] sm:$0xff] }
0x13da   :  { %v9476_v15 = vadd.f32 %v6305_v56, %v6304_v9  ;;  %v6631_v9 = vld [vmem:[#allocation8 + $0xc0] sm:$0xff]  ;;  %v6630_v56 = vld [vmem:[#allocation8 + $0xb8] sm:$0xff] }
0x13dc   :  { %8674 = vtanh.f32 %v9476_v15 }
0x13e9   :  { %v8675_v30 = vpop.eup %8674 }
0x13ea   :  { %v9479_v58 = vmul.f32 %v8675_v30, %v6308_v23  ;;  %v6628_v23 = vld [vmem:[#allocation8 + $0xa8] sm:$0xff]  ;;  %v6629_v30 = vld [vmem:[#allocation8 + $0xb0] sm:$0xff] }
0x13ec   :  { %v6311_v32 = vmax.f32 %v9479_v58, 0.0 }
0x13ee   :  { %6505 = vmatmul.mubr.f32.vlgmr.msra.gmra.mxu0 %v6311_v32  ;;  %6576 = vmatmul.mubr.f32.vlgmr.msra.gmra.mxu1 %v6311_v32  ;;  %v6627_v32 = vld [vmem:[#allocation8 + $0xa0] sm:$0xff] }
0x13ef   :  { %6799 = vmatprep.mubr.f32.mxu0 %v9454_v2  ;;  %6870 = vmatprep.mubr.f32.mxu1 %v9454_v2  ;;  %v6657_v2 = vld [vmem:[#allocation8 + $0x190] sm:$0xff] }
0x13f0   :  { %6807 = vmatpush1.msra.mxu1 %v6669_v17  ;;  %6736 = vmatpush1.msra.mxu0 %v6667_v60  ;;  %v6626_v17 = vld [vmem:[#allocation8 + $0x98] sm:$0xff]  ;;  %v6624_v60 = vld [vmem:[#allocation8 + $0x88] sm:$0xff] }
0x13f1   :  { %6808 = vmatprep.subr.mxu1 %v6666_v36  ;;  %6737 = vmatprep.subr.mxu0 %v6664_v38  ;;  %v6625_v36 = vld [vmem:[#allocation8 + $0x90] sm:$0xff]  ;;  %v6623_v38 = vld [vmem:[#allocation8 + $0x80] sm:$0xff] }
0x13f2   :  { %6809 = vmatpush1.msra.mxu1 %v6665_v11  ;;  %6738 = vmatpush1.msra.mxu0 %v6663_v43  ;;  %v6622_v11 = vld [vmem:[#allocation8 + $0x78] sm:$0xff]  ;;  %v6620_v43 = vld [vmem:[#allocation8 + $0x68] sm:$0xff] }
0x13f3   :  { %6810 = vmatprep.subr.mxu1 %v6662_v40  ;;  %6739 = vmatprep.subr.mxu0 %v6660_v22  ;;  %v6621_v40 = vld [vmem:[#allocation8 + $0x70] sm:$0xff]  ;;  %v6619_v22 = vld [vmem:[#allocation8 + $0x60] sm:$0xff] }
0x13f4   :  { %6811 = vmatpush1.msra.mxu1 %v6661_v44  ;;  %6740 = vmatpush1.msra.mxu0 %v6659_v47  ;;  %v6618_v44 = vld [vmem:[#allocation8 + $0x58] sm:$0xff]  ;;  %v6616_v47 = vld [vmem:[#allocation8 + $0x48] sm:$0xff] }
0x13f5   :  { %6812 = vmatprep.subr.mxu1 %v6658_v10  ;;  %6741 = vmatprep.subr.mxu0 %v6656_v37  ;;  %v6617_v10 = vld [vmem:[#allocation8 + $0x50] sm:$0xff]  ;;  %v6615_v37 = vld [vmem:[#allocation8 + $0x40] sm:$0xff] }
0x13f6   :  { %6813 = vmatpush1.msra.mxu1 %v6657_v2  ;;  %6742 = vmatpush1.msra.mxu0 %v6655_v4  ;;  %v6614_v2 = vld [vmem:[#allocation8 + $0x38] sm:$0xff]  ;;  %v6612_v4 = vld [vmem:[#allocation8 + $0x28] sm:$0xff] }
0x13f7   :  { %6814 = vmatprep.subr.mxu1 %v6654_v50  ;;  %6743 = vmatprep.subr.mxu0 %v6652_v13  ;;  %v6613_v50 = vld [vmem:[#allocation8 + $0x30] sm:$0xff]  ;;  %v6611_v13 = vld [vmem:[#allocation8 + $0x20] sm:$0xff] }
0x13f8   :  { %6815 = vmatpush1.msra.mxu1 %v6653_v14  ;;  %6744 = vmatpush1.msra.mxu0 %v6651_v29  ;;  %v6610_v14 = vld [vmem:[#allocation8 + $0x18] sm:$0xff]  ;;  %v6608_v29 = vld [vmem:[#allocation8 + $0x8] sm:$0xff] }
0x13f9   :  { %6816 = vmatprep.subr.mxu1 %v6650_v54  ;;  %6745 = vmatprep.subr.mxu0 %v6648_v55  ;;  %v6609_v54 = vld [vmem:[#allocation8 + $0x10] sm:$0xff]  ;;  %v6607_v55 = vld [vmem:[#allocation8] sm:$0xff] }
0x13fa   :  { %6817 = vmatpush1.msra.mxu1 %v6649_v57  ;;  %6746 = vmatpush1.msra.mxu0 %v6647_v33  ;;  %v6734_v57 = vld [vmem:[#allocation8 + $0x3f8] sm:$0xff]  ;;  %v6732_v33 = vld [vmem:[#allocation8 + $0x3e8] sm:$0xff] }
0x13fb   :  { %6818 = vmatprep.subr.mxu1 %v6646_v24  ;;  %6747 = vmatprep.subr.mxu0 %v6644_v34  ;;  %v6733_v24 = vld [vmem:[#allocation8 + $0x3f0] sm:$0xff]  ;;  %v6731_v34 = vld [vmem:[#allocation8 + $0x3e0] sm:$0xff] }
0x13fc   :  { %6819 = vmatpush1.msra.mxu1 %v6645_v61  ;;  %6748 = vmatpush1.msra.mxu0 %v6643_v3  ;;  %v6730_v61 = vld [vmem:[#allocation8 + $0x3d8] sm:$0xff]  ;;  %v6728_v3 = vld [vmem:[#allocation8 + $0x3c8] sm:$0xff] }
0x13fd   :  { %6820 = vmatprep.subr.mxu1 %v6642_v45  ;;  %6749 = vmatprep.subr.mxu0 %v6640_v16  ;;  %v6729_v45 = vld [vmem:[#allocation8 + $0x3d0] sm:$0xff]  ;;  %v6727_v16 = vld [vmem:[#allocation8 + $0x3c0] sm:$0xff] }
0x13fe   :  { %6821 = vmatpush1.msra.mxu1 %v6641_v46  ;;  %6750 = vmatpush1.msra.mxu0 %v6639_v7  ;;  %v6726_v46 = vld [vmem:[#allocation8 + $0x3b8] sm:$0xff]  ;;  %v6724_v7 = vld [vmem:[#allocation8 + $0x3a8] sm:$0xff] }
0x13ff   :  { %6822 = vmatprep.subr.mxu1 %v6638_v8  ;;  %6751 = vmatprep.subr.mxu0 %v6636_v1  ;;  %v6725_v8 = vld [vmem:[#allocation8 + $0x3b0] sm:$0xff]  ;;  %v6723_v1 = vld [vmem:[#allocation8 + $0x3a0] sm:$0xff] }
0x1400   :  { %6823 = vmatpush1.msra.mxu1 %v6637_v5  ;;  %6752 = vmatpush1.msra.mxu0 %v6635_v48  ;;  %v6722_v5 = vld [vmem:[#allocation8 + $0x398] sm:$0xff]  ;;  %v6720_v48 = vld [vmem:[#allocation8 + $0x388] sm:$0xff] }
0x1401   :  { %6824 = vmatprep.subr.mxu1 %v6634_v31  ;;  %6753 = vmatprep.subr.mxu0 %v6632_v12  ;;  %v6721_v31 = vld [vmem:[#allocation8 + $0x390] sm:$0xff]  ;;  %v6719_v12 = vld [vmem:[#allocation8 + $0x380] sm:$0xff] }
0x1402   :  { %6825 = vmatpush1.msra.mxu1 %v6633_v63  ;;  %6754 = vmatpush1.msra.mxu0 %v6631_v9  ;;  %v6718_v63 = vld [vmem:[#allocation8 + $0x378] sm:$0xff]  ;;  %v6716_v9 = vld [vmem:[#allocation8 + $0x368] sm:$0xff] }
0x1403   :  { %6826 = vmatprep.subr.mxu1 %v6630_v56  ;;  %6755 = vmatprep.subr.mxu0 %v6628_v23  ;;  %v6717_v56 = vld [vmem:[#allocation8 + $0x370] sm:$0xff]  ;;  %v6715_v23 = vld [vmem:[#allocation8 + $0x360] sm:$0xff] }
0x1404   :  { %6827 = vmatpush1.msra.mxu1 %v6629_v30  ;;  %6756 = vmatpush1.msra.mxu0 %v6627_v32  ;;  %v6714_v30 = vld [vmem:[#allocation8 + $0x358] sm:$0xff]  ;;  %v6712_v32 = vld [vmem:[#allocation8 + $0x348] sm:$0xff] }
0x1405   :  { %6828 = vmatprep.subr.mxu1 %v6626_v17  ;;  %6757 = vmatprep.subr.mxu0 %v6624_v60  ;;  %v6713_v17 = vld [vmem:[#allocation8 + $0x350] sm:$0xff]  ;;  %v6711_v60 = vld [vmem:[#allocation8 + $0x340] sm:$0xff] }
0x1406   :  { %6829 = vmatpush1.msra.mxu1 %v6625_v36  ;;  %6758 = vmatpush1.msra.mxu0 %v6623_v38  ;;  %v6710_v36 = vld [vmem:[#allocation8 + $0x338] sm:$0xff]  ;;  %v6708_v38 = vld [vmem:[#allocation8 + $0x328] sm:$0xff] }
0x1407   :  { %6830 = vmatprep.subr.mxu1 %v6622_v11  ;;  %6759 = vmatprep.subr.mxu0 %v6620_v43  ;;  %v6709_v11 = vld [vmem:[#allocation8 + $0x330] sm:$0xff]  ;;  %v6707_v43 = vld [vmem:[#allocation8 + $0x320] sm:$0xff] }
0x1408   :  { %6831 = vmatpush1.msra.mxu1 %v6621_v40  ;;  %6760 = vmatpush1.msra.mxu0 %v6619_v22  ;;  %v6706_v40 = vld [vmem:[#allocation8 + $0x318] sm:$0xff]  ;;  %v6704_v22 = vld [vmem:[#allocation8 + $0x308] sm:$0xff] }
0x1409   :  { %6832 = vmatprep.subr.mxu1 %v6618_v44  ;;  %6761 = vmatprep.subr.mxu0 %v6616_v47  ;;  %v6705_v44 = vld [vmem:[#allocation8 + $0x310] sm:$0xff]  ;;  %v6703_v47 = vld [vmem:[#allocation8 + $0x300] sm:$0xff] }
0x140a   :  { %6833 = vmatpush1.msra.mxu1 %v6617_v10  ;;  %6762 = vmatpush1.msra.mxu0 %v6615_v37  ;;  %v6702_v10 = vld [vmem:[#allocation8 + $0x2f8] sm:$0xff]  ;;  %v6700_v37 = vld [vmem:[#allocation8 + $0x2e8] sm:$0xff] }
0x140b   :  { %6834 = vmatprep.subr.mxu1 %v6614_v2  ;;  %6763 = vmatprep.subr.mxu0 %v6612_v4  ;;  %v6701_v2 = vld [vmem:[#allocation8 + $0x2f0] sm:$0xff]  ;;  %v6699_v4 = vld [vmem:[#allocation8 + $0x2e0] sm:$0xff] }
0x140c   :  { %6835 = vmatpush1.msra.mxu1 %v6613_v50  ;;  %6764 = vmatpush1.msra.mxu0 %v6611_v13  ;;  %v6698_v50 = vld [vmem:[#allocation8 + $0x2d8] sm:$0xff]  ;;  %v6696_v13 = vld [vmem:[#allocation8 + $0x2c8] sm:$0xff] }
0x140d   :  { %6836 = vmatprep.subr.mxu1 %v6610_v14  ;;  %6765 = vmatprep.subr.mxu0 %v6608_v29  ;;  %v6697_v14 = vld [vmem:[#allocation8 + $0x2d0] sm:$0xff]  ;;  %v6695_v29 = vld [vmem:[#allocation8 + $0x2c0] sm:$0xff] }
0x140e   :  { %6837 = vmatpush1.msra.mxu1 %v6609_v54  ;;  %6766 = vmatpush1.msra.mxu0 %v6607_v55  ;;  %v6694_v54 = vld [vmem:[#allocation8 + $0x2b8] sm:$0xff]  ;;  %v6692_v55 = vld [vmem:[#allocation8 + $0x2a8] sm:$0xff] }
0x140f   :  { %6838 = vmatprep.subr.mxu1 %v6734_v57  ;;  %6767 = vmatprep.subr.mxu0 %v6732_v33  ;;  %v6693_v57 = vld [vmem:[#allocation8 + $0x2b0] sm:$0xff]  ;;  %v6691_v33 = vld [vmem:[#allocation8 + $0x2a0] sm:$0xff] }
0x1410   :  { %6839 = vmatpush2.msra.mxu1 %v6733_v24  ;;  %6768 = vmatpush2.msra.mxu0 %v6731_v34  ;;  %v6690_v24 = vld [vmem:[#allocation8 + $0x298] sm:$0xff]  ;;  %v6688_v34 = vld [vmem:[#allocation8 + $0x288] sm:$0xff] }
0x1411   :  { %6840 = vmatprep.subr.mxu1 %v6730_v61  ;;  %6769 = vmatprep.subr.mxu0 %v6728_v3  ;;  %v6689_v61 = vld [vmem:[#allocation8 + $0x290] sm:$0xff]  ;;  %v6687_v3 = vld [vmem:[#allocation8 + $0x280] sm:$0xff] }
0x1412   :  { %6841 = vmatpush2.msra.mxu1 %v6729_v45  ;;  %6770 = vmatpush2.msra.mxu0 %v6727_v16  ;;  %v6686_v45 = vld [vmem:[#allocation8 + $0x278] sm:$0xff]  ;;  %v6684_v16 = vld [vmem:[#allocation8 + $0x268] sm:$0xff] }
0x1413   :  { %6842 = vmatprep.subr.mxu1 %v6726_v46  ;;  %6771 = vmatprep.subr.mxu0 %v6724_v7  ;;  %v6685_v46 = vld [vmem:[#allocation8 + $0x270] sm:$0xff]  ;;  %v6683_v7 = vld [vmem:[#allocation8 + $0x260] sm:$0xff] }
0x1414   :  { %6843 = vmatpush2.msra.mxu1 %v6725_v8  ;;  %6772 = vmatpush2.msra.mxu0 %v6723_v1  ;;  %v6682_v8 = vld [vmem:[#allocation8 + $0x258] sm:$0xff]  ;;  %v6680_v1 = vld [vmem:[#allocation8 + $0x248] sm:$0xff] }
0x1415   :  { %6844 = vmatprep.subr.mxu1 %v6722_v5  ;;  %6773 = vmatprep.subr.mxu0 %v6720_v48  ;;  %v6681_v5 = vld [vmem:[#allocation8 + $0x250] sm:$0xff]  ;;  %v6679_v48 = vld [vmem:[#allocation8 + $0x240] sm:$0xff] }
0x1416   :  { %6845 = vmatpush2.msra.mxu1 %v6721_v31  ;;  %6774 = vmatpush2.msra.mxu0 %v6719_v12  ;;  %v6678_v31 = vld [vmem:[#allocation8 + $0x238] sm:$0xff]  ;;  %v6676_v12 = vld [vmem:[#allocation8 + $0x228] sm:$0xff] }
0x1417   :  { %6846 = vmatprep.subr.mxu1 %v6718_v63  ;;  %6775 = vmatprep.subr.mxu0 %v6716_v9  ;;  %v6677_v63 = vld [vmem:[#allocation8 + $0x230] sm:$0xff]  ;;  %v6675_v9 = vld [vmem:[#allocation8 + $0x220] sm:$0xff] }
0x1418   :  { %6847 = vmatpush2.msra.mxu1 %v6717_v56  ;;  %6776 = vmatpush2.msra.mxu0 %v6715_v23  ;;  %v6674_v56 = vld [vmem:[#allocation8 + $0x218] sm:$0xff]  ;;  %v6672_v23 = vld [vmem:[#allocation8 + $0x208] sm:$0xff] }
0x1419   :  { %6848 = vmatprep.subr.mxu1 %v6714_v30  ;;  %6777 = vmatprep.subr.mxu0 %v6712_v32  ;;  %v6673_v30 = vld [vmem:[#allocation8 + $0x210] sm:$0xff]  ;;  %v6671_v32 = vld [vmem:[#allocation8 + $0x200] sm:$0xff] }
0x141a   :  { %6849 = vmatpush2.msra.mxu1 %v6713_v17  ;;  %6778 = vmatpush2.msra.mxu0 %v6711_v60  ;;  %v7053_v17 = vld [vmem:[#allocation3 + $0x1e8] sm:$0xff] }
0x141b   :  { %6850 = vmatprep.subr.mxu1 %v6710_v36  ;;  %6779 = vmatprep.subr.mxu0 %v6708_v38 }
0x141c   :  { %6851 = vmatpush2.msra.mxu1 %v6709_v11  ;;  %6780 = vmatpush2.msra.mxu0 %v6707_v43 }
0x141d   :  { %6852 = vmatprep.subr.mxu1 %v6706_v40  ;;  %6781 = vmatprep.subr.mxu0 %v6704_v22 }
0x141e   :  { %6853 = vmatpush2.msra.mxu1 %v6705_v44  ;;  %6782 = vmatpush2.msra.mxu0 %v6703_v47 }
0x141f   :  { %6854 = vmatprep.subr.mxu1 %v6702_v10  ;;  %6783 = vmatprep.subr.mxu0 %v6700_v37 }
0x1420   :  { %6855 = vmatpush2.msra.mxu1 %v6701_v2  ;;  %6784 = vmatpush2.msra.mxu0 %v6699_v4 }
0x1421   :  { %6856 = vmatprep.subr.mxu1 %v6698_v50  ;;  %6785 = vmatprep.subr.mxu0 %v6696_v13 }
0x1422   :  { %6857 = vmatpush2.msra.mxu1 %v6697_v14  ;;  %6786 = vmatpush2.msra.mxu0 %v6695_v29 }
0x1423   :  { %6858 = vmatprep.subr.mxu1 %v6694_v54  ;;  %6787 = vmatprep.subr.mxu0 %v6692_v55 }
0x1424   :  { %6859 = vmatpush2.msra.mxu1 %v6693_v57  ;;  %6788 = vmatpush2.msra.mxu0 %v6691_v33 }
0x1425   :  { %6860 = vmatprep.subr.mxu1 %v6690_v24  ;;  %6789 = vmatprep.subr.mxu0 %v6688_v34 }
0x1426   :  { %6861 = vmatpush2.msra.mxu1 %v6689_v61  ;;  %6790 = vmatpush2.msra.mxu0 %v6687_v3 }
0x1427   :  { %6862 = vmatprep.subr.mxu1 %v6686_v45  ;;  %6791 = vmatprep.subr.mxu0 %v6684_v16 }
0x1428   :  { %6863 = vmatpush2.msra.mxu1 %v6685_v46  ;;  %6792 = vmatpush2.msra.mxu0 %v6683_v7  ;;  %v7052_v46 = vld [vmem:[#allocation3 + $0x1e0] sm:$0xff]  ;;  %v7049_v7 = vld [vmem:[#allocation3 + $0x1c8] sm:$0xff] }
0x1429   :  { %6864 = vmatprep.subr.mxu1 %v6682_v8  ;;  %6793 = vmatprep.subr.mxu0 %v6680_v1  ;;  %v7048_v8 = vld [vmem:[#allocation3 + $0x1c0] sm:$0xff]  ;;  %v7045_v1 = vld [vmem:[#allocation3 + $0x1a8] sm:$0xff] }
0x142a   :  { %6865 = vmatpush2.msra.mxu1 %v6681_v5  ;;  %6794 = vmatpush2.msra.mxu0 %v6679_v48  ;;  %v7041_v5 = vld [vmem:[#allocation3 + $0x188] sm:$0xff]  ;;  %v7040_v48 = vld [vmem:[#allocation3 + $0x180] sm:$0xff] }
0x142b   :  { %6866 = vmatprep.subr.mxu1 %v6678_v31  ;;  %6795 = vmatprep.subr.mxu0 %v6676_v12  ;;  %v7037_v31 = vld [vmem:[#allocation3 + $0x168] sm:$0xff]  ;;  %v7036_v12 = vld [vmem:[#allocation3 + $0x160] sm:$0xff] }
0x142c   :  { %6867 = vmatpush2.msra.mxu1 %v6677_v63  ;;  %6796 = vmatpush2.msra.mxu0 %v6675_v9  ;;  %v7033_v63 = vld [vmem:[#allocation3 + $0x148] sm:$0xff]  ;;  %v7032_v9 = vld [vmem:[#allocation3 + $0x140] sm:$0xff] }
0x142d   :  { %6868 = vmatprep.subr.mxu1 %v6674_v56  ;;  %6797 = vmatprep.subr.mxu0 %v6672_v23  ;;  %v7029_v56 = vld [vmem:[#allocation3 + $0x128] sm:$0xff]  ;;  %v7028_v23 = vld [vmem:[#allocation3 + $0x120] sm:$0xff] }
0x142e   :  { %6869 = vmatpush2.msra.mxu1 %v6673_v30  ;;  %6798 = vmatpush2.msra.mxu0 %v6671_v32  ;;  %v7025_v30 = vld [vmem:[#allocation3 + $0x108] sm:$0xff]  ;;  %v7024_v32 = vld [vmem:[#allocation3 + $0x100] sm:$0xff] }
0x142f   :  { %7056 = vmatprep.subr.mxu1 %v7053_v17  ;;  %8342 = vmatprep.subr.mxu0 %v8870_v0  ;;  %v7021_v17 = vld [vmem:[#allocation3 + $0xe8] sm:$0xff] }
0x14ae   :  { %v6506_v60 = vpop.f32.mrf.mxu0  ;;  %v6577_v22 = vpop.f32.mrf.mxu1 }
0x14af   :  { %v6507_v36 = vadd.f32 %v6506_v60, %v9029_v51  ;;  %v6578_v44 = vadd.f32 %v6577_v22, %v9037_v59  ;;  %v7020_v60 = vld [vmem:[#allocation3 + $0xe0] sm:$0xff] }
0x14b0   :  { %v6508_v38 = vpop.f32.mrf.mxu0  ;;  %v6579_v47 = vpop.f32.mrf.mxu1  ;;  %v7008_v22 = vld [vmem:[#allocation3 + $0x80] sm:$0xff] }
0x14b1   :  { %v7983_v11 = vmul.f32 -1.442695, %v6507_v36  ;;  %v6509_v43 = vadd.f32 %v6508_v38, %v9032_v52  ;;  %v7985_v10 = vmul.f32 -1.442695, %v6578_v44  ;;  %v6580_v2 = vadd.f32 %v6579_v47, %v9041_v62  ;;  %v7017_v36 = vld [vmem:[#allocation3 + $0xc8] sm:$0xff]  ;;  %v7016_v38 = vld [vmem:[#allocation3 + $0xc0] sm:$0xff] }
0x14b2   :  { %v7005_v44 = vld [vmem:[#allocation3 + $0x68] sm:$0xff]  ;;  %v7004_v47 = vld [vmem:[#allocation3 + $0x60] sm:$0xff] }
0x14b3   :  { %8676 = vpow2.f32 %v7983_v11  ;;  %v7984_v40 = vmul.f32 -1.442695, %v6509_v43  ;;  %v7013_v11 = vld [vmem:[#allocation3 + $0xa8] sm:$0xff]  ;;  %v7012_v43 = vld [vmem:[#allocation3 + $0xa0] sm:$0xff] }
0x14b5   :  { %8678 = vpow2.f32 %v7984_v40  ;;  %v7009_v40 = vld [vmem:[#allocation3 + $0x88] sm:$0xff] }
0x14b6   :  { %8680 = vpow2.f32 %v7985_v10  ;;  %v7001_v10 = vld [vmem:[#allocation3 + $0x48] sm:$0xff] }
0x14c0   :  { %v8677_v37 = vpop.eup %8676 }
0x14c1   :  { %v6591_v4 = vadd.f32 1.0, %v8677_v37  ;;  %v7000_v37 = vld [vmem:[#allocation3 + $0x40] sm:$0xff] }
0x14c2   :  { %v8679_v50 = vpop.eup %8678 }
0x14c3   :  { %8682 = vrcp.f32 %v6591_v4  ;;  %v6592_v13 = vadd.f32 1.0, %v8679_v50  ;;  %v8681_v14 = vpop.eup %8680  ;;  %v6996_v4 = vld [vmem:[#allocation3 + $0x20] sm:$0xff]  ;;  %v6993_v50 = vld [vmem:[#allocation3 + $0x8] sm:$0xff] }
0x14c4   :  { %8684 = vtanh.f32 %v6580_v2  ;;  %v6593_v57 = vadd.f32 1.0, %v8681_v14  ;;  %v6997_v2 = vld [vmem:[#allocation3 + $0x28] sm:$0xff]  ;;  %v6917_v14 = vld [vmem:[#allocation9 + $0x78] sm:$0xff] }
0x14c5   :  { %8686 = vrcp.f32 %v6592_v13  ;;  %v6992_v13 = vld [vmem:[#allocation3] sm:$0xff] }
0x14c6   :  { %8688 = vrcp.f32 %v6593_v57  ;;  %v6913_v57 = vld [vmem:[#allocation9 + $0x58] sm:$0xff] }
0x14d0   :  { %v8683_v29 = vpop.eup %8682 }
0x14d1   :  { %v8685_v54 = vpop.eup %8684 }
0x14d2   :  { %v8687_v55 = vpop.eup %8686  ;;  %v6602_v24 = vmul.f32 %v8685_v54, %v8683_v29  ;;  %v6916_v29 = vld [vmem:[#allocation9 + $0x70] sm:$0xff]  ;;  %v6915_v54 = vld [vmem:[#allocation9 + $0x68] sm:$0xff] }
0x14d3   :  { %v6601_v33 = vmul.f32 %v8687_v55, %v9420_v6  ;;  %v8689_v61 = vpop.eup %8688  ;;  %v7044_v6 = vld [vmem:[#allocation3 + $0x1a0] sm:$0xff] }
0x14d4   :  { %v6914_v55 = vld [vmem:[#allocation9 + $0x60] sm:$0xff] }
0x14d5   :  { %v9490_v34 = vadd.f32 %v6602_v24, %v6601_v33  ;;  %v6912_v33 = vld [vmem:[#allocation9 + $0x50] sm:$0xff]  ;;  %v6911_v24 = vld [vmem:[#allocation9 + $0x48] sm:$0xff] }
0x14d7   :  { %8690 = vtanh.f32 %v9490_v34 }
0x14e4   :  { %v8691_v3 = vpop.eup %8690 }
0x14e5   :  { %v9493_v45 = vmul.f32 %v8691_v3, %v8689_v61  ;;  %v6910_v61 = vld [vmem:[#allocation9 + $0x40] sm:$0xff]  ;;  %v6909_v3 = vld [vmem:[#allocation9 + $0x38] sm:$0xff] }
0x14e7   :  { %v6606_v16 = vmax.f32 %v9493_v45, 0.0 }
0x14e9   :  { %6800 = vmatmul.mubr.f32.vlgmr.msra.gmra.mxu0 %v6606_v16  ;;  %6871 = vmatmul.mubr.f32.vlgmr.msra.gmra.mxu1 %v6606_v16  ;;  %v6908_v16 = vld [vmem:[#allocation9 + $0x30] sm:$0xff] }
0x14ea   :  { %7057 = vmatpush1.msra.mxu1 %v7052_v46  ;;  %7120 = vmatprep.mubr.f32.mxu1 %v8870_v0  ;;  %v6907_v46 = vld [vmem:[#allocation9 + $0x28] sm:$0xff] }
0x14eb   :  { %7058 = vmatprep.subr.mxu1 %v7049_v7  ;;  %8374 = vmatprep.mubr.msk.f32.mxu0 %vm8873_vm0, %v8870_v0  ;;  %v6906_v7 = vld [vmem:[#allocation9 + $0x20] sm:$0xff] }
0x14ec   :  { %7059 = vmatpush1.msra.mxu1 %v7048_v8  ;;  %8343 = vmatpush3.msra.mxu0 %v6917_v14  ;;  %v6905_v8 = vld [vmem:[#allocation9 + $0x18] sm:$0xff] }
0x14ed   :  { %7060 = vmatprep.subr.mxu1 %v7045_v1  ;;  %8344 = vmatprep.subr.mxu0 %v8870_v0  ;;  %v6904_v1 = vld [vmem:[#allocation9 + $0x10] sm:$0xff] }
0x14ee   :  { %7061 = vmatpush1.msra.mxu1 %v7044_v6  ;;  %8345 = vmatpush3.msra.mxu0 %v6916_v29  ;;  %v6903_v6 = vld [vmem:[#allocation9 + $0x8] sm:$0xff] }
0x14ef   :  { %7062 = vmatprep.subr.mxu1 %v7041_v5  ;;  %8346 = vmatprep.subr.mxu0 %v8870_v0  ;;  %v6902_v5 = vld [vmem:[#allocation9] sm:$0xff] }
0x14f0   :  { %7063 = vmatpush1.msra.mxu1 %v7040_v48  ;;  %8347 = vmatpush3.msra.mxu0 %v6915_v54  ;;  %v7055_v48 = vld [vmem:[#allocation3 + $0x1f8] sm:$0xff] }
0x14f1   :  { %7064 = vmatprep.subr.mxu1 %v7037_v31  ;;  %8348 = vmatprep.subr.mxu0 %v8870_v0 }
0x14f2   :  { %7065 = vmatpush1.msra.mxu1 %v7036_v12  ;;  %8349 = vmatpush3.msra.mxu0 %v6914_v55  ;;  %v7054_v55 = vld [vmem:[#allocation3 + $0x1f0] sm:$0xff] }
0x14f3   :  { %7066 = vmatprep.subr.mxu1 %v7033_v63  ;;  %8350 = vmatprep.subr.mxu0 %v8870_v0 }
0x14f4   :  { %7067 = vmatpush1.msra.mxu1 %v7032_v9  ;;  %8351 = vmatpush3.msra.mxu0 %v6913_v57  ;;  %v7051_v57 = vld [vmem:[#allocation3 + $0x1d8] sm:$0xff] }
0x14f5   :  { %7068 = vmatprep.subr.mxu1 %v7029_v56  ;;  %8352 = vmatprep.subr.mxu0 %v8870_v0 }
0x14f6   :  { %7069 = vmatpush1.msra.mxu1 %v7028_v23  ;;  %8353 = vmatpush3.msra.mxu0 %v6912_v33  ;;  %v7050_v33 = vld [vmem:[#allocation3 + $0x1d0] sm:$0xff] }
0x14f7   :  { %7070 = vmatprep.subr.mxu1 %v7025_v30  ;;  %8354 = vmatprep.subr.mxu0 %v8870_v0 }
0x14f8   :  { %7071 = vmatpush1.msra.mxu1 %v7024_v32  ;;  %8355 = vmatpush3.msra.mxu0 %v6911_v24  ;;  %v7047_v24 = vld [vmem:[#allocation3 + $0x1b8] sm:$0xff] }
0x14f9   :  { %7072 = vmatprep.subr.mxu1 %v7021_v17  ;;  %8356 = vmatprep.subr.mxu0 %v8870_v0 }
0x14fa   :  { %7073 = vmatpush1.msra.mxu1 %v7020_v60  ;;  %8357 = vmatpush3.msra.mxu0 %v6910_v61  ;;  %v7043_v61 = vld [vmem:[#allocation3 + $0x198] sm:$0xff] }
0x14fb   :  { %7074 = vmatprep.subr.mxu1 %v7017_v36  ;;  %8358 = vmatprep.subr.mxu0 %v8870_v0 }
0x14fc   :  { %7075 = vmatpush1.msra.mxu1 %v7016_v38  ;;  %8359 = vmatpush3.msra.mxu0 %v6909_v3  ;;  %v7042_v3 = vld [vmem:[#allocation3 + $0x190] sm:$0xff] }
0x14fd   :  { %7076 = vmatprep.subr.mxu1 %v7013_v11  ;;  %8360 = vmatprep.subr.mxu0 %v8870_v0 }
0x14fe   :  { %7077 = vmatpush1.msra.mxu1 %v7012_v43  ;;  %8361 = vmatpush3.msra.mxu0 %v6908_v16  ;;  %v7039_v16 = vld [vmem:[#allocation3 + $0x178] sm:$0xff] }
0x14ff   :  { %7078 = vmatprep.subr.mxu1 %v7009_v40  ;;  %8362 = vmatprep.subr.mxu0 %v8870_v0 }
0x1500   :  { %7079 = vmatpush1.msra.mxu1 %v7008_v22  ;;  %8363 = vmatpush3.msra.mxu0 %v6907_v46  ;;  %v7038_v46 = vld [vmem:[#allocation3 + $0x170] sm:$0xff] }
0x1501   :  { %7080 = vmatprep.subr.mxu1 %v7005_v44  ;;  %8364 = vmatprep.subr.mxu0 %v8870_v0 }
0x1502   :  { %7081 = vmatpush1.msra.mxu1 %v7004_v47  ;;  %8365 = vmatpush3.msra.mxu0 %v6906_v7  ;;  %v7035_v7 = vld [vmem:[#allocation3 + $0x158] sm:$0xff] }
0x1503   :  { %7082 = vmatprep.subr.mxu1 %v7001_v10  ;;  %8366 = vmatprep.subr.mxu0 %v8870_v0 }
0x1504   :  { %7083 = vmatpush1.msra.mxu1 %v7000_v37  ;;  %8367 = vmatpush3.msra.mxu0 %v6905_v8  ;;  %v7034_v8 = vld [vmem:[#allocation3 + $0x150] sm:$0xff] }
0x1505   :  { %7084 = vmatprep.subr.mxu1 %v6997_v2  ;;  %8368 = vmatprep.subr.mxu0 %v8870_v0 }
0x1506   :  { %7085 = vmatpush1.msra.mxu1 %v6996_v4  ;;  %8369 = vmatpush3.msra.mxu0 %v6904_v1  ;;  %v7031_v1 = vld [vmem:[#allocation3 + $0x138] sm:$0xff] }
0x1507   :  { %7086 = vmatprep.subr.mxu1 %v6993_v50  ;;  %8370 = vmatprep.subr.mxu0 %v8870_v0 }
0x1508   :  { %7087 = vmatpush1.msra.mxu1 %v6992_v13  ;;  %8371 = vmatpush3.msra.mxu0 %v6903_v6  ;;  %v7030_v6 = vld [vmem:[#allocation3 + $0x130] sm:$0xff] }
0x1509   :  { %7121 = vmatmul.mubr.f32.vlgmr.msra.gmra.mxu1 %v9479_v58  ;;  %8372 = vmatprep.subr.mxu0 %v8870_v0 }
0x150a   :  { %7434 = vmatprep.mubr.f32.mxu1 %v9493_v45  ;;  %8373 = vmatpush3.msra.mxu0 %v6902_v5  ;;  %v7027_v5 = vld [vmem:[#allocation3 + $0x118] sm:$0xff] }
0x150b   :  { %7127 = vmatprep.subr.mxu0 %v7055_v48  ;;  %v7026_v48 = vld [vmem:[#allocation3 + $0x110] sm:$0xff] }
0x15a9   :  { %v6801_v31 = vpop.f32.mrf.mxu0  ;;  %v6872_v30 = vpop.f32.mrf.mxu1 }
0x15aa   :  { %v6802_v12 = vadd.f32 %v6801_v31, %v9074_v41  ;;  %v6873_v32 = vadd.f32 %v6872_v30, %v9082_v49  ;;  %v7023_v31 = vld [vmem:[#allocation3 + $0xf8] sm:$0xff] }
0x15ab   :  { %v6803_v63 = vpop.f32.mrf.mxu0  ;;  %v6874_v17 = vpop.f32.mrf.mxu1  ;;  %v7011_v30 = vld [vmem:[#allocation3 + $0x98] sm:$0xff] }
0x15ac   :  { %v7986_v9 = vmul.f32 -1.442695, %v6802_v12  ;;  %v6804_v56 = vadd.f32 %v6803_v63, %v9077_v42  ;;  %v7988_v60 = vmul.f32 -1.442695, %v6873_v32  ;;  %v6875_v38 = vadd.f32 %v6874_v17, %v9086_v53  ;;  %v7022_v12 = vld [vmem:[#allocation3 + $0xf0] sm:$0xff]  ;;  %v7019_v63 = vld [vmem:[#allocation3 + $0xd8] sm:$0xff] }
0x15ad   :  { %v7010_v32 = vld [vmem:[#allocation3 + $0x90] sm:$0xff]  ;;  %v7007_v17 = vld [vmem:[#allocation3 + $0x78] sm:$0xff] }
0x15ae   :  { %8692 = vpow2.f32 %v7986_v9  ;;  %v7987_v23 = vmul.f32 -1.442695, %v6804_v56  ;;  %v7018_v9 = vld [vmem:[#allocation3 + $0xd0] sm:$0xff]  ;;  %v7015_v56 = vld [vmem:[#allocation3 + $0xb8] sm:$0xff] }
0x15b0   :  { %8694 = vpow2.f32 %v7987_v23  ;;  %v7014_v23 = vld [vmem:[#allocation3 + $0xb0] sm:$0xff] }
0x15b1   :  { %8696 = vpow2.f32 %v7988_v60  ;;  %v7006_v60 = vld [vmem:[#allocation3 + $0x70] sm:$0xff] }
0x15bb   :  { %v8693_v36 = vpop.eup %8692 }
0x15bc   :  { %v6886_v11 = vadd.f32 1.0, %v8693_v36  ;;  %v7003_v36 = vld [vmem:[#allocation3 + $0x58] sm:$0xff] }
0x15bd   :  { %v8695_v43 = vpop.eup %8694 }
0x15be   :  { %8698 = vrcp.f32 %v6886_v11  ;;  %v6887_v40 = vadd.f32 1.0, %v8695_v43  ;;  %v8697_v22 = vpop.eup %8696  ;;  %v6999_v11 = vld [vmem:[#allocation3 + $0x38] sm:$0xff]  ;;  %v6998_v43 = vld [vmem:[#allocation3 + $0x30] sm:$0xff] }
0x15bf   :  { %8700 = vtanh.f32 %v6875_v38  ;;  %v6888_v37 = vadd.f32 1.0, %v8697_v22  ;;  %v7002_v38 = vld [vmem:[#allocation3 + $0x50] sm:$0xff] }
0x15c0   :  { %8702 = vrcp.f32 %v6887_v40  ;;  %v6995_v40 = vld [vmem:[#allocation3 + $0x18] sm:$0xff]  ;;  %v6994_v22 = vld [vmem:[#allocation3 + $0x10] sm:$0xff] }
0x15c1   :  { %8704 = vrcp.f32 %v6888_v37  ;;  %v7304_v37 = vld [vmem:[#allocation6 + $0x1f0] sm:$0xff] }
0x15cb   :  { %v8699_v44 = vpop.eup %8698 }
0x15cc   :  { %v8701_v47 = vpop.eup %8700 }
0x15cd   :  { %v8703_v10 = vpop.eup %8702  ;;  %v6897_v4 = vmul.f32 %v8701_v47, %v8699_v44  ;;  %v7303_v44 = vld [vmem:[#allocation6 + $0x1e8] sm:$0xff]  ;;  %v7305_v47 = vld [vmem:[#allocation6 + $0x1f8] sm:$0xff] }
0x15ce   :  { %v6896_v2 = vmul.f32 %v8703_v10, %v9451_v35  ;;  %v8705_v13 = vpop.eup %8704  ;;  %v7046_v35 = vld [vmem:[#allocation3 + $0x1b0] sm:$0xff]  ;;  %7370 = vmatprep.subr.mxu1 %v7303_v44  ;;  %v7302_v10 = vld [vmem:[#allocation6 + $0x1e0] sm:$0xff] }
0x15cf   :  { %7371 = vmatpush1.msra.mxu1 %v7302_v10  ;;  %v7262_v44 = vld [vmem:[#allocation6 + $0xa0] sm:$0xff]  ;;  %v7259_v10 = vld [vmem:[#allocation6 + $0x88] sm:$0xff] }
0x15d0   :  { %v9521_v50 = vadd.f32 %v6897_v4, %v6896_v2  ;;  %v7299_v2 = vld [vmem:[#allocation6 + $0x1c8] sm:$0xff]  ;;  %v7301_v4 = vld [vmem:[#allocation6 + $0x1d8] sm:$0xff] }
0x15d1   :  { %7372 = vmatprep.subr.mxu1 %v7299_v2  ;;  %v7258_v2 = vld [vmem:[#allocation6 + $0x80] sm:$0xff] }
0x15d2   :  { %8706 = vtanh.f32 %v9521_v50 }
0x15df   :  { %v8707_v14 = vpop.eup %8706 }
0x15e0   :  { %v9524_v29 = vmul.f32 %v8707_v14, %v8705_v13  ;;  %v7298_v13 = vld [vmem:[#allocation6 + $0x1c0] sm:$0xff]  ;;  %v7300_v14 = vld [vmem:[#allocation6 + $0x1d0] sm:$0xff] }
0x15e1   :  { %7373 = vmatpush1.msra.mxu1 %v7298_v13  ;;  %v7255_v13 = vld [vmem:[#allocation6 + $0x68] sm:$0xff] }
0x15e2   :  { %v6901_v54 = vmax.f32 %v9524_v29, 0.0 }
0x15e4   :  { %8375 = vmatmul.mubr.f32.vlgmr.msra.gmra.mxu0 %v6901_v54  ;;  %v7295_v54 = vld [vmem:[#allocation6 + $0x1a8] sm:$0xff] }
0x15e5   :  { %7128 = vmatpush1.msra.mxu0 %v7054_v55  ;;  %7191 = vmatprep.mubr.f32.mxu0 %v8870_v0  ;;  %v7296_v55 = vld [vmem:[#allocation6 + $0x1b0] sm:$0xff] }
0x15e6   :  { %7129 = vmatprep.subr.mxu0 %v7051_v57  ;;  %7374 = vmatprep.subr.mxu1 %v7295_v54  ;;  %v7291_v57 = vld [vmem:[#allocation6 + $0x188] sm:$0xff]  ;;  %v7254_v54 = vld [vmem:[#allocation6 + $0x60] sm:$0xff] }
0x15e7   :  { %7130 = vmatpush1.msra.mxu0 %v7050_v33  ;;  %v7293_v33 = vld [vmem:[#allocation6 + $0x198] sm:$0xff] }
0x15e8   :  { %7131 = vmatprep.subr.mxu0 %v7047_v24  ;;  %v7290_v24 = vld [vmem:[#allocation6 + $0x180] sm:$0xff] }
0x15e9   :  { %7132 = vmatpush1.msra.mxu0 %v7046_v35  ;;  %v7292_v35 = vld [vmem:[#allocation6 + $0x190] sm:$0xff] }
0x15ea   :  { %7133 = vmatprep.subr.mxu0 %v7043_v61  ;;  %v7287_v61 = vld [vmem:[#allocation6 + $0x168] sm:$0xff] }
0x15eb   :  { %7134 = vmatpush1.msra.mxu0 %v7042_v3  ;;  %v7289_v3 = vld [vmem:[#allocation6 + $0x178] sm:$0xff] }
0x15ec   :  { %7135 = vmatprep.subr.mxu0 %v7039_v16  ;;  %v7286_v16 = vld [vmem:[#allocation6 + $0x160] sm:$0xff] }
0x15ed   :  { %7136 = vmatpush1.msra.mxu0 %v7038_v46  ;;  %v7288_v46 = vld [vmem:[#allocation6 + $0x170] sm:$0xff] }
0x15ee   :  { %7137 = vmatprep.subr.mxu0 %v7035_v7  ;;  %v7283_v7 = vld [vmem:[#allocation6 + $0x148] sm:$0xff] }
0x15ef   :  { %7138 = vmatpush1.msra.mxu0 %v7034_v8  ;;  %v7285_v8 = vld [vmem:[#allocation6 + $0x158] sm:$0xff] }
0x15f0   :  { %7139 = vmatprep.subr.mxu0 %v7031_v1  ;;  %v7282_v1 = vld [vmem:[#allocation6 + $0x140] sm:$0xff] }
0x15f1   :  { %7140 = vmatpush1.msra.mxu0 %v7030_v6  ;;  %v7284_v6 = vld [vmem:[#allocation6 + $0x150] sm:$0xff] }
0x15f2   :  { %7141 = vmatprep.subr.mxu0 %v7027_v5  ;;  %v7279_v5 = vld [vmem:[#allocation6 + $0x128] sm:$0xff] }
0x15f3   :  { %7142 = vmatpush1.msra.mxu0 %v7026_v48  ;;  %v7281_v48 = vld [vmem:[#allocation6 + $0x138] sm:$0xff] }
0x15f4   :  { %7143 = vmatprep.subr.mxu0 %v7023_v31  ;;  %v7278_v31 = vld [vmem:[#allocation6 + $0x120] sm:$0xff] }
0x15f5   :  { %7144 = vmatpush1.msra.mxu0 %v7022_v12  ;;  %v7280_v12 = vld [vmem:[#allocation6 + $0x130] sm:$0xff] }
0x15f6   :  { %7145 = vmatprep.subr.mxu0 %v7019_v63  ;;  %v7275_v63 = vld [vmem:[#allocation6 + $0x108] sm:$0xff] }
0x15f7   :  { %7146 = vmatpush1.msra.mxu0 %v7018_v9  ;;  %v7277_v9 = vld [vmem:[#allocation6 + $0x118] sm:$0xff] }
0x15f8   :  { %7147 = vmatprep.subr.mxu0 %v7015_v56  ;;  %v7274_v56 = vld [vmem:[#allocation6 + $0x100] sm:$0xff] }
0x15f9   :  { %7148 = vmatpush1.msra.mxu0 %v7014_v23  ;;  %v7276_v23 = vld [vmem:[#allocation6 + $0x110] sm:$0xff] }
0x15fa   :  { %7149 = vmatprep.subr.mxu0 %v7011_v30  ;;  %v7271_v30 = vld [vmem:[#allocation6 + $0xe8] sm:$0xff] }
0x15fb   :  { %7150 = vmatpush1.msra.mxu0 %v7010_v32  ;;  %v7273_v32 = vld [vmem:[#allocation6 + $0xf8] sm:$0xff] }
0x15fc   :  { %7151 = vmatprep.subr.mxu0 %v7007_v17  ;;  %v7270_v17 = vld [vmem:[#allocation6 + $0xe0] sm:$0xff] }
0x15fd   :  { %7152 = vmatpush1.msra.mxu0 %v7006_v60  ;;  %v7272_v60 = vld [vmem:[#allocation6 + $0xf0] sm:$0xff] }
0x15fe   :  { %7153 = vmatprep.subr.mxu0 %v7003_v36  ;;  %v7267_v36 = vld [vmem:[#allocation6 + $0xc8] sm:$0xff] }
0x15ff   :  { %7154 = vmatpush1.msra.mxu0 %v7002_v38  ;;  %v7269_v38 = vld [vmem:[#allocation6 + $0xd8] sm:$0xff] }
0x1600   :  { %7155 = vmatprep.subr.mxu0 %v6999_v11  ;;  %v7266_v11 = vld [vmem:[#allocation6 + $0xc0] sm:$0xff] }
0x1601   :  { %7156 = vmatpush1.msra.mxu0 %v6998_v43  ;;  %v7268_v43 = vld [vmem:[#allocation6 + $0xd0] sm:$0xff] }
0x1602   :  { %7157 = vmatprep.subr.mxu0 %v6995_v40  ;;  %v7263_v40 = vld [vmem:[#allocation6 + $0xa8] sm:$0xff] }
0x1603   :  { %7158 = vmatpush1.msra.mxu0 %v6994_v22  ;;  %v7265_v22 = vld [vmem:[#allocation6 + $0xb8] sm:$0xff] }
0x1604   :  { %7192 = vmatmul.mubr.f32.vlgmr.msra.gmra.mxu0 %v9479_v58  ;;  %7441 = vmatprep.subr.mxu0 %v7305_v47  ;;  %v7297_v58 = vld [vmem:[#allocation6 + $0x1b8] sm:$0xff]  ;;  %v7264_v47 = vld [vmem:[#allocation6 + $0xb0] sm:$0xff] }
0x1605   :  { %7505 = vmatprep.mubr.f32.mxu0 %v9493_v45  ;;  %7442 = vmatpush1.msra.mxu0 %v7304_v37  ;;  %v7294_v45 = vld [vmem:[#allocation6 + $0x1a0] sm:$0xff]  ;;  %v7261_v37 = vld [vmem:[#allocation6 + $0x98] sm:$0xff] }
0x1606   :  { %7443 = vmatprep.subr.mxu0 %v7301_v4  ;;  %7375 = vmatpush1.msra.mxu1 %v7294_v45  ;;  %v7260_v4 = vld [vmem:[#allocation6 + $0x90] sm:$0xff]  ;;  %v7251_v45 = vld [vmem:[#allocation6 + $0x48] sm:$0xff] }
0x1607   :  { %7444 = vmatpush1.msra.mxu0 %v7300_v14  ;;  %7376 = vmatprep.subr.mxu1 %v7291_v57  ;;  %v7257_v14 = vld [vmem:[#allocation6 + $0x78] sm:$0xff]  ;;  %v7250_v57 = vld [vmem:[#allocation6 + $0x40] sm:$0xff] }
0x1608   :  { %7445 = vmatprep.subr.mxu0 %v7297_v58  ;;  %7377 = vmatpush1.msra.mxu1 %v7290_v24  ;;  %v7256_v58 = vld [vmem:[#allocation6 + $0x70] sm:$0xff]  ;;  %v7247_v24 = vld [vmem:[#allocation6 + $0x28] sm:$0xff] }
0x1609   :  { %7446 = vmatpush1.msra.mxu0 %v7296_v55  ;;  %7378 = vmatprep.subr.mxu1 %v7287_v61  ;;  %v7253_v55 = vld [vmem:[#allocation6 + $0x58] sm:$0xff]  ;;  %v7246_v61 = vld [vmem:[#allocation6 + $0x20] sm:$0xff] }
0x160a   :  { %7447 = vmatprep.subr.mxu0 %v7293_v33  ;;  %7379 = vmatpush1.msra.mxu1 %v7286_v16  ;;  %v7252_v33 = vld [vmem:[#allocation6 + $0x50] sm:$0xff]  ;;  %v7243_v16 = vld [vmem:[#allocation6 + $0x8] sm:$0xff] }
0x160b   :  { %7448 = vmatpush1.msra.mxu0 %v7292_v35  ;;  %7380 = vmatprep.subr.mxu1 %v7283_v7  ;;  %v7249_v35 = vld [vmem:[#allocation6 + $0x38] sm:$0xff]  ;;  %v7242_v7 = vld [vmem:[#allocation6] sm:$0xff] }
0x160c   :  { %7449 = vmatprep.subr.mxu0 %v7289_v3  ;;  %7381 = vmatpush1.msra.mxu1 %v7282_v1  ;;  %v7248_v3 = vld [vmem:[#allocation6 + $0x30] sm:$0xff]  ;;  %v7367_v1 = vld [vmem:[#allocation6 + $0x3e8] sm:$0xff] }
0x160d   :  { %7450 = vmatpush1.msra.mxu0 %v7288_v46  ;;  %7382 = vmatprep.subr.mxu1 %v7279_v5  ;;  %v7245_v46 = vld [vmem:[#allocation6 + $0x18] sm:$0xff]  ;;  %v7366_v5 = vld [vmem:[#allocation6 + $0x3e0] sm:$0xff] }
0x160e   :  { %7451 = vmatprep.subr.mxu0 %v7285_v8  ;;  %7383 = vmatpush1.msra.mxu1 %v7278_v31  ;;  %v7244_v8 = vld [vmem:[#allocation6 + $0x10] sm:$0xff]  ;;  %v7363_v31 = vld [vmem:[#allocation6 + $0x3c8] sm:$0xff] }
0x160f   :  { %7452 = vmatpush1.msra.mxu0 %v7284_v6  ;;  %7384 = vmatprep.subr.mxu1 %v7275_v63  ;;  %v7369_v6 = vld [vmem:[#allocation6 + $0x3f8] sm:$0xff]  ;;  %v7362_v63 = vld [vmem:[#allocation6 + $0x3c0] sm:$0xff] }
0x1610   :  { %7453 = vmatprep.subr.mxu0 %v7281_v48  ;;  %7385 = vmatpush1.msra.mxu1 %v7274_v56  ;;  %v7368_v48 = vld [vmem:[#allocation6 + $0x3f0] sm:$0xff]  ;;  %v7359_v56 = vld [vmem:[#allocation6 + $0x3a8] sm:$0xff] }
0x1611   :  { %7454 = vmatpush1.msra.mxu0 %v7280_v12  ;;  %7386 = vmatprep.subr.mxu1 %v7271_v30  ;;  %v7365_v12 = vld [vmem:[#allocation6 + $0x3d8] sm:$0xff]  ;;  %v7358_v30 = vld [vmem:[#allocation6 + $0x3a0] sm:$0xff] }
0x1612   :  { %7455 = vmatprep.subr.mxu0 %v7277_v9  ;;  %7387 = vmatpush1.msra.mxu1 %v7270_v17  ;;  %v7364_v9 = vld [vmem:[#allocation6 + $0x3d0] sm:$0xff]  ;;  %v7355_v17 = vld [vmem:[#allocation6 + $0x388] sm:$0xff] }
0x1613   :  { %7456 = vmatpush1.msra.mxu0 %v7276_v23  ;;  %7388 = vmatprep.subr.mxu1 %v7267_v36  ;;  %v7361_v23 = vld [vmem:[#allocation6 + $0x3b8] sm:$0xff]  ;;  %v7354_v36 = vld [vmem:[#allocation6 + $0x380] sm:$0xff] }
0x1614   :  { %7457 = vmatprep.subr.mxu0 %v7273_v32  ;;  %7389 = vmatpush1.msra.mxu1 %v7266_v11  ;;  %v7360_v32 = vld [vmem:[#allocation6 + $0x3b0] sm:$0xff]  ;;  %v7351_v11 = vld [vmem:[#allocation6 + $0x368] sm:$0xff] }
0x1615   :  { %7458 = vmatpush1.msra.mxu0 %v7272_v60  ;;  %7390 = vmatprep.subr.mxu1 %v7263_v40  ;;  %v7357_v60 = vld [vmem:[#allocation6 + $0x398] sm:$0xff]  ;;  %v7350_v40 = vld [vmem:[#allocation6 + $0x360] sm:$0xff] }
0x1616   :  { %7459 = vmatprep.subr.mxu0 %v7269_v38  ;;  %7391 = vmatpush1.msra.mxu1 %v7262_v44  ;;  %v7356_v38 = vld [vmem:[#allocation6 + $0x390] sm:$0xff]  ;;  %v7347_v44 = vld [vmem:[#allocation6 + $0x348] sm:$0xff] }
0x1617   :  { %7460 = vmatpush1.msra.mxu0 %v7268_v43  ;;  %7392 = vmatprep.subr.mxu1 %v7259_v10  ;;  %v7353_v43 = vld [vmem:[#allocation6 + $0x378] sm:$0xff]  ;;  %v7346_v10 = vld [vmem:[#allocation6 + $0x340] sm:$0xff] }
0x1618   :  { %7461 = vmatprep.subr.mxu0 %v7265_v22  ;;  %7393 = vmatpush1.msra.mxu1 %v7258_v2  ;;  %v7352_v22 = vld [vmem:[#allocation6 + $0x370] sm:$0xff]  ;;  %v7343_v2 = vld [vmem:[#allocation6 + $0x328] sm:$0xff] }
0x1619   :  { %7462 = vmatpush1.msra.mxu0 %v7264_v47  ;;  %7394 = vmatprep.subr.mxu1 %v7255_v13  ;;  %v7349_v47 = vld [vmem:[#allocation6 + $0x358] sm:$0xff]  ;;  %v7342_v13 = vld [vmem:[#allocation6 + $0x320] sm:$0xff] }
0x161a   :  { %7463 = vmatprep.subr.mxu0 %v7261_v37  ;;  %7395 = vmatpush1.msra.mxu1 %v7254_v54  ;;  %v7348_v37 = vld [vmem:[#allocation6 + $0x350] sm:$0xff]  ;;  %v7339_v54 = vld [vmem:[#allocation6 + $0x308] sm:$0xff] }
0x161b   :  { %7464 = vmatpush1.msra.mxu0 %v7260_v4  ;;  %7396 = vmatprep.subr.mxu1 %v7251_v45  ;;  %v7345_v4 = vld [vmem:[#allocation6 + $0x338] sm:$0xff]  ;;  %v7338_v45 = vld [vmem:[#allocation6 + $0x300] sm:$0xff] }
0x161c   :  { %7465 = vmatprep.subr.mxu0 %v7257_v14  ;;  %7397 = vmatpush1.msra.mxu1 %v7250_v57  ;;  %v7344_v14 = vld [vmem:[#allocation6 + $0x330] sm:$0xff]  ;;  %v7335_v57 = vld [vmem:[#allocation6 + $0x2e8] sm:$0xff] }
0x161d   :  { %7466 = vmatpush1.msra.mxu0 %v7256_v58  ;;  %7398 = vmatprep.subr.mxu1 %v7247_v24  ;;  %v7341_v58 = vld [vmem:[#allocation6 + $0x318] sm:$0xff]  ;;  %v7334_v24 = vld [vmem:[#allocation6 + $0x2e0] sm:$0xff] }
0x161e   :  { %7467 = vmatprep.subr.mxu0 %v7253_v55  ;;  %7399 = vmatpush1.msra.mxu1 %v7246_v61  ;;  %v7340_v55 = vld [vmem:[#allocation6 + $0x310] sm:$0xff]  ;;  %v7331_v61 = vld [vmem:[#allocation6 + $0x2c8] sm:$0xff] }
0x161f   :  { %7468 = vmatpush1.msra.mxu0 %v7252_v33  ;;  %7400 = vmatprep.subr.mxu1 %v7243_v16  ;;  %v7337_v33 = vld [vmem:[#allocation6 + $0x2f8] sm:$0xff]  ;;  %v7330_v16 = vld [vmem:[#allocation6 + $0x2c0] sm:$0xff] }
0x1620   :  { %7469 = vmatprep.subr.mxu0 %v7249_v35  ;;  %7401 = vmatpush1.msra.mxu1 %v7242_v7  ;;  %v7336_v35 = vld [vmem:[#allocation6 + $0x2f0] sm:$0xff]  ;;  %v7327_v7 = vld [vmem:[#allocation6 + $0x2a8] sm:$0xff] }
0x1621   :  { %7470 = vmatpush1.msra.mxu0 %v7248_v3  ;;  %7402 = vmatprep.subr.mxu1 %v7367_v1  ;;  %v7333_v3 = vld [vmem:[#allocation6 + $0x2d8] sm:$0xff]  ;;  %v7326_v1 = vld [vmem:[#allocation6 + $0x2a0] sm:$0xff] }
0x1622   :  { %7471 = vmatprep.subr.mxu0 %v7245_v46  ;;  %7403 = vmatpush2.msra.mxu1 %v7366_v5  ;;  %v7332_v46 = vld [vmem:[#allocation6 + $0x2d0] sm:$0xff]  ;;  %v7323_v5 = vld [vmem:[#allocation6 + $0x288] sm:$0xff] }
0x1623   :  { %7472 = vmatpush1.msra.mxu0 %v7244_v8  ;;  %7404 = vmatprep.subr.mxu1 %v7363_v31  ;;  %v7329_v8 = vld [vmem:[#allocation6 + $0x2b8] sm:$0xff]  ;;  %v7322_v31 = vld [vmem:[#allocation6 + $0x280] sm:$0xff] }
0x1624   :  { %7473 = vmatprep.subr.mxu0 %v7369_v6  ;;  %7405 = vmatpush2.msra.mxu1 %v7362_v63  ;;  %v7328_v6 = vld [vmem:[#allocation6 + $0x2b0] sm:$0xff]  ;;  %v7319_v63 = vld [vmem:[#allocation6 + $0x268] sm:$0xff] }
0x1625   :  { %7474 = vmatpush2.msra.mxu0 %v7368_v48  ;;  %7406 = vmatprep.subr.mxu1 %v7359_v56  ;;  %v7325_v48 = vld [vmem:[#allocation6 + $0x298] sm:$0xff]  ;;  %v7318_v56 = vld [vmem:[#allocation6 + $0x260] sm:$0xff] }
0x1626   :  { %7475 = vmatprep.subr.mxu0 %v7365_v12  ;;  %7407 = vmatpush2.msra.mxu1 %v7358_v30  ;;  %v7324_v12 = vld [vmem:[#allocation6 + $0x290] sm:$0xff]  ;;  %v7315_v30 = vld [vmem:[#allocation6 + $0x248] sm:$0xff] }
0x1627   :  { %7476 = vmatpush2.msra.mxu0 %v7364_v9  ;;  %7408 = vmatprep.subr.mxu1 %v7355_v17  ;;  %v7321_v9 = vld [vmem:[#allocation6 + $0x278] sm:$0xff]  ;;  %v7314_v17 = vld [vmem:[#allocation6 + $0x240] sm:$0xff] }
0x1628   :  { %7477 = vmatprep.subr.mxu0 %v7361_v23  ;;  %7409 = vmatpush2.msra.mxu1 %v7354_v36  ;;  %v7320_v23 = vld [vmem:[#allocation6 + $0x270] sm:$0xff]  ;;  %v7311_v36 = vld [vmem:[#allocation6 + $0x228] sm:$0xff] }
0x1629   :  { %7478 = vmatpush2.msra.mxu0 %v7360_v32  ;;  %7410 = vmatprep.subr.mxu1 %v7351_v11  ;;  %v7317_v32 = vld [vmem:[#allocation6 + $0x258] sm:$0xff]  ;;  %v7310_v11 = vld [vmem:[#allocation6 + $0x220] sm:$0xff] }
0x162a   :  { %7479 = vmatprep.subr.mxu0 %v7357_v60  ;;  %7411 = vmatpush2.msra.mxu1 %v7350_v40  ;;  %v7316_v60 = vld [vmem:[#allocation6 + $0x250] sm:$0xff]  ;;  %v7307_v40 = vld [vmem:[#allocation6 + $0x208] sm:$0xff] }
0x162b   :  { %7480 = vmatpush2.msra.mxu0 %v7356_v38  ;;  %7412 = vmatprep.subr.mxu1 %v7347_v44  ;;  %v7313_v38 = vld [vmem:[#allocation6 + $0x238] sm:$0xff]  ;;  %v7306_v44 = vld [vmem:[#allocation6 + $0x200] sm:$0xff] }
0x162c   :  { %7481 = vmatprep.subr.mxu0 %v7353_v43  ;;  %7413 = vmatpush2.msra.mxu1 %v7346_v10  ;;  %v7312_v43 = vld [vmem:[#allocation6 + $0x230] sm:$0xff]  ;;  %v7598_v10 = vld [vmem:[#allocation8 + $0x1e8] sm:$0xff] }
0x162d   :  { %7482 = vmatpush2.msra.mxu0 %v7352_v22  ;;  %7414 = vmatprep.subr.mxu1 %v7343_v2  ;;  %v7309_v22 = vld [vmem:[#allocation6 + $0x218] sm:$0xff] }
0x162e   :  { %7483 = vmatprep.subr.mxu0 %v7349_v47  ;;  %7415 = vmatpush2.msra.mxu1 %v7342_v13  ;;  %v7308_v47 = vld [vmem:[#allocation6 + $0x210] sm:$0xff] }
0x162f   :  { %7484 = vmatpush2.msra.mxu0 %v7348_v37  ;;  %7416 = vmatprep.subr.mxu1 %v7339_v54  ;;  %v7600_v37 = vld [vmem:[#allocation8 + $0x1f8] sm:$0xff]  ;;  %v138_v54 = vpop.permute.xlu1 %137 }
0x1630   :  { %7485 = vmatprep.subr.mxu0 %v7345_v4  ;;  %7417 = vmatpush2.msra.mxu1 %v7338_v45  ;;  %v9533_v4 = vld [vmem:[%s9594_s9] ss:$0 sm:$0xff]  ;;  %v190_v45 = vmul.f32 %v8979_v19, %v138_v54  ;;  %s8874_s9 = smov [#allocation11]  }
0x1631   :  { %7486 = vmatpush2.msra.mxu0 %v7344_v14  ;;  %7418 = vmatprep.subr.mxu1 %v7335_v57  ;;  %v192_v57 = vmul.f32 %v8985_v21, %v138_v54  ;;  %s7925_s24 = sshll.u32 %s8874_s9, 4  ;;  %s7926_s24 = int_to_ptr.vmem [resolvable:$true] %s7925_s24 }
0x1632   :  { %7487 = vmatprep.subr.mxu0 %v7341_v58  ;;  %7419 = vmatpush2.msra.mxu1 %v7334_v24  ;;  %v189_v58 = vmul.f32 %v8976_v18, %v138_v54  ;;  %s8834_s25 = scalar_lea.vmem %s7926_s24, 256  ;;  %p8839_p7 = scmp.lt.s32.totalorder %s7926_s24, %s7926_s24 }
0x1633   :  { %7488 = vmatpush2.msra.mxu0 %v7340_v55  ;;  %7420 = vmatprep.subr.mxu1 %v7331_v61  ;;  %v191_v55 = vmul.f32 %v8982_v20, %v138_v54  ;;  %v7582_v54 = vld [vmem:[#allocation8 + $0x168] sm:$0xff]  ;;  %p8835_p6 = scmp.ne.s32.totalorder %s7926_s24, %s8834_s25  ;;  %p8840_p8 = scmp.lt.s32.totalorder %s8834_s25, %s8834_s25 }
0x1634   :  { %7489 = vmatprep.subr.mxu0 %v7337_v33  ;;  %7421 = vmatpush2.msra.mxu1 %v7330_v16  ;;  %v7122_v33 = vpop.f32.mrf.mxu1  ;;  %v243_v24 = vadd.f32 %v8991_v25, %v189_v58  ;;  %v7584_v58 = vld [vmem:[#allocation8 + $0x178] sm:$0xff] }
0x1635   :  { %7490 = vmatpush2.msra.mxu0 %v7336_v35  ;;  %7422 = vmatprep.subr.mxu1 %v7327_v7  ;;  %v244_v35 = vadd.f32 %v8994_v26, %v190_v45  ;;  %v245_v61 = vadd.f32 %v8997_v27, %v191_v55  ;;  %v7581_v45 = vld [vmem:[#allocation8 + $0x160] sm:$0xff]  ;;  %v7583_v55 = vld [vmem:[#allocation8 + $0x170] sm:$0xff]  ;;  %p8841_p9 = por %p8840_p8, %p8839_p7 }
0x1636   :  { %7491 = vmatprep.subr.mxu0 %v7333_v3  ;;  %7423 = vmatpush2.msra.mxu1 %v7326_v1  ;;  %v246_v3 = vadd.f32 %v9000_v28, %v192_v57  ;;  %v7124_v16 = vpop.f32.mrf.mxu1  ;;  %v7578_v57 = vld [vmem:[#allocation8 + $0x148] sm:$0xff] }
0x1637   :  { %7492 = vmatpush2.msra.mxu0 %v7332_v46  ;;  %7424 = vmatprep.subr.mxu1 %v7323_v5  ;;  %v398_v46 = vcombine.low %v243_v24, %v244_v35  ;;  %v7202_v18 = vcombine.low %v7122_v33, %v7124_v16  ;;  %v7580_v33 = vld [vmem:[#allocation8 + $0x158] sm:$0xff]  ;;  %v7577_v24 = vld [vmem:[#allocation8 + $0x140] sm:$0xff]  ;;  %v7579_v35 = vld [vmem:[#allocation8 + $0x150] sm:$0xff]  ;;  %p8842_p10 = pnand %p8841_p9, %p8835_p6 }
0x1638   :  { %7493 = vmatprep.subr.mxu0 %v7329_v8  ;;  %7425 = vmatpush2.msra.mxu1 %v7322_v31  ;;  %v399_v7 = vcombine.low %v245_v61, %v246_v3  ;;  %v7574_v61 = vld [vmem:[#allocation8 + $0x128] sm:$0xff]  ;;  %v7576_v3 = vld [vmem:[#allocation8 + $0x138] sm:$0xff]  ;;  %v7573_v16 = vld [vmem:[#allocation8 + $0x120] sm:$0xff] }
0x1639   :  { %7494 = vmatpush2.msra.mxu0 %v7328_v6  ;;  %7426 = vmatprep.subr.mxu1 %v7319_v63  ;;  %v406_v19 = vrot.slane %v398_v46, %v9010_v39  ;;  %v7210_v6 = vrot.slane %v7202_v18, %v9010_v39  ;;  %v7575_v46 = vld [vmem:[#allocation8 + $0x130] sm:$0xff]  ;;  %v7569_v18 = vld [vmem:[#allocation8 + $0x100] sm:$0xff] }
0x163a   :  { %7495 = vmatprep.subr.mxu0 %v7325_v48  ;;  %7427 = vmatpush2.msra.mxu1 %v7318_v56  ;;  %v413_v20 = vrot.slane %v399_v7, %v9010_v39  ;;  %v7570_v7 = vld [vmem:[#allocation8 + $0x108] sm:$0xff] }
0x163b   :  { %7496 = vmatpush2.msra.mxu0 %v7324_v12  ;;  %7428 = vmatprep.subr.mxu1 %v7315_v30 }
0x163c   :  { %7497 = vmatprep.subr.mxu0 %v7321_v9  ;;  %7429 = vmatpush2.msra.mxu1 %v7314_v17  ;;  %v414_v26 = vcombine.low %v406_v19, %v413_v20  ;;  %v7566_v19 = vld [vmem:[#allocation8 + $0xe8] sm:$0xff]  ;;  %v7568_v20 = vld [vmem:[#allocation8 + $0xf8] sm:$0xff] }
0x163d   :  { %7498 = vmatpush2.msra.mxu0 %v7320_v23  ;;  %7430 = vmatprep.subr.mxu1 %v7311_v36 }
0x163e   :  { %7499 = vmatprep.subr.mxu0 %v7317_v32  ;;  %7431 = vmatpush2.msra.mxu1 %v7310_v11  ;;  %v7599_v11 = vld [vmem:[#allocation8 + $0x1f0] sm:$0xff] }
0x163f   :  { %7500 = vmatpush2.msra.mxu0 %v7316_v60  ;;  %7432 = vmatprep.subr.mxu1 %v7307_v40  ;;  %v7596_v40 = vld [vmem:[#allocation8 + $0x1d8] sm:$0xff] }
0x1640   :  { %7501 = vmatprep.subr.mxu0 %v7313_v38  ;;  %7433 = vmatpush2.msra.mxu1 %v7306_v44  ;;  %v7597_v38 = vld [vmem:[#allocation8 + $0x1e0] sm:$0xff]  ;;  %v7595_v44 = vld [vmem:[#allocation8 + $0x1d0] sm:$0xff] }
0x1641   :  { %7502 = vmatpush2.msra.mxu0 %v7312_v43  ;;  %7665 = vmatprep.subr.mxu1 %v7598_v10  ;;  %v7594_v43 = vld [vmem:[#allocation8 + $0x1c8] sm:$0xff]  ;;  %v7589_v10 = vld [vmem:[#allocation8 + $0x1a0] sm:$0xff] }
0x1642   :  { %7503 = vmatprep.subr.mxu0 %v7309_v22  ;;  %v7593_v22 = vld [vmem:[#allocation8 + $0x1c0] sm:$0xff] }
0x1643   :  { %7504 = vmatpush2.msra.mxu0 %v7308_v47  ;;  %v7592_v47 = vld [vmem:[#allocation8 + $0x1b8] sm:$0xff] }
0x1644   :  { %7736 = vmatprep.subr.mxu0 %v7600_v37  ;;  %v7591_v37 = vld [vmem:[#allocation8 + $0x1b0] sm:$0xff] }
0x16a4   :  { %v6984_v2 = vpop.f32.mrf.mxu0 }
0x16a5   :  { %v6985_v13 = vadd.f32 %v9533_v4, %v6984_v2  ;;  %v7586_v2 = vld [vmem:[#allocation8 + $0x188] sm:$0xff] }
0x16a6   :  { %v8376_v14 = vpop.f32.mrf.mxu0 }
0x16a7   :  { %6989 = vst [vmem:[#allocation11 + $0xc] sm:$0x3] %v6985_v13  ;;  %v7588_v13 = vld [vmem:[#allocation8 + $0x198] sm:$0xff]  ;;  %v7587_v14 = vld [vmem:[#allocation8 + $0x190] sm:$0xff] }
0x16c4   :  { %v7193_v8 = vpop.f32.mrf.mxu0 }
0x16c6   :  { %v7195_v1 = vpop.f32.mrf.mxu0 }
0x16c7   :  { %v7203_v21 = vcombine.low %v7193_v8, %v7195_v1  ;;  %v7572_v8 = vld [vmem:[#allocation8 + $0x118] sm:$0xff]  ;;  %v7571_v1 = vld [vmem:[#allocation8 + $0x110] sm:$0xff] }
0x16c9   :  { %v7217_v25 = vrot.slane %v7203_v21, %v9010_v39  ;;  %v7565_v21 = vld [vmem:[#allocation8 + $0xe0] sm:$0xff] }
0x16cb   :  { %v7218_v5 = vcombine.low %v7210_v6, %v7217_v25  ;;  %v7567_v6 = vld [vmem:[#allocation8 + $0xf0] sm:$0xff]  ;;  %v7562_v25 = vld [vmem:[#allocation8 + $0xc8] sm:$0xff] }
0x16cd   :  { %v7220_v27 = vadd.f32 %v7218_v5, %v414_v26  ;;  %v7564_v26 = vld [vmem:[#allocation8 + $0xd8] sm:$0xff]  ;;  %v7561_v5 = vld [vmem:[#allocation8 + $0xc0] sm:$0xff] }
0x16cf   :  { %v7989_v48 = vmul.f32 -1.442695, %v7220_v27  ;;  %v7228_v12 = vrot.slane %v7220_v27, 6  ;;  %v7563_v27 = vld [vmem:[#allocation8 + $0xd0] sm:$0xff] }
0x16d1   :  { %8708 = vpow2.f32 %v7989_v48  ;;  %v7558_v48 = vld [vmem:[#allocation8 + $0xa8] sm:$0xff] }
0x16de   :  { %v8709_v28 = vpop.eup %8708 }
0x16df   :  { %v7224_v31 = vadd.f32 1.0, %v8709_v28  ;;  %v7560_v28 = vld [vmem:[#allocation8 + $0xb8] sm:$0xff] }
0x16e1   :  { %8710 = vrcp.f32 %v7224_v31  ;;  %v7557_v31 = vld [vmem:[#allocation8 + $0xa0] sm:$0xff] }
0x16e2   :  { %8712 = vtanh.f32 %v7228_v12  ;;  %v7559_v12 = vld [vmem:[#allocation8 + $0xb0] sm:$0xff] }
0x16ee   :  { %v8711_v63 = vpop.eup %8710 }
0x16ef   :  { %v7232_v9 = vrot.slane %v8711_v63, 2  ;;  %v8713_v56 = vpop.eup %8712  ;;  %v7238_v17 = vrot.slane %v8711_v63, 4 }
0x16f0   :  { %v7235_v23 = vmul.f32 %v8713_v56, %v8711_v63  ;;  %v7554_v63 = vld [vmem:[#allocation8 + $0x88] sm:$0xff]  ;;  %v7553_v56 = vld [vmem:[#allocation8 + $0x80] sm:$0xff] }
0x16f1   :  { %v7234_v30 = vmul.f32 %v7232_v9, %v9476_v15  ;;  %v7590_v15 = vld [vmem:[#allocation8 + $0x1a8] sm:$0xff]  ;;  %v7556_v9 = vld [vmem:[#allocation8 + $0x98] sm:$0xff] }
0x16f3   :  { %v7236_v32 = vadd.f32 %v7235_v23, %v7234_v30  ;;  %v7555_v23 = vld [vmem:[#allocation8 + $0x90] sm:$0xff]  ;;  %v7550_v30 = vld [vmem:[#allocation8 + $0x68] sm:$0xff] }
0x16f5   :  { %8714 = vtanh.f32 %v7236_v32  ;;  %v7552_v32 = vld [vmem:[#allocation8 + $0x78] sm:$0xff] }
0x1702   :  { %v8715_v39 = vpop.eup %8714 }
0x1703   :  { %v7240_v60 = vmul.f32 %v8715_v39, %v7238_v17  ;;  %v7549_v17 = vld [vmem:[#allocation8 + $0x60] sm:$0xff]  ;;  %v7551_v39 = vld [vmem:[#allocation8 + $0x70] sm:$0xff] }
0x1705   :  { %v7241_v36 = vmax.f32 %v7240_v60, 0.0  ;;  %v7546_v60 = vld [vmem:[#allocation8 + $0x48] sm:$0xff] }
0x1707   :  { %7435 = vmatmul.mubr.f32.vlgmr.msra.gmra.mxu1 %v7241_v36  ;;  %7506 = vmatmul.mubr.f32.vlgmr.msra.gmra.mxu0 %v7241_v36  ;;  %v7548_v36 = vld [vmem:[#allocation8 + $0x58] sm:$0xff] }
0x1708   :  { %7729 = vmatprep.mubr.f32.mxu1 %v9524_v29  ;;  %7800 = vmatprep.mubr.f32.mxu0 %v9524_v29  ;;  %v7585_v29 = vld [vmem:[#allocation8 + $0x180] sm:$0xff] }
0x1709   :  { %7666 = vmatpush1.msra.mxu1 %v7597_v38  ;;  %7737 = vmatpush1.msra.mxu0 %v7599_v11  ;;  %v7545_v38 = vld [vmem:[#allocation8 + $0x40] sm:$0xff]  ;;  %v7547_v11 = vld [vmem:[#allocation8 + $0x50] sm:$0xff] }
0x170a   :  { %7667 = vmatprep.subr.mxu1 %v7594_v43  ;;  %7738 = vmatprep.subr.mxu0 %v7596_v40  ;;  %v7542_v43 = vld [vmem:[#allocation8 + $0x28] sm:$0xff]  ;;  %v7544_v40 = vld [vmem:[#allocation8 + $0x38] sm:$0xff] }
0x170b   :  { %7668 = vmatpush1.msra.mxu1 %v7593_v22  ;;  %7739 = vmatpush1.msra.mxu0 %v7595_v44  ;;  %v7541_v22 = vld [vmem:[#allocation8 + $0x20] sm:$0xff]  ;;  %v7543_v44 = vld [vmem:[#allocation8 + $0x30] sm:$0xff] }
0x170c   :  { %7669 = vmatprep.subr.mxu1 %v7590_v15  ;;  %7740 = vmatprep.subr.mxu0 %v7592_v47  ;;  %v7538_v15 = vld [vmem:[#allocation8 + $0x8] sm:$0xff]  ;;  %v7540_v47 = vld [vmem:[#allocation8 + $0x18] sm:$0xff] }
0x170d   :  { %7670 = vmatpush1.msra.mxu1 %v7589_v10  ;;  %7741 = vmatpush1.msra.mxu0 %v7591_v37  ;;  %v7537_v10 = vld [vmem:[#allocation8] sm:$0xff]  ;;  %v7539_v37 = vld [vmem:[#allocation8 + $0x10] sm:$0xff] }
0x170e   :  { %7671 = vmatprep.subr.mxu1 %v7586_v2  ;;  %7742 = vmatprep.subr.mxu0 %v7588_v13  ;;  %v7662_v2 = vld [vmem:[#allocation8 + $0x3e8] sm:$0xff]  ;;  %v7664_v13 = vld [vmem:[#allocation8 + $0x3f8] sm:$0xff] }
0x170f   :  { %7672 = vmatpush1.msra.mxu1 %v7585_v29  ;;  %7743 = vmatpush1.msra.mxu0 %v7587_v14  ;;  %v7661_v29 = vld [vmem:[#allocation8 + $0x3e0] sm:$0xff]  ;;  %v7663_v14 = vld [vmem:[#allocation8 + $0x3f0] sm:$0xff] }
0x1710   :  { %7673 = vmatprep.subr.mxu1 %v7582_v54  ;;  %7744 = vmatprep.subr.mxu0 %v7584_v58  ;;  %v7658_v54 = vld [vmem:[#allocation8 + $0x3c8] sm:$0xff]  ;;  %v7660_v58 = vld [vmem:[#allocation8 + $0x3d8] sm:$0xff] }
0x1711   :  { %7674 = vmatpush1.msra.mxu1 %v7581_v45  ;;  %7745 = vmatpush1.msra.mxu0 %v7583_v55  ;;  %v7657_v45 = vld [vmem:[#allocation8 + $0x3c0] sm:$0xff]  ;;  %v7659_v55 = vld [vmem:[#allocation8 + $0x3d0] sm:$0xff] }
0x1712   :  { %7675 = vmatprep.subr.mxu1 %v7578_v57  ;;  %7746 = vmatprep.subr.mxu0 %v7580_v33  ;;  %v7654_v57 = vld [vmem:[#allocation8 + $0x3a8] sm:$0xff]  ;;  %v7656_v33 = vld [vmem:[#allocation8 + $0x3b8] sm:$0xff] }
0x1713   :  { %7676 = vmatpush1.msra.mxu1 %v7577_v24  ;;  %7747 = vmatpush1.msra.mxu0 %v7579_v35  ;;  %v7653_v24 = vld [vmem:[#allocation8 + $0x3a0] sm:$0xff]  ;;  %v7655_v35 = vld [vmem:[#allocation8 + $0x3b0] sm:$0xff] }
0x1714   :  { %7677 = vmatprep.subr.mxu1 %v7574_v61  ;;  %7748 = vmatprep.subr.mxu0 %v7576_v3  ;;  %v7650_v61 = vld [vmem:[#allocation8 + $0x388] sm:$0xff]  ;;  %v7652_v3 = vld [vmem:[#allocation8 + $0x398] sm:$0xff] }
0x1715   :  { %7678 = vmatpush1.msra.mxu1 %v7573_v16  ;;  %7749 = vmatpush1.msra.mxu0 %v7575_v46  ;;  %v7649_v16 = vld [vmem:[#allocation8 + $0x380] sm:$0xff]  ;;  %v7651_v46 = vld [vmem:[#allocation8 + $0x390] sm:$0xff] }
0x1716   :  { %7679 = vmatprep.subr.mxu1 %v7570_v7  ;;  %7750 = vmatprep.subr.mxu0 %v7572_v8  ;;  %v7646_v7 = vld [vmem:[#allocation8 + $0x368] sm:$0xff]  ;;  %v7648_v8 = vld [vmem:[#allocation8 + $0x378] sm:$0xff] }
0x1717   :  { %7680 = vmatpush1.msra.mxu1 %v7569_v18  ;;  %7751 = vmatpush1.msra.mxu0 %v7571_v1  ;;  %v7645_v18 = vld [vmem:[#allocation8 + $0x360] sm:$0xff]  ;;  %v7647_v1 = vld [vmem:[#allocation8 + $0x370] sm:$0xff] }
0x1718   :  { %7681 = vmatprep.subr.mxu1 %v7566_v19  ;;  %7752 = vmatprep.subr.mxu0 %v7568_v20  ;;  %v7642_v19 = vld [vmem:[#allocation8 + $0x348] sm:$0xff]  ;;  %v7644_v20 = vld [vmem:[#allocation8 + $0x358] sm:$0xff] }
0x1719   :  { %7682 = vmatpush1.msra.mxu1 %v7565_v21  ;;  %7753 = vmatpush1.msra.mxu0 %v7567_v6  ;;  %v7641_v21 = vld [vmem:[#allocation8 + $0x340] sm:$0xff]  ;;  %v7643_v6 = vld [vmem:[#allocation8 + $0x350] sm:$0xff] }
0x171a   :  { %7683 = vmatprep.subr.mxu1 %v7562_v25  ;;  %7754 = vmatprep.subr.mxu0 %v7564_v26  ;;  %v7638_v25 = vld [vmem:[#allocation8 + $0x328] sm:$0xff]  ;;  %v7640_v26 = vld [vmem:[#allocation8 + $0x338] sm:$0xff] }
0x171b   :  { %7684 = vmatpush1.msra.mxu1 %v7561_v5  ;;  %7755 = vmatpush1.msra.mxu0 %v7563_v27  ;;  %v7637_v5 = vld [vmem:[#allocation8 + $0x320] sm:$0xff]  ;;  %v7639_v27 = vld [vmem:[#allocation8 + $0x330] sm:$0xff] }
0x171c   :  { %7685 = vmatprep.subr.mxu1 %v7558_v48  ;;  %7756 = vmatprep.subr.mxu0 %v7560_v28  ;;  %v7634_v48 = vld [vmem:[#allocation8 + $0x308] sm:$0xff]  ;;  %v7636_v28 = vld [vmem:[#allocation8 + $0x318] sm:$0xff] }
0x171d   :  { %7686 = vmatpush1.msra.mxu1 %v7557_v31  ;;  %7757 = vmatpush1.msra.mxu0 %v7559_v12  ;;  %v7633_v31 = vld [vmem:[#allocation8 + $0x300] sm:$0xff]  ;;  %v7635_v12 = vld [vmem:[#allocation8 + $0x310] sm:$0xff] }
0x171e   :  { %7687 = vmatprep.subr.mxu1 %v7554_v63  ;;  %7758 = vmatprep.subr.mxu0 %v7556_v9  ;;  %v7630_v63 = vld [vmem:[#allocation8 + $0x2e8] sm:$0xff]  ;;  %v7632_v9 = vld [vmem:[#allocation8 + $0x2f8] sm:$0xff] }
0x171f   :  { %7688 = vmatpush1.msra.mxu1 %v7553_v56  ;;  %7759 = vmatpush1.msra.mxu0 %v7555_v23  ;;  %v7629_v56 = vld [vmem:[#allocation8 + $0x2e0] sm:$0xff]  ;;  %v7631_v23 = vld [vmem:[#allocation8 + $0x2f0] sm:$0xff] }
0x1720   :  { %7689 = vmatprep.subr.mxu1 %v7550_v30  ;;  %7760 = vmatprep.subr.mxu0 %v7552_v32  ;;  %v7626_v30 = vld [vmem:[#allocation8 + $0x2c8] sm:$0xff]  ;;  %v7628_v32 = vld [vmem:[#allocation8 + $0x2d8] sm:$0xff] }
0x1721   :  { %7690 = vmatpush1.msra.mxu1 %v7549_v17  ;;  %7761 = vmatpush1.msra.mxu0 %v7551_v39  ;;  %v7625_v17 = vld [vmem:[#allocation8 + $0x2c0] sm:$0xff]  ;;  %v7627_v39 = vld [vmem:[#allocation8 + $0x2d0] sm:$0xff] }
0x1722   :  { %7691 = vmatprep.subr.mxu1 %v7546_v60  ;;  %7762 = vmatprep.subr.mxu0 %v7548_v36  ;;  %v7622_v60 = vld [vmem:[#allocation8 + $0x2a8] sm:$0xff]  ;;  %v7624_v36 = vld [vmem:[#allocation8 + $0x2b8] sm:$0xff] }
0x1723   :  { %7692 = vmatpush1.msra.mxu1 %v7545_v38  ;;  %7763 = vmatpush1.msra.mxu0 %v7547_v11  ;;  %v7621_v38 = vld [vmem:[#allocation8 + $0x2a0] sm:$0xff]  ;;  %v7623_v11 = vld [vmem:[#allocation8 + $0x2b0] sm:$0xff] }
0x1724   :  { %7693 = vmatprep.subr.mxu1 %v7542_v43  ;;  %7764 = vmatprep.subr.mxu0 %v7544_v40  ;;  %v7618_v43 = vld [vmem:[#allocation8 + $0x288] sm:$0xff]  ;;  %v7620_v40 = vld [vmem:[#allocation8 + $0x298] sm:$0xff] }
0x1725   :  { %7694 = vmatpush1.msra.mxu1 %v7541_v22  ;;  %7765 = vmatpush1.msra.mxu0 %v7543_v44  ;;  %v7617_v22 = vld [vmem:[#allocation8 + $0x280] sm:$0xff]  ;;  %v7619_v44 = vld [vmem:[#allocation8 + $0x290] sm:$0xff] }
0x1726   :  { %7695 = vmatprep.subr.mxu1 %v7538_v15  ;;  %7766 = vmatprep.subr.mxu0 %v7540_v47  ;;  %v7614_v15 = vld [vmem:[#allocation8 + $0x268] sm:$0xff]  ;;  %v7616_v47 = vld [vmem:[#allocation8 + $0x278] sm:$0xff] }
0x1727   :  { %7696 = vmatpush1.msra.mxu1 %v7537_v10  ;;  %7767 = vmatpush1.msra.mxu0 %v7539_v37  ;;  %v7613_v10 = vld [vmem:[#allocation8 + $0x260] sm:$0xff]  ;;  %v7615_v37 = vld [vmem:[#allocation8 + $0x270] sm:$0xff] }
0x1728   :  { %7697 = vmatprep.subr.mxu1 %v7662_v2  ;;  %7768 = vmatprep.subr.mxu0 %v7664_v13  ;;  %v7610_v2 = vld [vmem:[#allocation8 + $0x248] sm:$0xff]  ;;  %v7612_v13 = vld [vmem:[#allocation8 + $0x258] sm:$0xff] }
0x1729   :  { %7698 = vmatpush2.msra.mxu1 %v7661_v29  ;;  %7769 = vmatpush2.msra.mxu0 %v7663_v14  ;;  %v7609_v29 = vld [vmem:[#allocation8 + $0x240] sm:$0xff]  ;;  %v7611_v14 = vld [vmem:[#allocation8 + $0x250] sm:$0xff] }
0x172a   :  { %7699 = vmatprep.subr.mxu1 %v7658_v54  ;;  %7770 = vmatprep.subr.mxu0 %v7660_v58  ;;  %v7606_v54 = vld [vmem:[#allocation8 + $0x228] sm:$0xff]  ;;  %v7608_v58 = vld [vmem:[#allocation8 + $0x238] sm:$0xff] }
0x172b   :  { %7700 = vmatpush2.msra.mxu1 %v7657_v45  ;;  %7771 = vmatpush2.msra.mxu0 %v7659_v55  ;;  %v7605_v45 = vld [vmem:[#allocation8 + $0x220] sm:$0xff]  ;;  %v7607_v55 = vld [vmem:[#allocation8 + $0x230] sm:$0xff] }
0x172c   :  { %7701 = vmatprep.subr.mxu1 %v7654_v57  ;;  %7772 = vmatprep.subr.mxu0 %v7656_v33  ;;  %v7602_v57 = vld [vmem:[#allocation8 + $0x208] sm:$0xff]  ;;  %v7604_v33 = vld [vmem:[#allocation8 + $0x218] sm:$0xff] }
0x172d   :  { %7702 = vmatpush2.msra.mxu1 %v7653_v24  ;;  %7773 = vmatpush2.msra.mxu0 %v7655_v35  ;;  %v7601_v24 = vld [vmem:[#allocation8 + $0x200] sm:$0xff]  ;;  %v7603_v35 = vld [vmem:[#allocation8 + $0x210] sm:$0xff] }
0x172e   :  { %7703 = vmatprep.subr.mxu1 %v7650_v61  ;;  %7774 = vmatprep.subr.mxu0 %v7652_v3 }
0x172f   :  { %7704 = vmatpush2.msra.mxu1 %v7649_v16  ;;  %7775 = vmatpush2.msra.mxu0 %v7651_v46 }
0x1730   :  { %7705 = vmatprep.subr.mxu1 %v7646_v7  ;;  %7776 = vmatprep.subr.mxu0 %v7648_v8 }
0x1731   :  { %7706 = vmatpush2.msra.mxu1 %v7645_v18  ;;  %7777 = vmatpush2.msra.mxu0 %v7647_v1 }
0x1732   :  { %7707 = vmatprep.subr.mxu1 %v7642_v19  ;;  %7778 = vmatprep.subr.mxu0 %v7644_v20 }
0x1733   :  { %7708 = vmatpush2.msra.mxu1 %v7641_v21  ;;  %7779 = vmatpush2.msra.mxu0 %v7643_v6 }
0x1734   :  { %7709 = vmatprep.subr.mxu1 %v7638_v25  ;;  %7780 = vmatprep.subr.mxu0 %v7640_v26 }
0x1735   :  { %7710 = vmatpush2.msra.mxu1 %v7637_v5  ;;  %7781 = vmatpush2.msra.mxu0 %v7639_v27 }
0x1736   :  { %7711 = vmatprep.subr.mxu1 %v7634_v48  ;;  %7782 = vmatprep.subr.mxu0 %v7636_v28 }
0x1737   :  { %7712 = vmatpush2.msra.mxu1 %v7633_v31  ;;  %7783 = vmatpush2.msra.mxu0 %v7635_v12 }
0x1738   :  { %7713 = vmatprep.subr.mxu1 %v7630_v63  ;;  %7784 = vmatprep.subr.mxu0 %v7632_v9 }
0x1739   :  { %7714 = vmatpush2.msra.mxu1 %v7629_v56  ;;  %7785 = vmatpush2.msra.mxu0 %v7631_v23  ;;  %v7847_v23 = vld [vmem:[#allocation9 + $0x78] sm:$0xff] }
0x173a   :  { %7715 = vmatprep.subr.mxu1 %v7626_v30  ;;  %7786 = vmatprep.subr.mxu0 %v7628_v32  ;;  %v7846_v30 = vld [vmem:[#allocation9 + $0x70] sm:$0xff]  ;;  %v7844_v32 = vld [vmem:[#allocation9 + $0x60] sm:$0xff] }
0x173b   :  { %7716 = vmatpush2.msra.mxu1 %v7625_v17  ;;  %7787 = vmatpush2.msra.mxu0 %v7627_v39  ;;  %v7843_v17 = vld [vmem:[#allocation9 + $0x58] sm:$0xff]  ;;  %v7842_v39 = vld [vmem:[#allocation9 + $0x50] sm:$0xff] }
0x173c   :  { %7717 = vmatprep.subr.mxu1 %v7622_v60  ;;  %7788 = vmatprep.subr.mxu0 %v7624_v36  ;;  %v7841_v60 = vld [vmem:[#allocation9 + $0x48] sm:$0xff]  ;;  %v7840_v36 = vld [vmem:[#allocation9 + $0x40] sm:$0xff] }
0x173d   :  { %7718 = vmatpush2.msra.mxu1 %v7621_v38  ;;  %7789 = vmatpush2.msra.mxu0 %v7623_v11  ;;  %v7839_v38 = vld [vmem:[#allocation9 + $0x38] sm:$0xff]  ;;  %v7838_v11 = vld [vmem:[#allocation9 + $0x30] sm:$0xff] }
0x173e   :  { %7719 = vmatprep.subr.mxu1 %v7618_v43  ;;  %7790 = vmatprep.subr.mxu0 %v7620_v40  ;;  %v7837_v43 = vld [vmem:[#allocation9 + $0x28] sm:$0xff]  ;;  %v7836_v40 = vld [vmem:[#allocation9 + $0x20] sm:$0xff] }
0x173f   :  { %7720 = vmatpush2.msra.mxu1 %v7617_v22  ;;  %7791 = vmatpush2.msra.mxu0 %v7619_v44  ;;  %v7835_v22 = vld [vmem:[#allocation9 + $0x18] sm:$0xff]  ;;  %v7834_v44 = vld [vmem:[#allocation9 + $0x10] sm:$0xff] }
0x1740   :  { %7721 = vmatprep.subr.mxu1 %v7614_v15  ;;  %7792 = vmatprep.subr.mxu0 %v7616_v47  ;;  %v7833_v15 = vld [vmem:[#allocation9 + $0x8] sm:$0xff]  ;;  %v7832_v47 = vld [vmem:[#allocation9] sm:$0xff] }
0x1741   :  { %7722 = vmatpush2.msra.mxu1 %v7613_v10  ;;  %7793 = vmatpush2.msra.mxu0 %v7615_v37 }
0x1742   :  { %7723 = vmatprep.subr.mxu1 %v7610_v2  ;;  %7794 = vmatprep.subr.mxu0 %v7612_v13 }
0x1743   :  { %7724 = vmatpush2.msra.mxu1 %v7609_v29  ;;  %7795 = vmatpush2.msra.mxu0 %v7611_v14 }
0x1744   :  { %7725 = vmatprep.subr.mxu1 %v7606_v54  ;;  %7796 = vmatprep.subr.mxu0 %v7608_v58 }
0x1745   :  { %7726 = vmatpush2.msra.mxu1 %v7605_v45  ;;  %7797 = vmatpush2.msra.mxu0 %v7607_v55 }
0x1746   :  { %7727 = vmatprep.subr.mxu1 %v7602_v57  ;;  %7798 = vmatprep.subr.mxu0 %v7604_v33 }
0x1747   :  { %7728 = vmatpush2.msra.mxu1 %v7601_v24  ;;  %7799 = vmatpush2.msra.mxu0 %v7603_v35 }
0x1748   :  { %8377 = vmatprep.subr.mxu1 %v8870_v0 }
0x17c7   :  { %v7436_v61 = vpop.f32.mrf.mxu1  ;;  %v7507_v18 = vpop.f32.mrf.mxu0 }
0x17c8   :  { %v7437_v3 = vadd.f32 %v7436_v61, %v9029_v51  ;;  %v7508_v1 = vadd.f32 %v7507_v18, %v9037_v59 }
0x17c9   :  { %v7438_v16 = vpop.f32.mrf.mxu1  ;;  %v7509_v19 = vpop.f32.mrf.mxu0 }
0x17ca   :  { %v7990_v46 = vmul.f32 -1.442695, %v7437_v3  ;;  %v7439_v7 = vadd.f32 %v7438_v16, %v9032_v52  ;;  %v7992_v20 = vmul.f32 -1.442695, %v7508_v1  ;;  %v7510_v6 = vadd.f32 %v7509_v19, %v9041_v62 }
0x17cc   :  { %8716 = vpow2.f32 %v7990_v46  ;;  %v7991_v8 = vmul.f32 -1.442695, %v7439_v7 }
0x17ce   :  { %8718 = vpow2.f32 %v7991_v8 }
0x17cf   :  { %8720 = vpow2.f32 %v7992_v20 }
0x17d9   :  { %v8717_v21 = vpop.eup %8716 }
0x17da   :  { %v7521_v25 = vadd.f32 1.0, %v8717_v21 }
0x17db   :  { %v8719_v26 = vpop.eup %8718 }
0x17dc   :  { %8722 = vrcp.f32 %v7521_v25  ;;  %v7522_v51 = vadd.f32 1.0, %v8719_v26  ;;  %v8721_v5 = vpop.eup %8720 }
0x17dd   :  { %8724 = vtanh.f32 %v7510_v6  ;;  %v7523_v28 = vadd.f32 1.0, %v8721_v5 }
0x17de   :  { %8726 = vrcp.f32 %v7522_v51 }
0x17df   :  { %8728 = vrcp.f32 %v7523_v28 }
0x17e9   :  { %v8723_v52 = vpop.eup %8722 }
0x17ea   :  { %v8725_v27 = vpop.eup %8724 }
0x17eb   :  { %v8727_v48 = vpop.eup %8726  ;;  %v7532_v59 = vmul.f32 %v8725_v27, %v8723_v52 }
0x17ec   :  { %v7531_v31 = vmul.f32 %v8727_v48, %v9490_v34  ;;  %v8729_v63 = vpop.eup %8728  ;;  %v7845_v34 = vld [vmem:[#allocation9 + $0x68] sm:$0xff] }
0x17ee   :  { %v7533_v12 = vadd.f32 %v7532_v59, %v7531_v31 }
0x17f0   :  { %8730 = vtanh.f32 %v7533_v12 }
0x17fd   :  { %v8731_v62 = vpop.eup %8730 }
0x17fe   :  { %v7535_v9 = vmul.f32 %v8731_v62, %v8729_v63 }
0x1800   :  { %v7536_v56 = vmax.f32 %v7535_v9, 0.0 }
0x1802   :  { %7730 = vmatmul.mubr.f32.vlgmr.msra.gmra.mxu1 %v7536_v56  ;;  %7801 = vmatmul.mubr.f32.vlgmr.msra.gmra.mxu0 %v7536_v56 }
0x1803   :  { %8409 = vmatprep.mubr.msk.f32.mxu1 %vm8873_vm0, %v8870_v0  ;;  %8378 = vmatpush3.msra.mxu1 %v7847_v23 }
0x1804   :  { %8379 = vmatprep.subr.mxu1 %v8870_v0 }
0x1805   :  { %8380 = vmatpush3.msra.mxu1 %v7846_v30 }
0x1806   :  { %8381 = vmatprep.subr.mxu1 %v8870_v0 }
0x1807   :  { %8382 = vmatpush3.msra.mxu1 %v7845_v34 }
0x1808   :  { %8383 = vmatprep.subr.mxu1 %v8870_v0 }
0x1809   :  { %8384 = vmatpush3.msra.mxu1 %v7844_v32 }
0x180a   :  { %8385 = vmatprep.subr.mxu1 %v8870_v0 }
0x180b   :  { %8386 = vmatpush3.msra.mxu1 %v7843_v17 }
0x180c   :  { %8387 = vmatprep.subr.mxu1 %v8870_v0 }
0x180d   :  { %8388 = vmatpush3.msra.mxu1 %v7842_v39 }
0x180e   :  { %8389 = vmatprep.subr.mxu1 %v8870_v0 }
0x180f   :  { %8390 = vmatpush3.msra.mxu1 %v7841_v60 }
0x1810   :  { %8391 = vmatprep.subr.mxu1 %v8870_v0 }
0x1811   :  { %8392 = vmatpush3.msra.mxu1 %v7840_v36 }
0x1812   :  { %8393 = vmatprep.subr.mxu1 %v8870_v0 }
0x1813   :  { %8394 = vmatpush3.msra.mxu1 %v7839_v38 }
0x1814   :  { %8395 = vmatprep.subr.mxu1 %v8870_v0 }
0x1815   :  { %8396 = vmatpush3.msra.mxu1 %v7838_v11 }
0x1816   :  { %8397 = vmatprep.subr.mxu1 %v8870_v0 }
0x1817   :  { %8398 = vmatpush3.msra.mxu1 %v7837_v43 }
0x1818   :  { %8399 = vmatprep.subr.mxu1 %v8870_v0 }
0x1819   :  { %8400 = vmatpush3.msra.mxu1 %v7836_v40 }
0x181a   :  { %8401 = vmatprep.subr.mxu1 %v8870_v0 }
0x181b   :  { %8402 = vmatpush3.msra.mxu1 %v7835_v22 }
0x181c   :  { %8403 = vmatprep.subr.mxu1 %v8870_v0 }
0x181d   :  { %8404 = vmatpush3.msra.mxu1 %v7834_v44 }
0x181e   :  { %8405 = vmatprep.subr.mxu1 %v8870_v0 }
0x181f   :  { %8406 = vmatpush3.msra.mxu1 %v7833_v15 }
0x1820   :  { %8407 = vmatprep.subr.mxu1 %v8870_v0 }
0x1821   :  { %8408 = vmatpush3.msra.mxu1 %v7832_v47 }
0x18c2   :  { %v7731_v10 = vpop.f32.mrf.mxu1  ;;  %v7802_v54 = vpop.f32.mrf.mxu0 }
0x18c3   :  { %v7732_v37 = vadd.f32 %v7731_v10, %v9074_v41  ;;  %v7803_v58 = vadd.f32 %v7802_v54, %v9082_v49 }
0x18c4   :  { %v7733_v2 = vpop.f32.mrf.mxu1  ;;  %v7804_v45 = vpop.f32.mrf.mxu0 }
0x18c5   :  { %v7993_v13 = vmul.f32 -1.442695, %v7732_v37  ;;  %v7734_v29 = vadd.f32 %v7733_v2, %v9077_v42  ;;  %v7995_v55 = vmul.f32 -1.442695, %v7803_v58  ;;  %v7805_v33 = vadd.f32 %v7804_v45, %v9086_v53 }
0x18c7   :  { %8732 = vpow2.f32 %v7993_v13  ;;  %v7994_v14 = vmul.f32 -1.442695, %v7734_v29 }
0x18c9   :  { %8734 = vpow2.f32 %v7994_v14 }
0x18ca   :  { %8736 = vpow2.f32 %v7995_v55 }
0x18d4   :  { %v8733_v57 = vpop.eup %8732 }
0x18d5   :  { %v7816_v0 = vadd.f32 1.0, %v8733_v57 }
0x18d6   :  { %v8735_v24 = vpop.eup %8734 }
0x18d7   :  { %8738 = vrcp.f32 %v7816_v0  ;;  %v7817_v41 = vadd.f32 1.0, %v8735_v24  ;;  %v8737_v35 = vpop.eup %8736 }
0x18d8   :  { %8740 = vtanh.f32 %v7805_v33  ;;  %v7818_v16 = vadd.f32 1.0, %v8737_v35 }
0x18d9   :  { %8742 = vrcp.f32 %v7817_v41 }
0x18da   :  { %8744 = vrcp.f32 %v7818_v16 }
0x18e4   :  { %v8739_v42 = vpop.eup %8738 }
0x18e5   :  { %v8741_v61 = vpop.eup %8740 }
0x18e6   :  { %v8743_v3 = vpop.eup %8742  ;;  %v7827_v49 = vmul.f32 %v8741_v61, %v8739_v42 }
0x18e7   :  { %v7826_v46 = vmul.f32 %v8743_v3, %v9521_v50  ;;  %v8745_v8 = vpop.eup %8744 }
0x18e9   :  { %v7828_v7 = vadd.f32 %v7827_v49, %v7826_v46 }
0x18eb   :  { %8746 = vtanh.f32 %v7828_v7 }
0x18f8   :  { %v8747_v53 = vpop.eup %8746 }
0x18f9   :  { %v7830_v18 = vmul.f32 %v8747_v53, %v8745_v8 }
0x18fb   :  { %v7831_v1 = vmax.f32 %v7830_v18, 0.0 }
0x18fd   :  { %8410 = vmatmul.mubr.f32.vlgmr.msra.gmra.mxu1 %v7831_v1 }
0x19bd   :  { %v7914_v19 = vpop.f32.mrf.mxu1 }
0x19be   :  { %v7915_v20 = vadd.f32 %v9533_v4, %v7914_v19 }
0x19bf   :  { %v8411_v21 = vpop.f32.mrf.mxu1 }
0x19c0   :  { %7919 = vst [vmem:[#allocation11 + $0xe] sm:$0x3] %v7915_v20 }
0x19c1   :  { %8845 = shalt.err (!%p8842_p10)
}
0x19c2   :  { %s8875_s1 = smov 2  }
0x19c3   :  { %7931 = dma.vmem_to_hbm [thread:$0]  %s7926_s24, 256, %s9595_s10, [#allocation5], %s8865_s19, %s8865_s19, %s8875_s1  }
0x19c4   :  { %8860 = dma.done.wait [#allocation5], 256  }
0x19c5   :  { %8861 = vsyncadd [#allocation5], 4294967040 }
0x19c6   :  { %7935 = vsyncpa [#allocation4], 1 }
0x19c7   :  { %7936 = vsyncpa [#allocation7], 1 }
0x19c8   :  { %7937 = vsyncpa [#allocation10], 1 }
0x19c9   :  { %7938 = vsyncpa [#allocation5], 1 }

</bundles_post_ra>
